<compile_context>
chip_gen: v7x
topology: tpu7x:2x2x1
jax: 0.10.0
libtpu: 0.0.40
codegen_flags: <defaults>
</compile_context>

<pallas_src>
import functools
import math

import jax
import jax.numpy as jnp
from jax.experimental import pallas as pl
from jax.experimental.pallas import tpu as pltpu


_VMEM_LIMIT = 64 * 1024 * 1024  # explicit scoped-VMEM budget (safe on v5e/v6e/v7x)


def _cparams(n_axes):
    return pltpu.CompilerParams(
        dimension_semantics=("parallel",) * n_axes,
        vmem_limit_bytes=_VMEM_LIMIT)


# ----------------------------------------------------------------------------
# Tiling helpers
# ----------------------------------------------------------------------------
def _row_block(m, target=256):
    """Largest row-block <= target that tiles m (multiple of 8), else full m."""
    if m <= target:
        return m
    for bm in (target, 128, 64, 32, 16, 8):
        if m % bm == 0:
            return bm
    return m


def _col_block(n, target=1024):
    """Largest 128-multiple column-block <= target that tiles n, else full n."""
    if n <= target:
        return n
    for bn in (1024, 512, 256, 128):
        if n % bn == 0:
            return bn
    return n


def _q_block(sq, target=256):
    if sq <= target:
        return sq
    for t in (256, 128, 64, 32, 16, 8):
        if sq % t == 0:
            return t
    return sq


# ----------------------------------------------------------------------------
# Linear (+ optional ReLU / residual / fused LayerNorm epilogue)
# ----------------------------------------------------------------------------
def _linear_pallas(x2d, w, b, *, activation=None, residual=None, ln=None, eps=1e-5):
    """out = epilogue(x2d @ w + b); bf16 matmul operands, f32 accumulation."""
    M, K = x2d.shape
    K2, N = w.shape
    assert K == K2
    fuse_ln = ln is not None
    bm = _row_block(M)
    bn = N if fuse_ln else _col_block(N)   # LN needs full rows in one block
    b2d = b.reshape(1, N)

    def kernel(*refs):
        it = iter(refs)
        x_ref = next(it)
        w_ref = next(it)
        b_ref = next(it)
        r_ref = next(it) if residual is not None else None
        if fuse_ln:
            g_ref = next(it)
            be_ref = next(it)
        o_ref = next(it)

        acc = jnp.dot(x_ref[...].astype(jnp.bfloat16), w_ref[...].astype(jnp.bfloat16),
                      preferred_element_type=jnp.float32)
        acc = acc + b_ref[...]
        if activation == "relu":
            acc = jnp.maximum(acc, 0.0)
        if r_ref is not None:
            acc = acc + r_ref[...]
        if fuse_ln:
            mu = jnp.mean(acc, axis=-1, keepdims=True)
            var = jnp.mean(jnp.square(acc - mu), axis=-1, keepdims=True)
            acc = (acc - mu) * jax.lax.rsqrt(var + eps) * g_ref[...] + be_ref[...]
        o_ref[...] = acc

    in_specs = [
        pl.BlockSpec((bm, K), lambda i, j: (i, 0)),
        pl.BlockSpec((K, bn), lambda i, j: (0, j)),
        pl.BlockSpec((1, bn), lambda i, j: (0, j)),
    ]
    arrays = [x2d, w, b2d]
    if residual is not None:
        in_specs.append(pl.BlockSpec((bm, bn), lambda i, j: (i, j)))
        arrays.append(residual)
    if fuse_ln:
        g, be = ln
        in_specs += [pl.BlockSpec((1, N), lambda i, j: (0, 0)),
                     pl.BlockSpec((1, N), lambda i, j: (0, 0))]
        arrays += [g.reshape(1, N), be.reshape(1, N)]

    return pl.pallas_call(
        kernel,
        out_shape=jax.ShapeDtypeStruct((M, N), jnp.float32),
        grid=(M // bm, N // bn),
        in_specs=in_specs,
        out_specs=pl.BlockSpec((bm, bn), lambda i, j: (i, j)),
        compiler_params=_cparams(2),
    )(*arrays)


def linear(x, w, b, *, activation=None, residual=None, ln=None, eps=1e-5):
    lead, K = x.shape[:-1], x.shape[-1]
    N = w.shape[-1]
    res2d = residual.reshape(-1, N) if residual is not None else None
    y = _linear_pallas(x.reshape(-1, K), w, b, activation=activation,
                       residual=res2d, ln=ln, eps=eps)
    return y.reshape(*lead, N)


# ----------------------------------------------------------------------------
# Standalone LayerNorm (for the embedding LNs)
# ----------------------------------------------------------------------------
def layer_norm(x, gamma, beta, eps=1e-5):
    lead, H = x.shape[:-1], x.shape[-1]
    x2d = x.reshape(-1, H)
    M = x2d.shape[0]
    bm = _row_block(M)

    def kernel(x_ref, g_ref, b_ref, o_ref):
        v = x_ref[...]
        mu = jnp.mean(v, axis=-1, keepdims=True)
        var = jnp.mean(jnp.square(v - mu), axis=-1, keepdims=True)
        o_ref[...] = (v - mu) * jax.lax.rsqrt(var + eps) * g_ref[...] + b_ref[...]

    y = pl.pallas_call(
        kernel,
        out_shape=jax.ShapeDtypeStruct((M, H), jnp.float32),
        grid=(M // bm,),
        in_specs=[pl.BlockSpec((bm, H), lambda i: (i, 0)),
                  pl.BlockSpec((1, H), lambda i: (0, 0)),
                  pl.BlockSpec((1, H), lambda i: (0, 0))],
        out_specs=pl.BlockSpec((bm, H), lambda i: (i, 0)),
        compiler_params=_cparams(1),
    )(x2d, gamma.reshape(1, H), beta.reshape(1, H))
    return y.reshape(*lead, H)


# ----------------------------------------------------------------------------
# Fused attention: softmax(qk^T/sqrt(D)+bias) v  ->  @ wo + bo + residual -> LN
# q/k/v are selected out of fused projection buffers via BlockSpec last-dim
# block offsets (q_idx/k_idx/v_idx), so no wrapper-side slices or transposes.
# ----------------------------------------------------------------------------
def attention_fused(q_arr, q_idx, kv_arr, k_idx, v_idx, key_bias, wo, bo,
                    residual, ln_g, ln_b, *, num_heads, hidden, eps=1e-5):
    B, Sq, _ = residual.shape
    Sk = kv_arr.shape[1]
    Qb = key_bias.shape[1]
    D = hidden // num_heads
    assert num_heads * D == hidden
    scale = 1.0 / math.sqrt(D)
    tq = _q_block(Sq)
    qb_tiled = (Qb == Sq)
    qb_blk = tq if qb_tiled else 1

    def kernel(q_ref, k_ref, v_ref, bias_ref, wo_ref, bo_ref, r_ref, g_ref, be_ref, o_ref):
        q_all = (q_ref[0] * scale).astype(jnp.bfloat16)   # (tq, H) scale folded into q
        k_all = k_ref[0].astype(jnp.bfloat16)             # (Sk, H)
        v_all = v_ref[0].astype(jnp.bfloat16)             # (Sk, H)
        wo_all = wo_ref[...].astype(jnp.bfloat16)         # (H, H)
        bias = bias_ref[0]                                # (qb_blk, Sk), f32

        acc = jnp.zeros((tq, hidden), jnp.float32)
        # TODO(synk): for very long Sk on v7x, add an Sk (flash-style) loop; the
        # per-head score tile here is already bounded to (tq, Sk).
        for h in range(num_heads):
            lo, hi = h * D, (h + 1) * D
            qh = q_all[:, lo:hi]
            kh = k_all[:, lo:hi]
            vh = v_all[:, lo:hi]
            s = jax.lax.dot_general(qh, kh,
                                    dimension_numbers=(((1,), (1,)), ((), ())),
                                    preferred_element_type=jnp.float32)      # (tq, Sk)
            s = s + bias                                                     # broadcast
            m = jnp.max(s, axis=-1, keepdims=True)
            p = jnp.exp(s - m)
            denom = jnp.sum(p, axis=-1, keepdims=True)
            o_h = jnp.dot(p.astype(jnp.bfloat16), vh,
                          preferred_element_type=jnp.float32)                # (tq, D)
            o_h = o_h * pl.reciprocal(denom, approx=True)                    # on (tq, D)
            acc = acc + jnp.dot(o_h.astype(jnp.bfloat16), wo_all[lo:hi, :],
                                preferred_element_type=jnp.float32)          # (tq, H)

        acc = acc + bo_ref[...] + r_ref[0]
        mu = jnp.mean(acc, axis=-1, keepdims=True)
        var = jnp.mean(jnp.square(acc - mu), axis=-1, keepdims=True)
        o_ref[0] = (acc - mu) * jax.lax.rsqrt(var + eps) * g_ref[...] + be_ref[...]

    return pl.pallas_call(
        kernel,
        out_shape=jax.ShapeDtypeStruct((B, Sq, hidden), jnp.float32),
        grid=(B, Sq // tq),
        in_specs=[
            pl.BlockSpec((1, tq, hidden), lambda b, qi: (b, qi, q_idx)),
            pl.BlockSpec((1, Sk, hidden), lambda b, qi: (b, 0, k_idx)),
            pl.BlockSpec((1, Sk, hidden), lambda b, qi: (b, 0, v_idx)),
            pl.BlockSpec((1, qb_blk, Sk),
                         (lambda b, qi: (b, qi, 0)) if qb_tiled else (lambda b, qi: (b, 0, 0))),
            pl.BlockSpec((hidden, hidden), lambda b, qi: (0, 0)),
            pl.BlockSpec((1, hidden), lambda b, qi: (0, 0)),
            pl.BlockSpec((1, tq, hidden), lambda b, qi: (b, qi, 0)),
            pl.BlockSpec((1, hidden), lambda b, qi: (0, 0)),
            pl.BlockSpec((1, hidden), lambda b, qi: (0, 0)),
        ],
        out_specs=pl.BlockSpec((1, tq, hidden), lambda b, qi: (b, qi, 0)),
        compiler_params=_cparams(2),
    )(q_arr, kv_arr, kv_arr, key_bias, wo, bo.reshape(1, hidden),
      residual, ln_g.reshape(1, hidden), ln_b.reshape(1, hidden))


# ----------------------------------------------------------------------------
# Transformer layers
# ----------------------------------------------------------------------------
def self_attention_block(x, key_bias, p, ln_g, ln_b, num_heads):
    hidden = x.shape[-1]
    qkv = linear(x, p["wqkv"], p["bqkv"])                 # fused QKV: one [H, 3H] matmul
    return attention_fused(qkv, 0, qkv, 1, 2, key_bias, p["wo"], p["bo"],
                           x, ln_g, ln_b, num_heads=num_heads, hidden=hidden)


def cross_attention_block(y, enc, key_bias, p, ln_g, ln_b, num_heads):
    hidden = y.shape[-1]
    q = linear(y, p["wq"], p["bq"])                       # (B, T, H)
    kv = linear(enc, p["wkv"], p["bkv"])                  # fused KV: one [H, 2H] matmul
    return attention_fused(q, 0, kv, 0, 1, key_bias, p["wo"], p["bo"],
                           y, ln_g, ln_b, num_heads=num_heads, hidden=hidden)


def encoder_layer(x, p, key_bias, num_heads):
    x = self_attention_block(x, key_bias, p["attn"], p["ln1_g"], p["ln1_b"], num_heads)
    h = linear(x, p["ff_w1"], p["ff_b1"], activation="relu")
    x = linear(h, p["ff_w2"], p["ff_b2"], residual=x, ln=(p["ln2_g"], p["ln2_b"]))
    return x


def decoder_layer(y, enc, p, self_bias, cross_bias, num_heads):
    y = self_attention_block(y, self_bias, p["self_attn"], p["ln1_g"], p["ln1_b"], num_heads)
    y = cross_attention_block(y, enc, cross_bias, p["cross_attn"], p["ln2_g"], p["ln2_b"], num_heads)
    h = linear(y, p["ff_w1"], p["ff_b1"], activation="relu")
    y = linear(h, p["ff_w2"], p["ff_b2"], residual=y, ln=(p["ln3_g"], p["ln3_b"]))
    return y


# ----------------------------------------------------------------------------
# Full forward
# ----------------------------------------------------------------------------
def rel2layout_forward(params, input_token, input_ids, segment_label, token_type,
                       src_mask, output_cls, output_pos, output_shape, trg_mask,
                       *, num_heads):
    enc = params["encoder"]
    dec = params["decoder"]
    neg = jnp.float32(-1e9)

    # ----- encoder: input_embeddings(input_token, input_ids, segment_label, token_type)
    src = (jnp.take(enc["tok_emb"], input_token, axis=0)
           + jnp.take(enc["pos_emb"], input_ids, axis=0)
           + jnp.take(enc["seg_emb"], segment_label, axis=0)
           + jnp.take(enc["typ_emb"], token_type, axis=0))
    src = layer_norm(src, enc["emb_ln_g"], enc["emb_ln_b"])  # TODO(synk): dropout is identity (eval mode)

    # Key-padding bias stays (B, 1, Ss): broadcast over heads/queries happens in-kernel.
    src_key_bias = jnp.where(src_mask[:, None, :], 0.0, neg).astype(jnp.float32)

    x = src
    for lp in enc["layers"]:
        x = encoder_layer(x, lp, src_key_bias, num_heads)
    enc_out = x

    # ----- decoder: BboxDecoder(output_cls, output_pos, output_shape, enc_out, src_mask, trg_mask)
    T = output_cls.shape[1]
    tpos = jnp.take(dec["tpos_emb"], jnp.arange(T), axis=0)[None, :, :]
    y = (jnp.take(dec["cls_emb"], output_cls, axis=0)
         + jnp.take(dec["pos_emb"], output_pos, axis=0)
         + jnp.take(dec["shape_emb"], output_shape, axis=0)
         + tpos)
    y = layer_norm(y, dec["emb_ln_g"], dec["emb_ln_b"])

    trg_self_bias = jnp.where(trg_mask, 0.0, neg).astype(jnp.float32)   # (B, T, T) causal
    cross_bias = src_key_bias                                           # (B, 1, Ss)

    for lp in dec["layers"]:
        y = decoder_layer(y, enc_out, lp, trg_self_bias, cross_bias, num_heads)

    # Fused (128-padded) output heads: one [H, pad(cls+pos+shape)] matmul, cheap slices after.
    cls_size = dec["cls_emb"].shape[0]
    pos_size = dec["pos_emb"].shape[0]
    shape_size = dec["shape_emb"].shape[0]
    logits = linear(y, dec["head_w"], dec["head_b"])
    cls_logits = logits[..., :cls_size]
    pos_logits = logits[..., cls_size:cls_size + pos_size]
    shape_logits = logits[..., cls_size + pos_size:cls_size + pos_size + shape_size]
    return cls_logits, pos_logits, shape_logits


# ----------------------------------------------------------------------------
# Deterministic parameter initialization (bf16 matmul weights, padded head)
# ----------------------------------------------------------------------------
def init_params(key, *, vocab_size, max_id, seg_size, typ_size, cls_size, pos_size,
                shape_size, hidden, ff, num_layers, max_trg_len):
    counter = [0]

    def nk():
        counter[0] += 1
        return jax.random.fold_in(key, counter[0])

    def w(shape, scale=0.02):
        return scale * jax.random.normal(nk(), shape, dtype=jnp.float32)

    def wb(shape):                      # matmul weights stored in bf16 (halved HBM traffic)
        return w(shape).astype(jnp.bfloat16)

    def zeros(shape):
        return jnp.zeros(shape, jnp.float32)

    def ones(shape):
        return jnp.ones(shape, jnp.float32)

    def attn_self():
        return dict(wqkv=wb((hidden, 3 * hidden)), bqkv=zeros((3 * hidden,)),
                    wo=wb((hidden, hidden)), bo=zeros((hidden,)))

    def attn_cross():
        return dict(wq=wb((hidden, hidden)), bq=zeros((hidden,)),
                    wkv=wb((hidden, 2 * hidden)), bkv=zeros((2 * hidden,)),
                    wo=wb((hidden, hidden)), bo=zeros((hidden,)))

    def enc_layer():
        return dict(attn=attn_self(),
                    ln1_g=ones((hidden,)), ln1_b=zeros((hidden,)),
                    ff_w1=wb((hidden, ff)), ff_b1=zeros((ff,)),
                    ff_w2=wb((ff, hidden)), ff_b2=zeros((hidden,)),
                    ln2_g=ones((hidden,)), ln2_b=zeros((hidden,)))

    def dec_layer():
        return dict(self_attn=attn_self(), cross_attn=attn_cross(),
                    ln1_g=ones((hidden,)), ln1_b=zeros((hidden,)),
                    ln2_g=ones((hidden,)), ln2_b=zeros((hidden,)),
                    ff_w1=wb((hidden, ff)), ff_b1=zeros((ff,)),
                    ff_w2=wb((ff, hidden)), ff_b2=zeros((hidden,)),
                    ln3_g=ones((hidden,)), ln3_b=zeros((hidden,)))

    n_out = cls_size + pos_size + shape_size
    n_pad = ((n_out + 127) // 128) * 128               # lane-dense fused head
    head_w = jnp.zeros((hidden, n_pad), jnp.float32).at[:, :n_out].set(w((hidden, n_out)))
    head_w = head_w.astype(jnp.bfloat16)
    head_b = zeros((n_pad,))

    encoder = dict(
        tok_emb=w((vocab_size, hidden)),
        pos_emb=w((max_id, hidden)),
        seg_emb=w((seg_size, hidden)),
        typ_emb=w((typ_size, hidden)),
        emb_ln_g=ones((hidden,)), emb_ln_b=zeros((hidden,)),
        layers=[enc_layer() for _ in range(num_layers)],
    )
    decoder = dict(
        cls_emb=w((cls_size, hidden)),
        pos_emb=w((pos_size, hidden)),
        shape_emb=w((shape_size, hidden)),
        tpos_emb=w((max_trg_len, hidden)),
        emb_ln_g=ones((hidden,)), emb_ln_b=zeros((hidden,)),
        layers=[dec_layer() for _ in range(num_layers)],
        head_w=head_w, head_b=head_b,
    )
    return dict(encoder=encoder, decoder=decoder)


# ----------------------------------------------------------------------------
if __name__ == "__main__":
    key = jax.random.PRNGKey(0)

    # Small shapes consistent with the module.  hidden=128 (real model: 512) is
    # the smallest lane-aligned width that supports the last-dim-offset q/k/v
    # BlockSpecs (block last dim must be a multiple of 128 or the full dim).
    B, Ss, T = 2, 8, 8
    hidden, heads, num_layers, ff = 128, 4, 2, 256
    vocab_size, max_id, seg_size, typ_size = 20, 16, 4, 4
    cls_size, pos_size, shape_size = 12, 10, 10

    params = init_params(key, vocab_size=vocab_size, max_id=max_id, seg_size=seg_size,
                         typ_size=typ_size, cls_size=cls_size, pos_size=pos_size,
                         shape_size=shape_size, hidden=hidden, ff=ff,
                         num_layers=num_layers, max_trg_len=T)

    ks = jax.random.split(jax.random.fold_in(key, 12345), 8)
    input_token = jax.random.randint(ks[0], (B, Ss), 0, vocab_size, dtype=jnp.int32)
    input_ids = jax.random.randint(ks[1], (B, Ss), 0, max_id, dtype=jnp.int32)
    segment_label = jax.random.randint(ks[2], (B, Ss), 0, seg_size, dtype=jnp.int32)
    token_type = jax.random.randint(ks[3], (B, Ss), 0, typ_size, dtype=jnp.int32)
    src_mask = (input_token != 0)                                        # (B, Ss) key-padding mask
    output_cls = jax.random.randint(ks[4], (B, T), 0, cls_size, dtype=jnp.int32)
    output_pos = jax.random.randint(ks[5], (B, T), 0, pos_size, dtype=jnp.int32)
    output_shape = jax.random.randint(ks[6], (B, T), 0, shape_size, dtype=jnp.int32)
    trg_mask = jnp.broadcast_to(jnp.tril(jnp.ones((T, T), dtype=bool)), (B, T, T))  # causal

    fwd = jax.jit(functools.partial(rel2layout_forward, num_heads=heads))
    cls_logits, pos_logits, shape_logits = fwd(
        params, input_token, input_ids, segment_label, token_type, src_mask,
        output_cls, output_pos, output_shape, trg_mask)
    jax.block_until_ready((cls_logits, pos_logits, shape_logits))

    assert cls_logits.shape == (B, T, cls_size)
    assert pos_logits.shape == (B, T, pos_size)
    assert shape_logits.shape == (B, T, shape_size)
    print("KERNEL_OK")
</pallas_src>

<mosaic_0001>
module attributes {stable_mosaic.version = 11 : i64} {
  func.func @kernel(%arg0: i32, %arg1: i32, %arg2: memref<16x128xf32, #tpu.memory_space<vmem>>, %arg3: memref<128x384xbf16, #tpu.memory_space<vmem>>, %arg4: memref<1x384xf32, #tpu.memory_space<vmem>>, %arg5: memref<16x384xf32, #tpu.memory_space<vmem>>) attributes {dimension_semantics = [#tpu.dimension_semantics<parallel>, #tpu.dimension_semantics<parallel>], iteration_bounds = array<i64: 1, 1>, scalar_prefetch = 0 : i64, scratch_operands = 0 : i64, tpu.core_type = #tpu.core_type<tc>, window_params = [{transform_indices = @transform_0, window_bounds = array<i64: 16, 128>}, {transform_indices = @transform_1, window_bounds = array<i64: 128, 384>}, {transform_indices = @transform_2, window_bounds = array<i64: 1, 384>}, {transform_indices = @transform_3, window_bounds = array<i64: 16, 384>}]} {
    %c0 = arith.constant 0 : index
    %c0_0 = arith.constant 0 : index
    %0 = vector.load %arg2[%c0, %c0_0] : memref<16x128xf32, #tpu.memory_space<vmem>>, vector<16x128xf32>
    %1 = arith.truncf %0 : vector<16x128xf32> to vector<16x128xbf16>
    %c0_1 = arith.constant 0 : index
    %c0_2 = arith.constant 0 : index
    %2 = vector.load %arg3[%c0_1, %c0_2] : memref<128x384xbf16, #tpu.memory_space<vmem>>, vector<128x384xbf16>
    %cst = arith.constant dense<0.000000e+00> : vector<16x384xf32>
    %3 = tpu.matmul %1, %2, %cst {dimension_numbers = #tpu.dot_dimension_numbers<[1], [0], [0], [1], [0, 0, 1, 1], [], []>} : vector<16x128xbf16>, vector<128x384xbf16>, vector<16x384xf32> -> vector<16x384xf32>
    %c0_3 = arith.constant 0 : index
    %c0_4 = arith.constant 0 : index
    %4 = vector.load %arg4[%c0_3, %c0_4] : memref<1x384xf32, #tpu.memory_space<vmem>>, vector<1x384xf32>
    %5 = vector.broadcast %4 : vector<1x384xf32> to vector<16x384xf32>
    %6 = arith.addf %3, %5 : vector<16x384xf32>
    %c0_5 = arith.constant 0 : index
    %c0_6 = arith.constant 0 : index
    %7 = vector.load %arg5[%c0_5, %c0_6] : memref<16x384xf32, #tpu.memory_space<vmem>>, vector<16x384xf32>
    tpu.vector_store %arg5[%c0_5, %c0_6], %6 {strides = array<i32>} : memref<16x384xf32, #tpu.memory_space<vmem>>, vector<16x384xf32>,
    return
  }
  func.func @transform_0(%arg0: i32, %arg1: i32) -> (i32, i32) {
    %c0_i32 = arith.constant 0 : i32
    %c0_i32_0 = arith.constant 0 : i32
    return %arg0, %c0_i32 : i32, i32
  }
  func.func @transform_1(%arg0: i32, %arg1: i32) -> (i32, i32) {
    %c0_i32 = arith.constant 0 : i32
    %c0_i32_0 = arith.constant 0 : i32
    return %c0_i32, %arg1 : i32, i32
  }
  func.func @transform_2(%arg0: i32, %arg1: i32) -> (i32, i32) {
    %c0_i32 = arith.constant 0 : i32
    %c0_i32_0 = arith.constant 0 : i32
    return %c0_i32, %arg1 : i32, i32
  }
  func.func @transform_3(%arg0: i32, %arg1: i32) -> (i32, i32) {
    %c0_i32 = arith.constant 0 : i32
    return %arg0, %arg1 : i32, i32
  }
}

module attributes {stable_mosaic.version = 11 : i64} {
  func.func @kernel(%arg0: i32, %arg1: memref<16x128xf32, #tpu.memory_space<vmem>>, %arg2: memref<1x128xf32, #tpu.memory_space<vmem>>, %arg3: memref<1x128xf32, #tpu.memory_space<vmem>>, %arg4: memref<16x128xf32, #tpu.memory_space<vmem>>) attributes {dimension_semantics = [#tpu.dimension_semantics<parallel>], iteration_bounds = array<i64: 1>, scalar_prefetch = 0 : i64, scratch_operands = 0 : i64, tpu.core_type = #tpu.core_type<tc>, window_params = [{transform_indices = @transform_0, window_bounds = array<i64: 16, 128>}, {pipeline_mode = #tpu.pipeline_mode<synchronous>, transform_indices = @transform_1, window_bounds = array<i64: 1, 128>}, {pipeline_mode = #tpu.pipeline_mode<synchronous>, transform_indices = @transform_2, window_bounds = array<i64: 1, 128>}, {transform_indices = @transform_3, window_bounds = array<i64: 16, 128>}]} {
    %c0 = arith.constant 0 : index
    %c0_0 = arith.constant 0 : index
    %0 = vector.load %arg1[%c0, %c0_0] : memref<16x128xf32, #tpu.memory_space<vmem>>, vector<16x128xf32>
    %cst = arith.constant dense<0.000000e+00> : vector<16xf32>
    %1 = vector.multi_reduction <add>, %0, %cst [1] : vector<16x128xf32> to vector<16xf32>
    %2 = vector.shape_cast %1 : vector<16xf32> to vector<16x1xf32>
    %cst_1 = arith.constant 1.280000e+02 : f32
    %3 = vector.broadcast %cst_1 : f32 to vector<16x1xf32>
    %4 = arith.divf %2, %3 : vector<16x1xf32>
    %5 = vector.broadcast %4 : vector<16x1xf32> to vector<16x128xf32>
    %6 = arith.subf %0, %5 : vector<16x128xf32>
    %7 = arith.mulf %6, %6 : vector<16x128xf32>
    %cst_2 = arith.constant dense<0.000000e+00> : vector<16xf32>
    %8 = vector.multi_reduction <add>, %7, %cst_2 [1] : vector<16x128xf32> to vector<16xf32>
    %9 = vector.shape_cast %8 : vector<16xf32> to vector<16x1xf32>
    %cst_3 = arith.constant 1.280000e+02 : f32
    %10 = vector.broadcast %cst_3 : f32 to vector<16x1xf32>
    %11 = arith.divf %9, %10 : vector<16x1xf32>
    %12 = vector.broadcast %4 : vector<16x1xf32> to vector<16x128xf32>
    %13 = arith.subf %0, %12 : vector<16x128xf32>
    %cst_4 = arith.constant 9.99999974E-6 : f32
    %14 = vector.broadcast %cst_4 : f32 to vector<16x1xf32>
    %15 = arith.addf %11, %14 : vector<16x1xf32>
    %16 = math.rsqrt %15 : vector<16x1xf32>
    %17 = vector.broadcast %16 : vector<16x1xf32> to vector<16x128xf32>
    %18 = arith.mulf %13, %17 : vector<16x128xf32>
    %c0_5 = arith.constant 0 : index
    %c0_6 = arith.constant 0 : index
    %19 = vector.load %arg2[%c0_5, %c0_6] : memref<1x128xf32, #tpu.memory_space<vmem>>, vector<1x128xf32>
    %20 = vector.broadcast %19 : vector<1x128xf32> to vector<16x128xf32>
    %21 = arith.mulf %18, %20 : vector<16x128xf32>
    %c0_7 = arith.constant 0 : index
    %c0_8 = arith.constant 0 : index
    %22 = vector.load %arg3[%c0_7, %c0_8] : memref<1x128xf32, #tpu.memory_space<vmem>>, vector<1x128xf32>
    %23 = vector.broadcast %22 : vector<1x128xf32> to vector<16x128xf32>
    %24 = arith.addf %21, %23 : vector<16x128xf32>
    %c0_9 = arith.constant 0 : index
    %c0_10 = arith.constant 0 : index
    %25 = vector.load %arg4[%c0_9, %c0_10] : memref<16x128xf32, #tpu.memory_space<vmem>>, vector<16x128xf32>
    tpu.vector_store %arg4[%c0_9, %c0_10], %24 {strides = array<i32>} : memref<16x128xf32, #tpu.memory_space<vmem>>, vector<16x128xf32>,
    return
  }
  func.func @transform_0(%arg0: i32) -> (i32, i32) {
    %c0_i32 = arith.constant 0 : i32
    %c0_i32_0 = arith.constant 0 : i32
    return %arg0, %c0_i32 : i32, i32
  }
  func.func @transform_1(%arg0: i32) -> (i32, i32) {
    %c0_i32 = arith.constant 0 : i32
    %c0_i32_0 = arith.constant 0 : i32
    %c0_i32_1 = arith.constant 0 : i32
    return %c0_i32, %c0_i32_0 : i32, i32
  }
  func.func @transform_2(%arg0: i32) -> (i32, i32) {
    %c0_i32 = arith.constant 0 : i32
    %c0_i32_0 = arith.constant 0 : i32
    %c0_i32_1 = arith.constant 0 : i32
    return %c0_i32, %c0_i32_0 : i32, i32
  }
  func.func @transform_3(%arg0: i32) -> (i32, i32) {
    %c0_i32 = arith.constant 0 : i32
    %c0_i32_0 = arith.constant 0 : i32
    return %arg0, %c0_i32 : i32, i32
  }
}

module attributes {stable_mosaic.version = 11 : i64} {
  func.func @kernel(%arg0: i32, %arg1: i32, %arg2: memref<16x128xf32, #tpu.memory_space<vmem>>, %arg3: memref<128x128xbf16, #tpu.memory_space<vmem>>, %arg4: memref<1x128xf32, #tpu.memory_space<vmem>>, %arg5: memref<16x128xf32, #tpu.memory_space<vmem>>) attributes {dimension_semantics = [#tpu.dimension_semantics<parallel>, #tpu.dimension_semantics<parallel>], iteration_bounds = array<i64: 1, 1>, scalar_prefetch = 0 : i64, scratch_operands = 0 : i64, tpu.core_type = #tpu.core_type<tc>, window_params = [{transform_indices = @transform_0, window_bounds = array<i64: 16, 128>}, {transform_indices = @transform_1, window_bounds = array<i64: 128, 128>}, {transform_indices = @transform_2, window_bounds = array<i64: 1, 128>}, {transform_indices = @transform_3, window_bounds = array<i64: 16, 128>}]} {
    %c0 = arith.constant 0 : index
    %c0_0 = arith.constant 0 : index
    %0 = vector.load %arg2[%c0, %c0_0] : memref<16x128xf32, #tpu.memory_space<vmem>>, vector<16x128xf32>
    %1 = arith.truncf %0 : vector<16x128xf32> to vector<16x128xbf16>
    %c0_1 = arith.constant 0 : index
    %c0_2 = arith.constant 0 : index
    %2 = vector.load %arg3[%c0_1, %c0_2] : memref<128x128xbf16, #tpu.memory_space<vmem>>, vector<128x128xbf16>
    %cst = arith.constant dense<0.000000e+00> : vector<16x128xf32>
    %3 = tpu.matmul %1, %2, %cst {dimension_numbers = #tpu.dot_dimension_numbers<[1], [0], [0], [1], [0, 0, 1, 1], [], []>} : vector<16x128xbf16>, vector<128x128xbf16>, vector<16x128xf32> -> vector<16x128xf32>
    %c0_3 = arith.constant 0 : index
    %c0_4 = arith.constant 0 : index
    %4 = vector.load %arg4[%c0_3, %c0_4] : memref<1x128xf32, #tpu.memory_space<vmem>>, vector<1x128xf32>
    %5 = vector.broadcast %4 : vector<1x128xf32> to vector<16x128xf32>
    %6 = arith.addf %3, %5 : vector<16x128xf32>
    %c0_5 = arith.constant 0 : index
    %c0_6 = arith.constant 0 : index
    %7 = vector.load %arg5[%c0_5, %c0_6] : memref<16x128xf32, #tpu.memory_space<vmem>>, vector<16x128xf32>
    tpu.vector_store %arg5[%c0_5, %c0_6], %6 {strides = array<i32>} : memref<16x128xf32, #tpu.memory_space<vmem>>, vector<16x128xf32>,
    return
  }
  func.func @transform_0(%arg0: i32, %arg1: i32) -> (i32, i32) {
    %c0_i32 = arith.constant 0 : i32
    %c0_i32_0 = arith.constant 0 : i32
    return %arg0, %c0_i32 : i32, i32
  }
  func.func @transform_1(%arg0: i32, %arg1: i32) -> (i32, i32) {
    %c0_i32 = arith.constant 0 : i32
    %c0_i32_0 = arith.constant 0 : i32
    return %c0_i32, %arg1 : i32, i32
  }
  func.func @transform_2(%arg0: i32, %arg1: i32) -> (i32, i32) {
    %c0_i32 = arith.constant 0 : i32
    %c0_i32_0 = arith.constant 0 : i32
    return %c0_i32, %arg1 : i32, i32
  }
  func.func @transform_3(%arg0: i32, %arg1: i32) -> (i32, i32) {
    %c0_i32 = arith.constant 0 : i32
    return %arg0, %arg1 : i32, i32
  }
}

module attributes {stable_mosaic.version = 11 : i64} {
  func.func @kernel(%arg0: i32, %arg1: i32, %arg2: memref<1x8x128xf32, #tpu.memory_space<vmem>>, %arg3: memref<1x8x128xf32, #tpu.memory_space<vmem>>, %arg4: memref<1x8x128xf32, #tpu.memory_space<vmem>>, %arg5: memref<1x8x8xf32, #tpu.memory_space<vmem>>, %arg6: memref<128x128xbf16, #tpu.memory_space<vmem>>, %arg7: memref<1x128xf32, #tpu.memory_space<vmem>>, %arg8: memref<1x8x128xf32, #tpu.memory_space<vmem>>, %arg9: memref<1x128xf32, #tpu.memory_space<vmem>>, %arg10: memref<1x128xf32, #tpu.memory_space<vmem>>, %arg11: memref<1x8x128xf32, #tpu.memory_space<vmem>>) attributes {dimension_semantics = [#tpu.dimension_semantics<parallel>, #tpu.dimension_semantics<parallel>], iteration_bounds = array<i64: 2, 1>, scalar_prefetch = 0 : i64, scratch_operands = 0 : i64, tpu.core_type = #tpu.core_type<tc>, window_params = [{transform_indices = @transform_0, window_bounds = array<i64: 1, 8, 128>}, {transform_indices = @transform_1, window_bounds = array<i64: 1, 8, 128>}, {transform_indices = @transform_2, window_bounds = array<i64: 1, 8, 128>}, {transform_indices = @transform_3, window_bounds = array<i64: 1, 8, 8>}, {pipeline_mode = #tpu.pipeline_mode<synchronous>, transform_indices = @transform_4, window_bounds = array<i64: 128, 128>}, {pipeline_mode = #tpu.pipeline_mode<synchronous>, transform_indices = @transform_5, window_bounds = array<i64: 1, 128>}, {transform_indices = @transform_6, window_bounds = array<i64: 1, 8, 128>}, {pipeline_mode = #tpu.pipeline_mode<synchronous>, transform_indices = @transform_7, window_bounds = array<i64: 1, 128>}, {pipeline_mode = #tpu.pipeline_mode<synchronous>, transform_indices = @transform_8, window_bounds = array<i64: 1, 128>}, {transform_indices = @transform_9, window_bounds = array<i64: 1, 8, 128>}]} {
    %c0 = arith.constant 0 : index
    %c0_0 = arith.constant 0 : index
    %c0_1 = arith.constant 0 : index
    %0 = vector.load %arg2[%c0, %c0_0, %c0_1] : memref<1x8x128xf32, #tpu.memory_space<vmem>>, vector<1x8x128xf32>
    %1 = vector.shape_cast %0 : vector<1x8x128xf32> to vector<8x128xf32>
    %cst = arith.constant 0.176776692 : f32
    %2 = vector.broadcast %cst : f32 to vector<8x128xf32>
    %3 = arith.mulf %1, %2 : vector<8x128xf32>
    %4 = arith.truncf %3 : vector<8x128xf32> to vector<8x128xbf16>
    %c0_2 = arith.constant 0 : index
    %c0_3 = arith.constant 0 : index
    %c0_4 = arith.constant 0 : index
    %5 = vector.load %arg3[%c0_2, %c0_3, %c0_4] : memref<1x8x128xf32, #tpu.memory_space<vmem>>, vector<1x8x128xf32>
    %6 = vector.shape_cast %5 : vector<1x8x128xf32> to vector<8x128xf32>
    %7 = arith.truncf %6 : vector<8x128xf32> to vector<8x128xbf16>
    %c0_5 = arith.constant 0 : index
    %c0_6 = arith.constant 0 : index
    %c0_7 = arith.constant 0 : index
    %8 = vector.load %arg4[%c0_5, %c0_6, %c0_7] : memref<1x8x128xf32, #tpu.memory_space<vmem>>, vector<1x8x128xf32>
    %9 = vector.shape_cast %8 : vector<1x8x128xf32> to vector<8x128xf32>
    %10 = arith.truncf %9 : vector<8x128xf32> to vector<8x128xbf16>
    %c0_8 = arith.constant 0 : index
    %c0_9 = arith.constant 0 : index
    %11 = vector.load %arg6[%c0_8, %c0_9] : memref<128x128xbf16, #tpu.memory_space<vmem>>, vector<128x128xbf16>
    %c0_10 = arith.constant 0 : index
    %c0_11 = arith.constant 0 : index
    %c0_12 = arith.constant 0 : index
    %12 = vector.load %arg5[%c0_10, %c0_11, %c0_12] : memref<1x8x8xf32, #tpu.memory_space<vmem>>, vector<1x8x8xf32>
    %13 = vector.shape_cast %12 : vector<1x8x8xf32> to vector<8x8xf32>
    %cst_13 = arith.constant 0.000000e+00 : f32
    %14 = vector.broadcast %cst_13 : f32 to vector<8x128xf32>
    %15 = vector.extract_strided_slice %4 {offsets = [0, 0], sizes = [8, 32], strides = [1, 1]} : vector<8x128xbf16> to vector<8x32xbf16>
    %16 = vector.extract_strided_slice %7 {offsets = [0, 0], sizes = [8, 32], strides = [1, 1]} : vector<8x128xbf16> to vector<8x32xbf16>
    %17 = vector.extract_strided_slice %10 {offsets = [0, 0], sizes = [8, 32], strides = [1, 1]} : vector<8x128xbf16> to vector<8x32xbf16>
    %cst_14 = arith.constant dense<0.000000e+00> : vector<8x8xf32>
    %18 = tpu.matmul %15, %16, %cst_14 {dimension_numbers = #tpu.dot_dimension_numbers<[1], [1], [0], [0], [0, 0, 1, 0], [], []>} : vector<8x32xbf16>, vector<8x32xbf16>, vector<8x8xf32> -> vector<8x8xf32>
    %19 = arith.addf %18, %13 : vector<8x8xf32>
    %cst_15 = arith.constant dense<0xFF800000> : vector<8xf32>
    %20 = vector.multi_reduction <maximumf>, %19, %cst_15 [1] : vector<8x8xf32> to vector<8xf32>
    %21 = vector.shape_cast %20 : vector<8xf32> to vector<8x1xf32>
    %22 = vector.broadcast %21 : vector<8x1xf32> to vector<8x8xf32>
    %23 = arith.subf %19, %22 : vector<8x8xf32>
    %24 = math.exp %23 : vector<8x8xf32>
    %cst_16 = arith.constant dense<0.000000e+00> : vector<8xf32>
    %25 = vector.multi_reduction <add>, %24, %cst_16 [1] : vector<8x8xf32> to vector<8xf32>
    %26 = vector.shape_cast %25 : vector<8xf32> to vector<8x1xf32>
    %27 = arith.truncf %24 : vector<8x8xf32> to vector<8x8xbf16>
    %cst_17 = arith.constant dense<0.000000e+00> : vector<8x32xf32>
    %28 = tpu.matmul %27, %17, %cst_17 {dimension_numbers = #tpu.dot_dimension_numbers<[1], [0], [0], [1], [0, 0, 1, 1], [], []>} : vector<8x8xbf16>, vector<8x32xbf16>, vector<8x32xf32> -> vector<8x32xf32>
    %29 = tpu.reciprocal %26 {approx = true} : vector<8x1xf32> -> vector<8x1xf32>
    %30 = vector.broadcast %29 : vector<8x1xf32> to vector<8x32xf32>
    %31 = arith.mulf %28, %30 : vector<8x32xf32>
    %32 = arith.truncf %31 : vector<8x32xf32> to vector<8x32xbf16>
    %33 = vector.extract_strided_slice %11 {offsets = [0, 0], sizes = [32, 128], strides = [1, 1]} : vector<128x128xbf16> to vector<32x128xbf16>
    %cst_18 = arith.constant dense<0.000000e+00> : vector<8x128xf32>
    %34 = tpu.matmul %32, %33, %cst_18 {dimension_numbers = #tpu.dot_dimension_numbers<[1], [0], [0], [1], [0, 0, 1, 1], [], []>} : vector<8x32xbf16>, vector<32x128xbf16>, vector<8x128xf32> -> vector<8x128xf32>
    %35 = arith.addf %14, %34 : vector<8x128xf32>
    %36 = vector.extract_strided_slice %4 {offsets = [0, 32], sizes = [8, 32], strides = [1, 1]} : vector<8x128xbf16> to vector<8x32xbf16>
    %37 = vector.extract_strided_slice %7 {offsets = [0, 32], sizes = [8, 32], strides = [1, 1]} : vector<8x128xbf16> to vector<8x32xbf16>
    %38 = vector.extract_strided_slice %10 {offsets = [0, 32], sizes = [8, 32], strides = [1, 1]} : vector<8x128xbf16> to vector<8x32xbf16>
    %cst_19 = arith.constant dense<0.000000e+00> : vector<8x8xf32>
    %39 = tpu.matmul %36, %37, %cst_19 {dimension_numbers = #tpu.dot_dimension_numbers<[1], [1], [0], [0], [0, 0, 1, 0], [], []>} : vector<8x32xbf16>, vector<8x32xbf16>, vector<8x8xf32> -> vector<8x8xf32>
    %40 = arith.addf %39, %13 : vector<8x8xf32>
    %cst_20 = arith.constant dense<0xFF800000> : vector<8xf32>
    %41 = vector.multi_reduction <maximumf>, %40, %cst_20 [1] : vector<8x8xf32> to vector<8xf32>
    %42 = vector.shape_cast %41 : vector<8xf32> to vector<8x1xf32>
    %43 = vector.broadcast %42 : vector<8x1xf32> to vector<8x8xf32>
    %44 = arith.subf %40, %43 : vector<8x8xf32>
    %45 = math.exp %44 : vector<8x8xf32>
    %cst_21 = arith.constant dense<0.000000e+00> : vector<8xf32>
    %46 = vector.multi_reduction <add>, %45, %cst_21 [1] : vector<8x8xf32> to vector<8xf32>
    %47 = vector.shape_cast %46 : vector<8xf32> to vector<8x1xf32>
    %48 = arith.truncf %45 : vector<8x8xf32> to vector<8x8xbf16>
    %cst_22 = arith.constant dense<0.000000e+00> : vector<8x32xf32>
    %49 = tpu.matmul %48, %38, %cst_22 {dimension_numbers = #tpu.dot_dimension_numbers<[1], [0], [0], [1], [0, 0, 1, 1], [], []>} : vector<8x8xbf16>, vector<8x32xbf16>, vector<8x32xf32> -> vector<8x32xf32>
    %50 = tpu.reciprocal %47 {approx = true} : vector<8x1xf32> -> vector<8x1xf32>
    %51 = vector.broadcast %50 : vector<8x1xf32> to vector<8x32xf32>
    %52 = arith.mulf %49, %51 : vector<8x32xf32>
    %53 = arith.truncf %52 : vector<8x32xf32> to vector<8x32xbf16>
    %54 = vector.extract_strided_slice %11 {offsets = [32, 0], sizes = [32, 128], strides = [1, 1]} : vector<128x128xbf16> to vector<32x128xbf16>
    %cst_23 = arith.constant dense<0.000000e+00> : vector<8x128xf32>
    %55 = tpu.matmul %53, %54, %cst_23 {dimension_numbers = #tpu.dot_dimension_numbers<[1], [0], [0], [1], [0, 0, 1, 1], [], []>} : vector<8x32xbf16>, vector<32x128xbf16>, vector<8x128xf32> -> vector<8x128xf32>
    %56 = arith.addf %35, %55 : vector<8x128xf32>
    %57 = vector.extract_strided_slice %4 {offsets = [0, 64], sizes = [8, 32], strides = [1, 1]} : vector<8x128xbf16> to vector<8x32xbf16>
    %58 = vector.extract_strided_slice %7 {offsets = [0, 64], sizes = [8, 32], strides = [1, 1]} : vector<8x128xbf16> to vector<8x32xbf16>
    %59 = vector.extract_strided_slice %10 {offsets = [0, 64], sizes = [8, 32], strides = [1, 1]} : vector<8x128xbf16> to vector<8x32xbf16>
    %cst_24 = arith.constant dense<0.000000e+00> : vector<8x8xf32>
    %60 = tpu.matmul %57, %58, %cst_24 {dimension_numbers = #tpu.dot_dimension_numbers<[1], [1], [0], [0], [0, 0, 1, 0], [], []>} : vector<8x32xbf16>, vector<8x32xbf16>, vector<8x8xf32> -> vector<8x8xf32>
    %61 = arith.addf %60, %13 : vector<8x8xf32>
    %cst_25 = arith.constant dense<0xFF800000> : vector<8xf32>
    %62 = vector.multi_reduction <maximumf>, %61, %cst_25 [1] : vector<8x8xf32> to vector<8xf32>
    %63 = vector.shape_cast %62 : vector<8xf32> to vector<8x1xf32>
    %64 = vector.broadcast %63 : vector<8x1xf32> to vector<8x8xf32>
    %65 = arith.subf %61, %64 : vector<8x8xf32>
    %66 = math.exp %65 : vector<8x8xf32>
    %cst_26 = arith.constant dense<0.000000e+00> : vector<8xf32>
    %67 = vector.multi_reduction <add>, %66, %cst_26 [1] : vector<8x8xf32> to vector<8xf32>
    %68 = vector.shape_cast %67 : vector<8xf32> to vector<8x1xf32>
    %69 = arith.truncf %66 : vector<8x8xf32> to vector<8x8xbf16>
    %cst_27 = arith.constant dense<0.000000e+00> : vector<8x32xf32>
    %70 = tpu.matmul %69, %59, %cst_27 {dimension_numbers = #tpu.dot_dimension_numbers<[1], [0], [0], [1], [0, 0, 1, 1], [], []>} : vector<8x8xbf16>, vector<8x32xbf16>, vector<8x32xf32> -> vector<8x32xf32>
    %71 = tpu.reciprocal %68 {approx = true} : vector<8x1xf32> -> vector<8x1xf32>
    %72 = vector.broadcast %71 : vector<8x1xf32> to vector<8x32xf32>
    %73 = arith.mulf %70, %72 : vector<8x32xf32>
    %74 = arith.truncf %73 : vector<8x32xf32> to vector<8x32xbf16>
    %75 = vector.extract_strided_slice %11 {offsets = [64, 0], sizes = [32, 128], strides = [1, 1]} : vector<128x128xbf16> to vector<32x128xbf16>
    %cst_28 = arith.constant dense<0.000000e+00> : vector<8x128xf32>
    %76 = tpu.matmul %74, %75, %cst_28 {dimension_numbers = #tpu.dot_dimension_numbers<[1], [0], [0], [1], [0, 0, 1, 1], [], []>} : vector<8x32xbf16>, vector<32x128xbf16>, vector<8x128xf32> -> vector<8x128xf32>
    %77 = arith.addf %56, %76 : vector<8x128xf32>
    %78 = vector.extract_strided_slice %4 {offsets = [0, 96], sizes = [8, 32], strides = [1, 1]} : vector<8x128xbf16> to vector<8x32xbf16>
    %79 = vector.extract_strided_slice %7 {offsets = [0, 96], sizes = [8, 32], strides = [1, 1]} : vector<8x128xbf16> to vector<8x32xbf16>
    %80 = vector.extract_strided_slice %10 {offsets = [0, 96], sizes = [8, 32], strides = [1, 1]} : vector<8x128xbf16> to vector<8x32xbf16>
    %cst_29 = arith.constant dense<0.000000e+00> : vector<8x8xf32>
    %81 = tpu.matmul %78, %79, %cst_29 {dimension_numbers = #tpu.dot_dimension_numbers<[1], [1], [0], [0], [0, 0, 1, 0], [], []>} : vector<8x32xbf16>, vector<8x32xbf16>, vector<8x8xf32> -> vector<8x8xf32>
    %82 = arith.addf %81, %13 : vector<8x8xf32>
    %cst_30 = arith.constant dense<0xFF800000> : vector<8xf32>
    %83 = vector.multi_reduction <maximumf>, %82, %cst_30 [1] : vector<8x8xf32> to vector<8xf32>
    %84 = vector.shape_cast %83 : vector<8xf32> to vector<8x1xf32>
    %85 = vector.broadcast %84 : vector<8x1xf32> to vector<8x8xf32>
    %86 = arith.subf %82, %85 : vector<8x8xf32>
    %87 = math.exp %86 : vector<8x8xf32>
    %cst_31 = arith.constant dense<0.000000e+00> : vector<8xf32>
    %88 = vector.multi_reduction <add>, %87, %cst_31 [1] : vector<8x8xf32> to vector<8xf32>
    %89 = vector.shape_cast %88 : vector<8xf32> to vector<8x1xf32>
    %90 = arith.truncf %87 : vector<8x8xf32> to vector<8x8xbf16>
    %cst_32 = arith.constant dense<0.000000e+00> : vector<8x32xf32>
    %91 = tpu.matmul %90, %80, %cst_32 {dimension_numbers = #tpu.dot_dimension_numbers<[1], [0], [0], [1], [0, 0, 1, 1], [], []>} : vector<8x8xbf16>, vector<8x32xbf16>, vector<8x32xf32> -> vector<8x32xf32>
    %92 = tpu.reciprocal %89 {approx = true} : vector<8x1xf32> -> vector<8x1xf32>
    %93 = vector.broadcast %92 : vector<8x1xf32> to vector<8x32xf32>
    %94 = arith.mulf %91, %93 : vector<8x32xf32>
    %95 = arith.truncf %94 : vector<8x32xf32> to vector<8x32xbf16>
    %96 = vector.extract_strided_slice %11 {offsets = [96, 0], sizes = [32, 128], strides = [1, 1]} : vector<128x128xbf16> to vector<32x128xbf16>
    %cst_33 = arith.constant dense<0.000000e+00> : vector<8x128xf32>
    %97 = tpu.matmul %95, %96, %cst_33 {dimension_numbers = #tpu.dot_dimension_numbers<[1], [0], [0], [1], [0, 0, 1, 1], [], []>} : vector<8x32xbf16>, vector<32x128xbf16>, vector<8x128xf32> -> vector<8x128xf32>
    %98 = arith.addf %77, %97 : vector<8x128xf32>
    %c0_34 = arith.constant 0 : index
    %c0_35 = arith.constant 0 : index
    %99 = vector.load %arg7[%c0_34, %c0_35] : memref<1x128xf32, #tpu.memory_space<vmem>>, vector<1x128xf32>
    %100 = vector.broadcast %99 : vector<1x128xf32> to vector<8x128xf32>
    %101 = arith.addf %98, %100 : vector<8x128xf32>
    %c0_36 = arith.constant 0 : index
    %c0_37 = arith.constant 0 : index
    %c0_38 = arith.constant 0 : index
    %102 = vector.load %arg8[%c0_36, %c0_37, %c0_38] : memref<1x8x128xf32, #tpu.memory_space<vmem>>, vector<1x8x128xf32>
    %103 = vector.shape_cast %102 : vector<1x8x128xf32> to vector<8x128xf32>
    %104 = arith.addf %101, %103 : vector<8x128xf32>
    %cst_39 = arith.constant dense<0.000000e+00> : vector<8xf32>
    %105 = vector.multi_reduction <add>, %104, %cst_39 [1] : vector<8x128xf32> to vector<8xf32>
    %106 = vector.shape_cast %105 : vector<8xf32> to vector<8x1xf32>
    %cst_40 = arith.constant 1.280000e+02 : f32
    %107 = vector.broadcast %cst_40 : f32 to vector<8x1xf32>
    %108 = arith.divf %106, %107 : vector<8x1xf32>
    %109 = vector.broadcast %108 : vector<8x1xf32> to vector<8x128xf32>
    %110 = arith.subf %104, %109 : vector<8x128xf32>
    %111 = arith.mulf %110, %110 : vector<8x128xf32>
    %cst_41 = arith.constant dense<0.000000e+00> : vector<8xf32>
    %112 = vector.multi_reduction <add>, %111, %cst_41 [1] : vector<8x128xf32> to vector<8xf32>
    %113 = vector.shape_cast %112 : vector<8xf32> to vector<8x1xf32>
    %cst_42 = arith.constant 1.280000e+02 : f32
    %114 = vector.broadcast %cst_42 : f32 to vector<8x1xf32>
    %115 = arith.divf %113, %114 : vector<8x1xf32>
    %116 = vector.broadcast %108 : vector<8x1xf32> to vector<8x128xf32>
    %117 = arith.subf %104, %116 : vector<8x128xf32>
    %cst_43 = arith.constant 9.99999974E-6 : f32
    %118 = vector.broadcast %cst_43 : f32 to vector<8x1xf32>
    %119 = arith.addf %115, %118 : vector<8x1xf32>
    %120 = math.rsqrt %119 : vector<8x1xf32>
    %121 = vector.broadcast %120 : vector<8x1xf32> to vector<8x128xf32>
    %122 = arith.mulf %117, %121 : vector<8x128xf32>
    %c0_44 = arith.constant 0 : index
    %c0_45 = arith.constant 0 : index
    %123 = vector.load %arg9[%c0_44, %c0_45] : memref<1x128xf32, #tpu.memory_space<vmem>>, vector<1x128xf32>
    %124 = vector.broadcast %123 : vector<1x128xf32> to vector<8x128xf32>
    %125 = arith.mulf %122, %124 : vector<8x128xf32>
    %c0_46 = arith.constant 0 : index
    %c0_47 = arith.constant 0 : index
    %126 = vector.load %arg10[%c0_46, %c0_47] : memref<1x128xf32, #tpu.memory_space<vmem>>, vector<1x128xf32>
    %127 = vector.broadcast %126 : vector<1x128xf32> to vector<8x128xf32>
    %128 = arith.addf %125, %127 : vector<8x128xf32>
    %c0_48 = arith.constant 0 : index
    %c0_49 = arith.constant 0 : index
    %c0_50 = arith.constant 0 : index
    %129 = vector.load %arg11[%c0_48, %c0_49, %c0_50] : memref<1x8x128xf32, #tpu.memory_space<vmem>>, vector<1x8x128xf32>
    %130 = vector.shape_cast %129 : vector<1x8x128xf32> to vector<8x128xf32>
    %131 = vector.shape_cast %128 : vector<8x128xf32> to vector<1x8x128xf32>
    tpu.vector_store %arg11[%c0_48, %c0_49, %c0_50], %131 {strides = array<i32>} : memref<1x8x128xf32, #tpu.memory_space<vmem>>, vector<1x8x128xf32>,
    return
  }
  func.func @transform_0(%arg0: i32, %arg1: i32) -> (i32, i32, i32) {
    %c0_i32 = arith.constant 0 : i32
    %c0_i32_0 = arith.constant 0 : i32
    return %arg0, %arg1, %c0_i32 : i32, i32, i32
  }
  func.func @transform_1(%arg0: i32, %arg1: i32) -> (i32, i32, i32) {
    %c0_i32 = arith.constant 0 : i32
    %c1_i32 = arith.constant 1 : i32
    %c0_i32_0 = arith.constant 0 : i32
    return %arg0, %c0_i32, %c1_i32 : i32, i32, i32
  }
  func.func @transform_2(%arg0: i32, %arg1: i32) -> (i32, i32, i32) {
    %c0_i32 = arith.constant 0 : i32
    %c2_i32 = arith.constant 2 : i32
    %c0_i32_0 = arith.constant 0 : i32
    return %arg0, %c0_i32, %c2_i32 : i32, i32, i32
  }
  func.func @transform_3(%arg0: i32, %arg1: i32) -> (i32, i32, i32) {
    %c0_i32 = arith.constant 0 : i32
    %c0_i32_0 = arith.constant 0 : i32
    return %arg0, %arg1, %c0_i32 : i32, i32, i32
  }
  func.func @transform_4(%arg0: i32, %arg1: i32) -> (i32, i32) {
    %c0_i32 = arith.constant 0 : i32
    %c0_i32_0 = arith.constant 0 : i32
    %c0_i32_1 = arith.constant 0 : i32
    return %c0_i32, %c0_i32_0 : i32, i32
  }
  func.func @transform_5(%arg0: i32, %arg1: i32) -> (i32, i32) {
    %c0_i32 = arith.constant 0 : i32
    %c0_i32_0 = arith.constant 0 : i32
    %c0_i32_1 = arith.constant 0 : i32
    return %c0_i32, %c0_i32_0 : i32, i32
  }
  func.func @transform_6(%arg0: i32, %arg1: i32) -> (i32, i32, i32) {
    %c0_i32 = arith.constant 0 : i32
    %c0_i32_0 = arith.constant 0 : i32
    return %arg0, %arg1, %c0_i32 : i32, i32, i32
  }
  func.func @transform_7(%arg0: i32, %arg1: i32) -> (i32, i32) {
    %c0_i32 = arith.constant 0 : i32
    %c0_i32_0 = arith.constant 0 : i32
    %c0_i32_1 = arith.constant 0 : i32
    return %c0_i32, %c0_i32_0 : i32, i32
  }
  func.func @transform_8(%arg0: i32, %arg1: i32) -> (i32, i32) {
    %c0_i32 = arith.constant 0 : i32
    %c0_i32_0 = arith.constant 0 : i32
    %c0_i32_1 = arith.constant 0 : i32
    return %c0_i32, %c0_i32_0 : i32, i32
  }
  func.func @transform_9(%arg0: i32, %arg1: i32) -> (i32, i32, i32) {
    %c0_i32 = arith.constant 0 : i32
    %c0_i32_0 = arith.constant 0 : i32
    return %arg0, %arg1, %c0_i32 : i32, i32, i32
  }
}

module attributes {stable_mosaic.version = 11 : i64} {
  func.func @kernel(%arg0: i32, %arg1: i32, %arg2: memref<16x256xf32, #tpu.memory_space<vmem>>, %arg3: memref<256x128xbf16, #tpu.memory_space<vmem>>, %arg4: memref<1x128xf32, #tpu.memory_space<vmem>>, %arg5: memref<16x128xf32, #tpu.memory_space<vmem>>, %arg6: memref<1x128xf32, #tpu.memory_space<vmem>>, %arg7: memref<1x128xf32, #tpu.memory_space<vmem>>, %arg8: memref<16x128xf32, #tpu.memory_space<vmem>>) attributes {dimension_semantics = [#tpu.dimension_semantics<parallel>, #tpu.dimension_semantics<parallel>], iteration_bounds = array<i64: 1, 1>, scalar_prefetch = 0 : i64, scratch_operands = 0 : i64, tpu.core_type = #tpu.core_type<tc>, window_params = [{transform_indices = @transform_0, window_bounds = array<i64: 16, 256>}, {transform_indices = @transform_1, window_bounds = array<i64: 256, 128>}, {transform_indices = @transform_2, window_bounds = array<i64: 1, 128>}, {transform_indices = @transform_3, window_bounds = array<i64: 16, 128>}, {pipeline_mode = #tpu.pipeline_mode<synchronous>, transform_indices = @transform_4, window_bounds = array<i64: 1, 128>}, {pipeline_mode = #tpu.pipeline_mode<synchronous>, transform_indices = @transform_5, window_bounds = array<i64: 1, 128>}, {transform_indices = @transform_6, window_bounds = array<i64: 16, 128>}]} {
    %c0 = arith.constant 0 : index
    %c0_0 = arith.constant 0 : index
    %0 = vector.load %arg2[%c0, %c0_0] : memref<16x256xf32, #tpu.memory_space<vmem>>, vector<16x256xf32>
    %1 = arith.truncf %0 : vector<16x256xf32> to vector<16x256xbf16>
    %c0_1 = arith.constant 0 : index
    %c0_2 = arith.constant 0 : index
    %2 = vector.load %arg3[%c0_1, %c0_2] : memref<256x128xbf16, #tpu.memory_space<vmem>>, vector<256x128xbf16>
    %cst = arith.constant dense<0.000000e+00> : vector<16x128xf32>
    %3 = tpu.matmul %1, %2, %cst {dimension_numbers = #tpu.dot_dimension_numbers<[1], [0], [0], [1], [0, 0, 1, 1], [], []>} : vector<16x256xbf16>, vector<256x128xbf16>, vector<16x128xf32> -> vector<16x128xf32>
    %c0_3 = arith.constant 0 : index
    %c0_4 = arith.constant 0 : index
    %4 = vector.load %arg4[%c0_3, %c0_4] : memref<1x128xf32, #tpu.memory_space<vmem>>, vector<1x128xf32>
    %5 = vector.broadcast %4 : vector<1x128xf32> to vector<16x128xf32>
    %6 = arith.addf %3, %5 : vector<16x128xf32>
    %c0_5 = arith.constant 0 : index
    %c0_6 = arith.constant 0 : index
    %7 = vector.load %arg5[%c0_5, %c0_6] : memref<16x128xf32, #tpu.memory_space<vmem>>, vector<16x128xf32>
    %8 = arith.addf %6, %7 : vector<16x128xf32>
    %cst_7 = arith.constant dense<0.000000e+00> : vector<16xf32>
    %9 = vector.multi_reduction <add>, %8, %cst_7 [1] : vector<16x128xf32> to vector<16xf32>
    %10 = vector.shape_cast %9 : vector<16xf32> to vector<16x1xf32>
    %cst_8 = arith.constant 1.280000e+02 : f32
    %11 = vector.broadcast %cst_8 : f32 to vector<16x1xf32>
    %12 = arith.divf %10, %11 : vector<16x1xf32>
    %13 = vector.broadcast %12 : vector<16x1xf32> to vector<16x128xf32>
    %14 = arith.subf %8, %13 : vector<16x128xf32>
    %15 = arith.mulf %14, %14 : vector<16x128xf32>
    %cst_9 = arith.constant dense<0.000000e+00> : vector<16xf32>
    %16 = vector.multi_reduction <add>, %15, %cst_9 [1] : vector<16x128xf32> to vector<16xf32>
    %17 = vector.shape_cast %16 : vector<16xf32> to vector<16x1xf32>
    %cst_10 = arith.constant 1.280000e+02 : f32
    %18 = vector.broadcast %cst_10 : f32 to vector<16x1xf32>
    %19 = arith.divf %17, %18 : vector<16x1xf32>
    %20 = vector.broadcast %12 : vector<16x1xf32> to vector<16x128xf32>
    %21 = arith.subf %8, %20 : vector<16x128xf32>
    %cst_11 = arith.constant 9.99999974E-6 : f32
    %22 = vector.broadcast %cst_11 : f32 to vector<16x1xf32>
    %23 = arith.addf %19, %22 : vector<16x1xf32>
    %24 = math.rsqrt %23 : vector<16x1xf32>
    %25 = vector.broadcast %24 : vector<16x1xf32> to vector<16x128xf32>
    %26 = arith.mulf %21, %25 : vector<16x128xf32>
    %c0_12 = arith.constant 0 : index
    %c0_13 = arith.constant 0 : index
    %27 = vector.load %arg6[%c0_12, %c0_13] : memref<1x128xf32, #tpu.memory_space<vmem>>, vector<1x128xf32>
    %28 = vector.broadcast %27 : vector<1x128xf32> to vector<16x128xf32>
    %29 = arith.mulf %26, %28 : vector<16x128xf32>
    %c0_14 = arith.constant 0 : index
    %c0_15 = arith.constant 0 : index
    %30 = vector.load %arg7[%c0_14, %c0_15] : memref<1x128xf32, #tpu.memory_space<vmem>>, vector<1x128xf32>
    %31 = vector.broadcast %30 : vector<1x128xf32> to vector<16x128xf32>
    %32 = arith.addf %29, %31 : vector<16x128xf32>
    %c0_16 = arith.constant 0 : index
    %c0_17 = arith.constant 0 : index
    %33 = vector.load %arg8[%c0_16, %c0_17] : memref<16x128xf32, #tpu.memory_space<vmem>>, vector<16x128xf32>
    tpu.vector_store %arg8[%c0_16, %c0_17], %32 {strides = array<i32>} : memref<16x128xf32, #tpu.memory_space<vmem>>, vector<16x128xf32>,
    return
  }
  func.func @transform_0(%arg0: i32, %arg1: i32) -> (i32, i32) {
    %c0_i32 = arith.constant 0 : i32
    %c0_i32_0 = arith.constant 0 : i32
    return %arg0, %c0_i32 : i32, i32
  }
  func.func @transform_1(%arg0: i32, %arg1: i32) -> (i32, i32) {
    %c0_i32 = arith.constant 0 : i32
    %c0_i32_0 = arith.constant 0 : i32
    return %c0_i32, %arg1 : i32, i32
  }
  func.func @transform_2(%arg0: i32, %arg1: i32) -> (i32, i32) {
    %c0_i32 = arith.constant 0 : i32
    %c0_i32_0 = arith.constant 0 : i32
    return %c0_i32, %arg1 : i32, i32
  }
  func.func @transform_3(%arg0: i32, %arg1: i32) -> (i32, i32) {
    %c0_i32 = arith.constant 0 : i32
    return %arg0, %arg1 : i32, i32
  }
  func.func @transform_4(%arg0: i32, %arg1: i32) -> (i32, i32) {
    %c0_i32 = arith.constant 0 : i32
    %c0_i32_0 = arith.constant 0 : i32
    %c0_i32_1 = arith.constant 0 : i32
    return %c0_i32, %c0_i32_0 : i32, i32
  }
  func.func @transform_5(%arg0: i32, %arg1: i32) -> (i32, i32) {
    %c0_i32 = arith.constant 0 : i32
    %c0_i32_0 = arith.constant 0 : i32
    %c0_i32_1 = arith.constant 0 : i32
    return %c0_i32, %c0_i32_0 : i32, i32
  }
  func.func @transform_6(%arg0: i32, %arg1: i32) -> (i32, i32) {
    %c0_i32 = arith.constant 0 : i32
    return %arg0, %arg1 : i32, i32
  }
}

module attributes {stable_mosaic.version = 11 : i64} {
  func.func @kernel(%arg0: i32, %arg1: i32, %arg2: memref<16x128xf32, #tpu.memory_space<vmem>>, %arg3: memref<128x256xbf16, #tpu.memory_space<vmem>>, %arg4: memref<1x256xf32, #tpu.memory_space<vmem>>, %arg5: memref<16x256xf32, #tpu.memory_space<vmem>>) attributes {dimension_semantics = [#tpu.dimension_semantics<parallel>, #tpu.dimension_semantics<parallel>], iteration_bounds = array<i64: 1, 1>, scalar_prefetch = 0 : i64, scratch_operands = 0 : i64, tpu.core_type = #tpu.core_type<tc>, window_params = [{transform_indices = @transform_0, window_bounds = array<i64: 16, 128>}, {transform_indices = @transform_1, window_bounds = array<i64: 128, 256>}, {transform_indices = @transform_2, window_bounds = array<i64: 1, 256>}, {transform_indices = @transform_3, window_bounds = array<i64: 16, 256>}]} {
    %c0 = arith.constant 0 : index
    %c0_0 = arith.constant 0 : index
    %0 = vector.load %arg2[%c0, %c0_0] : memref<16x128xf32, #tpu.memory_space<vmem>>, vector<16x128xf32>
    %1 = arith.truncf %0 : vector<16x128xf32> to vector<16x128xbf16>
    %c0_1 = arith.constant 0 : index
    %c0_2 = arith.constant 0 : index
    %2 = vector.load %arg3[%c0_1, %c0_2] : memref<128x256xbf16, #tpu.memory_space<vmem>>, vector<128x256xbf16>
    %cst = arith.constant dense<0.000000e+00> : vector<16x256xf32>
    %3 = tpu.matmul %1, %2, %cst {dimension_numbers = #tpu.dot_dimension_numbers<[1], [0], [0], [1], [0, 0, 1, 1], [], []>} : vector<16x128xbf16>, vector<128x256xbf16>, vector<16x256xf32> -> vector<16x256xf32>
    %c0_3 = arith.constant 0 : index
    %c0_4 = arith.constant 0 : index
    %4 = vector.load %arg4[%c0_3, %c0_4] : memref<1x256xf32, #tpu.memory_space<vmem>>, vector<1x256xf32>
    %5 = vector.broadcast %4 : vector<1x256xf32> to vector<16x256xf32>
    %6 = arith.addf %3, %5 : vector<16x256xf32>
    %cst_5 = arith.constant 0.000000e+00 : f32
    %7 = vector.broadcast %cst_5 : f32 to vector<16x256xf32>
    %8 = arith.maximumf %6, %7 : vector<16x256xf32>
    %c0_6 = arith.constant 0 : index
    %c0_7 = arith.constant 0 : index
    %9 = vector.load %arg5[%c0_6, %c0_7] : memref<16x256xf32, #tpu.memory_space<vmem>>, vector<16x256xf32>
    tpu.vector_store %arg5[%c0_6, %c0_7], %8 {strides = array<i32>} : memref<16x256xf32, #tpu.memory_space<vmem>>, vector<16x256xf32>,
    return
  }
  func.func @transform_0(%arg0: i32, %arg1: i32) -> (i32, i32) {
    %c0_i32 = arith.constant 0 : i32
    %c0_i32_0 = arith.constant 0 : i32
    return %arg0, %c0_i32 : i32, i32
  }
  func.func @transform_1(%arg0: i32, %arg1: i32) -> (i32, i32) {
    %c0_i32 = arith.constant 0 : i32
    %c0_i32_0 = arith.constant 0 : i32
    return %c0_i32, %arg1 : i32, i32
  }
  func.func @transform_2(%arg0: i32, %arg1: i32) -> (i32, i32) {
    %c0_i32 = arith.constant 0 : i32
    %c0_i32_0 = arith.constant 0 : i32
    return %c0_i32, %arg1 : i32, i32
  }
  func.func @transform_3(%arg0: i32, %arg1: i32) -> (i32, i32) {
    %c0_i32 = arith.constant 0 : i32
    return %arg0, %arg1 : i32, i32
  }
}

module attributes {stable_mosaic.version = 11 : i64} {
  func.func @kernel(%arg0: i32, %arg1: i32, %arg2: memref<1x8x128xf32, #tpu.memory_space<vmem>>, %arg3: memref<1x8x128xf32, #tpu.memory_space<vmem>>, %arg4: memref<1x8x128xf32, #tpu.memory_space<vmem>>, %arg5: memref<1x1x8xf32, #tpu.memory_space<vmem>>, %arg6: memref<128x128xbf16, #tpu.memory_space<vmem>>, %arg7: memref<1x128xf32, #tpu.memory_space<vmem>>, %arg8: memref<1x8x128xf32, #tpu.memory_space<vmem>>, %arg9: memref<1x128xf32, #tpu.memory_space<vmem>>, %arg10: memref<1x128xf32, #tpu.memory_space<vmem>>, %arg11: memref<1x8x128xf32, #tpu.memory_space<vmem>>) attributes {dimension_semantics = [#tpu.dimension_semantics<parallel>, #tpu.dimension_semantics<parallel>], iteration_bounds = array<i64: 2, 1>, scalar_prefetch = 0 : i64, scratch_operands = 0 : i64, tpu.core_type = #tpu.core_type<tc>, window_params = [{transform_indices = @transform_0, window_bounds = array<i64: 1, 8, 128>}, {transform_indices = @transform_1, window_bounds = array<i64: 1, 8, 128>}, {transform_indices = @transform_2, window_bounds = array<i64: 1, 8, 128>}, {transform_indices = @transform_3, window_bounds = array<i64: 1, 1, 8>}, {pipeline_mode = #tpu.pipeline_mode<synchronous>, transform_indices = @transform_4, window_bounds = array<i64: 128, 128>}, {pipeline_mode = #tpu.pipeline_mode<synchronous>, transform_indices = @transform_5, window_bounds = array<i64: 1, 128>}, {transform_indices = @transform_6, window_bounds = array<i64: 1, 8, 128>}, {pipeline_mode = #tpu.pipeline_mode<synchronous>, transform_indices = @transform_7, window_bounds = array<i64: 1, 128>}, {pipeline_mode = #tpu.pipeline_mode<synchronous>, transform_indices = @transform_8, window_bounds = array<i64: 1, 128>}, {transform_indices = @transform_9, window_bounds = array<i64: 1, 8, 128>}]} {
    %c0 = arith.constant 0 : index
    %c0_0 = arith.constant 0 : index
    %c0_1 = arith.constant 0 : index
    %0 = vector.load %arg2[%c0, %c0_0, %c0_1] : memref<1x8x128xf32, #tpu.memory_space<vmem>>, vector<1x8x128xf32>
    %1 = vector.shape_cast %0 : vector<1x8x128xf32> to vector<8x128xf32>
    %cst = arith.constant 0.176776692 : f32
    %2 = vector.broadcast %cst : f32 to vector<8x128xf32>
    %3 = arith.mulf %1, %2 : vector<8x128xf32>
    %4 = arith.truncf %3 : vector<8x128xf32> to vector<8x128xbf16>
    %c0_2 = arith.constant 0 : index
    %c0_3 = arith.constant 0 : index
    %c0_4 = arith.constant 0 : index
    %5 = vector.load %arg3[%c0_2, %c0_3, %c0_4] : memref<1x8x128xf32, #tpu.memory_space<vmem>>, vector<1x8x128xf32>
    %6 = vector.shape_cast %5 : vector<1x8x128xf32> to vector<8x128xf32>
    %7 = arith.truncf %6 : vector<8x128xf32> to vector<8x128xbf16>
    %c0_5 = arith.constant 0 : index
    %c0_6 = arith.constant 0 : index
    %c0_7 = arith.constant 0 : index
    %8 = vector.load %arg4[%c0_5, %c0_6, %c0_7] : memref<1x8x128xf32, #tpu.memory_space<vmem>>, vector<1x8x128xf32>
    %9 = vector.shape_cast %8 : vector<1x8x128xf32> to vector<8x128xf32>
    %10 = arith.truncf %9 : vector<8x128xf32> to vector<8x128xbf16>
    %c0_8 = arith.constant 0 : index
    %c0_9 = arith.constant 0 : index
    %11 = vector.load %arg6[%c0_8, %c0_9] : memref<128x128xbf16, #tpu.memory_space<vmem>>, vector<128x128xbf16>
    %c0_10 = arith.constant 0 : index
    %c0_11 = arith.constant 0 : index
    %c0_12 = arith.constant 0 : index
    %12 = vector.load %arg5[%c0_10, %c0_11, %c0_12] : memref<1x1x8xf32, #tpu.memory_space<vmem>>, vector<1x1x8xf32>
    %13 = vector.shape_cast %12 : vector<1x1x8xf32> to vector<1x8xf32>
    %cst_13 = arith.constant 0.000000e+00 : f32
    %14 = vector.broadcast %cst_13 : f32 to vector<8x128xf32>
    %15 = vector.extract_strided_slice %4 {offsets = [0, 0], sizes = [8, 32], strides = [1, 1]} : vector<8x128xbf16> to vector<8x32xbf16>
    %16 = vector.extract_strided_slice %7 {offsets = [0, 0], sizes = [8, 32], strides = [1, 1]} : vector<8x128xbf16> to vector<8x32xbf16>
    %17 = vector.extract_strided_slice %10 {offsets = [0, 0], sizes = [8, 32], strides = [1, 1]} : vector<8x128xbf16> to vector<8x32xbf16>
    %cst_14 = arith.constant dense<0.000000e+00> : vector<8x8xf32>
    %18 = tpu.matmul %15, %16, %cst_14 {dimension_numbers = #tpu.dot_dimension_numbers<[1], [1], [0], [0], [0, 0, 1, 0], [], []>} : vector<8x32xbf16>, vector<8x32xbf16>, vector<8x8xf32> -> vector<8x8xf32>
    %19 = vector.broadcast %13 : vector<1x8xf32> to vector<8x8xf32>
    %20 = arith.addf %18, %19 : vector<8x8xf32>
    %cst_15 = arith.constant dense<0xFF800000> : vector<8xf32>
    %21 = vector.multi_reduction <maximumf>, %20, %cst_15 [1] : vector<8x8xf32> to vector<8xf32>
    %22 = vector.shape_cast %21 : vector<8xf32> to vector<8x1xf32>
    %23 = vector.broadcast %22 : vector<8x1xf32> to vector<8x8xf32>
    %24 = arith.subf %20, %23 : vector<8x8xf32>
    %25 = math.exp %24 : vector<8x8xf32>
    %cst_16 = arith.constant dense<0.000000e+00> : vector<8xf32>
    %26 = vector.multi_reduction <add>, %25, %cst_16 [1] : vector<8x8xf32> to vector<8xf32>
    %27 = vector.shape_cast %26 : vector<8xf32> to vector<8x1xf32>
    %28 = arith.truncf %25 : vector<8x8xf32> to vector<8x8xbf16>
    %cst_17 = arith.constant dense<0.000000e+00> : vector<8x32xf32>
    %29 = tpu.matmul %28, %17, %cst_17 {dimension_numbers = #tpu.dot_dimension_numbers<[1], [0], [0], [1], [0, 0, 1, 1], [], []>} : vector<8x8xbf16>, vector<8x32xbf16>, vector<8x32xf32> -> vector<8x32xf32>
    %30 = tpu.reciprocal %27 {approx = true} : vector<8x1xf32> -> vector<8x1xf32>
    %31 = vector.broadcast %30 : vector<8x1xf32> to vector<8x32xf32>
    %32 = arith.mulf %29, %31 : vector<8x32xf32>
    %33 = arith.truncf %32 : vector<8x32xf32> to vector<8x32xbf16>
    %34 = vector.extract_strided_slice %11 {offsets = [0, 0], sizes = [32, 128], strides = [1, 1]} : vector<128x128xbf16> to vector<32x128xbf16>
    %cst_18 = arith.constant dense<0.000000e+00> : vector<8x128xf32>
    %35 = tpu.matmul %33, %34, %cst_18 {dimension_numbers = #tpu.dot_dimension_numbers<[1], [0], [0], [1], [0, 0, 1, 1], [], []>} : vector<8x32xbf16>, vector<32x128xbf16>, vector<8x128xf32> -> vector<8x128xf32>
    %36 = arith.addf %14, %35 : vector<8x128xf32>
    %37 = vector.extract_strided_slice %4 {offsets = [0, 32], sizes = [8, 32], strides = [1, 1]} : vector<8x128xbf16> to vector<8x32xbf16>
    %38 = vector.extract_strided_slice %7 {offsets = [0, 32], sizes = [8, 32], strides = [1, 1]} : vector<8x128xbf16> to vector<8x32xbf16>
    %39 = vector.extract_strided_slice %10 {offsets = [0, 32], sizes = [8, 32], strides = [1, 1]} : vector<8x128xbf16> to vector<8x32xbf16>
    %cst_19 = arith.constant dense<0.000000e+00> : vector<8x8xf32>
    %40 = tpu.matmul %37, %38, %cst_19 {dimension_numbers = #tpu.dot_dimension_numbers<[1], [1], [0], [0], [0, 0, 1, 0], [], []>} : vector<8x32xbf16>, vector<8x32xbf16>, vector<8x8xf32> -> vector<8x8xf32>
    %41 = vector.broadcast %13 : vector<1x8xf32> to vector<8x8xf32>
    %42 = arith.addf %40, %41 : vector<8x8xf32>
    %cst_20 = arith.constant dense<0xFF800000> : vector<8xf32>
    %43 = vector.multi_reduction <maximumf>, %42, %cst_20 [1] : vector<8x8xf32> to vector<8xf32>
    %44 = vector.shape_cast %43 : vector<8xf32> to vector<8x1xf32>
    %45 = vector.broadcast %44 : vector<8x1xf32> to vector<8x8xf32>
    %46 = arith.subf %42, %45 : vector<8x8xf32>
    %47 = math.exp %46 : vector<8x8xf32>
    %cst_21 = arith.constant dense<0.000000e+00> : vector<8xf32>
    %48 = vector.multi_reduction <add>, %47, %cst_21 [1] : vector<8x8xf32> to vector<8xf32>
    %49 = vector.shape_cast %48 : vector<8xf32> to vector<8x1xf32>
    %50 = arith.truncf %47 : vector<8x8xf32> to vector<8x8xbf16>
    %cst_22 = arith.constant dense<0.000000e+00> : vector<8x32xf32>
    %51 = tpu.matmul %50, %39, %cst_22 {dimension_numbers = #tpu.dot_dimension_numbers<[1], [0], [0], [1], [0, 0, 1, 1], [], []>} : vector<8x8xbf16>, vector<8x32xbf16>, vector<8x32xf32> -> vector<8x32xf32>
    %52 = tpu.reciprocal %49 {approx = true} : vector<8x1xf32> -> vector<8x1xf32>
    %53 = vector.broadcast %52 : vector<8x1xf32> to vector<8x32xf32>
    %54 = arith.mulf %51, %53 : vector<8x32xf32>
    %55 = arith.truncf %54 : vector<8x32xf32> to vector<8x32xbf16>
    %56 = vector.extract_strided_slice %11 {offsets = [32, 0], sizes = [32, 128], strides = [1, 1]} : vector<128x128xbf16> to vector<32x128xbf16>
    %cst_23 = arith.constant dense<0.000000e+00> : vector<8x128xf32>
    %57 = tpu.matmul %55, %56, %cst_23 {dimension_numbers = #tpu.dot_dimension_numbers<[1], [0], [0], [1], [0, 0, 1, 1], [], []>} : vector<8x32xbf16>, vector<32x128xbf16>, vector<8x128xf32> -> vector<8x128xf32>
    %58 = arith.addf %36, %57 : vector<8x128xf32>
    %59 = vector.extract_strided_slice %4 {offsets = [0, 64], sizes = [8, 32], strides = [1, 1]} : vector<8x128xbf16> to vector<8x32xbf16>
    %60 = vector.extract_strided_slice %7 {offsets = [0, 64], sizes = [8, 32], strides = [1, 1]} : vector<8x128xbf16> to vector<8x32xbf16>
    %61 = vector.extract_strided_slice %10 {offsets = [0, 64], sizes = [8, 32], strides = [1, 1]} : vector<8x128xbf16> to vector<8x32xbf16>
    %cst_24 = arith.constant dense<0.000000e+00> : vector<8x8xf32>
    %62 = tpu.matmul %59, %60, %cst_24 {dimension_numbers = #tpu.dot_dimension_numbers<[1], [1], [0], [0], [0, 0, 1, 0], [], []>} : vector<8x32xbf16>, vector<8x32xbf16>, vector<8x8xf32> -> vector<8x8xf32>
    %63 = vector.broadcast %13 : vector<1x8xf32> to vector<8x8xf32>
    %64 = arith.addf %62, %63 : vector<8x8xf32>
    %cst_25 = arith.constant dense<0xFF800000> : vector<8xf32>
    %65 = vector.multi_reduction <maximumf>, %64, %cst_25 [1] : vector<8x8xf32> to vector<8xf32>
    %66 = vector.shape_cast %65 : vector<8xf32> to vector<8x1xf32>
    %67 = vector.broadcast %66 : vector<8x1xf32> to vector<8x8xf32>
    %68 = arith.subf %64, %67 : vector<8x8xf32>
    %69 = math.exp %68 : vector<8x8xf32>
    %cst_26 = arith.constant dense<0.000000e+00> : vector<8xf32>
    %70 = vector.multi_reduction <add>, %69, %cst_26 [1] : vector<8x8xf32> to vector<8xf32>
    %71 = vector.shape_cast %70 : vector<8xf32> to vector<8x1xf32>
    %72 = arith.truncf %69 : vector<8x8xf32> to vector<8x8xbf16>
    %cst_27 = arith.constant dense<0.000000e+00> : vector<8x32xf32>
    %73 = tpu.matmul %72, %61, %cst_27 {dimension_numbers = #tpu.dot_dimension_numbers<[1], [0], [0], [1], [0, 0, 1, 1], [], []>} : vector<8x8xbf16>, vector<8x32xbf16>, vector<8x32xf32> -> vector<8x32xf32>
    %74 = tpu.reciprocal %71 {approx = true} : vector<8x1xf32> -> vector<8x1xf32>
    %75 = vector.broadcast %74 : vector<8x1xf32> to vector<8x32xf32>
    %76 = arith.mulf %73, %75 : vector<8x32xf32>
    %77 = arith.truncf %76 : vector<8x32xf32> to vector<8x32xbf16>
    %78 = vector.extract_strided_slice %11 {offsets = [64, 0], sizes = [32, 128], strides = [1, 1]} : vector<128x128xbf16> to vector<32x128xbf16>
    %cst_28 = arith.constant dense<0.000000e+00> : vector<8x128xf32>
    %79 = tpu.matmul %77, %78, %cst_28 {dimension_numbers = #tpu.dot_dimension_numbers<[1], [0], [0], [1], [0, 0, 1, 1], [], []>} : vector<8x32xbf16>, vector<32x128xbf16>, vector<8x128xf32> -> vector<8x128xf32>
    %80 = arith.addf %58, %79 : vector<8x128xf32>
    %81 = vector.extract_strided_slice %4 {offsets = [0, 96], sizes = [8, 32], strides = [1, 1]} : vector<8x128xbf16> to vector<8x32xbf16>
    %82 = vector.extract_strided_slice %7 {offsets = [0, 96], sizes = [8, 32], strides = [1, 1]} : vector<8x128xbf16> to vector<8x32xbf16>
    %83 = vector.extract_strided_slice %10 {offsets = [0, 96], sizes = [8, 32], strides = [1, 1]} : vector<8x128xbf16> to vector<8x32xbf16>
    %cst_29 = arith.constant dense<0.000000e+00> : vector<8x8xf32>
    %84 = tpu.matmul %81, %82, %cst_29 {dimension_numbers = #tpu.dot_dimension_numbers<[1], [1], [0], [0], [0, 0, 1, 0], [], []>} : vector<8x32xbf16>, vector<8x32xbf16>, vector<8x8xf32> -> vector<8x8xf32>
    %85 = vector.broadcast %13 : vector<1x8xf32> to vector<8x8xf32>
    %86 = arith.addf %84, %85 : vector<8x8xf32>
    %cst_30 = arith.constant dense<0xFF800000> : vector<8xf32>
    %87 = vector.multi_reduction <maximumf>, %86, %cst_30 [1] : vector<8x8xf32> to vector<8xf32>
    %88 = vector.shape_cast %87 : vector<8xf32> to vector<8x1xf32>
    %89 = vector.broadcast %88 : vector<8x1xf32> to vector<8x8xf32>
    %90 = arith.subf %86, %89 : vector<8x8xf32>
    %91 = math.exp %90 : vector<8x8xf32>
    %cst_31 = arith.constant dense<0.000000e+00> : vector<8xf32>
    %92 = vector.multi_reduction <add>, %91, %cst_31 [1] : vector<8x8xf32> to vector<8xf32>
    %93 = vector.shape_cast %92 : vector<8xf32> to vector<8x1xf32>
    %94 = arith.truncf %91 : vector<8x8xf32> to vector<8x8xbf16>
    %cst_32 = arith.constant dense<0.000000e+00> : vector<8x32xf32>
    %95 = tpu.matmul %94, %83, %cst_32 {dimension_numbers = #tpu.dot_dimension_numbers<[1], [0], [0], [1], [0, 0, 1, 1], [], []>} : vector<8x8xbf16>, vector<8x32xbf16>, vector<8x32xf32> -> vector<8x32xf32>
    %96 = tpu.reciprocal %93 {approx = true} : vector<8x1xf32> -> vector<8x1xf32>
    %97 = vector.broadcast %96 : vector<8x1xf32> to vector<8x32xf32>
    %98 = arith.mulf %95, %97 : vector<8x32xf32>
    %99 = arith.truncf %98 : vector<8x32xf32> to vector<8x32xbf16>
    %100 = vector.extract_strided_slice %11 {offsets = [96, 0], sizes = [32, 128], strides = [1, 1]} : vector<128x128xbf16> to vector<32x128xbf16>
    %cst_33 = arith.constant dense<0.000000e+00> : vector<8x128xf32>
    %101 = tpu.matmul %99, %100, %cst_33 {dimension_numbers = #tpu.dot_dimension_numbers<[1], [0], [0], [1], [0, 0, 1, 1], [], []>} : vector<8x32xbf16>, vector<32x128xbf16>, vector<8x128xf32> -> vector<8x128xf32>
    %102 = arith.addf %80, %101 : vector<8x128xf32>
    %c0_34 = arith.constant 0 : index
    %c0_35 = arith.constant 0 : index
    %103 = vector.load %arg7[%c0_34, %c0_35] : memref<1x128xf32, #tpu.memory_space<vmem>>, vector<1x128xf32>
    %104 = vector.broadcast %103 : vector<1x128xf32> to vector<8x128xf32>
    %105 = arith.addf %102, %104 : vector<8x128xf32>
    %c0_36 = arith.constant 0 : index
    %c0_37 = arith.constant 0 : index
    %c0_38 = arith.constant 0 : index
    %106 = vector.load %arg8[%c0_36, %c0_37, %c0_38] : memref<1x8x128xf32, #tpu.memory_space<vmem>>, vector<1x8x128xf32>
    %107 = vector.shape_cast %106 : vector<1x8x128xf32> to vector<8x128xf32>
    %108 = arith.addf %105, %107 : vector<8x128xf32>
    %cst_39 = arith.constant dense<0.000000e+00> : vector<8xf32>
    %109 = vector.multi_reduction <add>, %108, %cst_39 [1] : vector<8x128xf32> to vector<8xf32>
    %110 = vector.shape_cast %109 : vector<8xf32> to vector<8x1xf32>
    %cst_40 = arith.constant 1.280000e+02 : f32
    %111 = vector.broadcast %cst_40 : f32 to vector<8x1xf32>
    %112 = arith.divf %110, %111 : vector<8x1xf32>
    %113 = vector.broadcast %112 : vector<8x1xf32> to vector<8x128xf32>
    %114 = arith.subf %108, %113 : vector<8x128xf32>
    %115 = arith.mulf %114, %114 : vector<8x128xf32>
    %cst_41 = arith.constant dense<0.000000e+00> : vector<8xf32>
    %116 = vector.multi_reduction <add>, %115, %cst_41 [1] : vector<8x128xf32> to vector<8xf32>
    %117 = vector.shape_cast %116 : vector<8xf32> to vector<8x1xf32>
    %cst_42 = arith.constant 1.280000e+02 : f32
    %118 = vector.broadcast %cst_42 : f32 to vector<8x1xf32>
    %119 = arith.divf %117, %118 : vector<8x1xf32>
    %120 = vector.broadcast %112 : vector<8x1xf32> to vector<8x128xf32>
    %121 = arith.subf %108, %120 : vector<8x128xf32>
    %cst_43 = arith.constant 9.99999974E-6 : f32
    %122 = vector.broadcast %cst_43 : f32 to vector<8x1xf32>
    %123 = arith.addf %119, %122 : vector<8x1xf32>
    %124 = math.rsqrt %123 : vector<8x1xf32>
    %125 = vector.broadcast %124 : vector<8x1xf32> to vector<8x128xf32>
    %126 = arith.mulf %121, %125 : vector<8x128xf32>
    %c0_44 = arith.constant 0 : index
    %c0_45 = arith.constant 0 : index
    %127 = vector.load %arg9[%c0_44, %c0_45] : memref<1x128xf32, #tpu.memory_space<vmem>>, vector<1x128xf32>
    %128 = vector.broadcast %127 : vector<1x128xf32> to vector<8x128xf32>
    %129 = arith.mulf %126, %128 : vector<8x128xf32>
    %c0_46 = arith.constant 0 : index
    %c0_47 = arith.constant 0 : index
    %130 = vector.load %arg10[%c0_46, %c0_47] : memref<1x128xf32, #tpu.memory_space<vmem>>, vector<1x128xf32>
    %131 = vector.broadcast %130 : vector<1x128xf32> to vector<8x128xf32>
    %132 = arith.addf %129, %131 : vector<8x128xf32>
    %c0_48 = arith.constant 0 : index
    %c0_49 = arith.constant 0 : index
    %c0_50 = arith.constant 0 : index
    %133 = vector.load %arg11[%c0_48, %c0_49, %c0_50] : memref<1x8x128xf32, #tpu.memory_space<vmem>>, vector<1x8x128xf32>
    %134 = vector.shape_cast %133 : vector<1x8x128xf32> to vector<8x128xf32>
    %135 = vector.shape_cast %132 : vector<8x128xf32> to vector<1x8x128xf32>
    tpu.vector_store %arg11[%c0_48, %c0_49, %c0_50], %135 {strides = array<i32>} : memref<1x8x128xf32, #tpu.memory_space<vmem>>, vector<1x8x128xf32>,
    return
  }
  func.func @transform_0(%arg0: i32, %arg1: i32) -> (i32, i32, i32) {
    %c0_i32 = arith.constant 0 : i32
    %c0_i32_0 = arith.constant 0 : i32
    return %arg0, %arg1, %c0_i32 : i32, i32, i32
  }
  func.func @transform_1(%arg0: i32, %arg1: i32) -> (i32, i32, i32) {
    %c0_i32 = arith.constant 0 : i32
    %c1_i32 = arith.constant 1 : i32
    %c0_i32_0 = arith.constant 0 : i32
    return %arg0, %c0_i32, %c1_i32 : i32, i32, i32
  }
  func.func @transform_2(%arg0: i32, %arg1: i32) -> (i32, i32, i32) {
    %c0_i32 = arith.constant 0 : i32
    %c2_i32 = arith.constant 2 : i32
    %c0_i32_0 = arith.constant 0 : i32
    return %arg0, %c0_i32, %c2_i32 : i32, i32, i32
  }
  func.func @transform_3(%arg0: i32, %arg1: i32) -> (i32, i32, i32) {
    %c0_i32 = arith.constant 0 : i32
    %c0_i32_0 = arith.constant 0 : i32
    %c0_i32_1 = arith.constant 0 : i32
    return %arg0, %c0_i32, %c0_i32_0 : i32, i32, i32
  }
  func.func @transform_4(%arg0: i32, %arg1: i32) -> (i32, i32) {
    %c0_i32 = arith.constant 0 : i32
    %c0_i32_0 = arith.constant 0 : i32
    %c0_i32_1 = arith.constant 0 : i32
    return %c0_i32, %c0_i32_0 : i32, i32
  }
  func.func @transform_5(%arg0: i32, %arg1: i32) -> (i32, i32) {
    %c0_i32 = arith.constant 0 : i32
    %c0_i32_0 = arith.constant 0 : i32
    %c0_i32_1 = arith.constant 0 : i32
    return %c0_i32, %c0_i32_0 : i32, i32
  }
  func.func @transform_6(%arg0: i32, %arg1: i32) -> (i32, i32, i32) {
    %c0_i32 = arith.constant 0 : i32
    %c0_i32_0 = arith.constant 0 : i32
    return %arg0, %arg1, %c0_i32 : i32, i32, i32
  }
  func.func @transform_7(%arg0: i32, %arg1: i32) -> (i32, i32) {
    %c0_i32 = arith.constant 0 : i32
    %c0_i32_0 = arith.constant 0 : i32
    %c0_i32_1 = arith.constant 0 : i32
    return %c0_i32, %c0_i32_0 : i32, i32
  }
  func.func @transform_8(%arg0: i32, %arg1: i32) -> (i32, i32) {
    %c0_i32 = arith.constant 0 : i32
    %c0_i32_0 = arith.constant 0 : i32
    %c0_i32_1 = arith.constant 0 : i32
    return %c0_i32, %c0_i32_0 : i32, i32
  }
  func.func @transform_9(%arg0: i32, %arg1: i32) -> (i32, i32, i32) {
    %c0_i32 = arith.constant 0 : i32
    %c0_i32_0 = arith.constant 0 : i32
    return %arg0, %arg1, %c0_i32 : i32, i32, i32
  }
}

module attributes {stable_mosaic.version = 11 : i64} {
  func.func @kernel(%arg0: i32, %arg1: i32, %arg2: memref<16x128xf32, #tpu.memory_space<vmem>>, %arg3: memref<128x256xbf16, #tpu.memory_space<vmem>>, %arg4: memref<1x256xf32, #tpu.memory_space<vmem>>, %arg5: memref<16x256xf32, #tpu.memory_space<vmem>>) attributes {dimension_semantics = [#tpu.dimension_semantics<parallel>, #tpu.dimension_semantics<parallel>], iteration_bounds = array<i64: 1, 1>, scalar_prefetch = 0 : i64, scratch_operands = 0 : i64, tpu.core_type = #tpu.core_type<tc>, window_params = [{transform_indices = @transform_0, window_bounds = array<i64: 16, 128>}, {transform_indices = @transform_1, window_bounds = array<i64: 128, 256>}, {transform_indices = @transform_2, window_bounds = array<i64: 1, 256>}, {transform_indices = @transform_3, window_bounds = array<i64: 16, 256>}]} {
    %c0 = arith.constant 0 : index
    %c0_0 = arith.constant 0 : index
    %0 = vector.load %arg2[%c0, %c0_0] : memref<16x128xf32, #tpu.memory_space<vmem>>, vector<16x128xf32>
    %1 = arith.truncf %0 : vector<16x128xf32> to vector<16x128xbf16>
    %c0_1 = arith.constant 0 : index
    %c0_2 = arith.constant 0 : index
    %2 = vector.load %arg3[%c0_1, %c0_2] : memref<128x256xbf16, #tpu.memory_space<vmem>>, vector<128x256xbf16>
    %cst = arith.constant dense<0.000000e+00> : vector<16x256xf32>
    %3 = tpu.matmul %1, %2, %cst {dimension_numbers = #tpu.dot_dimension_numbers<[1], [0], [0], [1], [0, 0, 1, 1], [], []>} : vector<16x128xbf16>, vector<128x256xbf16>, vector<16x256xf32> -> vector<16x256xf32>
    %c0_3 = arith.constant 0 : index
    %c0_4 = arith.constant 0 : index
    %4 = vector.load %arg4[%c0_3, %c0_4] : memref<1x256xf32, #tpu.memory_space<vmem>>, vector<1x256xf32>
    %5 = vector.broadcast %4 : vector<1x256xf32> to vector<16x256xf32>
    %6 = arith.addf %3, %5 : vector<16x256xf32>
    %c0_5 = arith.constant 0 : index
    %c0_6 = arith.constant 0 : index
    %7 = vector.load %arg5[%c0_5, %c0_6] : memref<16x256xf32, #tpu.memory_space<vmem>>, vector<16x256xf32>
    tpu.vector_store %arg5[%c0_5, %c0_6], %6 {strides = array<i32>} : memref<16x256xf32, #tpu.memory_space<vmem>>, vector<16x256xf32>,
    return
  }
  func.func @transform_0(%arg0: i32, %arg1: i32) -> (i32, i32) {
    %c0_i32 = arith.constant 0 : i32
    %c0_i32_0 = arith.constant 0 : i32
    return %arg0, %c0_i32 : i32, i32
  }
  func.func @transform_1(%arg0: i32, %arg1: i32) -> (i32, i32) {
    %c0_i32 = arith.constant 0 : i32
    %c0_i32_0 = arith.constant 0 : i32
    return %c0_i32, %arg1 : i32, i32
  }
  func.func @transform_2(%arg0: i32, %arg1: i32) -> (i32, i32) {
    %c0_i32 = arith.constant 0 : i32
    %c0_i32_0 = arith.constant 0 : i32
    return %c0_i32, %arg1 : i32, i32
  }
  func.func @transform_3(%arg0: i32, %arg1: i32) -> (i32, i32) {
    %c0_i32 = arith.constant 0 : i32
    return %arg0, %arg1 : i32, i32
  }
}

module attributes {stable_mosaic.version = 11 : i64} {
  func.func @kernel(%arg0: i32, %arg1: i32, %arg2: memref<1x8x128xf32, #tpu.memory_space<vmem>>, %arg3: memref<1x8x128xf32, #tpu.memory_space<vmem>>, %arg4: memref<1x8x128xf32, #tpu.memory_space<vmem>>, %arg5: memref<1x1x8xf32, #tpu.memory_space<vmem>>, %arg6: memref<128x128xbf16, #tpu.memory_space<vmem>>, %arg7: memref<1x128xf32, #tpu.memory_space<vmem>>, %arg8: memref<1x8x128xf32, #tpu.memory_space<vmem>>, %arg9: memref<1x128xf32, #tpu.memory_space<vmem>>, %arg10: memref<1x128xf32, #tpu.memory_space<vmem>>, %arg11: memref<1x8x128xf32, #tpu.memory_space<vmem>>) attributes {dimension_semantics = [#tpu.dimension_semantics<parallel>, #tpu.dimension_semantics<parallel>], iteration_bounds = array<i64: 2, 1>, scalar_prefetch = 0 : i64, scratch_operands = 0 : i64, tpu.core_type = #tpu.core_type<tc>, window_params = [{transform_indices = @transform_0, window_bounds = array<i64: 1, 8, 128>}, {transform_indices = @transform_1, window_bounds = array<i64: 1, 8, 128>}, {transform_indices = @transform_2, window_bounds = array<i64: 1, 8, 128>}, {transform_indices = @transform_3, window_bounds = array<i64: 1, 1, 8>}, {pipeline_mode = #tpu.pipeline_mode<synchronous>, transform_indices = @transform_4, window_bounds = array<i64: 128, 128>}, {pipeline_mode = #tpu.pipeline_mode<synchronous>, transform_indices = @transform_5, window_bounds = array<i64: 1, 128>}, {transform_indices = @transform_6, window_bounds = array<i64: 1, 8, 128>}, {pipeline_mode = #tpu.pipeline_mode<synchronous>, transform_indices = @transform_7, window_bounds = array<i64: 1, 128>}, {pipeline_mode = #tpu.pipeline_mode<synchronous>, transform_indices = @transform_8, window_bounds = array<i64: 1, 128>}, {transform_indices = @transform_9, window_bounds = array<i64: 1, 8, 128>}]} {
    %c0 = arith.constant 0 : index
    %c0_0 = arith.constant 0 : index
    %c0_1 = arith.constant 0 : index
    %0 = vector.load %arg2[%c0, %c0_0, %c0_1] : memref<1x8x128xf32, #tpu.memory_space<vmem>>, vector<1x8x128xf32>
    %1 = vector.shape_cast %0 : vector<1x8x128xf32> to vector<8x128xf32>
    %cst = arith.constant 0.176776692 : f32
    %2 = vector.broadcast %cst : f32 to vector<8x128xf32>
    %3 = arith.mulf %1, %2 : vector<8x128xf32>
    %4 = arith.truncf %3 : vector<8x128xf32> to vector<8x128xbf16>
    %c0_2 = arith.constant 0 : index
    %c0_3 = arith.constant 0 : index
    %c0_4 = arith.constant 0 : index
    %5 = vector.load %arg3[%c0_2, %c0_3, %c0_4] : memref<1x8x128xf32, #tpu.memory_space<vmem>>, vector<1x8x128xf32>
    %6 = vector.shape_cast %5 : vector<1x8x128xf32> to vector<8x128xf32>
    %7 = arith.truncf %6 : vector<8x128xf32> to vector<8x128xbf16>
    %c0_5 = arith.constant 0 : index
    %c0_6 = arith.constant 0 : index
    %c0_7 = arith.constant 0 : index
    %8 = vector.load %arg4[%c0_5, %c0_6, %c0_7] : memref<1x8x128xf32, #tpu.memory_space<vmem>>, vector<1x8x128xf32>
    %9 = vector.shape_cast %8 : vector<1x8x128xf32> to vector<8x128xf32>
    %10 = arith.truncf %9 : vector<8x128xf32> to vector<8x128xbf16>
    %c0_8 = arith.constant 0 : index
    %c0_9 = arith.constant 0 : index
    %11 = vector.load %arg6[%c0_8, %c0_9] : memref<128x128xbf16, #tpu.memory_space<vmem>>, vector<128x128xbf16>
    %c0_10 = arith.constant 0 : index
    %c0_11 = arith.constant 0 : index
    %c0_12 = arith.constant 0 : index
    %12 = vector.load %arg5[%c0_10, %c0_11, %c0_12] : memref<1x1x8xf32, #tpu.memory_space<vmem>>, vector<1x1x8xf32>
    %13 = vector.shape_cast %12 : vector<1x1x8xf32> to vector<1x8xf32>
    %cst_13 = arith.constant 0.000000e+00 : f32
    %14 = vector.broadcast %cst_13 : f32 to vector<8x128xf32>
    %15 = vector.extract_strided_slice %4 {offsets = [0, 0], sizes = [8, 32], strides = [1, 1]} : vector<8x128xbf16> to vector<8x32xbf16>
    %16 = vector.extract_strided_slice %7 {offsets = [0, 0], sizes = [8, 32], strides = [1, 1]} : vector<8x128xbf16> to vector<8x32xbf16>
    %17 = vector.extract_strided_slice %10 {offsets = [0, 0], sizes = [8, 32], strides = [1, 1]} : vector<8x128xbf16> to vector<8x32xbf16>
    %cst_14 = arith.constant dense<0.000000e+00> : vector<8x8xf32>
    %18 = tpu.matmul %15, %16, %cst_14 {dimension_numbers = #tpu.dot_dimension_numbers<[1], [1], [0], [0], [0, 0, 1, 0], [], []>} : vector<8x32xbf16>, vector<8x32xbf16>, vector<8x8xf32> -> vector<8x8xf32>
    %19 = vector.broadcast %13 : vector<1x8xf32> to vector<8x8xf32>
    %20 = arith.addf %18, %19 : vector<8x8xf32>
    %cst_15 = arith.constant dense<0xFF800000> : vector<8xf32>
    %21 = vector.multi_reduction <maximumf>, %20, %cst_15 [1] : vector<8x8xf32> to vector<8xf32>
    %22 = vector.shape_cast %21 : vector<8xf32> to vector<8x1xf32>
    %23 = vector.broadcast %22 : vector<8x1xf32> to vector<8x8xf32>
    %24 = arith.subf %20, %23 : vector<8x8xf32>
    %25 = math.exp %24 : vector<8x8xf32>
    %cst_16 = arith.constant dense<0.000000e+00> : vector<8xf32>
    %26 = vector.multi_reduction <add>, %25, %cst_16 [1] : vector<8x8xf32> to vector<8xf32>
    %27 = vector.shape_cast %26 : vector<8xf32> to vector<8x1xf32>
    %28 = arith.truncf %25 : vector<8x8xf32> to vector<8x8xbf16>
    %cst_17 = arith.constant dense<0.000000e+00> : vector<8x32xf32>
    %29 = tpu.matmul %28, %17, %cst_17 {dimension_numbers = #tpu.dot_dimension_numbers<[1], [0], [0], [1], [0, 0, 1, 1], [], []>} : vector<8x8xbf16>, vector<8x32xbf16>, vector<8x32xf32> -> vector<8x32xf32>
    %30 = tpu.reciprocal %27 {approx = true} : vector<8x1xf32> -> vector<8x1xf32>
    %31 = vector.broadcast %30 : vector<8x1xf32> to vector<8x32xf32>
    %32 = arith.mulf %29, %31 : vector<8x32xf32>
    %33 = arith.truncf %32 : vector<8x32xf32> to vector<8x32xbf16>
    %34 = vector.extract_strided_slice %11 {offsets = [0, 0], sizes = [32, 128], strides = [1, 1]} : vector<128x128xbf16> to vector<32x128xbf16>
    %cst_18 = arith.constant dense<0.000000e+00> : vector<8x128xf32>
    %35 = tpu.matmul %33, %34, %cst_18 {dimension_numbers = #tpu.dot_dimension_numbers<[1], [0], [0], [1], [0, 0, 1, 1], [], []>} : vector<8x32xbf16>, vector<32x128xbf16>, vector<8x128xf32> -> vector<8x128xf32>
    %36 = arith.addf %14, %35 : vector<8x128xf32>
    %37 = vector.extract_strided_slice %4 {offsets = [0, 32], sizes = [8, 32], strides = [1, 1]} : vector<8x128xbf16> to vector<8x32xbf16>
    %38 = vector.extract_strided_slice %7 {offsets = [0, 32], sizes = [8, 32], strides = [1, 1]} : vector<8x128xbf16> to vector<8x32xbf16>
    %39 = vector.extract_strided_slice %10 {offsets = [0, 32], sizes = [8, 32], strides = [1, 1]} : vector<8x128xbf16> to vector<8x32xbf16>
    %cst_19 = arith.constant dense<0.000000e+00> : vector<8x8xf32>
    %40 = tpu.matmul %37, %38, %cst_19 {dimension_numbers = #tpu.dot_dimension_numbers<[1], [1], [0], [0], [0, 0, 1, 0], [], []>} : vector<8x32xbf16>, vector<8x32xbf16>, vector<8x8xf32> -> vector<8x8xf32>
    %41 = vector.broadcast %13 : vector<1x8xf32> to vector<8x8xf32>
    %42 = arith.addf %40, %41 : vector<8x8xf32>
    %cst_20 = arith.constant dense<0xFF800000> : vector<8xf32>
    %43 = vector.multi_reduction <maximumf>, %42, %cst_20 [1] : vector<8x8xf32> to vector<8xf32>
    %44 = vector.shape_cast %43 : vector<8xf32> to vector<8x1xf32>
    %45 = vector.broadcast %44 : vector<8x1xf32> to vector<8x8xf32>
    %46 = arith.subf %42, %45 : vector<8x8xf32>
    %47 = math.exp %46 : vector<8x8xf32>
    %cst_21 = arith.constant dense<0.000000e+00> : vector<8xf32>
    %48 = vector.multi_reduction <add>, %47, %cst_21 [1] : vector<8x8xf32> to vector<8xf32>
    %49 = vector.shape_cast %48 : vector<8xf32> to vector<8x1xf32>
    %50 = arith.truncf %47 : vector<8x8xf32> to vector<8x8xbf16>
    %cst_22 = arith.constant dense<0.000000e+00> : vector<8x32xf32>
    %51 = tpu.matmul %50, %39, %cst_22 {dimension_numbers = #tpu.dot_dimension_numbers<[1], [0], [0], [1], [0, 0, 1, 1], [], []>} : vector<8x8xbf16>, vector<8x32xbf16>, vector<8x32xf32> -> vector<8x32xf32>
    %52 = tpu.reciprocal %49 {approx = true} : vector<8x1xf32> -> vector<8x1xf32>
    %53 = vector.broadcast %52 : vector<8x1xf32> to vector<8x32xf32>
    %54 = arith.mulf %51, %53 : vector<8x32xf32>
    %55 = arith.truncf %54 : vector<8x32xf32> to vector<8x32xbf16>
    %56 = vector.extract_strided_slice %11 {offsets = [32, 0], sizes = [32, 128], strides = [1, 1]} : vector<128x128xbf16> to vector<32x128xbf16>
    %cst_23 = arith.constant dense<0.000000e+00> : vector<8x128xf32>
    %57 = tpu.matmul %55, %56, %cst_23 {dimension_numbers = #tpu.dot_dimension_numbers<[1], [0], [0], [1], [0, 0, 1, 1], [], []>} : vector<8x32xbf16>, vector<32x128xbf16>, vector<8x128xf32> -> vector<8x128xf32>
    %58 = arith.addf %36, %57 : vector<8x128xf32>
    %59 = vector.extract_strided_slice %4 {offsets = [0, 64], sizes = [8, 32], strides = [1, 1]} : vector<8x128xbf16> to vector<8x32xbf16>
    %60 = vector.extract_strided_slice %7 {offsets = [0, 64], sizes = [8, 32], strides = [1, 1]} : vector<8x128xbf16> to vector<8x32xbf16>
    %61 = vector.extract_strided_slice %10 {offsets = [0, 64], sizes = [8, 32], strides = [1, 1]} : vector<8x128xbf16> to vector<8x32xbf16>
    %cst_24 = arith.constant dense<0.000000e+00> : vector<8x8xf32>
    %62 = tpu.matmul %59, %60, %cst_24 {dimension_numbers = #tpu.dot_dimension_numbers<[1], [1], [0], [0], [0, 0, 1, 0], [], []>} : vector<8x32xbf16>, vector<8x32xbf16>, vector<8x8xf32> -> vector<8x8xf32>
    %63 = vector.broadcast %13 : vector<1x8xf32> to vector<8x8xf32>
    %64 = arith.addf %62, %63 : vector<8x8xf32>
    %cst_25 = arith.constant dense<0xFF800000> : vector<8xf32>
    %65 = vector.multi_reduction <maximumf>, %64, %cst_25 [1] : vector<8x8xf32> to vector<8xf32>
    %66 = vector.shape_cast %65 : vector<8xf32> to vector<8x1xf32>
    %67 = vector.broadcast %66 : vector<8x1xf32> to vector<8x8xf32>
    %68 = arith.subf %64, %67 : vector<8x8xf32>
    %69 = math.exp %68 : vector<8x8xf32>
    %cst_26 = arith.constant dense<0.000000e+00> : vector<8xf32>
    %70 = vector.multi_reduction <add>, %69, %cst_26 [1] : vector<8x8xf32> to vector<8xf32>
    %71 = vector.shape_cast %70 : vector<8xf32> to vector<8x1xf32>
    %72 = arith.truncf %69 : vector<8x8xf32> to vector<8x8xbf16>
    %cst_27 = arith.constant dense<0.000000e+00> : vector<8x32xf32>
    %73 = tpu.matmul %72, %61, %cst_27 {dimension_numbers = #tpu.dot_dimension_numbers<[1], [0], [0], [1], [0, 0, 1, 1], [], []>} : vector<8x8xbf16>, vector<8x32xbf16>, vector<8x32xf32> -> vector<8x32xf32>
    %74 = tpu.reciprocal %71 {approx = true} : vector<8x1xf32> -> vector<8x1xf32>
    %75 = vector.broadcast %74 : vector<8x1xf32> to vector<8x32xf32>
    %76 = arith.mulf %73, %75 : vector<8x32xf32>
    %77 = arith.truncf %76 : vector<8x32xf32> to vector<8x32xbf16>
    %78 = vector.extract_strided_slice %11 {offsets = [64, 0], sizes = [32, 128], strides = [1, 1]} : vector<128x128xbf16> to vector<32x128xbf16>
    %cst_28 = arith.constant dense<0.000000e+00> : vector<8x128xf32>
    %79 = tpu.matmul %77, %78, %cst_28 {dimension_numbers = #tpu.dot_dimension_numbers<[1], [0], [0], [1], [0, 0, 1, 1], [], []>} : vector<8x32xbf16>, vector<32x128xbf16>, vector<8x128xf32> -> vector<8x128xf32>
    %80 = arith.addf %58, %79 : vector<8x128xf32>
    %81 = vector.extract_strided_slice %4 {offsets = [0, 96], sizes = [8, 32], strides = [1, 1]} : vector<8x128xbf16> to vector<8x32xbf16>
    %82 = vector.extract_strided_slice %7 {offsets = [0, 96], sizes = [8, 32], strides = [1, 1]} : vector<8x128xbf16> to vector<8x32xbf16>
    %83 = vector.extract_strided_slice %10 {offsets = [0, 96], sizes = [8, 32], strides = [1, 1]} : vector<8x128xbf16> to vector<8x32xbf16>
    %cst_29 = arith.constant dense<0.000000e+00> : vector<8x8xf32>
    %84 = tpu.matmul %81, %82, %cst_29 {dimension_numbers = #tpu.dot_dimension_numbers<[1], [1], [0], [0], [0, 0, 1, 0], [], []>} : vector<8x32xbf16>, vector<8x32xbf16>, vector<8x8xf32> -> vector<8x8xf32>
    %85 = vector.broadcast %13 : vector<1x8xf32> to vector<8x8xf32>
    %86 = arith.addf %84, %85 : vector<8x8xf32>
    %cst_30 = arith.constant dense<0xFF800000> : vector<8xf32>
    %87 = vector.multi_reduction <maximumf>, %86, %cst_30 [1] : vector<8x8xf32> to vector<8xf32>
    %88 = vector.shape_cast %87 : vector<8xf32> to vector<8x1xf32>
    %89 = vector.broadcast %88 : vector<8x1xf32> to vector<8x8xf32>
    %90 = arith.subf %86, %89 : vector<8x8xf32>
    %91 = math.exp %90 : vector<8x8xf32>
    %cst_31 = arith.constant dense<0.000000e+00> : vector<8xf32>
    %92 = vector.multi_reduction <add>, %91, %cst_31 [1] : vector<8x8xf32> to vector<8xf32>
    %93 = vector.shape_cast %92 : vector<8xf32> to vector<8x1xf32>
    %94 = arith.truncf %91 : vector<8x8xf32> to vector<8x8xbf16>
    %cst_32 = arith.constant dense<0.000000e+00> : vector<8x32xf32>
    %95 = tpu.matmul %94, %83, %cst_32 {dimension_numbers = #tpu.dot_dimension_numbers<[1], [0], [0], [1], [0, 0, 1, 1], [], []>} : vector<8x8xbf16>, vector<8x32xbf16>, vector<8x32xf32> -> vector<8x32xf32>
    %96 = tpu.reciprocal %93 {approx = true} : vector<8x1xf32> -> vector<8x1xf32>
    %97 = vector.broadcast %96 : vector<8x1xf32> to vector<8x32xf32>
    %98 = arith.mulf %95, %97 : vector<8x32xf32>
    %99 = arith.truncf %98 : vector<8x32xf32> to vector<8x32xbf16>
    %100 = vector.extract_strided_slice %11 {offsets = [96, 0], sizes = [32, 128], strides = [1, 1]} : vector<128x128xbf16> to vector<32x128xbf16>
    %cst_33 = arith.constant dense<0.000000e+00> : vector<8x128xf32>
    %101 = tpu.matmul %99, %100, %cst_33 {dimension_numbers = #tpu.dot_dimension_numbers<[1], [0], [0], [1], [0, 0, 1, 1], [], []>} : vector<8x32xbf16>, vector<32x128xbf16>, vector<8x128xf32> -> vector<8x128xf32>
    %102 = arith.addf %80, %101 : vector<8x128xf32>
    %c0_34 = arith.constant 0 : index
    %c0_35 = arith.constant 0 : index
    %103 = vector.load %arg7[%c0_34, %c0_35] : memref<1x128xf32, #tpu.memory_space<vmem>>, vector<1x128xf32>
    %104 = vector.broadcast %103 : vector<1x128xf32> to vector<8x128xf32>
    %105 = arith.addf %102, %104 : vector<8x128xf32>
    %c0_36 = arith.constant 0 : index
    %c0_37 = arith.constant 0 : index
    %c0_38 = arith.constant 0 : index
    %106 = vector.load %arg8[%c0_36, %c0_37, %c0_38] : memref<1x8x128xf32, #tpu.memory_space<vmem>>, vector<1x8x128xf32>
    %107 = vector.shape_cast %106 : vector<1x8x128xf32> to vector<8x128xf32>
    %108 = arith.addf %105, %107 : vector<8x128xf32>
    %cst_39 = arith.constant dense<0.000000e+00> : vector<8xf32>
    %109 = vector.multi_reduction <add>, %108, %cst_39 [1] : vector<8x128xf32> to vector<8xf32>
    %110 = vector.shape_cast %109 : vector<8xf32> to vector<8x1xf32>
    %cst_40 = arith.constant 1.280000e+02 : f32
    %111 = vector.broadcast %cst_40 : f32 to vector<8x1xf32>
    %112 = arith.divf %110, %111 : vector<8x1xf32>
    %113 = vector.broadcast %112 : vector<8x1xf32> to vector<8x128xf32>
    %114 = arith.subf %108, %113 : vector<8x128xf32>
    %115 = arith.mulf %114, %114 : vector<8x128xf32>
    %cst_41 = arith.constant dense<0.000000e+00> : vector<8xf32>
    %116 = vector.multi_reduction <add>, %115, %cst_41 [1] : vector<8x128xf32> to vector<8xf32>
    %117 = vector.shape_cast %116 : vector<8xf32> to vector<8x1xf32>
    %cst_42 = arith.constant 1.280000e+02 : f32
    %118 = vector.broadcast %cst_42 : f32 to vector<8x1xf32>
    %119 = arith.divf %117, %118 : vector<8x1xf32>
    %120 = vector.broadcast %112 : vector<8x1xf32> to vector<8x128xf32>
    %121 = arith.subf %108, %120 : vector<8x128xf32>
    %cst_43 = arith.constant 9.99999974E-6 : f32
    %122 = vector.broadcast %cst_43 : f32 to vector<8x1xf32>
    %123 = arith.addf %119, %122 : vector<8x1xf32>
    %124 = math.rsqrt %123 : vector<8x1xf32>
    %125 = vector.broadcast %124 : vector<8x1xf32> to vector<8x128xf32>
    %126 = arith.mulf %121, %125 : vector<8x128xf32>
    %c0_44 = arith.constant 0 : index
    %c0_45 = arith.constant 0 : index
    %127 = vector.load %arg9[%c0_44, %c0_45] : memref<1x128xf32, #tpu.memory_space<vmem>>, vector<1x128xf32>
    %128 = vector.broadcast %127 : vector<1x128xf32> to vector<8x128xf32>
    %129 = arith.mulf %126, %128 : vector<8x128xf32>
    %c0_46 = arith.constant 0 : index
    %c0_47 = arith.constant 0 : index
    %130 = vector.load %arg10[%c0_46, %c0_47] : memref<1x128xf32, #tpu.memory_space<vmem>>, vector<1x128xf32>
    %131 = vector.broadcast %130 : vector<1x128xf32> to vector<8x128xf32>
    %132 = arith.addf %129, %131 : vector<8x128xf32>
    %c0_48 = arith.constant 0 : index
    %c0_49 = arith.constant 0 : index
    %c0_50 = arith.constant 0 : index
    %133 = vector.load %arg11[%c0_48, %c0_49, %c0_50] : memref<1x8x128xf32, #tpu.memory_space<vmem>>, vector<1x8x128xf32>
    %134 = vector.shape_cast %133 : vector<1x8x128xf32> to vector<8x128xf32>
    %135 = vector.shape_cast %132 : vector<8x128xf32> to vector<1x8x128xf32>
    tpu.vector_store %arg11[%c0_48, %c0_49, %c0_50], %135 {strides = array<i32>} : memref<1x8x128xf32, #tpu.memory_space<vmem>>, vector<1x8x128xf32>,
    return
  }
  func.func @transform_0(%arg0: i32, %arg1: i32) -> (i32, i32, i32) {
    %c0_i32 = arith.constant 0 : i32
    %c0_i32_0 = arith.constant 0 : i32
    return %arg0, %arg1, %c0_i32 : i32, i32, i32
  }
  func.func @transform_1(%arg0: i32, %arg1: i32) -> (i32, i32, i32) {
    %c0_i32 = arith.constant 0 : i32
    %c0_i32_0 = arith.constant 0 : i32
    %c0_i32_1 = arith.constant 0 : i32
    return %arg0, %c0_i32, %c0_i32_0 : i32, i32, i32
  }
  func.func @transform_2(%arg0: i32, %arg1: i32) -> (i32, i32, i32) {
    %c0_i32 = arith.constant 0 : i32
    %c1_i32 = arith.constant 1 : i32
    %c0_i32_0 = arith.constant 0 : i32
    return %arg0, %c0_i32, %c1_i32 : i32, i32, i32
  }
  func.func @transform_3(%arg0: i32, %arg1: i32) -> (i32, i32, i32) {
    %c0_i32 = arith.constant 0 : i32
    %c0_i32_0 = arith.constant 0 : i32
    %c0_i32_1 = arith.constant 0 : i32
    return %arg0, %c0_i32, %c0_i32_0 : i32, i32, i32
  }
  func.func @transform_4(%arg0: i32, %arg1: i32) -> (i32, i32) {
    %c0_i32 = arith.constant 0 : i32
    %c0_i32_0 = arith.constant 0 : i32
    %c0_i32_1 = arith.constant 0 : i32
    return %c0_i32, %c0_i32_0 : i32, i32
  }
  func.func @transform_5(%arg0: i32, %arg1: i32) -> (i32, i32) {
    %c0_i32 = arith.constant 0 : i32
    %c0_i32_0 = arith.constant 0 : i32
    %c0_i32_1 = arith.constant 0 : i32
    return %c0_i32, %c0_i32_0 : i32, i32
  }
  func.func @transform_6(%arg0: i32, %arg1: i32) -> (i32, i32, i32) {
    %c0_i32 = arith.constant 0 : i32
    %c0_i32_0 = arith.constant 0 : i32
    return %arg0, %arg1, %c0_i32 : i32, i32, i32
  }
  func.func @transform_7(%arg0: i32, %arg1: i32) -> (i32, i32) {
    %c0_i32 = arith.constant 0 : i32
    %c0_i32_0 = arith.constant 0 : i32
    %c0_i32_1 = arith.constant 0 : i32
    return %c0_i32, %c0_i32_0 : i32, i32
  }
  func.func @transform_8(%arg0: i32, %arg1: i32) -> (i32, i32) {
    %c0_i32 = arith.constant 0 : i32
    %c0_i32_0 = arith.constant 0 : i32
    %c0_i32_1 = arith.constant 0 : i32
    return %c0_i32, %c0_i32_0 : i32, i32
  }
  func.func @transform_9(%arg0: i32, %arg1: i32) -> (i32, i32, i32) {
    %c0_i32 = arith.constant 0 : i32
    %c0_i32_0 = arith.constant 0 : i32
    return %arg0, %arg1, %c0_i32 : i32, i32, i32
  }
}

</mosaic_0001>

<bundles_post_ra>
// kernel: rel2layout_forward.34
= control target key start
LH: loop header
LB: loop body
LE: loop exit
PB: predicated region body
PF: predicated region fallthrough
CT: control target
= control target key end

     0   :  { %8 = vsyncpa [#allocation3], 0  ;;  %s308_s0 = inlined_call_operand.hbm [shape: f32[16,128], index: 0, kind: input, shape index: {}]   ;;  %s309_s1 = inlined_call_operand.hbm [shape: f32[1,128], index: 1, kind: input, shape index: {}]   ;;  %s310_s2 = inlined_call_operand.hbm [shape: f32[1,128], index: 2, kind: input, shape index: {}]   ;;  %s311_s3 = inlined_call_operand.hbm [shape: f32[16,128], index: 3, kind: output, shape index: {}]  }
   0x1   :  { %9 = vsyncpa [#allocation6], 0 }
   0x2   :  { %10 = vsyncpa [#allocation4], 0  ;;  %s221_s12 = smov [#allocation5]   ;;  %s222_s14 = smov [#allocation2]  }
   0x3   :  { %s29_s13 = sshll.u32 %s221_s12, 4  ;;  %s16_s15 = sshll.u32 %s222_s14, 4  ;;  %s30_s13 = int_to_ptr.vmem [resolvable:$true] %s29_s13  ;;  %s247_s15 = int_to_ptr.vmem [resolvable:$true] %s16_s15 }
   0x4   :  { %s127_s18 = scalar_lea.hbm %s309_s1, 16 }
   0x5   :  { %p128_p0 = scmp.ne.s32.totalorder %s309_s1, %s127_s18  ;;  %p131_p1 = scmp.lt.u32.totalorder %s127_s18, %s309_s1 }
   0x7   :  { %p133_p2 = pnand %p131_p1, %p128_p0 }
   0x9   :  { %136 = shalt.err (!%p133_p2)
}
   0xa   :  { %s137_s23 = scalar_lea.vmem %s30_s13, 16  ;;  %s141_s24 = scalar_lea.vmem %s30_s13, 32 }
   0xb   :  { %p138_p3 = scmp.ne.s32.totalorder %s30_s13, %s137_s23  ;;  %p142_p4 = scmp.lt.s32.totalorder %s30_s13, %s30_s13 }
   0xc   :  { %p143_p5 = scmp.lt.s32.totalorder %s141_s24, %s137_s23 }
   0xe   :  { %p144_p6 = por %p143_p5, %p142_p4 }
  0x10   :  { %p145_p7 = pnand %p144_p6, %p138_p3 }
  0x12   :  { %148 = shalt.err (!%p145_p7)
}
  0x13   :  { %32 = dma.hbm_to_vmem [thread:$0]  %s309_s1, 16, %s30_s13, [#allocation6]  }
  0x14   :  { %s149_s29 = scalar_lea.hbm %s308_s0, 256 }
  0x15   :  { %p150_p8 = scmp.ne.s32.totalorder %s308_s0, %s149_s29  ;;  %p153_p9 = scmp.lt.u32.totalorder %s149_s29, %s308_s0 }
  0x17   :  { %p155_p10 = pnand %p153_p9, %p150_p8 }
  0x19   :  { %158 = shalt.err (!%p155_p10)
}
  0x1a   :  { %s159_s7 = scalar_lea.vmem %s247_s15, 256  ;;  %p164_p12 = scmp.lt.s32.totalorder %s247_s15, %s247_s15 }
  0x1b   :  { %p160_p11 = scmp.ne.s32.totalorder %s247_s15, %s159_s7  ;;  %p165_p13 = scmp.lt.s32.totalorder %s159_s7, %s159_s7 }
  0x1d   :  { %p166_p0 = por %p165_p13, %p164_p12 }
  0x1f   :  { %p167_p1 = pnand %p166_p0, %p160_p11 }
  0x21   :  { %170 = shalt.err (!%p167_p1)
}
  0x22   :  { %s223_s1 = smov 128   ;;  %s224_s8 = smov 8  }
  0x23   :  { %22 = dma.hbm_to_vmem [thread:$0]  %s308_s0, 256, %s247_s15, [#allocation3], %s223_s1, %s223_s1, %s224_s8  }
  0x24   :  { %s225_s11 = smov [#allocation7]   ;;  %s171_s16 = scalar_lea.hbm %s310_s2, 16 }
  0x25   :  { %s39_s12 = sshll.u32 %s225_s11, 4  ;;  %p172_p2 = scmp.ne.s32.totalorder %s310_s2, %s171_s16  ;;  %s40_s12 = int_to_ptr.vmem [resolvable:$true] %s39_s12 }
  0x26   :  { %p175_p3 = scmp.lt.u32.totalorder %s171_s16, %s310_s2 }
  0x28   :  { %p177_p4 = pnand %p175_p3, %p172_p2 }
  0x2a   :  { %180 = shalt.err (!%p177_p4)
}
  0x2b   :  { %s181_s21 = scalar_lea.vmem %s40_s12, 16  ;;  %s185_s0 = scalar_lea.vmem %s40_s12, 32 }
  0x2c   :  { %p182_p5 = scmp.ne.s32.totalorder %s40_s12, %s181_s21  ;;  %p186_p6 = scmp.lt.s32.totalorder %s40_s12, %s40_s12 }
  0x2d   :  { %p187_p7 = scmp.lt.s32.totalorder %s185_s0, %s181_s21 }
  0x2f   :  { %p188_p8 = por %p187_p7, %p186_p6 }
  0x31   :  { %p189_p9 = pnand %p188_p8, %p182_p5 }
  0x33   :  { %192 = shalt.err (!%p189_p9)
}
  0x34   :  { %42 = dma.hbm_to_vmem [thread:$0]  %s310_s2, 16, %s40_s12, [#allocation6]  }
  0x35   :  { %215 = dma.done.wait [#allocation3], 256  }
  0x36   :  { %216 = vsyncadd [#allocation3], 4294967040 }
  0x37   :  { %217 = dma.done.wait [#allocation6], 32  }
  0x38   :  { %218 = vsyncadd [#allocation6], 4294967264  ;;  %v52_v0 = vld [vmem:[#allocation2] sm:$0xff]  ;;  %v53_v1 = vld [vmem:[#allocation2 + $0x8] sm:$0xff]  ;;  %s226_s2 = smov [#allocation8]  }
  0x39   :  { %54 = vadd.xlane.f32.xlu0 %v52_v0  ;;  %v115_v17 = vld [vmem:[#allocation5] ss:$0 sm:$0xff]  ;;  %v116_v19 = vld [vmem:[#allocation7] ss:$0 sm:$0xff]  ;;  %s102_s23 = sshll.u32 %s226_s2, 4  ;;  %s103_s23 = int_to_ptr.vmem [resolvable:$true] %s102_s23 }
  0x3a   :  { %s193_s24 = scalar_lea.vmem %s103_s23, 256  ;;  %p198_p11 = scmp.lt.s32.totalorder %s103_s23, %s103_s23 }
  0x3b   :  { %p194_p10 = scmp.ne.s32.totalorder %s103_s23, %s193_s24  ;;  %p199_p12 = scmp.lt.s32.totalorder %s193_s24, %s193_s24 }
  0x3d   :  { %56 = vadd.xlane.f32.xlu0 %v53_v1  ;;  %p200_p13 = por %p199_p12, %p198_p11 }
  0x3f   :  { %p201_p0 = pnand %p200_p13, %p194_p10 }
  0xc6   :  { %v55_v2 = vpop.xlane.xlu0 %54 }
  0xc7   :  { %v59_v3 = vmul.f32 0.0078125, %v55_v2 }
  0xc9   :  { %v61_v4 = vsub.f32 %v52_v0, %v59_v3 }
  0xca   :  { %v57_v5 = vpop.xlane.xlu0 %56 }
  0xcb   :  { %v60_v6 = vmul.f32 0.0078125, %v57_v5  ;;  %v63_v7 = vmul.f32 %v61_v4, %v61_v4 }
  0xcd   :  { %v62_v8 = vsub.f32 %v53_v1, %v60_v6  ;;  %65 = vadd.xlane.f32.xlu1 %v63_v7 }
  0xcf   :  { %v64_v9 = vmul.f32 %v62_v8, %v62_v8 }
  0xd1   :  { %67 = vadd.xlane.f32.xlu1 %v64_v9 }
 0x15a   :  { %v66_v10 = vpop.xlane.xlu1 %65 }
 0x15b   :  { %v69_v11 = vmul.f32 0.0078125, %v66_v10 }
 0x15d   :  { %v71_v12 = vadd.f32 1e-05, %v69_v11 }
 0x15e   :  { %v68_v13 = vpop.xlane.xlu1 %67 }
 0x15f   :  { %123 = vrsqrt.f32 %v71_v12  ;;  %v70_v14 = vmul.f32 0.0078125, %v68_v13 }
 0x161   :  { %v72_v15 = vadd.f32 1e-05, %v70_v14 }
 0x163   :  { %125 = vrsqrt.f32 %v72_v15 }
 0x169   :  { %v124_v16 = vpop.eup %123 }
 0x16a   :  { %v75_v18 = vmul.f32 %v124_v16, %v61_v4 }
 0x16c   :  { %v84_v20 = vmul.f32 %v115_v17, %v75_v18 }
 0x16d   :  { %v126_v21 = vpop.eup %125 }
 0x16e   :  { %v76_v22 = vmul.f32 %v126_v21, %v62_v8  ;;  %v93_v23 = vadd.f32 %v116_v19, %v84_v20 }
 0x170   :  { %v85_v24 = vmul.f32 %v115_v17, %v76_v22  ;;  %95 = vst [vmem:[#allocation8] sm:$0xff] %v93_v23 }
 0x172   :  { %v94_v25 = vadd.f32 %v116_v19, %v85_v24 }
 0x174   :  { %96 = vst [vmem:[#allocation8 + $0x8] sm:$0xff] %v94_v25 }
 0x175   :  { %204 = shalt.err (!%p201_p0)
}
 0x176   :  { %s205_s27 = scalar_lea.hbm %s311_s3, 256 }
 0x177   :  { %p206_p1 = scmp.ne.s32.totalorder %s311_s3, %s205_s27  ;;  %p209_p2 = scmp.lt.u32.totalorder %s205_s27, %s311_s3 }
 0x179   :  { %p211_p3 = pnand %p209_p2, %p206_p1 }
 0x17b   :  { %214 = shalt.err (!%p211_p3)
}
 0x17c   :  { %108 = dma.vmem_to_hbm [thread:$0]  %s103_s23, 256, %s311_s3, [#allocation4], %s223_s1, %s223_s1, %s224_s8  }
 0x17d   :  { %219 = dma.done.wait [#allocation4], 256  }
 0x17e   :  { %220 = vsyncadd [#allocation4], 4294967040 }
 0x17f   :  { %112 = vsyncpa [#allocation3], 1 }
 0x180   :  { %113 = vsyncpa [#allocation6], 1 }
 0x181   :  { %114 = vsyncpa [#allocation4], 1 }

// kernel: rel2layout_forward.37
= control target key start
LH: loop header
LB: loop body
LE: loop exit
PB: predicated region body
PF: predicated region fallthrough
CT: control target
= control target key end

     0   :  { %8 = vsyncpa [#allocation3], 0  ;;  %s424_s0 = inlined_call_operand.hbm [shape: f32[16,128], index: 0, kind: input, shape index: {}]   ;;  %s425_s1 = inlined_call_operand.hbm [shape: bf16[128,128], index: 1, kind: input, shape index: {}]   ;;  %s426_s2 = inlined_call_operand.hbm [shape: f32[1,128], index: 2, kind: input, shape index: {}]   ;;  %s427_s3 = inlined_call_operand.hbm [shape: f32[16,128], index: 3, kind: output, shape index: {}]  }
   0x1   :  { %9 = vsyncpa [#allocation6], 0 }
   0x2   :  { %10 = vsyncpa [#allocation4], 0  ;;  %s340_s12 = smov [#allocation5]   ;;  %s246_s16 = scalar_lea.hbm %s425_s1, 1024 }
   0x3   :  { %s28_s13 = sshll.u32 %s340_s12, 4  ;;  %p247_p0 = scmp.ne.s32.totalorder %s425_s1, %s246_s16  ;;  %s29_s13 = int_to_ptr.vmem [resolvable:$true] %s28_s13 }
   0x4   :  { %p250_p1 = scmp.lt.u32.totalorder %s246_s16, %s425_s1 }
   0x6   :  { %p252_p2 = pnand %p250_p1, %p247_p0 }
   0x8   :  { %255 = shalt.err (!%p252_p2)
}
   0x9   :  { %s256_s21 = scalar_lea.vmem %s29_s13, 1024  ;;  %p261_p4 = scmp.lt.s32.totalorder %s29_s13, %s29_s13 }
   0xa   :  { %p257_p3 = scmp.ne.s32.totalorder %s29_s13, %s256_s21  ;;  %p262_p5 = scmp.lt.s32.totalorder %s256_s21, %s256_s21 }
   0xc   :  { %p263_p6 = por %p262_p5, %p261_p4 }
   0xe   :  { %p264_p7 = pnand %p263_p6, %p257_p3 }
  0x10   :  { %267 = shalt.err (!%p264_p7)
}
  0x11   :  { %s341_s22 = smov 64   ;;  %s342_s23 = smov 4  }
  0x12   :  { %34 = dma.hbm_to_vmem [thread:$0]  %s425_s1, 1024, %s29_s13, [#allocation6], %s341_s22, %s341_s22, %s342_s23  }
  0x13   :  { %s343_s26 = smov [#allocation2]   ;;  %s268_s30 = scalar_lea.hbm %s424_s0, 256 }
  0x14   :  { %s16_s27 = sshll.u32 %s343_s26, 4  ;;  %p269_p8 = scmp.ne.s32.totalorder %s424_s0, %s268_s30  ;;  %s17_s27 = int_to_ptr.vmem [resolvable:$true] %s16_s27 }
  0x15   :  { %p272_p9 = scmp.lt.u32.totalorder %s268_s30, %s424_s0 }
  0x17   :  { %p274_p10 = pnand %p272_p9, %p269_p8 }
  0x19   :  { %277 = shalt.err (!%p274_p10)
}
  0x1a   :  { %s278_s8 = scalar_lea.vmem %s17_s27, 256  ;;  %p283_p12 = scmp.lt.s32.totalorder %s17_s27, %s17_s27 }
  0x1b   :  { %p279_p11 = scmp.ne.s32.totalorder %s17_s27, %s278_s8  ;;  %p284_p13 = scmp.lt.s32.totalorder %s278_s8, %s278_s8 }
  0x1d   :  { %p285_p0 = por %p284_p13, %p283_p12 }
  0x1f   :  { %p286_p1 = pnand %p285_p0, %p279_p11 }
  0x21   :  { %289 = shalt.err (!%p286_p1)
}
  0x22   :  { %s344_s1 = smov 128   ;;  %s345_s9 = smov 8  }
  0x23   :  { %22 = dma.hbm_to_vmem [thread:$0]  %s424_s0, 256, %s17_s27, [#allocation3], %s344_s1, %s344_s1, %s345_s9  }
  0x24   :  { %s346_s12 = smov [#allocation7]   ;;  %s290_s16 = scalar_lea.hbm %s426_s2, 16 }
  0x25   :  { %s41_s13 = sshll.u32 %s346_s12, 4  ;;  %p291_p2 = scmp.ne.s32.totalorder %s426_s2, %s290_s16  ;;  %s42_s13 = int_to_ptr.vmem [resolvable:$true] %s41_s13 }
  0x26   :  { %p294_p3 = scmp.lt.u32.totalorder %s290_s16, %s426_s2 }
  0x28   :  { %p296_p4 = pnand %p294_p3, %p291_p2 }
  0x2a   :  { %299 = shalt.err (!%p296_p4)
}
  0x2b   :  { %s300_s21 = scalar_lea.vmem %s42_s13, 16  ;;  %s304_s0 = scalar_lea.vmem %s42_s13, 32 }
  0x2c   :  { %p301_p5 = scmp.ne.s32.totalorder %s42_s13, %s300_s21  ;;  %p305_p6 = scmp.lt.s32.totalorder %s42_s13, %s42_s13 }
  0x2d   :  { %p306_p7 = scmp.lt.s32.totalorder %s304_s0, %s300_s21 }
  0x2f   :  { %p307_p8 = por %p306_p7, %p305_p6 }
  0x31   :  { %p308_p9 = pnand %p307_p8, %p301_p5 }
  0x33   :  { %311 = shalt.err (!%p308_p9)
}
  0x34   :  { %44 = dma.hbm_to_vmem [thread:$0]  %s426_s2, 16, %s42_s13, [#allocation6]  }
  0x35   :  { %334 = dma.done.wait [#allocation3], 256  }
  0x36   :  { %335 = vsyncadd [#allocation3], 4294967040 }
  0x37   :  { %336 = dma.done.wait [#allocation6], 1040  }
  0x38   :  { %337 = vsyncadd [#allocation6], 4294966256  ;;  %v347_v0 = vmov 0.0   ;;  %vm348_vm0 = vmmov 0   ;;  %v238_v1 = vld [vmem:[#allocation5] sm:$0xff]   ;;  %v239_v2 = vld [vmem:[#allocation5 + $0x8] sm:$0xff]  }
  0x39   :  { %208 = vmatprep.subr.bf16.mxu0 %v347_v0  ;;  %224 = vmatprep.mubr.msk.bf16.mxu0 %vm348_vm0, %v347_v0  ;;  %v240_v3 = vld [vmem:[#allocation5 + $0x10] sm:$0xff]   ;;  %v241_v4 = vld [vmem:[#allocation5 + $0x18] sm:$0xff]   ;;  %v242_v5 = vld [vmem:[#allocation5 + $0x20] sm:$0xff]   ;;  %s349_s2 = smov [#allocation8]  }
  0x3a   :  { %209 = vmatpush3.bf16.msra.mxu0 %v238_v1  ;;  %v243_v6 = vld [vmem:[#allocation5 + $0x28] sm:$0xff]   ;;  %v244_v7 = vld [vmem:[#allocation5 + $0x30] sm:$0xff]   ;;  %v245_v8 = vld [vmem:[#allocation5 + $0x38] sm:$0xff]   ;;  %s177_s24 = sshll.u32 %s349_s2, 4  ;;  %s178_s24 = int_to_ptr.vmem [resolvable:$true] %s177_s24 }
  0x3b   :  { %210 = vmatprep.subr.bf16.mxu0 %v347_v0  ;;  %v55_v9 = vld [vmem:[#allocation2] sm:$0xff]  ;;  %v56_v10 = vld [vmem:[#allocation2 + $0x8] sm:$0xff]  ;;  %v190_v12 = vld [vmem:[#allocation7] ss:$0 sm:$0xff]  ;;  %s312_s25 = scalar_lea.vmem %s178_s24, 256  ;;  %p317_p11 = scmp.lt.s32.totalorder %s178_s24, %s178_s24 }
  0x3c   :  { %v57_v11 = vpack.c.bf16 %v56_v10, %v55_v9  ;;  %p313_p10 = scmp.ne.s32.totalorder %s178_s24, %s312_s25  ;;  %p318_p12 = scmp.lt.s32.totalorder %s312_s25, %s312_s25 }
  0x3e   :  { %211 = vmatpush3.bf16.msra.mxu0 %v239_v2  ;;  %p319_p13 = por %p318_p12, %p317_p11 }
  0x3f   :  { %212 = vmatprep.subr.bf16.mxu0 %v347_v0 }
  0x40   :  { %p320_p0 = pnand %p319_p13, %p313_p10 }
  0x42   :  { %213 = vmatpush3.bf16.msra.mxu0 %v240_v3 }
  0x43   :  { %214 = vmatprep.subr.bf16.mxu0 %v347_v0 }
  0x46   :  { %215 = vmatpush3.bf16.msra.mxu0 %v241_v4 }
  0x47   :  { %216 = vmatprep.subr.bf16.mxu0 %v347_v0 }
  0x4a   :  { %217 = vmatpush3.bf16.msra.mxu0 %v242_v5 }
  0x4b   :  { %218 = vmatprep.subr.bf16.mxu0 %v347_v0 }
  0x4e   :  { %219 = vmatpush3.bf16.msra.mxu0 %v243_v6 }
  0x4f   :  { %220 = vmatprep.subr.bf16.mxu0 %v347_v0 }
  0x52   :  { %221 = vmatpush3.bf16.msra.mxu0 %v244_v7 }
  0x53   :  { %222 = vmatprep.subr.bf16.mxu0 %v347_v0 }
  0x56   :  { %223 = vmatpush3.bf16.msra.mxu0 %v245_v8 }
  0x59   :  { %225 = vmatmul.mubr.bf16.vlgmr.msra.gmra.mrb[0].mxu0 %v57_v11 }
 0x12c   :  { %v163_v13 = vpop.f32.mrb[0].mxu0 }
 0x12d   :  { %v164_v14 = vadd.f32 %v190_v12, %v163_v13  ;;  %v226_v15 = vpop.f32.mrb[1].mxu0 }
 0x12e   :  { %v166_v16 = vpop.f32.mrb[2].mxu0 }
 0x12f   :  { %170 = vst [vmem:[#allocation8] sm:$0xff] %v164_v14  ;;  %v167_v17 = vadd.f32 %v190_v12, %v166_v16  ;;  %v227_v18 = vpop.f32.mrb[3].mxu0 }
 0x131   :  { %171 = vst [vmem:[#allocation8 + $0x8] sm:$0xff] %v167_v17 }
 0x132   :  { %323 = shalt.err (!%p320_p0)
}
 0x133   :  { %s324_s28 = scalar_lea.hbm %s427_s3, 256 }
 0x134   :  { %p325_p1 = scmp.ne.s32.totalorder %s427_s3, %s324_s28  ;;  %p328_p2 = scmp.lt.u32.totalorder %s324_s28, %s427_s3 }
 0x136   :  { %p330_p3 = pnand %p328_p2, %p325_p1 }
 0x138   :  { %333 = shalt.err (!%p330_p3)
}
 0x139   :  { %183 = dma.vmem_to_hbm [thread:$0]  %s178_s24, 256, %s427_s3, [#allocation4], %s344_s1, %s344_s1, %s345_s9  }
 0x13a   :  { %338 = dma.done.wait [#allocation4], 256  }
 0x13b   :  { %339 = vsyncadd [#allocation4], 4294967040 }
 0x13c   :  { %187 = vsyncpa [#allocation3], 1 }
 0x13d   :  { %188 = vsyncpa [#allocation6], 1 }
 0x13e   :  { %189 = vsyncpa [#allocation4], 1 }

// kernel: rel2layout_forward.35
= control target key start
LH: loop header
LB: loop body
LE: loop exit
PB: predicated region body
PF: predicated region fallthrough
CT: control target
= control target key end

     0   :  { %8 = vsyncpa [#allocation3], 0  ;;  %s616_s0 = inlined_call_operand.hbm [shape: f32[16,128], index: 0, kind: input, shape index: {}]   ;;  %s617_s1 = inlined_call_operand.hbm [shape: bf16[128,384], index: 1, kind: input, shape index: {}]   ;;  %s618_s2 = inlined_call_operand.hbm [shape: f32[1,384], index: 2, kind: input, shape index: {}]   ;;  %s619_s3 = inlined_call_operand.hbm [shape: f32[16,384], index: 3, kind: output, shape index: {}]  }
   0x1   :  { %9 = vsyncpa [#allocation6], 0 }
   0x2   :  { %10 = vsyncpa [#allocation4], 0  ;;  %s535_s12 = smov [#allocation5]   ;;  %s441_s16 = scalar_lea.hbm %s617_s1, 3072 }
   0x3   :  { %s28_s13 = sshll.u32 %s535_s12, 4  ;;  %p442_p0 = scmp.ne.s32.totalorder %s617_s1, %s441_s16  ;;  %s29_s13 = int_to_ptr.vmem [resolvable:$true] %s28_s13 }
   0x4   :  { %p445_p1 = scmp.lt.u32.totalorder %s441_s16, %s617_s1 }
   0x6   :  { %p447_p2 = pnand %p445_p1, %p442_p0 }
   0x8   :  { %450 = shalt.err (!%p447_p2)
}
   0x9   :  { %s451_s21 = scalar_lea.vmem %s29_s13, 3072  ;;  %p456_p4 = scmp.lt.s32.totalorder %s29_s13, %s29_s13 }
   0xa   :  { %p452_p3 = scmp.ne.s32.totalorder %s29_s13, %s451_s21  ;;  %p457_p5 = scmp.lt.s32.totalorder %s451_s21, %s451_s21 }
   0xc   :  { %p458_p6 = por %p457_p5, %p456_p4 }
   0xe   :  { %p459_p7 = pnand %p458_p6, %p452_p3 }
  0x10   :  { %462 = shalt.err (!%p459_p7)
}
  0x11   :  { %s536_s22 = smov 192   ;;  %s537_s23 = smov 12  }
  0x12   :  { %34 = dma.hbm_to_vmem [thread:$0]  %s617_s1, 3072, %s29_s13, [#allocation6], %s536_s22, %s536_s22, %s537_s23  }
  0x13   :  { %s538_s26 = smov [#allocation2]   ;;  %s463_s30 = scalar_lea.hbm %s616_s0, 256 }
  0x14   :  { %s16_s27 = sshll.u32 %s538_s26, 4  ;;  %p464_p8 = scmp.ne.s32.totalorder %s616_s0, %s463_s30  ;;  %s17_s27 = int_to_ptr.vmem [resolvable:$true] %s16_s27 }
  0x15   :  { %p467_p9 = scmp.lt.u32.totalorder %s463_s30, %s616_s0 }
  0x17   :  { %p469_p10 = pnand %p467_p9, %p464_p8 }
  0x19   :  { %472 = shalt.err (!%p469_p10)
}
  0x1a   :  { %s473_s8 = scalar_lea.vmem %s17_s27, 256  ;;  %p478_p12 = scmp.lt.s32.totalorder %s17_s27, %s17_s27 }
  0x1b   :  { %p474_p11 = scmp.ne.s32.totalorder %s17_s27, %s473_s8  ;;  %p479_p13 = scmp.lt.s32.totalorder %s473_s8, %s473_s8 }
  0x1d   :  { %p480_p0 = por %p479_p13, %p478_p12 }
  0x1f   :  { %p481_p1 = pnand %p480_p0, %p474_p11 }
  0x21   :  { %484 = shalt.err (!%p481_p1)
}
  0x22   :  { %s539_s1 = smov 128   ;;  %s540_s9 = smov 8  }
  0x23   :  { %22 = dma.hbm_to_vmem [thread:$0]  %s616_s0, 256, %s17_s27, [#allocation3], %s539_s1, %s539_s1, %s540_s9  }
  0x24   :  { %s541_s12 = smov [#allocation7]   ;;  %s485_s16 = scalar_lea.hbm %s618_s2, 48 }
  0x25   :  { %s41_s13 = sshll.u32 %s541_s12, 4  ;;  %p486_p2 = scmp.ne.s32.totalorder %s618_s2, %s485_s16  ;;  %s42_s13 = int_to_ptr.vmem [resolvable:$true] %s41_s13 }
  0x26   :  { %p489_p3 = scmp.lt.u32.totalorder %s485_s16, %s618_s2 }
  0x28   :  { %p491_p4 = pnand %p489_p3, %p486_p2 }
  0x2a   :  { %494 = shalt.err (!%p491_p4)
}
  0x2b   :  { %s495_s21 = scalar_lea.vmem %s42_s13, 48  ;;  %s499_s0 = scalar_lea.vmem %s42_s13, 64 }
  0x2c   :  { %p496_p5 = scmp.ne.s32.totalorder %s42_s13, %s495_s21  ;;  %p500_p6 = scmp.lt.s32.totalorder %s42_s13, %s42_s13 }
  0x2d   :  { %p501_p7 = scmp.lt.s32.totalorder %s499_s0, %s495_s21 }
  0x2f   :  { %p502_p8 = por %p501_p7, %p500_p6 }
  0x31   :  { %p503_p9 = pnand %p502_p8, %p496_p5 }
  0x33   :  { %506 = shalt.err (!%p503_p9)
}
  0x34   :  { %44 = dma.hbm_to_vmem [thread:$0]  %s618_s2, 48, %s42_s13, [#allocation6]  }
  0x35   :  { %529 = dma.done.wait [#allocation3], 256  }
  0x36   :  { %530 = vsyncadd [#allocation3], 4294967040 }
  0x37   :  { %531 = dma.done.wait [#allocation6], 3120  }
  0x38   :  { %532 = vsyncadd [#allocation6], 4294964176  ;;  %v542_v0 = vmov 0.0   ;;  %vm543_vm0 = vmmov 0   ;;  %v544_v1 = vmov 0   ;;  %v55_v25 = vld [vmem:[#allocation2] sm:$0xff]  ;;  %v92_v29 = vlaneseq }
  0x39   :  { %376 = vmatprep.subr.bf16.mxu1 %v542_v0  ;;  %392 = vmatprep.mubr.msk.bf16.mxu1 %vm543_vm0, %v542_v0  ;;  %v409_v2 = vld [vmem:[#allocation5 + $0x4] ss:$12 sps:$4 sm:$0xff]   ;;  %v411_v3 = vld [vmem:[#allocation5 + $0x8] ss:$12 sps:$4 sm:$0xff]   ;;  %v412_v4 = vld [vmem:[#allocation5] ss:$12 sps:$4 sm:$0xff]  }
  0x3a   :  { %267 = vmatprep.mubr.bf16.mxu0 %v544_v1  ;;  %235 = vmatprep.subr.bf16.mxu0 %v409_v2  ;;  %v413_v5 = vld [vmem:[#allocation5 + $0x1c] ss:$12 sps:$4 sm:$0xff]   ;;  %v415_v6 = vld [vmem:[#allocation5 + $0x20] ss:$12 sps:$4 sm:$0xff]   ;;  %v416_v7 = vld [vmem:[#allocation5 + $0x18] ss:$12 sps:$4 sm:$0xff]  }
  0x3b   :  { %377 = vmatpush3.bf16.msra.mxu1 %v411_v3  ;;  %236 = vmatpush1.bf16.msra.mxu0 %v412_v4  ;;  %v417_v8 = vld [vmem:[#allocation5 + $0x34] ss:$12 sps:$4 sm:$0xff]   ;;  %v419_v9 = vld [vmem:[#allocation5 + $0x38] ss:$12 sps:$4 sm:$0xff]   ;;  %v420_v10 = vld [vmem:[#allocation5 + $0x30] ss:$12 sps:$4 sm:$0xff]  }
  0x3c   :  { %378 = vmatprep.subr.bf16.mxu1 %v542_v0  ;;  %237 = vmatprep.subr.bf16.mxu0 %v413_v5  ;;  %v421_v11 = vld [vmem:[#allocation5 + $0x4c] ss:$12 sps:$4 sm:$0xff]   ;;  %v423_v12 = vld [vmem:[#allocation5 + $0x50] ss:$12 sps:$4 sm:$0xff]   ;;  %v424_v13 = vld [vmem:[#allocation5 + $0x48] ss:$12 sps:$4 sm:$0xff]  }
  0x3d   :  { %v425_v14 = vld [vmem:[#allocation5 + $0x64] ss:$12 sps:$4 sm:$0xff]   ;;  %v427_v15 = vld [vmem:[#allocation5 + $0x68] ss:$12 sps:$4 sm:$0xff]   ;;  %v428_v16 = vld [vmem:[#allocation5 + $0x60] ss:$12 sps:$4 sm:$0xff]  }
  0x3e   :  { %v429_v17 = vld [vmem:[#allocation5 + $0x7c] ss:$12 sps:$4 sm:$0xff]   ;;  %v431_v18 = vld [vmem:[#allocation5 + $0x80] ss:$12 sps:$4 sm:$0xff]   ;;  %v432_v19 = vld [vmem:[#allocation5 + $0x78] ss:$12 sps:$4 sm:$0xff]  }
  0x3f   :  { %379 = vmatpush3.bf16.msra.mxu1 %v415_v6  ;;  %238 = vmatpush1.bf16.msra.mxu0 %v416_v7  ;;  %v433_v20 = vld [vmem:[#allocation5 + $0x94] ss:$12 sps:$4 sm:$0xff]   ;;  %v435_v21 = vld [vmem:[#allocation5 + $0x98] ss:$12 sps:$4 sm:$0xff]   ;;  %v436_v22 = vld [vmem:[#allocation5 + $0x90] ss:$12 sps:$4 sm:$0xff]  }
  0x40   :  { %380 = vmatprep.subr.bf16.mxu1 %v542_v0  ;;  %239 = vmatprep.subr.bf16.mxu0 %v417_v8  ;;  %v437_v23 = vld [vmem:[#allocation5 + $0xac] ss:$12 sps:$4 sm:$0xff]   ;;  %v439_v24 = vld [vmem:[#allocation5 + $0xb0] ss:$12 sps:$4 sm:$0xff]   ;;  %v440_v27 = vld [vmem:[#allocation5 + $0xa8] ss:$12 sps:$4 sm:$0xff]  }
  0x41   :  { %v56_v26 = vld [vmem:[#allocation2 + $0x8] sm:$0xff]  ;;  %v93_v30 = vshrl.u32 %v92_v29, 7  ;;  %v90_v32 = vld [vmem:[#allocation7] sm:$0x7]  ;;  %s545_s2 = smov [#allocation8]  }
  0x42   :  { %v57_v28 = vpack.c.bf16 %v56_v26, %v55_v25  ;;  %s330_s24 = sshll.u32 %s545_s2, 4  ;;  %s331_s24 = int_to_ptr.vmem [resolvable:$true] %s330_s24 }
  0x43   :  { %381 = vmatpush3.bf16.msra.mxu1 %v419_v9  ;;  %240 = vmatpush1.bf16.msra.mxu0 %v420_v10  ;;  %v102_v31 = vsub.s32 2, %v93_v30  ;;  %v94_v33 = vsub.s32 0, %v93_v30  ;;  %v98_v34 = vsub.s32 1, %v93_v30  ;;  %s507_s25 = scalar_lea.vmem %s331_s24, 768  ;;  %p512_p11 = scmp.lt.s32.totalorder %s331_s24, %s331_s24 }
  0x44   :  { %382 = vmatprep.subr.bf16.mxu1 %v542_v0  ;;  %241 = vmatprep.subr.bf16.mxu0 %v421_v11  ;;  %p508_p10 = scmp.ne.s32.totalorder %s331_s24, %s507_s25  ;;  %p513_p12 = scmp.lt.s32.totalorder %s507_s25, %s507_s25 }
  0x45   :  { %v103_v35 = vrot.slane %v90_v32, %v102_v31  ;;  %v95_v36 = vrot.slane %v90_v32, %v94_v33  ;;  %v99_v37 = vrot.slane %v90_v32, %v98_v34 }
  0x46   :  { %p514_p13 = por %p513_p12, %p512_p11 }
  0x47   :  { %383 = vmatpush3.bf16.msra.mxu1 %v423_v12  ;;  %242 = vmatpush1.bf16.msra.mxu0 %v424_v13 }
  0x48   :  { %384 = vmatprep.subr.bf16.mxu1 %v542_v0  ;;  %243 = vmatprep.subr.bf16.mxu0 %v425_v14  ;;  %p515_p0 = pnand %p514_p13, %p508_p10 }
  0x4b   :  { %385 = vmatpush3.bf16.msra.mxu1 %v427_v15  ;;  %244 = vmatpush1.bf16.msra.mxu0 %v428_v16 }
  0x4c   :  { %386 = vmatprep.subr.bf16.mxu1 %v542_v0  ;;  %245 = vmatprep.subr.bf16.mxu0 %v429_v17 }
  0x4f   :  { %387 = vmatpush3.bf16.msra.mxu1 %v431_v18  ;;  %246 = vmatpush1.bf16.msra.mxu0 %v432_v19 }
  0x50   :  { %388 = vmatprep.subr.bf16.mxu1 %v542_v0  ;;  %247 = vmatprep.subr.bf16.mxu0 %v433_v20 }
  0x53   :  { %389 = vmatpush3.bf16.msra.mxu1 %v435_v21  ;;  %248 = vmatpush1.bf16.msra.mxu0 %v436_v22 }
  0x54   :  { %390 = vmatprep.subr.bf16.mxu1 %v542_v0  ;;  %249 = vmatprep.subr.bf16.mxu0 %v437_v23 }
  0x57   :  { %391 = vmatpush3.bf16.msra.mxu1 %v439_v24  ;;  %250 = vmatpush1.bf16.msra.mxu0 %v440_v27 }
  0x5a   :  { %393 = vmatmul.mubr.bf16.vlgmr.msra.gmra.mrb[0].mxu1 %v57_v28  ;;  %268 = vmatmul.mubr.bf16.vlgmr.msra.gmra.mrb[0].mxu0 %v57_v28 }
 0x12d   :  { %v312_v38 = vpop.f32.mrb[0].mxu1  ;;  %v269_v40 = vpop.f32.mrb[0].mxu0 }
 0x12e   :  { %v313_v39 = vadd.f32 %v312_v38, %v103_v35  ;;  %v394_v41 = vpop.f32.mrb[1].mxu1  ;;  %v270_v42 = vadd.f32 %v269_v40, %v95_v36  ;;  %v271_v43 = vpop.f32.mrb[1].mxu0 }
 0x12f   :  { %v315_v44 = vpop.f32.mrb[2].mxu1  ;;  %v272_v45 = vadd.f32 %v271_v43, %v99_v37  ;;  %v273_v47 = vpop.f32.mrb[2].mxu0 }
 0x130   :  { %321 = vst [vmem:[#allocation8 + $0x10] sm:$0xff] %v313_v39  ;;  %v316_v46 = vadd.f32 %v315_v44, %v103_v35  ;;  %v395_v48 = vpop.f32.mrb[3].mxu1  ;;  %319 = vst [vmem:[#allocation8] sm:$0xff] %v270_v42  ;;  %v274_v49 = vadd.f32 %v273_v47, %v95_v36  ;;  %v275_v50 = vpop.f32.mrb[3].mxu0 }
 0x131   :  { %320 = vst [vmem:[#allocation8 + $0x8] sm:$0xff] %v272_v45  ;;  %v276_v51 = vadd.f32 %v275_v50, %v99_v37 }
 0x132   :  { %324 = vst [vmem:[#allocation8 + $0x28] sm:$0xff] %v316_v46  ;;  %322 = vst [vmem:[#allocation8 + $0x18] sm:$0xff] %v274_v49 }
 0x133   :  { %323 = vst [vmem:[#allocation8 + $0x20] sm:$0xff] %v276_v51 }
 0x134   :  { %518 = shalt.err (!%p515_p0)
}
 0x135   :  { %s519_s28 = scalar_lea.hbm %s619_s3, 768 }
 0x136   :  { %p520_p1 = scmp.ne.s32.totalorder %s619_s3, %s519_s28  ;;  %p523_p2 = scmp.lt.u32.totalorder %s519_s28, %s619_s3 }
 0x138   :  { %p525_p3 = pnand %p523_p2, %p520_p1 }
 0x13a   :  { %528 = shalt.err (!%p525_p3)
}
 0x13b   :  { %s546_s6 = smov 384   ;;  %s547_s7 = smov 24  }
 0x13c   :  { %336 = dma.vmem_to_hbm [thread:$0]  %s331_s24, 768, %s619_s3, [#allocation4], %s546_s6, %s546_s6, %s547_s7  }
 0x13d   :  { %533 = dma.done.wait [#allocation4], 768  }
 0x13e   :  { %534 = vsyncadd [#allocation4], 4294966528 }
 0x13f   :  { %340 = vsyncpa [#allocation3], 1 }
 0x140   :  { %341 = vsyncpa [#allocation6], 1 }
 0x141   :  { %342 = vsyncpa [#allocation4], 1 }

// kernel: rel2layout_forward.36
= control target key start
LH: loop header
LB: loop body
LE: loop exit
PB: predicated region body
PF: predicated region fallthrough
CT: control target
= control target key end

     0   :  { %s2833_s0 = inlined_call_operand.hbm [shape: f32[2,8,384], index: 0, kind: input, shape index: {}, may-alias: {0,1,2}]   ;;  %s2834_s1 = inlined_call_operand.hbm [shape: f32[2,8,384], index: 1, kind: input, shape index: {}, may-alias: {0,1,2}]   ;;  %s2835_s2 = inlined_call_operand.hbm [shape: f32[2,8,384], index: 2, kind: input, shape index: {}, may-alias: {0,1,2}]   ;;  %s2836_s3 = inlined_call_operand.hbm [shape: f32[2,8,8], index: 3, kind: input, shape index: {}]   ;;  %s2837_s4 = inlined_call_operand.hbm [shape: bf16[128,128], index: 4, kind: input, shape index: {}]   ;;  %s2838_s5 = inlined_call_operand.hbm [shape: f32[1,128], index: 5, kind: input, shape index: {}]   ;;  %s2839_s6 = inlined_call_operand.hbm [shape: f32[2,8,128], index: 6, kind: input, shape index: {}]   ;;  %s2840_s7 = inlined_call_operand.hbm [shape: f32[1,128], index: 7, kind: input, shape index: {}]   ;;  %s2841_s8 = inlined_call_operand.hbm [shape: f32[1,128], index: 8, kind: input, shape index: {}]   ;;  %s2842_s9 = inlined_call_operand.hbm [shape: f32[2,8,128], index: 9, kind: output, shape index: {}]  }
   0x1   :  { %2859 = sst [smem:[#allocation33_spill]] %s2833_s0 }
   0x2   :  { %2860 = sst [smem:[#allocation34_spill]] %s2834_s1 }
   0x3   :  { %2861 = sst [smem:[#allocation35_spill]] %s2837_s4 }
   0x4   :  { %2862 = sst [smem:[#allocation36_spill]] %s2840_s7 }
   0x5   :  { %2863 = sst [smem:[#allocation37_spill]] %s2841_s8 }
   0x6   :  { %2864 = sst [smem:[#allocation38_spill]] %s2842_s9 }
   0x7   :  { %14 = vsyncpa [#allocation3], 0 }
   0x8   :  { %16 = vsyncpa [#allocation3 + $0x1], 0 }
   0x9   :  { %17 = vsyncpa [#allocation6], 0 }
   0xa   :  { %19 = vsyncpa [#allocation6 + $0x1], 0 }
   0xb   :  { %20 = vsyncpa [#allocation9], 0 }
   0xc   :  { %22 = vsyncpa [#allocation9 + $0x1], 0 }
   0xd   :  { %23 = vsyncpa [#allocation12], 0 }
   0xe   :  { %24 = vsyncpa [#allocation4], 0 }
   0xf   :  { %26 = vsyncpa [#allocation4 + $0x1], 0  ;;  %s2290_s30 = smov 0   ;;  %s2292_s10 = smov 0  }
  0x10   :  { %s2294_s11 = smov 0   ;;  %s2296_s12 = smov 0  }
  0x11   :  { %s2298_s13 = smov 0   ;;  %s2300_s14 = smov 0  }
  0x12 LB: > { %2865 = sst [smem:[#allocation26_spill]] %s2201_s30  ;;  %s2321_s15 = sadd.s32 4294967295, %s2221_s14   ;;  %s2221_s14 = sphi %s2300_s14, %s32_s14   ;;  %s2217_s13 = sphi %s2298_s13, %s2918_s13   ;;  %s2213_s12 = sphi %s2296_s12, %s2917_s12   ;;  %s2209_s11 = sphi %s2294_s11, %s2913_s11   ;;  %s2205_s10 = sphi %s2292_s10, %s2916_s10   ;;  %s2201_s30 = sphi %s2290_s30, %s2915_s30  }
  0x13   : > { %2866 = sst [smem:[#allocation27_spill]] %s2209_s11  ;;  %s1527_s16 = sadd.s32 4294967294, %s2221_s14  }
  0x14   : > { %2867 = sst [smem:[#allocation28_spill]] %s2213_s12  ;;  %p66_p0 = scmp.ne.s32.totalorder %s2205_s10, %s2201_s30 }
  0x15   : > { %p2844_p1 = scmp.eq.s32.totalorder %s2321_s15, 0  ;;  %p290_p3 = scmp.eq.s32.totalorder %s1527_s16, 1 }
  0x16   : > { %p1528_p5 = scmp.ge.s32.totalorder %s2221_s14, 1  ;;  %p297_p7 = scmp.lt.s32.totalorder %s2221_s14, 3 }
  0x17   : > { %p2330_p4 = por %p2844_p1, %p66_p0  ;;  %p2335_p6 = por %p290_p3, %p66_p0 }
  0x18   : > { %p2340_p8 = pnand %p1528_p5, %p297_p7  ;;  %s2223_s20 = smov [#allocation10]  }
  0x19   : > { %s2868_s17 = scalar_select %p2330_p4, 1, 0 }
  0x1a   : > { %s2870_s18 = scalar_select %p2335_p6, 1, 0 }
  0x1b   : > { %2869 = sst [smem:[#allocation29_spill]] %s2868_s17  ;;  %s309_s21 = sshll.u32 %s2223_s20, 4  ;;  %s2344_s21 = int_to_ptr.vmem [resolvable:$true] %s309_s21 }
  0x1c   : > { %2871 = sst [smem:[#allocation30_spill]] %s2870_s18  ;;  %p1719_p9 = pneg %p2340_p8 }
  0x1d   : > { %s2872_s19 = scalar_select %p2340_p8, 1, 0 }
  0x1e   : > { %p2351_p11 = pnand %p1719_p9, %p2844_p1  ;;  %s2224_s23 = smov [#allocation14]  }
  0x1f   : > { %s334_s24 = sshll.u32 %s2224_s23, 4  ;;  %s2225_s25 = smov [#allocation15]   ;;  %s2355_s24 = int_to_ptr.vmem [resolvable:$true] %s334_s24 }
  0x20   : > { %s2873_s22 = scalar_select %p2351_p11, 1, 0 }
  0x21   : > { %s2357_s26 = sshll.u32 %s2225_s25, 4  ;;  %s2874_s4 = sld [smem:[#allocation35_spill]]  ;;  %s346_s26 = int_to_ptr.vmem [resolvable:$true] %s2357_s26 }
  0x22   : > { %p2367_p13 = pneg %p2351_p11 }
  0x24   : > { %s2875_s18 = scalar_select %p2367_p13, 1, 0 }
  0x27   : > { %s1847_s29 = scalar_lea.hbm %s2874_s4, 1024 }
  0x28   : > { %p1848_p12 = scmp.ne.s32.totalorder %s2874_s4, %s1847_s29  ;;  %p1854_p5 = scmp.lt.u32.totalorder %s1847_s29, %s2874_s4 }
  0x2a   : > { %p1850_p0 = pnand %p2367_p13, %p1848_p12 }
  0x2c   : > { %p1851_p3 = pneg %p1850_p0 }
  0x2e   : > { %p1856_p7 = pnand %p1854_p5, %p1851_p3 }
  0x30   : > { %1859 = shalt.err (!%p1856_p7)
}
  0x31   : > { %s1860_s27 = scalar_lea.vmem %s2344_s21, 1024  ;;  %p1868_p2 = scmp.lt.s32.totalorder %s2344_s21, %s2344_s21 }
  0x32   : > { %p1861_p9 = scmp.ne.s32.totalorder %s2344_s21, %s1860_s27  ;;  %p1869_p6 = scmp.lt.s32.totalorder %s1860_s27, %s1860_s27 }
  0x34   : > { %p1863_p10 = pnand %p1861_p9, %p2367_p13  ;;  %p1870_p12 = por %p1869_p6, %p1868_p2 }
  0x36   : > { %p1864_p1 = pneg %p1863_p10 }
  0x38   : > { %p1871_p0 = pnand %p1870_p12, %p1864_p1 }
  0x3a   : > { %1874 = shalt.err (!%p1871_p0)
}
  0x3b   : > { %s2226_s28 = smov 64   ;;  %s2227_s29 = smov 4  }
  0x3c   : > { %1722 = dma.hbm_to_vmem [thread:$0]  (!%p2351_p11), %s2874_s4, 1024, %s2344_s21, [#allocation9], %s2226_s28, %s2226_s28, %s2227_s29  }
  0x3d   : > { %s2876_s7 = sld [smem:[#allocation36_spill]] }
  0x43   : > { %s1875_s30 = scalar_lea.hbm %s2876_s7, 16 }
  0x44   : > { %p1876_p2 = scmp.ne.s32.totalorder %s2876_s7, %s1875_s30  ;;  %p1882_p10 = scmp.lt.u32.totalorder %s1875_s30, %s2876_s7 }
  0x46   : > { %p1878_p1 = pnand %p1876_p2, %p2367_p13 }
  0x48   : > { %p1879_p6 = pneg %p1878_p1 }
  0x4a   : > { %p1884_p3 = pnand %p1882_p10, %p1879_p6 }
  0x4c   : > { %1887 = shalt.err (!%p1884_p3)
}
  0x4d   : > { %s1888_s21 = scalar_lea.vmem %s2355_s24, 16  ;;  %s1895_s9 = scalar_lea.vmem %s2355_s24, 32 }
  0x4e   : > { %p1889_p5 = scmp.ne.s32.totalorder %s2355_s24, %s1888_s21  ;;  %p1896_p12 = scmp.lt.s32.totalorder %s2355_s24, %s2355_s24 }
  0x4f   : > { %p1897_p0 = scmp.lt.s32.totalorder %s1895_s9, %s1888_s21 }
  0x50   : > { %p1891_p7 = pnand %p1889_p5, %p2367_p13 }
  0x51   : > { %p1898_p2 = por %p1897_p0, %p1896_p12 }
  0x52   : > { %p1892_p9 = pneg %p1891_p7 }
  0x54   : > { %p1899_p1 = pnand %p1898_p2, %p1892_p9 }
  0x56   : > { %1902 = shalt.err (!%p1899_p1)
}
  0x57   : > { %1728 = dma.hbm_to_vmem [thread:$0]  (!%p2351_p11), %s2876_s7, 16, %s2355_s24, [#allocation6]  }
  0x58   : > { %s2877_s8 = sld [smem:[#allocation37_spill]] }
  0x5e   : > { %s1903_s29 = scalar_lea.hbm %s2877_s8, 16 }
  0x5f   : > { %p1904_p6 = scmp.ne.s32.totalorder %s2877_s8, %s1903_s29  ;;  %p1910_p5 = scmp.lt.u32.totalorder %s1903_s29, %s2877_s8 }
  0x61   : > { %p1906_p10 = pnand %p1904_p6, %p2367_p13 }
  0x63   : > { %p1907_p3 = pneg %p1906_p10 }
  0x65   : > { %p1912_p7 = pnand %p1910_p5, %p1907_p3 }
  0x67   : > { %1915 = shalt.err (!%p1912_p7)
}
  0x68   : > { %s1916_s27 = scalar_lea.vmem %s346_s26, 16  ;;  %s1923_s24 = scalar_lea.vmem %s346_s26, 32 }
  0x69   : > { %p1917_p9 = scmp.ne.s32.totalorder %s346_s26, %s1916_s27  ;;  %p1924_p2 = scmp.lt.s32.totalorder %s346_s26, %s346_s26 }
  0x6a   : > { %p1925_p1 = scmp.lt.s32.totalorder %s1923_s24, %s1916_s27 }
  0x6b   : > { %p1919_p12 = pnand %p1917_p9, %p2367_p13 }
  0x6c   : > { %p1926_p4 = por %p1925_p1, %p1924_p2 }
  0x6d   : > { %p1920_p0 = pneg %p1919_p12 }
  0x6f   : > { %p1927_p8 = pnand %p1926_p4, %p1920_p0 }
  0x71   : > { %1930 = shalt.err (!%p1927_p8)
}
  0x72   : > { %1731 = dma.hbm_to_vmem [thread:$0]  (!%p2351_p11), %s2877_s8, 16, %s346_s26, [#allocation9]  }
  0x73   : > { %s53_s30 = sadd.s32 1, %s2209_s11  ;;  %s44_s12 = sadd.s32 1, %s2217_s13 }
  0x74   : > { %p60_p4 = scmp.ne.s32.totalorder %s2209_s11, %s2205_s10  ;;  %p46_p8 = scmp.ge.s32.totalorder %s44_s12, 2 }
  0x75   : > { %p61_p6 = scmp.eq.s32.totalorder %s2221_s14, 0  ;;  %p2878_p10 = scmp.eq.s32.totalorder %s2321_s15, 1 }
  0x76   : > { %p1756_p5 = scmp.lt.s32.totalorder %s2221_s14, 2  ;;  %s2920_s12 = smov (%p46_p8, %s44_s12), 0 }
  0x77   : > { %p2438_p3 = por %p2878_p10, %p60_p4  ;;  %2880 = sst [smem:[#allocation31_spill]] %s2920_s12 }
  0x78   : > { %p62_p7 = por %p61_p6, %p60_p4  ;;  %s2446_s28 = sand.u32 1, %s2221_s14  }
  0x79   : > { %s2879_s17 = scalar_select %p2438_p3, 1, 0 }
  0x7a   : > { %s48_s26 = ssub.s32 %s2217_s13, %s2920_s12  ;;  %s358_s29 = sand.u32 1, %s2209_s11  }
  0x7b   : > { %p51_p9 = scmp.eq.s32.totalorder %s48_s26, 0  ;;  %s2451_s16 = sshll.u32 %s358_s29, 3 }
  0x7c   : > { %s2454_s20 = smul.u32 384, %s2217_s13  ;;  %s2882_s0 = sld [smem:[#allocation33_spill]] }
  0x7d   : > { %s2457_s23 = scalar_select %p51_p9, %s2209_s11, %s53_s30  }
  0x7e   : > { %s360_s21 = scalar_lea.vmem [#allocation2], %s2451_s16  ;;  %p2468_p12 = pnand %p1756_p5, %p62_p7 }
  0x7f   : > { %2881 = sst [smem:[#allocation32_spill]] %s2457_s23  ;;  %s370_s9 = sshll.u32 %s360_s21, 4  ;;  %s2472_s9 = int_to_ptr.vmem [resolvable:$true] %s370_s9 }
  0x80   : > { %s2883_s26 = scalar_select %p2468_p12, 1, 0 }
  0x81   : > { %p2479_p2 = pneg %p2468_p12 }
  0x82   : > { %s2463_s24 = scalar_lea.hbm %s2882_s0, %s2454_s20  ;;  %s1936_s4 = scalar_lea.hbm %s2882_s0, 768 }
  0x83   : > { %s1931_s29 = scalar_lea.hbm %s2463_s24, 128  ;;  %p1937_p8 = scmp.lt.u32.totalorder %s2463_s24, %s2882_s0 }
  0x84   : > { %p1932_p0 = scmp.ne.s32.totalorder %s2463_s24, %s1931_s29  ;;  %p1938_p6 = scmp.lt.u32.totalorder %s1936_s4, %s1931_s29 }
  0x85   : > { %p1940_p5 = scmp.lt.u32.totalorder %s1931_s29, %s2463_s24 }
  0x86   : > { %p1934_p1 = pnand %p2479_p2, %p1932_p0  ;;  %p1939_p10 = por %p1938_p6, %p1937_p8 }
  0x88   : > { %p1935_p4 = pneg %p1934_p1  ;;  %p1941_p7 = por %p1940_p5, %p1939_p10 }
  0x8a   : > { %p1942_p9 = pnand %p1941_p7, %p1935_p4 }
  0x8c   : > { %1945 = shalt.err (!%p1942_p9)
}
  0x8d   : > { %s1946_s30 = scalar_lea.vmem %s2472_s9, 128  ;;  %s2228_s27 = smov [#allocation2]  }
  0x8e   : > { %p1947_p0 = scmp.ne.s32.totalorder %s2472_s9, %s1946_s30  ;;  %s1951_s21 = sshll.u32 %s2228_s27, 4  ;;  %s1952_s21 = int_to_ptr.vmem [resolvable:$false] %s1951_s21 }
  0x8f   : > { %s1953_s7 = scalar_lea.vmem %s1952_s21, 256  ;;  %p1954_p11 = scmp.lt.s32.totalorder %s2472_s9, %s1952_s21 }
  0x90   : > { %p1949_p1 = pnand %p1947_p0, %p2479_p2  ;;  %p1955_p13 = scmp.lt.s32.totalorder %s1953_s7, %s1946_s30 }
  0x92   : > { %p1950_p3 = pneg %p1949_p1  ;;  %p1956_p8 = por %p1955_p13, %p1954_p11 }
  0x94   : > { %p1957_p6 = pnand %p1956_p8, %p1950_p3 }
  0x96   : > { %1960 = shalt.err (!%p1957_p6)
}
  0x97   : > { %s2885_s4 = scalar_lea.sflag [#allocation3], %s2446_s28  ;;  %s2886_s1 = sld [smem:[#allocation34_spill]] }
  0x98   : > { %1735 = dma.hbm_to_vmem [thread:$0]  (!%p2468_p12), %s2463_s24, 128, %s2472_s9, %s2885_s4  }
  0x99   : > { %s381_s21 = scalar_lea.vmem [#allocation5], %s2451_s16  ;;  %s378_s0 = scalar_lea.sflag [#allocation6], %s2446_s28 }
  0x9a   : > { %s390_s30 = sshll.u32 %s381_s21, 4  ;;  %s391_s30 = int_to_ptr.vmem [resolvable:$true] %s390_s30 }
  0x9d   : > { %s1359_s27 = scalar_lea.hbm %s2886_s1, %s2454_s20  ;;  %s1966_s9 = scalar_lea.hbm %s2886_s1, 768 }
  0x9e   : > { %s2509_s7 = scalar_lea.hbm %s1359_s27, 128  ;;  %s1991_s12 = scalar_lea.hbm %s1359_s27, 256 }
  0x9f   : > { %p1962_p11 = scmp.ne.s32.totalorder %s2509_s7, %s1991_s12  ;;  %p1967_p4 = scmp.lt.u32.totalorder %s2509_s7, %s2886_s1 }
  0xa0   : > { %p1968_p10 = scmp.lt.u32.totalorder %s1966_s9, %s1991_s12  ;;  %p1970_p7 = scmp.lt.u32.totalorder %s1991_s12, %s2509_s7 }
  0xa1   : > { %p1964_p13 = pnand %p1962_p11, %p2479_p2 }
  0xa2   : > { %p1969_p5 = por %p1968_p10, %p1967_p4 }
  0xa3   : > { %p1965_p3 = pneg %p1964_p13 }
  0xa4   : > { %p1971_p9 = por %p1970_p7, %p1969_p5 }
  0xa6   : > { %p1972_p0 = pnand %p1971_p9, %p1965_p3 }
  0xa8   : > { %1975 = shalt.err (!%p1972_p0)
}
  0xa9   : > { %s1976_s29 = scalar_lea.vmem %s391_s30, 128  ;;  %s2229_s27 = smov [#allocation5]  }
  0xaa   : > { %p1977_p1 = scmp.ne.s32.totalorder %s391_s30, %s1976_s29  ;;  %s1981_s21 = sshll.u32 %s2229_s27, 4  ;;  %s1982_s21 = int_to_ptr.vmem [resolvable:$false] %s1981_s21 }
  0xab   : > { %s1983_s23 = scalar_lea.vmem %s1982_s21, 256  ;;  %p1984_p11 = scmp.lt.s32.totalorder %s391_s30, %s1982_s21 }
  0xac   : > { %p1979_p8 = pnand %p1977_p1, %p2479_p2  ;;  %p1985_p13 = scmp.lt.s32.totalorder %s1983_s23, %s1976_s29 }
  0xae   : > { %p1980_p6 = pneg %p1979_p8  ;;  %p1986_p12 = por %p1985_p13, %p1984_p11 }
  0xb0   : > { %p1987_p4 = pnand %p1986_p12, %p1980_p6 }
  0xb2   : > { %1990 = shalt.err (!%p1987_p4)
}
  0xb3   : > { %p2887_p10 = scmp.ne.s32.totalorder %s2883_s26, 0  ;;  %s2230_s12 = smov [#allocation11]  }
  0xb4   : > { %s323_s24 = sshll.u32 %s2230_s12, 4  ;;  %s1366_s8 = scalar_lea.hbm %s2835_s2, %s2454_s20  ;;  %s324_s24 = int_to_ptr.vmem [resolvable:$true] %s323_s24 }
  0xb5   : > { %1738 = dma.hbm_to_vmem [thread:$0]  (!%p2887_p10), %s2509_s7, 128, %s391_s30, %s378_s0  }
  0xb6   : > { %s2534_s27 = scalar_lea.hbm %s1366_s8, 256  ;;  %s1992_s23 = scalar_lea.hbm %s2838_s5, 16 }
  0xb7   : > { %p1993_p12 = scmp.ne.s32.totalorder %s2838_s5, %s1992_s23  ;;  %p2888_p3 = scmp.ne.s32.totalorder %s2875_s18, 0 }
  0xb8   : > { %p1999_p9 = scmp.lt.u32.totalorder %s1992_s23, %s2838_s5 }
  0xb9   : > { %p1995_p5 = pnand %p1993_p12, %p2888_p3 }
  0xbb   : > { %p1996_p7 = pneg %p1995_p5 }
  0xbd   : > { %p2001_p0 = pnand %p1999_p9, %p1996_p7 }
  0xbf   : > { %2004 = shalt.err (!%p2001_p0)
}
  0xc0   : > { %s2005_s20 = scalar_lea.vmem %s324_s24, 16  ;;  %s2012_s12 = scalar_lea.vmem %s324_s24, 32 }
  0xc1   : > { %p2006_p1 = scmp.ne.s32.totalorder %s324_s24, %s2005_s20  ;;  %p2013_p11 = scmp.lt.s32.totalorder %s324_s24, %s324_s24 }
  0xc2   : > { %p2014_p13 = scmp.lt.s32.totalorder %s2012_s12, %s2005_s20 }
  0xc3   : > { %p2008_p8 = pnand %p2006_p1, %p2888_p3 }
  0xc4   : > { %p2015_p4 = por %p2014_p13, %p2013_p11 }
  0xc5   : > { %p2009_p6 = pneg %p2008_p8 }
  0xc7   : > { %p2016_p10 = pnand %p2015_p4, %p2009_p6 }
  0xc9   : > { %2019 = shalt.err (!%p2016_p10)
}
  0xca   : > { %p2889_p12 = scmp.ne.s32.totalorder %s2873_s22, 0  ;;  %s401_s18 = scalar_lea.vmem [#allocation7], %s2451_s16 }
  0xcb   : > { %s410_s9 = sshll.u32 %s401_s18, 4  ;;  %s2050_s4 = scalar_lea.hbm %s1366_s8, 384  ;;  %s411_s9 = int_to_ptr.vmem [resolvable:$true] %s410_s9 }
  0xcc   : > { %1725 = dma.hbm_to_vmem [thread:$0]  (!%p2889_p12), %s2838_s5, 16, %s324_s24, [#allocation12]  }
  0xcd   : > { %p2021_p3 = scmp.ne.s32.totalorder %s2534_s27, %s2050_s4  ;;  %s2025_s22 = scalar_lea.hbm %s2835_s2, 768 }
  0xce   : > { %p2026_p10 = scmp.lt.u32.totalorder %s2534_s27, %s2835_s2  ;;  %p2027_p9 = scmp.lt.u32.totalorder %s2025_s22, %s2050_s4 }
  0xcf   : > { %p2023_p5 = pnand %p2021_p3, %p2479_p2  ;;  %p2029_p1 = scmp.lt.u32.totalorder %s2050_s4, %s2534_s27 }
  0xd0   : > { %p2028_p0 = por %p2027_p9, %p2026_p10 }
  0xd1   : > { %p2024_p7 = pneg %p2023_p5 }
  0xd2   : > { %p2030_p8 = por %p2029_p1, %p2028_p0 }
  0xd4   : > { %p2031_p6 = pnand %p2030_p8, %p2024_p7 }
  0xd6   : > { %2034 = shalt.err (!%p2031_p6)
}
  0xd7   : > { %s2035_s24 = scalar_lea.vmem %s411_s9, 128  ;;  %s2231_s8 = smov [#allocation7]  }
  0xd8   : > { %p2036_p11 = scmp.ne.s32.totalorder %s411_s9, %s2035_s24  ;;  %s2040_s7 = sshll.u32 %s2231_s8, 4  ;;  %s2041_s7 = int_to_ptr.vmem [resolvable:$false] %s2040_s7 }
  0xd9   : > { %s2042_s20 = scalar_lea.vmem %s2041_s7, 256  ;;  %p2043_p12 = scmp.lt.s32.totalorder %s411_s9, %s2041_s7 }
  0xda   : > { %p2038_p13 = pnand %p2036_p11, %p2479_p2  ;;  %p2044_p3 = scmp.lt.s32.totalorder %s2042_s20, %s2035_s24 }
  0xdc   : > { %p2039_p4 = pneg %p2038_p13  ;;  %p2045_p5 = por %p2044_p3, %p2043_p12 }
  0xde   : > { %p2046_p9 = pnand %p2045_p5, %p2039_p4 }
  0xe0   : > { %2049 = shalt.err (!%p2046_p9)
}
  0xe1   : > { %p2890_p10 = scmp.ne.s32.totalorder %s2883_s26, 0  ;;  %s1541_s12 = sshll.u32 %s2217_s13, 7 }
  0xe2   : > { %s421_s1 = scalar_lea.vmem [#allocation8], %s2451_s16  ;;  %s2580_s29 = scalar_lea.hbm %s2836_s3, %s1541_s12 }
  0xe3   : > { %1741 = dma.hbm_to_vmem [thread:$0]  (!%p2890_p10), %s2534_s27, 128, %s411_s9, %s378_s0  }
  0xe4   : > { %s429_s11 = sshll.u32 %s421_s1, 4  ;;  %s418_s21 = scalar_lea.sflag [#allocation9], %s2446_s28  ;;  %s430_s11 = int_to_ptr.vmem [resolvable:$true] %s429_s11 }
  0xe5   : > { %s2051_s22 = scalar_lea.hbm %s2580_s29, 128  ;;  %s2056_s9 = scalar_lea.hbm %s2836_s3, 256 }
  0xe6   : > { %p2052_p7 = scmp.ne.s32.totalorder %s2580_s29, %s2051_s22  ;;  %p2057_p8 = scmp.lt.u32.totalorder %s2580_s29, %s2836_s3 }
  0xe7   : > { %p2058_p6 = scmp.lt.u32.totalorder %s2056_s9, %s2051_s22  ;;  %p2060_p13 = scmp.lt.u32.totalorder %s2051_s22, %s2580_s29 }
  0xe8   : > { %p2054_p0 = pnand %p2052_p7, %p2479_p2 }
  0xe9   : > { %p2059_p11 = por %p2058_p6, %p2057_p8 }
  0xea   : > { %p2055_p1 = pneg %p2054_p0 }
  0xeb   : > { %p2061_p4 = por %p2060_p13, %p2059_p11 }
  0xed   : > { %p2062_p12 = pnand %p2061_p4, %p2055_p1 }
  0xef   : > { %2065 = shalt.err (!%p2062_p12)
}
  0xf0   : > { %s2066_s24 = scalar_lea.vmem %s430_s11, 128  ;;  %s2232_s8 = smov [#allocation8]  }
  0xf1   : > { %p2067_p3 = scmp.ne.s32.totalorder %s430_s11, %s2066_s24  ;;  %s2071_s7 = sshll.u32 %s2232_s8, 4  ;;  %s2072_s7 = int_to_ptr.vmem [resolvable:$false] %s2071_s7 }
  0xf2   : > { %s2073_s20 = scalar_lea.vmem %s2072_s7, 256  ;;  %p2074_p7 = scmp.lt.s32.totalorder %s430_s11, %s2072_s7 }
  0xf3   : > { %p2069_p5 = pnand %p2067_p3, %p2479_p2  ;;  %p2075_p0 = scmp.lt.s32.totalorder %s2073_s20, %s2066_s24 }
  0xf5   : > { %p2070_p9 = pneg %p2069_p5  ;;  %p2076_p10 = por %p2075_p0, %p2074_p7 }
  0xf7   : > { %p2077_p6 = pnand %p2076_p10, %p2070_p9 }
  0xf9   : > { %2080 = shalt.err (!%p2077_p6)
}
  0xfa   : > { %p2891_p8 = scmp.ne.s32.totalorder %s2883_s26, 0  ;;  %s2605_s4 = scalar_lea.hbm %s2839_s6, %s1541_s12 }
  0xfb   : > { %s440_s22 = scalar_lea.vmem [#allocation13], %s2451_s16  ;;  %s2081_s27 = scalar_lea.hbm %s2605_s4, 128 }
  0xfc   : > { %1744 = dma.hbm_to_vmem [thread:$0]  (!%p2891_p8), %s2580_s29, 128, %s430_s11, %s418_s21  }
  0xfd   : > { %s448_s0 = sshll.u32 %s440_s22, 4  ;;  %p2082_p10 = scmp.ne.s32.totalorder %s2605_s4, %s2081_s27  ;;  %s449_s0 = int_to_ptr.vmem [resolvable:$true] %s448_s0 }
  0xfe   : > { %s2086_s29 = scalar_lea.hbm %s2839_s6, 256  ;;  %p2087_p13 = scmp.lt.u32.totalorder %s2605_s4, %s2839_s6 }
  0xff   : > { %p2084_p1 = pnand %p2082_p10, %p2479_p2  ;;  %p2088_p4 = scmp.lt.u32.totalorder %s2086_s29, %s2081_s27 }
 0x100   : > { %p2090_p3 = scmp.lt.u32.totalorder %s2081_s27, %s2605_s4 }
 0x101   : > { %p2085_p11 = pneg %p2084_p1  ;;  %p2089_p12 = por %p2088_p4, %p2087_p13 }
 0x103   : > { %p2091_p5 = por %p2090_p3, %p2089_p12 }
 0x105   : > { %p2092_p9 = pnand %p2091_p5, %p2085_p11 }
 0x107   : > { %2095 = shalt.err (!%p2092_p9)
}
 0x108   : > { %s2096_s16 = scalar_lea.vmem %s449_s0, 128  ;;  %s2233_s12 = smov [#allocation13]  }
 0x109   : > { %p2097_p7 = scmp.ne.s32.totalorder %s449_s0, %s2096_s16  ;;  %s2101_s30 = sshll.u32 %s2233_s12, 4  ;;  %s2102_s30 = int_to_ptr.vmem [resolvable:$false] %s2101_s30 }
 0x10a   : > { %s2103_s24 = scalar_lea.vmem %s2102_s30, 256  ;;  %p2104_p10 = scmp.lt.s32.totalorder %s449_s0, %s2102_s30 }
 0x10b   : > { %p2099_p0 = pnand %p2097_p7, %p2479_p2  ;;  %p2105_p1 = scmp.lt.s32.totalorder %s2103_s24, %s2096_s16 }
 0x10d   : > { %p2100_p6 = pneg %p2099_p0  ;;  %p2106_p8 = por %p2105_p1, %p2104_p10 }
 0x10f   : > { %p2107_p4 = pnand %p2106_p8, %p2100_p6 }
 0x111   : > { %2110 = shalt.err (!%p2107_p4)
}
 0x112   : > { %p2892_p13 = scmp.ne.s32.totalorder %s2883_s26, 0  ;;  %s2893_s8 = scalar_lea.sflag [#allocation3], %s2446_s28 }
 0x113   : > { %p2894_p11 = scmp.ne.s32.totalorder %s2872_s19, 0 }
 0x114   : > { %1747 = dma.hbm_to_vmem [thread:$0]  (!%p2892_p13), %s2605_s4, 128, %s449_s0, %s2893_s8  }
 0x115   : > { %457 = sbr.rel (%p2894_p11) target bundleno = 2812 (0xafc), region = 56  ;;  %s2895_s25 = sld [smem:[#allocation29_spill]] (!%p2894_p11) }
 0x116   : > { %s459_s7 = sand.u32 (!%p2894_p11), 1, %s2321_s15   ;;  %s461_s20 = sand.u32 (!%p2894_p11), 1, %s2205_s10  }
 0x117   : > { %s2633_s1 = sshll.u32 (!%p2894_p11), %s461_s20, 3  ;;  %s460_s18 = scalar_lea.sflag (!%p2894_p11), [#allocation3], %s459_s7 }
 0x118   : > { %s463_s22 = scalar_lea.vmem (!%p2894_p11), [#allocation2], %s2633_s1 }
 0x11b   : > { %p2896_p2 = scmp.ne.s32.totalorder (!%p2894_p11), %s2895_s25, 0 }
 0x11d   : > { %2164 = dma.done.wait (%p2896_p2), %s460_s18, 128  }
 0x11e   : > { %2166 = vsyncadd (%p2896_p2), %s460_s18, 4294967168  ;;  %s469_s19 = scalar_lea.sflag [#allocation6], %s459_s7  ;;  %s472_s28 = scalar_lea.vmem [#allocation5], %s2633_s1 }
 0x11f   : > { %2168 = dma.done.wait (%p2896_p2), %s469_s19, 256  }
 0x120   : > { %2170 = vsyncadd (%p2896_p2), %s469_s19, 4294967040  ;;  %s481_s26 = scalar_lea.vmem [#allocation7], %s2633_s1  ;;  %s487_s4 = scalar_lea.sflag [#allocation9], %s459_s7 }
 0x121   : > { %s490_s0 = scalar_lea.vmem [#allocation8], %s2633_s1 }
 0x122   : > { %2172 = dma.done.wait (%p2896_p2), %s487_s4, 128  }
 0x123   : > { %2174 = vsyncadd (%p2896_p2), %s487_s4, 4294967168  ;;  %p2897_p8 = scmp.eq.s32.totalorder %s2321_s15, 0 }
 0x125   : > { %2176 = dma.done.wait (%p2897_p8), [#allocation9], 1024   ;;  %p2898_p12 = pmov %p2897_p8 }
 0x126   : > { %p2899_p3 = pmov %p2897_p8 }
 0x127   : > { %2178 = vsyncadd (%p2898_p12), [#allocation9], 4294966272 }
 0x128   : > { %2180 = dma.done.wait (%p2899_p3), [#allocation12], 16   ;;  %p2900_p5 = pmov %p2899_p3 }
 0x129   : > { %s507_s27 = scalar_lea.vmem [#allocation13], %s2633_s1 }
 0x12a   : > { %2182 = vsyncadd (%p2900_p5), [#allocation12], 4294967280 }
 0x12b   : > { %2184 = dma.done.wait (%p2896_p2), %s460_s18, 128  }
 0x12c   : > { %2186 = vsyncadd (%p2896_p2), %s460_s18, 4294967168  ;;  %p2901_p9 = pmov %p2899_p3 }
 0x12d   : > { %p2902_p7 = pmov %p2899_p3 }
 0x12e   : > { %2188 = dma.done.wait (%p2901_p9), [#allocation6], 16  }
 0x12f   : > { %2190 = vsyncadd (%p2902_p7), [#allocation6], 4294967280  ;;  %p2903_p0 = pmov %p2899_p3 }
 0x131   : > { %2192 = dma.done.wait (%p2903_p0), [#allocation9], 16   ;;  %p2904_p6 = pmov %p2903_p0 }
 0x132   : > { %v2234_v0 = vmov 0.0   ;;  %vm2235_vm0 = vmmov 0   ;;  %v574_v1 = vld [vmem:[%s472_s28] sm:$0xff]  ;;  %vm595_vm1 = vcmask 261120   ;;  %v571_v2 = vld [vmem:[%s463_s22] sm:$0xff]  ;;  %s2236_s15 = smov 96  }
 0x133   : > { %2194 = vsyncadd (%p2904_p6), [#allocation9], 4294967280  ;;  %1610 = vmatprep.subr.bf16.mxu0 %v2234_v0  ;;  %1612 = vmatprep.mubr.msk.bf16.mxu0 %vm2235_vm0, %v2234_v0  ;;  %v2680_v3 = vpack.c.bf16 %v574_v1, %v574_v1  ;;  %v572_v4 = vmul.f32 0.17677669, %v571_v2  ;;  %v2694_v7 = vld [vmem:[%s490_s0] sm:$0xff]  ;;  %vm642_vm2 = vcmask 64512  }
 0x134   : > { %1616 = vmatprep.subr.bf16.mxu1 %v2234_v0  ;;  %1618 = vmatprep.mubr.msk.bf16.mxu1 %vm2235_vm0, %v2234_v0  ;;  %v576_v14 = vld [vmem:[%s481_s26] sm:$0xff]  ;;  %vm656_vm3 = vcmask 1043456   ;;  %s2237_s9 = smov 64   ;;  %v1823_v46 = vld [vmem:[#allocation10 + $0x10] sm:$0xff]   ;;  %v1824_v47 = vld [vmem:[#allocation10 + $0x18] sm:$0xff]   ;;  %s2238_s11 = smov 32  }
 0x135   : > { %v600_v5 = vsel %vm595_vm1, %v2680_v3, 0  ;;  %v2685_v6 = vpack.c.bf16 %v572_v4, %v572_v4  ;;  %v2700_v15 = vpack.c.bf16 %v576_v14, %v576_v14  ;;  %v1821_v44 = vld [vmem:[#allocation10] sm:$0xff]   ;;  %v1822_v45 = vld [vmem:[#allocation10 + $0x8] sm:$0xff]   ;;  %s2905_s29 = sld [smem:[#allocation28_spill]]  ;;  %s569_s23 = scalar_lea.vmem [#allocation16], %s2633_s1 }
 0x136   : > { %1611 = vmatpush3.bf16.xpose.msra.mxu0 %v600_v5  ;;  %s1315_s16 = sshll.u32 %s569_s23, 4  ;;  %s2906_s24 = sld [smem:[#allocation38_spill]]  ;;  %s2785_s16 = int_to_ptr.vmem [resolvable:$true] %s1315_s16 }
 0x137   : > { %1628 = vmatprep.subr.bf16.mxu0 %v2234_v0  ;;  %704 = vrot.lane.b32.xlu1 %v2685_v6, %s2236_s15  ;;  %v658_v16 = vsel %vm656_vm3, %v2700_v15, 0  ;;  %s1301_s25 = scalar_lea.sflag [#allocation4], %s461_s20  ;;  %s2111_s7 = scalar_lea.vmem %s2785_s16, 128 }
 0x138   : > { %1617 = vmatpush3.bf16.msra.mxu1 %v658_v16  ;;  %p2112_p10 = scmp.ne.s32.totalorder %s2785_s16, %s2111_s7  ;;  %p2907_p1 = scmp.ne.s32.totalorder %s2879_s17, 0 }
 0x139   : > { %1622 = vmatprep.subr.bf16.mxu1 %v2234_v0  ;;  %s2239_s1 = smov [#allocation16]  }
 0x13a   : > { %p2113_p4 = pnand %p2112_p10, %p2907_p1  ;;  %s2115_s18 = sshll.u32 %s2239_s1, 4  ;;  %s2116_s18 = int_to_ptr.vmem [resolvable:$false] %s2115_s18 }
 0x13b   : > { %s1579_s21 = sshll.u32 %s2905_s29, 7  ;;  %s2117_s22 = scalar_lea.vmem %s2116_s18, 256 }
 0x13c   : > { %s2783_s8 = scalar_lea.hbm %s2906_s24, %s1579_s21  ;;  %p2114_p13 = pneg %p2113_p4 }
 0x13d   : > { %1613 = vmatmul.mubr.msk.bf16.vlgmr.msra.gmra.mrb[0].mxu0 %vm595_vm1, %v2685_v6  ;;  %p2118_p11 = scmp.lt.s32.totalorder %s2785_s16, %s2116_s18  ;;  %p2119_p2 = scmp.lt.s32.totalorder %s2117_s22, %s2111_s7 }
 0x13e   : > { %1630 = vmatprep.mubr.msk.bf16.mxu0 %vm2235_vm0, %v2234_v0 }
 0x13f   : > { %p2120_p8 = por %p2119_p2, %p2118_p11 }
 0x141   : > { %p2121_p12 = pnand %p2120_p8, %p2114_p13 }
 0x1a9   : > { %v705_v24 = vpop.permute.xlu1 %704 }
 0x210   : > { %v636_v8 = vpop.f32.mrb[0].mxu0 }
 0x211   : > { %v637_v9 = vadd.f32 %v636_v8, %v2694_v7  ;;  %v1614_v10 = vpop.f32.mrb[1].mxu0 }
 0x212   : > { %v639_v11 = vpop.f32.mrb[2].mxu0 }
 0x213   : > { %v1615_v12 = vpop.f32.mrb[3].mxu0  ;;  %v643_v13 = vsel %vm642_vm2, %v637_v9, -inf }
 0x214   : > { %644 = vmax.xlane.f32.xlu0 %v643_v13 }
 0x22a   : > { %707 = vrot.lane.b32.xlu0 %v2680_v3, %s2236_s15 }
 0x22e   : > { %766 = vrot.lane.b32.xlu0 %v2700_v15, %s2236_s15 }
 0x2a1   : > { %v645_v17 = vpop.xlane.xlu0 %644 }
 0x2a2   : > { %v646_v18 = vsub.f32 %v637_v9, %v645_v17 }
 0x2a4   : > { %v647_v19 = vmul.f32 1.442695, %v646_v18 }
 0x2a5   : > { %v708_v20 = vpop.permute.xlu0 %707 }
 0x2a6   : > { %1829 = vpow2.f32 %v647_v19  ;;  %v713_v22 = vsel %vm595_vm1, %v708_v20, 0 }
 0x2a9   : > { %v767_v35 = vpop.permute.xlu0 %766 }
 0x2aa   : > { %v772_v36 = vsel %vm656_vm3, %v767_v35, 0 }
 0x2ab   : > { %1629 = vmatpush3.bf16.msra.mxu0 %v772_v36 }
 0x2ac   : > { %1642 = vmatprep.subr.bf16.mxu0 %v2234_v0 }
 0x2b0   : > { %v1830_v21 = vpop.eup %1829 }
 0x2b1   : > { %v652_v23 = vpack.c.bf16 %v1830_v21, %v1830_v21  ;;  %v649_v43 = vsel %vm642_vm2, %v1830_v21, 0.0 }
 0x2b3   : > { %1619 = vmatmul.mubr.msk.bf16.vlgmr.msra.gmra.mrb[0].mxu1 %vm642_vm2, %v652_v23 }
 0x2b4   : > { %1623 = vmatpush3.bf16.xpose.msra.mxu1 %v713_v22  ;;  %1624 = vmatprep.mubr.msk.bf16.mxu1 %vm2235_vm0, %v2234_v0 }
 0x2b5   : > { %1634 = vmatprep.subr.bf16.mxu1 %v2234_v0 }
 0x2bb   : > { %1625 = vmatmul.mubr.msk.bf16.vlgmr.msra.gmra.mrb[4].mxu1 %vm595_vm1, %v705_v24 }
 0x2bc   : > { %1638 = vmatprep.mubr.msk.bf16.mxu1 %vm2235_vm0, %v2234_v0  ;;  %1635 = vmatpush3.bf16.msra.mxu1 %v1823_v46 }
 0x2bd   : > { %1636 = vmatprep.subr.bf16.mxu1 %v2234_v0 }
 0x2c0   : > { %1637 = vmatpush3.bf16.msra.mxu1 %v1824_v47 }
 0x2c1   : > { %1650 = vmatprep.subr.bf16.mxu1 %v2234_v0 }
 0x386   : > { %v694_v25 = vpop.f32.mrb[0].mxu1 }
 0x387   : > { %v1620_v26 = vpop.f32.mrb[1].mxu1 }
 0x388   : > { %v697_v27 = vpop.f32.mrb[2].mxu1 }
 0x389   : > { %v1621_v28 = vpop.f32.mrb[3].mxu1 }
 0x38a   : > { %v1825_v28 = vld [vmem:[#allocation10 + $0x20] sm:$0xff]  }
 0x38e   : > { %v749_v29 = vpop.f32.mrb[4].mxu1 }
 0x38f   : > { %v750_v30 = vadd.f32 %v749_v29, %v2694_v7  ;;  %v1626_v31 = vpop.f32.mrb[5].mxu1  ;;  %v1826_v29 = vld [vmem:[#allocation10 + $0x28] sm:$0xff]  }
 0x390   : > { %v752_v32 = vpop.f32.mrb[6].mxu1 }
 0x391   : > { %v1627_v33 = vpop.f32.mrb[7].mxu1  ;;  %v755_v34 = vsel %vm642_vm2, %v750_v30, -inf }
 0x392   : > { %756 = vmax.xlane.f32.xlu1 %v755_v34 }
 0x3a3   : > { %929 = vrot.lane.b32.xlu1 %v2680_v3, %s2237_s9 }
 0x3a7   : > { %927 = vrot.lane.b32.xlu1 %v2685_v6, %s2237_s9 }
 0x41f   : > { %v757_v37 = vpop.xlane.xlu1 %756 }
 0x420   : > { %v758_v38 = vsub.f32 %v750_v30, %v757_v37 }
 0x422   : > { %v759_v39 = vmul.f32 1.442695, %v758_v38 }
 0x423   : > { %v930_v55 = vpop.permute.xlu1 %929 }
 0x424   : > { %1831 = vpow2.f32 %v759_v39  ;;  %v935_v60 = vsel %vm595_vm1, %v930_v55, 0 }
 0x427   : > { %v928_v62 = vpop.permute.xlu1 %927 }
 0x42e   : > { %v1832_v40 = vpop.eup %1831 }
 0x42f   : > { %v761_v41 = vsel %vm642_vm2, %v1832_v40, 0.0  ;;  %v764_v42 = vpack.c.bf16 %v1832_v40, %v1832_v40 }
 0x430   : > { %762 = vadd.xlane.f32.xlu0 %v761_v41 }
 0x431   : > { %1631 = vmatmul.mubr.msk.bf16.vlgmr.msra.gmra.mrb[4].mxu0 %vm642_vm2, %v764_v42 }
 0x432   : > { %1646 = vmatprep.mubr.msk.bf16.mxu0 %vm2235_vm0, %v2234_v0  ;;  %1643 = vmatpush3.bf16.msra.mxu0 %v1821_v44 }
 0x433   : > { %1644 = vmatprep.subr.bf16.mxu0 %v2234_v0 }
 0x434   : > { %650 = vadd.xlane.f32.xlu0 %v649_v43 }
 0x436   : > { %1645 = vmatpush3.bf16.msra.mxu0 %v1822_v45 }
 0x437   : > { %1656 = vmatprep.subr.bf16.mxu0 %v2234_v0 }
 0x44a   : > { %987 = vrot.lane.b32.xlu0 %v2700_v15, %s2237_s9 }
 0x44e   : > { %1096 = vrot.lane.b32.xlu0 %v2680_v3, %s2238_s11 }
 0x452   : > { %1094 = vrot.lane.b32.xlu0 %v2685_v6, %s2238_s11 }
 0x4bd   : > { %v763_v48 = vpop.xlane.xlu0 %762 }
 0x4c1   : > { %v651_v49 = vpop.xlane.xlu0 %650 }
 0x4c2   : > { %1833 = vrcp.f32 %v651_v49 }
 0x4c3   : > { %1835 = vrcp.f32 %v763_v48 }
 0x4c5   : > { %v988_v6 = vpop.permute.xlu0 %987 }
 0x4c6   : > { %v993_v18 = vsel %vm656_vm3, %v988_v6, 0 }
 0x4c9   : > { %v1097_v22 = vpop.permute.xlu0 %1096 }
 0x4ca   : > { %v1102_v24 = vsel %vm595_vm1, %v1097_v22, 0  ;;  %v1577_v22 = vld [vmem:[#allocation15] ss:$0 sm:$0xff] }
 0x4cc   : > { %v1834_v50 = vpop.eup %1833 }
 0x4cd   : > { %v701_v51 = vmul.f32 %v1834_v50, %v694_v25  ;;  %v1836_v53 = vpop.eup %1835  ;;  %v1095_v27 = vpop.permute.xlu0 %1094 }
 0x4cf   : > { %v702_v52 = vpack.c.bf16 %v701_v51, %v701_v51  ;;  %v1827_v51 = vld [vmem:[#allocation10 + $0x30] sm:$0xff]  }
 0x4d1   : > { %1647 = vmatmul.mubr.msk.bf16.vlgmr.msra.gmra.mrb[8].mxu0 %vm595_vm1, %v702_v52 }
 0x4d2   : > { %1658 = vmatprep.mubr.msk.bf16.mxu0 %vm2235_vm0, %v2234_v0  ;;  %1657 = vmatpush3.bf16.msra.mxu0 %v993_v18 }
 0x4d3   : > { %1670 = vmatprep.subr.bf16.mxu0 %v2234_v0 }
 0x504   : > { %v808_v54 = vpop.f32.mrb[4].mxu0 }
 0x505   : > { %v815_v56 = vmul.f32 %v1836_v53, %v808_v54  ;;  %v1632_v57 = vpop.f32.mrb[5].mxu0 }
 0x506   : > { %v811_v58 = vpop.f32.mrb[6].mxu0 }
 0x507   : > { %v816_v59 = vpack.c.bf16 %v815_v56, %v815_v56  ;;  %v1633_v61 = vpop.f32.mrb[7].mxu0  ;;  %v1828_v56 = vld [vmem:[#allocation10 + $0x38] sm:$0xff]  }
 0x509   : > { %1639 = vmatmul.mubr.msk.bf16.vlgmr.msra.gmra.mrb[8].mxu1 %vm595_vm1, %v816_v59 }
 0x50a   : > { %1651 = vmatpush3.bf16.xpose.msra.mxu1 %v935_v60  ;;  %1652 = vmatprep.mubr.msk.bf16.mxu1 %vm2235_vm0, %v2234_v0 }
 0x50b   : > { %1662 = vmatprep.subr.bf16.mxu1 %v2234_v0 }
 0x511   : > { %1653 = vmatmul.mubr.msk.bf16.vlgmr.msra.gmra.mrb[12].mxu1 %vm595_vm1, %v928_v62 }
 0x512   : > { %1666 = vmatprep.mubr.msk.bf16.mxu1 %vm2235_vm0, %v2234_v0  ;;  %1663 = vmatpush3.bf16.msra.mxu1 %v1825_v28 }
 0x513   : > { %1664 = vmatprep.subr.bf16.mxu1 %v2234_v0 }
 0x516   : > { %1665 = vmatpush3.bf16.msra.mxu1 %v1826_v29 }
 0x517   : > { %1676 = vmatprep.subr.bf16.mxu1 %v2234_v0 }
 0x5a4   : > { %v921_v63 = vpop.f32.mrb[8].mxu0 }
 0x5a5   : > { %v1648_v1 = vpop.f32.mrb[9].mxu0 }
 0x5a6   : > { %v924_v2 = vpop.f32.mrb[10].mxu0 }
 0x5a7   : > { %v1649_v4 = vpop.f32.mrb[11].mxu0  ;;  %v1575_v2 = vld [vmem:[#allocation11] ss:$0 sm:$0xff] }
 0x5dc   : > { %v866_v5 = vpop.f32.mrb[8].mxu1 }
 0x5dd   : > { %v2746_v8 = vadd.f32 %v921_v63, %v866_v5  ;;  %v1640_v9 = vpop.f32.mrb[9].mxu1 }
 0x5de   : > { %v869_v10 = vpop.f32.mrb[10].mxu1  ;;  %v1269_v9 = vld [vmem:[%s507_s27] sm:$0xff] }
 0x5df   : > { %v1641_v11 = vpop.f32.mrb[11].mxu1 }
 0x5e4   : > { %v971_v12 = vpop.f32.mrb[12].mxu1 }
 0x5e5   : > { %v972_v13 = vadd.f32 %v971_v12, %v2694_v7  ;;  %v1654_v14 = vpop.f32.mrb[13].mxu1 }
 0x5e6   : > { %v974_v16 = vpop.f32.mrb[14].mxu1 }
 0x5e7   : > { %v1655_v17 = vpop.f32.mrb[15].mxu1  ;;  %v977_v3 = vsel %vm642_vm2, %v972_v13, -inf }
 0x5e8   : > { %978 = vmax.xlane.f32.xlu1 %v977_v3 }
 0x675   : > { %v979_v19 = vpop.xlane.xlu1 %978 }
 0x676   : > { %v980_v20 = vsub.f32 %v972_v13, %v979_v19 }
 0x678   : > { %v981_v21 = vmul.f32 1.442695, %v980_v20  ;;  %v1576_v20 = vld [vmem:[#allocation14] ss:$0 sm:$0xff] }
 0x67a   : > { %1837 = vpow2.f32 %v981_v21 }
 0x684   : > { %v1838_v23 = vpop.eup %1837 }
 0x685   : > { %v983_v25 = vsel %vm642_vm2, %v1838_v23, 0.0  ;;  %v986_v26 = vpack.c.bf16 %v1838_v23, %v1838_v23 }
 0x686   : > { %984 = vadd.xlane.f32.xlu0 %v983_v25 }
 0x687   : > { %1659 = vmatmul.mubr.msk.bf16.vlgmr.msra.gmra.mrb[12].mxu0 %vm642_vm2, %v986_v26 }
 0x688   : > { %1671 = vmatpush3.bf16.xpose.msra.mxu0 %v1102_v24  ;;  %1672 = vmatprep.mubr.msk.bf16.mxu0 %vm2235_vm0, %v2234_v0 }
 0x689   : > { %1682 = vmatprep.subr.bf16.mxu0 %v2234_v0 }
 0x68f   : > { %1673 = vmatmul.mubr.msk.bf16.vlgmr.msra.gmra.mrb[16].mxu0 %vm595_vm1, %v1095_v27 }
 0x690   : > { %1686 = vmatprep.mubr.msk.bf16.mxu0 %vm2235_vm0, %v2234_v0  ;;  %1683 = vmatpush3.bf16.msra.mxu0 %v1827_v51 }
 0x691   : > { %1684 = vmatprep.subr.bf16.mxu0 %v2234_v0 }
 0x694   : > { %1685 = vmatpush3.bf16.msra.mxu0 %v1828_v56 }
 0x713   : > { %v985_v30 = vpop.xlane.xlu0 %984 }
 0x714   : > { %1839 = vrcp.f32 %v985_v30 }
 0x71e   : > { %v1840_v31 = vpop.eup %1839 }
 0x75a   : > { %v1029_v32 = vpop.f32.mrb[12].mxu0 }
 0x75b   : > { %v1036_v33 = vmul.f32 %v1840_v31, %v1029_v32  ;;  %v1660_v34 = vpop.f32.mrb[13].mxu0 }
 0x75c   : > { %v1032_v35 = vpop.f32.mrb[14].mxu0 }
 0x75d   : > { %v1037_v36 = vpack.c.bf16 %v1036_v33, %v1036_v33  ;;  %v1661_v37 = vpop.f32.mrb[15].mxu0 }
 0x75f   : > { %1667 = vmatmul.mubr.msk.bf16.vlgmr.msra.gmra.mrb[16].mxu1 %vm595_vm1, %v1037_v36 }
 0x760   : > { %1678 = vmatprep.mubr.msk.bf16.mxu1 %vm2235_vm0, %v2234_v0 }
 0x762   : > { %v1138_v38 = vpop.f32.mrb[16].mxu0 }
 0x763   : > { %v1139_v39 = vadd.f32 %v1138_v38, %v2694_v7  ;;  %v1674_v40 = vpop.f32.mrb[17].mxu0 }
 0x764   : > { %v1141_v41 = vpop.f32.mrb[18].mxu0 }
 0x765   : > { %v1675_v42 = vpop.f32.mrb[19].mxu0  ;;  %v1144_v43 = vsel %vm642_vm2, %v1139_v39, -inf }
 0x766   : > { %1145 = vmax.xlane.f32.xlu1 %v1144_v43 }
 0x777   : > { %1154 = vrot.lane.b32.xlu1 %v2700_v15, %s2238_s11 }
 0x7f3   : > { %v1146_v44 = vpop.xlane.xlu1 %1145 }
 0x7f4   : > { %v1147_v45 = vsub.f32 %v1139_v39, %v1146_v44 }
 0x7f6   : > { %v1148_v46 = vmul.f32 1.442695, %v1147_v45 }
 0x7f7   : > { %v1155_v47 = vpop.permute.xlu1 %1154 }
 0x7f8   : > { %1841 = vpow2.f32 %v1148_v46  ;;  %v1160_v48 = vsel %vm656_vm3, %v1155_v47, 0 }
 0x7f9   : > { %1677 = vmatpush3.bf16.msra.mxu1 %v1160_v48 }
 0x802   : > { %v1842_v49 = vpop.eup %1841 }
 0x803   : > { %v1150_v7 = vsel %vm642_vm2, %v1842_v49, 0.0  ;;  %v1153_v50 = vpack.c.bf16 %v1842_v49, %v1842_v49 }
 0x804   : > { %1151 = vadd.xlane.f32.xlu1 %v1150_v7 }
 0x805   : > { %1679 = vmatmul.mubr.msk.bf16.vlgmr.msra.gmra.mrb[20].mxu1 %vm642_vm2, %v1153_v50 }
 0x832   : > { %v1087_v15 = vpop.f32.mrb[16].mxu1 }
 0x833   : > { %v1093_v52 = vadd.f32 %v1087_v15, %v2746_v8  ;;  %v1668_v53 = vpop.f32.mrb[17].mxu1 }
 0x834   : > { %v1090_v54 = vpop.f32.mrb[18].mxu1 }
 0x835   : > { %v1669_v55 = vpop.f32.mrb[19].mxu1 }
 0x891   : > { %v1152_v57 = vpop.xlane.xlu1 %1151 }
 0x892   : > { %1843 = vrcp.f32 %v1152_v57 }
 0x89c   : > { %v1844_v58 = vpop.eup %1843 }
 0x8d8   : > { %v1196_v59 = vpop.f32.mrb[20].mxu1 }
 0x8d9   : > { %v1203_v60 = vmul.f32 %v1844_v58, %v1196_v59  ;;  %v1680_v61 = vpop.f32.mrb[21].mxu1 }
 0x8da   : > { %v1199_v62 = vpop.f32.mrb[22].mxu1 }
 0x8db   : > { %v1204_v63 = vpack.c.bf16 %v1203_v60, %v1203_v60  ;;  %v1681_v1 = vpop.f32.mrb[23].mxu1 }
 0x8dd   : > { %1687 = vmatmul.mubr.msk.bf16.vlgmr.msra.gmra.mrb[20].mxu0 %vm595_vm1, %v1204_v63 }
 0x9b0   : > { %v1254_v0 = vpop.f32.mrb[20].mxu0 }
 0x9b1   : > { %v1260_v4 = vadd.f32 %v1254_v0, %v1093_v52  ;;  %v1688_v5 = vpop.f32.mrb[21].mxu0 }
 0x9b2   : > { %v1257_v8 = vpop.f32.mrb[22].mxu0 }
 0x9b3   : > { %v1268_v10 = vadd.f32 %v1575_v2, %v1260_v4  ;;  %v1689_v11 = vpop.f32.mrb[23].mxu0 }
 0x9b5   : > { %v1270_v12 = vadd.f32 %v1269_v9, %v1268_v10 }
 0x9b7   : > { %1271 = vadd.xlane.f32.xlu0 %v1270_v12 }
 0xa44   : > { %v1272_v13 = vpop.xlane.xlu0 %1271 }
 0xa45   : > { %v1274_v14 = vmul.f32 0.0078125, %v1272_v13 }
 0xa47   : > { %v1275_v16 = vsub.f32 %v1270_v12, %v1274_v14 }
 0xa49   : > { %v1276_v17 = vmul.f32 %v1275_v16, %v1275_v16 }
 0xa4b   : > { %1277 = vadd.xlane.f32.xlu0 %v1276_v17 }
 0xad8   : > { %v1278_v3 = vpop.xlane.xlu0 %1277 }
 0xad9   : > { %v1279_v6 = vmul.f32 0.0078125, %v1278_v3 }
 0xadb   : > { %v1280_v18 = vadd.f32 1e-05, %v1279_v6 }
 0xadd   : > { %1845 = vrsqrt.f32 %v1280_v18 }
 0xae7   : > { %v1846_v19 = vpop.eup %1845 }
 0xae8   : > { %v1282_v21 = vmul.f32 %v1846_v19, %v1275_v16 }
 0xaea   : > { %v1290_v23 = vmul.f32 %v1576_v20, %v1282_v21 }
 0xaec   : > { %v1298_v24 = vadd.f32 %v1577_v22, %v1290_v23 }
 0xaee   : > { %1299 = vst [vmem:[%s569_s23] sm:$0xff] %v1298_v24 }
 0xaef   : > { %2124 = shalt.err (!%p2121_p12)
}
 0xaf0   : > { %s2125_s20 = scalar_lea.hbm %s2783_s8, 128  ;;  %s2129_s26 = scalar_lea.hbm %s2906_s24, 256 }
 0xaf1   : > { %p2126_p3 = scmp.ne.s32.totalorder %s2783_s8, %s2125_s20  ;;  %p2130_p7 = scmp.lt.u32.totalorder %s2783_s8, %s2906_s24 }
 0xaf2   : > { %p2131_p0 = scmp.lt.u32.totalorder %s2129_s26, %s2125_s20  ;;  %p2133_p10 = scmp.lt.u32.totalorder %s2125_s20, %s2783_s8 }
 0xaf3   : > { %p2127_p5 = pnand %p2126_p3, %p2907_p1 }
 0xaf4   : > { %p2132_p6 = por %p2131_p0, %p2130_p7 }
 0xaf5   : > { %p2128_p9 = pneg %p2127_p5 }
 0xaf6   : > { %p2134_p4 = por %p2133_p10, %p2132_p6 }
 0xaf8   : > { %p2135_p13 = pnand %p2134_p4, %p2128_p9 }
 0xafa   : > { %2138 = shalt.err (!%p2135_p13)
}
 0xafb   : > { %1717 = dma.vmem_to_hbm [thread:$0]  (%p2907_p1), %s2785_s16, 128, %s2783_s8, %s1301_s25  }
 0xafc PF: > { %s2908_s27 = sld [smem:[#allocation26_spill]]  ;;  %s2909_s15 = sld [smem:[#allocation30_spill]] }
 0xafd   : > { %p2911_p2 = scmp.ge.s32.totalorder %s2221_s14, 2 }
 0xb02   : > { %s1327_s9 = sand.u32 1, %s2908_s27   ;;  %p2910_p11 = scmp.ne.s32.totalorder %s2909_s15, 0 }
 0xb03   : > { %s1328_s11 = scalar_lea.sflag [#allocation4], %s1327_s9 }
 0xb04   : > { %p1749_p8 = pnand %p2911_p2, %p2910_p11 }
 0xb06   : > { %2196 = dma.done.wait (!%p1749_p8), %s1328_s11, 128  }
 0xb07   : > { %2198 = vsyncadd (!%p1749_p8), %s1328_s11, 4294967168  ;;  %s32_s14 = sadd.s32 1, %s2221_s14   ;;  %s2912_s29 = sld [smem:[#allocation27_spill]] }
 0xb08   : > { %p29_p12 = scmp.ge.s32.totalorder %s32_s14, 4   ;;  %s2913_s11 = sld [smem:[#allocation32_spill]] }
 0xb09   : > { %s2914_s17 = sld [smem:[#allocation31_spill]]  ;;  %s2915_s30 = smov %s2205_s10 }
 0xb0a   : > { %s2917_s12 = smov %s2217_s13  ;;  %31 = sbr.rel (!%p29_p12) target bundleno = 18 (0x12), region = 165 }
 0xb0d   : > { %s2916_s10 = smov %s2912_s29 }
 0xb0f   : > { %s2918_s13 = smov %s2914_s17 }
 0xb11   :  { %1333 = vsyncpa [#allocation3], 1 }
 0xb12   :  { %1335 = vsyncpa [#allocation3 + $0x1], 1 }
 0xb13   :  { %1336 = vsyncpa [#allocation6], 1 }
 0xb14   :  { %1338 = vsyncpa [#allocation6 + $0x1], 1 }
 0xb15   :  { %1339 = vsyncpa [#allocation9], 1 }
 0xb16   :  { %1341 = vsyncpa [#allocation9 + $0x1], 1 }
 0xb17   :  { %1342 = vsyncpa [#allocation12], 1 }
 0xb18   :  { %1343 = vsyncpa [#allocation4], 1 }
 0xb19   :  { %1345 = vsyncpa [#allocation4 + $0x1], 1 }

// kernel: rel2layout_forward.29
= control target key start
LH: loop header
LB: loop body
LE: loop exit
PB: predicated region body
PF: predicated region fallthrough
CT: control target
= control target key end

     0   :  { %11 = vsyncpa [#allocation3], 0  ;;  %s726_s0 = inlined_call_operand.hbm [shape: f32[16,256], index: 0, kind: input, shape index: {}]   ;;  %s727_s1 = inlined_call_operand.hbm [shape: bf16[256,128], index: 1, kind: input, shape index: {}]   ;;  %s728_s2 = inlined_call_operand.hbm [shape: f32[1,128], index: 2, kind: input, shape index: {}]   ;;  %s729_s3 = inlined_call_operand.hbm [shape: f32[16,128], index: 3, kind: input, shape index: {}]   ;;  %s730_s4 = inlined_call_operand.hbm [shape: f32[1,128], index: 4, kind: input, shape index: {}]   ;;  %s731_s5 = inlined_call_operand.hbm [shape: f32[1,128], index: 5, kind: input, shape index: {}]   ;;  %s732_s6 = inlined_call_operand.hbm [shape: f32[16,128], index: 6, kind: output, shape index: {}]  }
   0x1   :  { %12 = vsyncpa [#allocation6], 0 }
   0x2   :  { %13 = vsyncpa [#allocation9], 0 }
   0x3   :  { %14 = vsyncpa [#allocation12], 0 }
   0x4   :  { %15 = vsyncpa [#allocation4], 0  ;;  %s588_s21 = smov [#allocation5]   ;;  %s424_s25 = scalar_lea.hbm %s727_s1, 2048 }
   0x5   :  { %s33_s22 = sshll.u32 %s588_s21, 4  ;;  %p425_p0 = scmp.ne.s32.totalorder %s727_s1, %s424_s25  ;;  %s34_s22 = int_to_ptr.vmem [resolvable:$true] %s33_s22 }
   0x6   :  { %p428_p1 = scmp.lt.u32.totalorder %s424_s25, %s727_s1 }
   0x8   :  { %p430_p2 = pnand %p428_p1, %p425_p0 }
   0xa   :  { %433 = shalt.err (!%p430_p2)
}
   0xb   :  { %s434_s30 = scalar_lea.vmem %s34_s22, 2048  ;;  %p439_p4 = scmp.lt.s32.totalorder %s34_s22, %s34_s22 }
   0xc   :  { %p435_p3 = scmp.ne.s32.totalorder %s34_s22, %s434_s30  ;;  %p440_p5 = scmp.lt.s32.totalorder %s434_s30, %s434_s30 }
   0xe   :  { %p441_p6 = por %p440_p5, %p439_p4 }
  0x10   :  { %p442_p7 = pnand %p441_p6, %p435_p3 }
  0x12   :  { %445 = shalt.err (!%p442_p7)
}
  0x13   :  { %s589_s7 = smov 64   ;;  %s590_s8 = smov 4  }
  0x14   :  { %39 = dma.hbm_to_vmem [thread:$0]  %s727_s1, 2048, %s34_s22, [#allocation6], %s589_s7, %s589_s7, %s590_s8  }
  0x15   :  { %s591_s11 = smov [#allocation8]   ;;  %s446_s15 = scalar_lea.hbm %s729_s3, 256 }
  0x16   :  { %s55_s12 = sshll.u32 %s591_s11, 4  ;;  %p447_p8 = scmp.ne.s32.totalorder %s729_s3, %s446_s15  ;;  %s56_s12 = int_to_ptr.vmem [resolvable:$true] %s55_s12 }
  0x17   :  { %p450_p9 = scmp.lt.u32.totalorder %s446_s15, %s729_s3 }
  0x19   :  { %p452_p10 = pnand %p450_p9, %p447_p8 }
  0x1b   :  { %455 = shalt.err (!%p452_p10)
}
  0x1c   :  { %s456_s20 = scalar_lea.vmem %s56_s12, 256  ;;  %p461_p12 = scmp.lt.s32.totalorder %s56_s12, %s56_s12 }
  0x1d   :  { %p457_p11 = scmp.ne.s32.totalorder %s56_s12, %s456_s20  ;;  %p462_p13 = scmp.lt.s32.totalorder %s456_s20, %s456_s20 }
  0x1f   :  { %p463_p0 = por %p462_p13, %p461_p12 }
  0x21   :  { %p464_p1 = pnand %p463_p0, %p457_p11 }
  0x23   :  { %467 = shalt.err (!%p464_p1)
}
  0x24   :  { %s592_s1 = smov 128   ;;  %s593_s21 = smov 8  }
  0x25   :  { %61 = dma.hbm_to_vmem [thread:$0]  %s729_s3, 256, %s56_s12, [#allocation9], %s592_s1, %s592_s1, %s593_s21  }
  0x26   :  { %s594_s24 = smov [#allocation2]   ;;  %s468_s28 = scalar_lea.hbm %s726_s0, 512 }
  0x27   :  { %s21_s25 = sshll.u32 %s594_s24, 4  ;;  %p469_p2 = scmp.ne.s32.totalorder %s726_s0, %s468_s28  ;;  %s22_s25 = int_to_ptr.vmem [resolvable:$true] %s21_s25 }
  0x28   :  { %p472_p3 = scmp.lt.u32.totalorder %s468_s28, %s726_s0 }
  0x2a   :  { %p474_p4 = pnand %p472_p3, %p469_p2 }
  0x2c   :  { %477 = shalt.err (!%p474_p4)
}
  0x2d   :  { %s478_s9 = scalar_lea.vmem %s22_s25, 512  ;;  %p483_p6 = scmp.lt.s32.totalorder %s22_s25, %s22_s25 }
  0x2e   :  { %p479_p5 = scmp.ne.s32.totalorder %s22_s25, %s478_s9  ;;  %p484_p7 = scmp.lt.s32.totalorder %s478_s9, %s478_s9 }
  0x30   :  { %p485_p8 = por %p484_p7, %p483_p6 }
  0x32   :  { %p486_p9 = pnand %p485_p8, %p479_p5 }
  0x34   :  { %489 = shalt.err (!%p486_p9)
}
  0x35   :  { %s595_s3 = smov 256   ;;  %s596_s10 = smov 16  }
  0x36   :  { %27 = dma.hbm_to_vmem [thread:$0]  %s726_s0, 512, %s22_s25, [#allocation3], %s595_s3, %s595_s3, %s596_s10  }
  0x37   :  { %s597_s13 = smov [#allocation7]   ;;  %s598_s15 = smov [#allocation10]  }
  0x38   :  { %s46_s14 = sshll.u32 %s597_s13, 4  ;;  %s68_s16 = sshll.u32 %s598_s15, 4  ;;  %s47_s14 = int_to_ptr.vmem [resolvable:$true] %s46_s14  ;;  %s69_s16 = int_to_ptr.vmem [resolvable:$true] %s68_s16 }
  0x39   :  { %s490_s19 = scalar_lea.hbm %s728_s2, 16 }
  0x3a   :  { %p491_p10 = scmp.ne.s32.totalorder %s728_s2, %s490_s19  ;;  %p494_p11 = scmp.lt.u32.totalorder %s490_s19, %s728_s2 }
  0x3c   :  { %p496_p12 = pnand %p494_p11, %p491_p10 }
  0x3e   :  { %499 = shalt.err (!%p496_p12)
}
  0x3f   :  { %s500_s0 = scalar_lea.vmem %s47_s14, 16  ;;  %s504_s25 = scalar_lea.vmem %s47_s14, 32 }
  0x40   :  { %p501_p13 = scmp.ne.s32.totalorder %s47_s14, %s500_s0  ;;  %p505_p0 = scmp.lt.s32.totalorder %s47_s14, %s47_s14 }
  0x41   :  { %p506_p1 = scmp.lt.s32.totalorder %s504_s25, %s500_s0 }
  0x43   :  { %p507_p2 = por %p506_p1, %p505_p0 }
  0x45   :  { %p508_p3 = pnand %p507_p2, %p501_p13 }
  0x47   :  { %511 = shalt.err (!%p508_p3)
}
  0x48   :  { %49 = dma.hbm_to_vmem [thread:$0]  %s728_s2, 16, %s47_s14, [#allocation6]  }
  0x49   :  { %s512_s30 = scalar_lea.hbm %s730_s4, 16 }
  0x4a   :  { %p513_p4 = scmp.ne.s32.totalorder %s730_s4, %s512_s30  ;;  %p516_p5 = scmp.lt.u32.totalorder %s512_s30, %s730_s4 }
  0x4c   :  { %p518_p6 = pnand %p516_p5, %p513_p4 }
  0x4e   :  { %521 = shalt.err (!%p518_p6)
}
  0x4f   :  { %s522_s10 = scalar_lea.vmem %s69_s16, 16  ;;  %s526_s11 = scalar_lea.vmem %s69_s16, 32 }
  0x50   :  { %p523_p7 = scmp.ne.s32.totalorder %s69_s16, %s522_s10  ;;  %p527_p8 = scmp.lt.s32.totalorder %s69_s16, %s69_s16 }
  0x51   :  { %p528_p9 = scmp.lt.s32.totalorder %s526_s11, %s522_s10 }
  0x53   :  { %p529_p10 = por %p528_p9, %p527_p8 }
  0x55   :  { %p530_p11 = pnand %p529_p10, %p523_p7 }
  0x57   :  { %533 = shalt.err (!%p530_p11)
}
  0x58   :  { %71 = dma.hbm_to_vmem [thread:$0]  %s730_s4, 16, %s69_s16, [#allocation9]  }
  0x59   :  { %s599_s13 = smov [#allocation11]   ;;  %s534_s18 = scalar_lea.hbm %s731_s5, 16 }
  0x5a   :  { %s78_s14 = sshll.u32 %s599_s13, 4  ;;  %p535_p12 = scmp.ne.s32.totalorder %s731_s5, %s534_s18  ;;  %s79_s14 = int_to_ptr.vmem [resolvable:$true] %s78_s14 }
  0x5b   :  { %p538_p13 = scmp.lt.u32.totalorder %s534_s18, %s731_s5 }
  0x5d   :  { %p540_p0 = pnand %p538_p13, %p535_p12 }
  0x5f   :  { %543 = shalt.err (!%p540_p0)
}
  0x60   :  { %s544_s24 = scalar_lea.vmem %s79_s14, 16  ;;  %s548_s4 = scalar_lea.vmem %s79_s14, 32 }
  0x61   :  { %p545_p1 = scmp.ne.s32.totalorder %s79_s14, %s544_s24  ;;  %p549_p2 = scmp.lt.s32.totalorder %s79_s14, %s79_s14 }
  0x62   :  { %p550_p3 = scmp.lt.s32.totalorder %s548_s4, %s544_s24 }
  0x64   :  { %p551_p4 = por %p550_p3, %p549_p2 }
  0x66   :  { %p552_p5 = pnand %p551_p4, %p545_p1 }
  0x68   :  { %555 = shalt.err (!%p552_p5)
}
  0x69   :  { %81 = dma.hbm_to_vmem [thread:$0]  %s731_s5, 16, %s79_s14, [#allocation12]  }
  0x6a   :  { %578 = dma.done.wait [#allocation3], 512  }
  0x6b   :  { %579 = vsyncadd [#allocation3], 4294966784 }
  0x6c   :  { %580 = dma.done.wait [#allocation6], 2064  }
  0x6d   :  { %581 = vsyncadd [#allocation6], 4294965232 }
  0x6e   :  { %582 = dma.done.wait [#allocation9], 272  }
  0x6f   :  { %583 = vsyncadd [#allocation9], 4294967024 }
  0x70   :  { %584 = dma.done.wait [#allocation12], 16  }
  0x71   :  { %585 = vsyncadd [#allocation12], 4294967280  ;;  %v404_v0 = vld [vmem:[#allocation5 + $0x40] sm:$0xff]   ;;  %v406_v2 = vld [vmem:[#allocation5 + $0x48] sm:$0xff]   ;;  %s600_s5 = smov [#allocation13]  }
  0x72   :  { %v405_v1 = vld [vmem:[#allocation5] sm:$0xff]   ;;  %369 = vmatprep.subr.bf16.mxu0 %v404_v0  ;;  %v407_v3 = vld [vmem:[#allocation5 + $0x8] sm:$0xff]   ;;  %v408_v4 = vld [vmem:[#allocation5 + $0x50] sm:$0xff]   ;;  %s335_s25 = sshll.u32 %s600_s5, 4  ;;  %s336_s25 = int_to_ptr.vmem [resolvable:$true] %s335_s25 }
  0x73   :  { %370 = vmatpush3.bf16.msra.mxu0 %v405_v1  ;;  %v409_v5 = vld [vmem:[#allocation5 + $0x10] sm:$0xff]   ;;  %v410_v6 = vld [vmem:[#allocation5 + $0x58] sm:$0xff]   ;;  %v412_v8 = vld [vmem:[#allocation5 + $0x60] sm:$0xff]   ;;  %s556_s26 = scalar_lea.vmem %s336_s25, 256  ;;  %p561_p7 = scmp.lt.s32.totalorder %s336_s25, %s336_s25 }
  0x74   :  { %371 = vmatprep.subr.bf16.mxu0 %v406_v2  ;;  %v411_v7 = vld [vmem:[#allocation5 + $0x18] sm:$0xff]   ;;  %v413_v9 = vld [vmem:[#allocation5 + $0x20] sm:$0xff]   ;;  %v414_v10 = vld [vmem:[#allocation5 + $0x68] sm:$0xff]   ;;  %p557_p6 = scmp.ne.s32.totalorder %s336_s25, %s556_s26  ;;  %p562_p8 = scmp.lt.s32.totalorder %s556_s26, %s556_s26 }
  0x75   :  { %v102_v11 = vld [vmem:[#allocation2 + $0x8] sm:$0xff]  ;;  %v104_v12 = vld [vmem:[#allocation2 + $0x18] sm:$0xff]  ;;  %v416_v15 = vld [vmem:[#allocation5 + $0x70] sm:$0xff]  }
  0x76   :  { %v106_v13 = vpack.c.bf16 %v104_v12, %v102_v11  ;;  %v415_v14 = vld [vmem:[#allocation5 + $0x28] sm:$0xff]   ;;  %v417_v16 = vld [vmem:[#allocation5 + $0x30] sm:$0xff]   ;;  %v418_v17 = vld [vmem:[#allocation5 + $0x78] sm:$0xff]   ;;  %p563_p9 = por %p562_p8, %p561_p7 }
  0x77   :  { %372 = vmatpush3.bf16.msra.mxu0 %v407_v3  ;;  %v419_v18 = vld [vmem:[#allocation5 + $0x38] sm:$0xff]   ;;  %v101_v19 = vld [vmem:[#allocation2] sm:$0xff]  ;;  %v103_v20 = vld [vmem:[#allocation2 + $0x10] sm:$0xff] }
  0x78   :  { %373 = vmatprep.subr.bf16.mxu0 %v408_v4  ;;  %274 = vmatprep.mubr.bf16.mxu0 %v106_v13  ;;  %v105_v21 = vpack.c.bf16 %v103_v20, %v101_v19  ;;  %v350_v23 = vld [vmem:[#allocation7] ss:$0 sm:$0xff]  ;;  %v283_v28 = vld [vmem:[#allocation8] sm:$0xff]  ;;  %v284_v33 = vld [vmem:[#allocation8 + $0x8] sm:$0xff]  ;;  %p564_p10 = pnand %p563_p9, %p557_p6 }
  0x79   :  { %v367_v50 = vld [vmem:[#allocation10] ss:$0 sm:$0xff]  ;;  %v368_v52 = vld [vmem:[#allocation11] ss:$0 sm:$0xff] }
  0x7b   :  { %374 = vmatpush3.bf16.msra.mxu0 %v409_v5 }
  0x7c   :  { %375 = vmatprep.subr.bf16.mxu0 %v410_v6 }
  0x7f   :  { %376 = vmatpush3.bf16.msra.mxu0 %v411_v7 }
  0x80   :  { %377 = vmatprep.subr.bf16.mxu0 %v412_v8 }
  0x83   :  { %378 = vmatpush3.bf16.msra.mxu0 %v413_v9 }
  0x84   :  { %379 = vmatprep.subr.bf16.mxu0 %v414_v10 }
  0x87   :  { %380 = vmatpush3.bf16.msra.mxu0 %v415_v14 }
  0x88   :  { %381 = vmatprep.subr.bf16.mxu0 %v416_v15 }
  0x8b   :  { %382 = vmatpush3.bf16.msra.mxu0 %v417_v16 }
  0x8c   :  { %383 = vmatprep.subr.bf16.mxu0 %v418_v17 }
  0x8f   :  { %384 = vmatpush3.bf16.msra.mxu0 %v419_v18 }
  0x92   :  { %275 = vmatmul.mubr.bf16.vlgmr.msra.gmra.mrb[0].mxu0 %v105_v21 }
 0x165   :  { %v385_v22 = vpop.f32.mrb[0].mxu0 }
 0x166   :  { %v386_v24 = vpop.f32.mrb[1].mxu0 }
 0x167   :  { %v387_v25 = vadd.f32 %v386_v24, %v385_v22  ;;  %v388_v26 = vpop.f32.mrb[2].mxu0 }
 0x168   :  { %v389_v27 = vpop.f32.mrb[3].mxu0 }
 0x169   :  { %v277_v29 = vadd.f32 %v387_v25, %v350_v23  ;;  %v390_v30 = vadd.f32 %v389_v27, %v388_v26 }
 0x16b   :  { %v280_v31 = vadd.f32 %v390_v30, %v350_v23  ;;  %v285_v32 = vadd.f32 %v283_v28, %v277_v29 }
 0x16d   :  { %287 = vadd.xlane.f32.xlu0 %v285_v32  ;;  %v286_v34 = vadd.f32 %v284_v33, %v280_v31 }
 0x171   :  { %289 = vadd.xlane.f32.xlu0 %v286_v34 }
 0x1fa   :  { %v288_v35 = vpop.xlane.xlu0 %287 }
 0x1fb   :  { %v292_v36 = vmul.f32 0.0078125, %v288_v35 }
 0x1fd   :  { %v294_v37 = vsub.f32 %v285_v32, %v292_v36 }
 0x1fe   :  { %v290_v38 = vpop.xlane.xlu0 %289 }
 0x1ff   :  { %v293_v39 = vmul.f32 0.0078125, %v290_v38  ;;  %v296_v40 = vmul.f32 %v294_v37, %v294_v37 }
 0x201   :  { %v295_v41 = vsub.f32 %v286_v34, %v293_v39  ;;  %298 = vadd.xlane.f32.xlu1 %v296_v40 }
 0x203   :  { %v297_v42 = vmul.f32 %v295_v41, %v295_v41 }
 0x205   :  { %300 = vadd.xlane.f32.xlu1 %v297_v42 }
 0x28e   :  { %v299_v43 = vpop.xlane.xlu1 %298 }
 0x28f   :  { %v302_v44 = vmul.f32 0.0078125, %v299_v43 }
 0x291   :  { %v304_v45 = vadd.f32 1e-05, %v302_v44 }
 0x292   :  { %v301_v46 = vpop.xlane.xlu1 %300 }
 0x293   :  { %420 = vrsqrt.f32 %v304_v45  ;;  %v303_v47 = vmul.f32 0.0078125, %v301_v46 }
 0x295   :  { %v305_v48 = vadd.f32 1e-05, %v303_v47 }
 0x297   :  { %422 = vrsqrt.f32 %v305_v48 }
 0x29d   :  { %v421_v49 = vpop.eup %420 }
 0x29e   :  { %v308_v51 = vmul.f32 %v421_v49, %v294_v37 }
 0x2a0   :  { %v317_v53 = vmul.f32 %v367_v50, %v308_v51 }
 0x2a1   :  { %v423_v54 = vpop.eup %422 }
 0x2a2   :  { %v309_v55 = vmul.f32 %v423_v54, %v295_v41  ;;  %v326_v56 = vadd.f32 %v368_v52, %v317_v53 }
 0x2a4   :  { %v318_v57 = vmul.f32 %v367_v50, %v309_v55  ;;  %328 = vst [vmem:[#allocation13] sm:$0xff] %v326_v56 }
 0x2a6   :  { %v327_v58 = vadd.f32 %v368_v52, %v318_v57 }
 0x2a8   :  { %329 = vst [vmem:[#allocation13 + $0x8] sm:$0xff] %v327_v58 }
 0x2a9   :  { %567 = shalt.err (!%p564_p10)
}
 0x2aa   :  { %s568_s29 = scalar_lea.hbm %s732_s6, 256 }
 0x2ab   :  { %p569_p11 = scmp.ne.s32.totalorder %s732_s6, %s568_s29  ;;  %p572_p12 = scmp.lt.u32.totalorder %s568_s29, %s732_s6 }
 0x2ad   :  { %p574_p13 = pnand %p572_p12, %p569_p11 }
 0x2af   :  { %577 = shalt.err (!%p574_p13)
}
 0x2b0   :  { %341 = dma.vmem_to_hbm [thread:$0]  %s336_s25, 256, %s732_s6, [#allocation4], %s592_s1, %s592_s1, %s593_s21  }
 0x2b1   :  { %586 = dma.done.wait [#allocation4], 256  }
 0x2b2   :  { %587 = vsyncadd [#allocation4], 4294967040 }
 0x2b3   :  { %345 = vsyncpa [#allocation3], 1 }
 0x2b4   :  { %346 = vsyncpa [#allocation6], 1 }
 0x2b5   :  { %347 = vsyncpa [#allocation9], 1 }
 0x2b6   :  { %348 = vsyncpa [#allocation12], 1 }
 0x2b7   :  { %349 = vsyncpa [#allocation4], 1 }

// kernel: rel2layout_forward.28
= control target key start
LH: loop header
LB: loop body
LE: loop exit
PB: predicated region body
PF: predicated region fallthrough
CT: control target
= control target key end

     0   :  { %8 = vsyncpa [#allocation3], 0  ;;  %s462_s0 = inlined_call_operand.hbm [shape: f32[16,128], index: 0, kind: input, shape index: {}]   ;;  %s463_s1 = inlined_call_operand.hbm [shape: bf16[128,256], index: 1, kind: input, shape index: {}]   ;;  %s464_s2 = inlined_call_operand.hbm [shape: f32[1,256], index: 2, kind: input, shape index: {}]   ;;  %s465_s3 = inlined_call_operand.hbm [shape: f32[16,256], index: 3, kind: output, shape index: {}]  }
   0x1   :  { %9 = vsyncpa [#allocation6], 0 }
   0x2   :  { %10 = vsyncpa [#allocation4], 0  ;;  %s378_s12 = smov [#allocation5]   ;;  %s379_s14 = smov [#allocation2]  }
   0x3   :  { %s28_s13 = sshll.u32 %s378_s12, 4  ;;  %s16_s15 = sshll.u32 %s379_s14, 4  ;;  %s29_s13 = int_to_ptr.vmem [resolvable:$true] %s28_s13  ;;  %s407_s15 = int_to_ptr.vmem [resolvable:$true] %s16_s15 }
   0x4   :  { %s284_s18 = scalar_lea.hbm %s463_s1, 2048 }
   0x5   :  { %p285_p0 = scmp.ne.s32.totalorder %s463_s1, %s284_s18  ;;  %p288_p1 = scmp.lt.u32.totalorder %s284_s18, %s463_s1 }
   0x7   :  { %p290_p2 = pnand %p288_p1, %p285_p0 }
   0x9   :  { %293 = shalt.err (!%p290_p2)
}
   0xa   :  { %s294_s23 = scalar_lea.vmem %s29_s13, 2048  ;;  %p299_p4 = scmp.lt.s32.totalorder %s29_s13, %s29_s13 }
   0xb   :  { %p295_p3 = scmp.ne.s32.totalorder %s29_s13, %s294_s23  ;;  %p300_p5 = scmp.lt.s32.totalorder %s294_s23, %s294_s23 }
   0xd   :  { %p301_p6 = por %p300_p5, %p299_p4 }
   0xf   :  { %p302_p7 = pnand %p301_p6, %p295_p3 }
  0x11   :  { %305 = shalt.err (!%p302_p7)
}
  0x12   :  { %s380_s24 = smov 128   ;;  %s381_s25 = smov 8  }
  0x13   :  { %34 = dma.hbm_to_vmem [thread:$0]  %s463_s1, 2048, %s29_s13, [#allocation6], %s380_s24, %s380_s24, %s381_s25  }
  0x14   :  { %s306_s30 = scalar_lea.hbm %s462_s0, 256 }
  0x15   :  { %p307_p8 = scmp.ne.s32.totalorder %s462_s0, %s306_s30  ;;  %p310_p9 = scmp.lt.u32.totalorder %s306_s30, %s462_s0 }
  0x17   :  { %p312_p10 = pnand %p310_p9, %p307_p8 }
  0x19   :  { %315 = shalt.err (!%p312_p10)
}
  0x1a   :  { %s316_s8 = scalar_lea.vmem %s407_s15, 256  ;;  %p321_p12 = scmp.lt.s32.totalorder %s407_s15, %s407_s15 }
  0x1b   :  { %p317_p11 = scmp.ne.s32.totalorder %s407_s15, %s316_s8  ;;  %p322_p13 = scmp.lt.s32.totalorder %s316_s8, %s316_s8 }
  0x1d   :  { %p323_p0 = por %p322_p13, %p321_p12 }
  0x1f   :  { %p324_p1 = pnand %p323_p0, %p317_p11 }
  0x21   :  { %327 = shalt.err (!%p324_p1)
}
  0x22   :  { %22 = dma.hbm_to_vmem [thread:$0]  %s462_s0, 256, %s407_s15, [#allocation3], %s380_s24, %s380_s24, %s381_s25  }
  0x23   :  { %s382_s10 = smov [#allocation7]   ;;  %s328_s14 = scalar_lea.hbm %s464_s2, 32 }
  0x24   :  { %s41_s11 = sshll.u32 %s382_s10, 4  ;;  %p329_p2 = scmp.ne.s32.totalorder %s464_s2, %s328_s14  ;;  %s42_s11 = int_to_ptr.vmem [resolvable:$true] %s41_s11 }
  0x25   :  { %p332_p3 = scmp.lt.u32.totalorder %s328_s14, %s464_s2 }
  0x27   :  { %p334_p4 = pnand %p332_p3, %p329_p2 }
  0x29   :  { %337 = shalt.err (!%p334_p4)
}
  0x2a   :  { %s338_s20 = scalar_lea.vmem %s42_s11, 32  ;;  %p343_p6 = scmp.lt.s32.totalorder %s42_s11, %s42_s11 }
  0x2b   :  { %p339_p5 = scmp.ne.s32.totalorder %s42_s11, %s338_s20  ;;  %p344_p7 = scmp.lt.s32.totalorder %s338_s20, %s338_s20 }
  0x2d   :  { %p345_p8 = por %p344_p7, %p343_p6 }
  0x2f   :  { %p346_p9 = pnand %p345_p8, %p339_p5 }
  0x31   :  { %349 = shalt.err (!%p346_p9)
}
  0x32   :  { %44 = dma.hbm_to_vmem [thread:$0]  %s464_s2, 32, %s42_s11, [#allocation6]  }
  0x33   :  { %372 = dma.done.wait [#allocation3], 256  }
  0x34   :  { %373 = vsyncadd [#allocation3], 4294967040 }
  0x35   :  { %374 = dma.done.wait [#allocation6], 2080  }
  0x36   :  { %375 = vsyncadd [#allocation6], 4294965216  ;;  %v383_v0 = vmov 0   ;;  %v260_v1 = vld [vmem:[#allocation5 + $0x4] ss:$8 sps:$4 sm:$0xff]   ;;  %v55_v17 = vld [vmem:[#allocation2] sm:$0xff]  ;;  %v76_v20 = vlaneseq }
  0x37   :  { %198 = vmatprep.mubr.bf16.mxu0 %v383_v0  ;;  %v262_v2 = vld [vmem:[#allocation5] ss:$8 sps:$4 sm:$0xff]   ;;  %166 = vmatprep.subr.bf16.mxu0 %v260_v1  ;;  %v263_v3 = vld [vmem:[#allocation5 + $0x14] ss:$8 sps:$4 sm:$0xff]   ;;  %v265_v4 = vld [vmem:[#allocation5 + $0x10] ss:$8 sps:$4 sm:$0xff]  }
  0x38   :  { %167 = vmatpush1.bf16.msra.mxu0 %v262_v2  ;;  %v266_v5 = vld [vmem:[#allocation5 + $0x24] ss:$8 sps:$4 sm:$0xff]   ;;  %v268_v6 = vld [vmem:[#allocation5 + $0x20] ss:$8 sps:$4 sm:$0xff]   ;;  %v269_v7 = vld [vmem:[#allocation5 + $0x34] ss:$8 sps:$4 sm:$0xff]  }
  0x39   :  { %168 = vmatprep.subr.bf16.mxu0 %v263_v3  ;;  %v271_v8 = vld [vmem:[#allocation5 + $0x30] ss:$8 sps:$4 sm:$0xff]   ;;  %v272_v9 = vld [vmem:[#allocation5 + $0x44] ss:$8 sps:$4 sm:$0xff]   ;;  %v274_v10 = vld [vmem:[#allocation5 + $0x40] ss:$8 sps:$4 sm:$0xff]  }
  0x3a   :  { %v275_v11 = vld [vmem:[#allocation5 + $0x54] ss:$8 sps:$4 sm:$0xff]   ;;  %v277_v12 = vld [vmem:[#allocation5 + $0x50] ss:$8 sps:$4 sm:$0xff]   ;;  %v278_v13 = vld [vmem:[#allocation5 + $0x64] ss:$8 sps:$4 sm:$0xff]  }
  0x3b   :  { %v280_v14 = vld [vmem:[#allocation5 + $0x60] ss:$8 sps:$4 sm:$0xff]   ;;  %v281_v15 = vld [vmem:[#allocation5 + $0x74] ss:$8 sps:$4 sm:$0xff]   ;;  %v283_v16 = vld [vmem:[#allocation5 + $0x70] ss:$8 sps:$4 sm:$0xff]  }
  0x3c   :  { %169 = vmatpush1.bf16.msra.mxu0 %v265_v4  ;;  %v56_v18 = vld [vmem:[#allocation2 + $0x8] sm:$0xff]  ;;  %v77_v21 = vshrl.u32 %v76_v20, 7  ;;  %v74_v23 = vld [vmem:[#allocation7] sm:$0x3]  ;;  %s384_s2 = smov [#allocation8]  }
  0x3d   :  { %170 = vmatprep.subr.bf16.mxu0 %v266_v5  ;;  %v57_v19 = vpack.c.bf16 %v56_v18, %v55_v17  ;;  %s222_s21 = sshll.u32 %s384_s2, 4  ;;  %s223_s21 = int_to_ptr.vmem [resolvable:$true] %s222_s21 }
  0x3e   :  { %v78_v22 = vsub.s32 0, %v77_v21  ;;  %v82_v24 = vsub.s32 1, %v77_v21  ;;  %s350_s22 = scalar_lea.vmem %s223_s21, 512  ;;  %p355_p11 = scmp.lt.s32.totalorder %s223_s21, %s223_s21 }
  0x3f   :  { %p351_p10 = scmp.ne.s32.totalorder %s223_s21, %s350_s22  ;;  %p356_p12 = scmp.lt.s32.totalorder %s350_s22, %s350_s22 }
  0x40   :  { %171 = vmatpush1.bf16.msra.mxu0 %v268_v6  ;;  %v79_v25 = vrot.slane %v74_v23, %v78_v22  ;;  %v83_v26 = vrot.slane %v74_v23, %v82_v24 }
  0x41   :  { %172 = vmatprep.subr.bf16.mxu0 %v269_v7  ;;  %p357_p13 = por %p356_p12, %p355_p11 }
  0x43   :  { %p358_p0 = pnand %p357_p13, %p351_p10 }
  0x44   :  { %173 = vmatpush1.bf16.msra.mxu0 %v271_v8 }
  0x45   :  { %174 = vmatprep.subr.bf16.mxu0 %v272_v9 }
  0x48   :  { %175 = vmatpush1.bf16.msra.mxu0 %v274_v10 }
  0x49   :  { %176 = vmatprep.subr.bf16.mxu0 %v275_v11 }
  0x4c   :  { %177 = vmatpush1.bf16.msra.mxu0 %v277_v12 }
  0x4d   :  { %178 = vmatprep.subr.bf16.mxu0 %v278_v13 }
  0x50   :  { %179 = vmatpush1.bf16.msra.mxu0 %v280_v14 }
  0x51   :  { %180 = vmatprep.subr.bf16.mxu0 %v281_v15 }
  0x54   :  { %181 = vmatpush1.bf16.msra.mxu0 %v283_v16 }
  0x57   :  { %199 = vmatmul.mubr.bf16.vlgmr.msra.gmra.mrb[0].mxu0 %v57_v19 }
 0x12a   :  { %v200_v27 = vpop.f32.mrb[0].mxu0 }
 0x12b   :  { %v201_v28 = vadd.f32 %v200_v27, %v79_v25  ;;  %v202_v29 = vpop.f32.mrb[1].mxu0 }
 0x12c   :  { %v203_v30 = vadd.f32 %v202_v29, %v83_v26  ;;  %v204_v31 = vpop.f32.mrb[2].mxu0 }
 0x12d   :  { %v209_v32 = vmax.f32 %v201_v28, 0.0  ;;  %v205_v33 = vadd.f32 %v204_v31, %v79_v25  ;;  %v206_v34 = vpop.f32.mrb[3].mxu0 }
 0x12e   :  { %v210_v35 = vmax.f32 %v203_v30, 0.0  ;;  %v207_v36 = vadd.f32 %v206_v34, %v83_v26 }
 0x12f   :  { %213 = vst [vmem:[#allocation8] sm:$0xff] %v209_v32  ;;  %v211_v37 = vmax.f32 %v205_v33, 0.0 }
 0x130   :  { %214 = vst [vmem:[#allocation8 + $0x8] sm:$0xff] %v210_v35  ;;  %v212_v38 = vmax.f32 %v207_v36, 0.0 }
 0x131   :  { %215 = vst [vmem:[#allocation8 + $0x10] sm:$0xff] %v211_v37 }
 0x132   :  { %216 = vst [vmem:[#allocation8 + $0x18] sm:$0xff] %v212_v38 }
 0x133   :  { %361 = shalt.err (!%p358_p0)
}
 0x134   :  { %s362_s25 = scalar_lea.hbm %s465_s3, 512 }
 0x135   :  { %p363_p1 = scmp.ne.s32.totalorder %s465_s3, %s362_s25  ;;  %p366_p2 = scmp.lt.u32.totalorder %s362_s25, %s465_s3 }
 0x137   :  { %p368_p3 = pnand %p366_p2, %p363_p1 }
 0x139   :  { %371 = shalt.err (!%p368_p3)
}
 0x13a   :  { %s385_s30 = smov 256   ;;  %s386_s4 = smov 16  }
 0x13b   :  { %228 = dma.vmem_to_hbm [thread:$0]  %s223_s21, 512, %s465_s3, [#allocation4], %s385_s30, %s385_s30, %s386_s4  }
 0x13c   :  { %376 = dma.done.wait [#allocation4], 512  }
 0x13d   :  { %377 = vsyncadd [#allocation4], 4294966784 }
 0x13e   :  { %232 = vsyncpa [#allocation3], 1 }
 0x13f   :  { %233 = vsyncpa [#allocation6], 1 }
 0x140   :  { %234 = vsyncpa [#allocation4], 1 }

// kernel: rel2layout_forward.38
= control target key start
LH: loop header
LB: loop body
LE: loop exit
PB: predicated region body
PF: predicated region fallthrough
CT: control target
= control target key end

     0   :  { %8 = vsyncpa [#allocation3], 0  ;;  %s458_s0 = inlined_call_operand.hbm [shape: f32[16,128], index: 0, kind: input, shape index: {}]   ;;  %s459_s1 = inlined_call_operand.hbm [shape: bf16[128,256], index: 1, kind: input, shape index: {}]   ;;  %s460_s2 = inlined_call_operand.hbm [shape: f32[1,256], index: 2, kind: input, shape index: {}]   ;;  %s461_s3 = inlined_call_operand.hbm [shape: f32[16,256], index: 3, kind: output, shape index: {}]  }
   0x1   :  { %9 = vsyncpa [#allocation6], 0 }
   0x2   :  { %10 = vsyncpa [#allocation4], 0  ;;  %s374_s12 = smov [#allocation5]   ;;  %s375_s14 = smov [#allocation2]  }
   0x3   :  { %s28_s13 = sshll.u32 %s374_s12, 4  ;;  %s16_s15 = sshll.u32 %s375_s14, 4  ;;  %s29_s13 = int_to_ptr.vmem [resolvable:$true] %s28_s13  ;;  %s403_s15 = int_to_ptr.vmem [resolvable:$true] %s16_s15 }
   0x4   :  { %s280_s18 = scalar_lea.hbm %s459_s1, 2048 }
   0x5   :  { %p281_p0 = scmp.ne.s32.totalorder %s459_s1, %s280_s18  ;;  %p284_p1 = scmp.lt.u32.totalorder %s280_s18, %s459_s1 }
   0x7   :  { %p286_p2 = pnand %p284_p1, %p281_p0 }
   0x9   :  { %289 = shalt.err (!%p286_p2)
}
   0xa   :  { %s290_s23 = scalar_lea.vmem %s29_s13, 2048  ;;  %p295_p4 = scmp.lt.s32.totalorder %s29_s13, %s29_s13 }
   0xb   :  { %p291_p3 = scmp.ne.s32.totalorder %s29_s13, %s290_s23  ;;  %p296_p5 = scmp.lt.s32.totalorder %s290_s23, %s290_s23 }
   0xd   :  { %p297_p6 = por %p296_p5, %p295_p4 }
   0xf   :  { %p298_p7 = pnand %p297_p6, %p291_p3 }
  0x11   :  { %301 = shalt.err (!%p298_p7)
}
  0x12   :  { %s376_s24 = smov 128   ;;  %s377_s25 = smov 8  }
  0x13   :  { %34 = dma.hbm_to_vmem [thread:$0]  %s459_s1, 2048, %s29_s13, [#allocation6], %s376_s24, %s376_s24, %s377_s25  }
  0x14   :  { %s302_s30 = scalar_lea.hbm %s458_s0, 256 }
  0x15   :  { %p303_p8 = scmp.ne.s32.totalorder %s458_s0, %s302_s30  ;;  %p306_p9 = scmp.lt.u32.totalorder %s302_s30, %s458_s0 }
  0x17   :  { %p308_p10 = pnand %p306_p9, %p303_p8 }
  0x19   :  { %311 = shalt.err (!%p308_p10)
}
  0x1a   :  { %s312_s8 = scalar_lea.vmem %s403_s15, 256  ;;  %p317_p12 = scmp.lt.s32.totalorder %s403_s15, %s403_s15 }
  0x1b   :  { %p313_p11 = scmp.ne.s32.totalorder %s403_s15, %s312_s8  ;;  %p318_p13 = scmp.lt.s32.totalorder %s312_s8, %s312_s8 }
  0x1d   :  { %p319_p0 = por %p318_p13, %p317_p12 }
  0x1f   :  { %p320_p1 = pnand %p319_p0, %p313_p11 }
  0x21   :  { %323 = shalt.err (!%p320_p1)
}
  0x22   :  { %22 = dma.hbm_to_vmem [thread:$0]  %s458_s0, 256, %s403_s15, [#allocation3], %s376_s24, %s376_s24, %s377_s25  }
  0x23   :  { %s378_s10 = smov [#allocation7]   ;;  %s324_s14 = scalar_lea.hbm %s460_s2, 32 }
  0x24   :  { %s41_s11 = sshll.u32 %s378_s10, 4  ;;  %p325_p2 = scmp.ne.s32.totalorder %s460_s2, %s324_s14  ;;  %s42_s11 = int_to_ptr.vmem [resolvable:$true] %s41_s11 }
  0x25   :  { %p328_p3 = scmp.lt.u32.totalorder %s324_s14, %s460_s2 }
  0x27   :  { %p330_p4 = pnand %p328_p3, %p325_p2 }
  0x29   :  { %333 = shalt.err (!%p330_p4)
}
  0x2a   :  { %s334_s20 = scalar_lea.vmem %s42_s11, 32  ;;  %p339_p6 = scmp.lt.s32.totalorder %s42_s11, %s42_s11 }
  0x2b   :  { %p335_p5 = scmp.ne.s32.totalorder %s42_s11, %s334_s20  ;;  %p340_p7 = scmp.lt.s32.totalorder %s334_s20, %s334_s20 }
  0x2d   :  { %p341_p8 = por %p340_p7, %p339_p6 }
  0x2f   :  { %p342_p9 = pnand %p341_p8, %p335_p5 }
  0x31   :  { %345 = shalt.err (!%p342_p9)
}
  0x32   :  { %44 = dma.hbm_to_vmem [thread:$0]  %s460_s2, 32, %s42_s11, [#allocation6]  }
  0x33   :  { %368 = dma.done.wait [#allocation3], 256  }
  0x34   :  { %369 = vsyncadd [#allocation3], 4294967040 }
  0x35   :  { %370 = dma.done.wait [#allocation6], 2080  }
  0x36   :  { %371 = vsyncadd [#allocation6], 4294965216  ;;  %v379_v0 = vmov 0   ;;  %v256_v1 = vld [vmem:[#allocation5 + $0x4] ss:$8 sps:$4 sm:$0xff]   ;;  %v55_v17 = vld [vmem:[#allocation2] sm:$0xff]  ;;  %v76_v20 = vlaneseq }
  0x37   :  { %198 = vmatprep.mubr.bf16.mxu0 %v379_v0  ;;  %v258_v2 = vld [vmem:[#allocation5] ss:$8 sps:$4 sm:$0xff]   ;;  %166 = vmatprep.subr.bf16.mxu0 %v256_v1  ;;  %v259_v3 = vld [vmem:[#allocation5 + $0x14] ss:$8 sps:$4 sm:$0xff]   ;;  %v261_v4 = vld [vmem:[#allocation5 + $0x10] ss:$8 sps:$4 sm:$0xff]  }
  0x38   :  { %167 = vmatpush1.bf16.msra.mxu0 %v258_v2  ;;  %v262_v5 = vld [vmem:[#allocation5 + $0x24] ss:$8 sps:$4 sm:$0xff]   ;;  %v264_v6 = vld [vmem:[#allocation5 + $0x20] ss:$8 sps:$4 sm:$0xff]   ;;  %v265_v7 = vld [vmem:[#allocation5 + $0x34] ss:$8 sps:$4 sm:$0xff]  }
  0x39   :  { %168 = vmatprep.subr.bf16.mxu0 %v259_v3  ;;  %v267_v8 = vld [vmem:[#allocation5 + $0x30] ss:$8 sps:$4 sm:$0xff]   ;;  %v268_v9 = vld [vmem:[#allocation5 + $0x44] ss:$8 sps:$4 sm:$0xff]   ;;  %v270_v10 = vld [vmem:[#allocation5 + $0x40] ss:$8 sps:$4 sm:$0xff]  }
  0x3a   :  { %v271_v11 = vld [vmem:[#allocation5 + $0x54] ss:$8 sps:$4 sm:$0xff]   ;;  %v273_v12 = vld [vmem:[#allocation5 + $0x50] ss:$8 sps:$4 sm:$0xff]   ;;  %v274_v13 = vld [vmem:[#allocation5 + $0x64] ss:$8 sps:$4 sm:$0xff]  }
  0x3b   :  { %v276_v14 = vld [vmem:[#allocation5 + $0x60] ss:$8 sps:$4 sm:$0xff]   ;;  %v277_v15 = vld [vmem:[#allocation5 + $0x74] ss:$8 sps:$4 sm:$0xff]   ;;  %v279_v16 = vld [vmem:[#allocation5 + $0x70] ss:$8 sps:$4 sm:$0xff]  }
  0x3c   :  { %169 = vmatpush1.bf16.msra.mxu0 %v261_v4  ;;  %v56_v18 = vld [vmem:[#allocation2 + $0x8] sm:$0xff]  ;;  %v77_v21 = vshrl.u32 %v76_v20, 7  ;;  %v74_v23 = vld [vmem:[#allocation7] sm:$0x3]  ;;  %s380_s2 = smov [#allocation8]  }
  0x3d   :  { %170 = vmatprep.subr.bf16.mxu0 %v262_v5  ;;  %v57_v19 = vpack.c.bf16 %v56_v18, %v55_v17  ;;  %s218_s21 = sshll.u32 %s380_s2, 4  ;;  %s219_s21 = int_to_ptr.vmem [resolvable:$true] %s218_s21 }
  0x3e   :  { %v78_v22 = vsub.s32 0, %v77_v21  ;;  %v82_v24 = vsub.s32 1, %v77_v21  ;;  %s346_s22 = scalar_lea.vmem %s219_s21, 512  ;;  %p351_p11 = scmp.lt.s32.totalorder %s219_s21, %s219_s21 }
  0x3f   :  { %p347_p10 = scmp.ne.s32.totalorder %s219_s21, %s346_s22  ;;  %p352_p12 = scmp.lt.s32.totalorder %s346_s22, %s346_s22 }
  0x40   :  { %171 = vmatpush1.bf16.msra.mxu0 %v264_v6  ;;  %v79_v25 = vrot.slane %v74_v23, %v78_v22  ;;  %v83_v26 = vrot.slane %v74_v23, %v82_v24 }
  0x41   :  { %172 = vmatprep.subr.bf16.mxu0 %v265_v7  ;;  %p353_p13 = por %p352_p12, %p351_p11 }
  0x43   :  { %p354_p0 = pnand %p353_p13, %p347_p10 }
  0x44   :  { %173 = vmatpush1.bf16.msra.mxu0 %v267_v8 }
  0x45   :  { %174 = vmatprep.subr.bf16.mxu0 %v268_v9 }
  0x48   :  { %175 = vmatpush1.bf16.msra.mxu0 %v270_v10 }
  0x49   :  { %176 = vmatprep.subr.bf16.mxu0 %v271_v11 }
  0x4c   :  { %177 = vmatpush1.bf16.msra.mxu0 %v273_v12 }
  0x4d   :  { %178 = vmatprep.subr.bf16.mxu0 %v274_v13 }
  0x50   :  { %179 = vmatpush1.bf16.msra.mxu0 %v276_v14 }
  0x51   :  { %180 = vmatprep.subr.bf16.mxu0 %v277_v15 }
  0x54   :  { %181 = vmatpush1.bf16.msra.mxu0 %v279_v16 }
  0x57   :  { %199 = vmatmul.mubr.bf16.vlgmr.msra.gmra.mrb[0].mxu0 %v57_v19 }
 0x12a   :  { %v200_v27 = vpop.f32.mrb[0].mxu0 }
 0x12b   :  { %v201_v28 = vadd.f32 %v200_v27, %v79_v25  ;;  %v202_v29 = vpop.f32.mrb[1].mxu0 }
 0x12c   :  { %v203_v30 = vadd.f32 %v202_v29, %v83_v26  ;;  %v204_v31 = vpop.f32.mrb[2].mxu0 }
 0x12d   :  { %209 = vst [vmem:[#allocation8] sm:$0xff] %v201_v28  ;;  %v205_v32 = vadd.f32 %v204_v31, %v79_v25  ;;  %v206_v33 = vpop.f32.mrb[3].mxu0 }
 0x12e   :  { %210 = vst [vmem:[#allocation8 + $0x8] sm:$0xff] %v203_v30  ;;  %v207_v34 = vadd.f32 %v206_v33, %v83_v26 }
 0x12f   :  { %211 = vst [vmem:[#allocation8 + $0x10] sm:$0xff] %v205_v32 }
 0x130   :  { %212 = vst [vmem:[#allocation8 + $0x18] sm:$0xff] %v207_v34 }
 0x131   :  { %357 = shalt.err (!%p354_p0)
}
 0x132   :  { %s358_s25 = scalar_lea.hbm %s461_s3, 512 }
 0x133   :  { %p359_p1 = scmp.ne.s32.totalorder %s461_s3, %s358_s25  ;;  %p362_p2 = scmp.lt.u32.totalorder %s358_s25, %s461_s3 }
 0x135   :  { %p364_p3 = pnand %p362_p2, %p359_p1 }
 0x137   :  { %367 = shalt.err (!%p364_p3)
}
 0x138   :  { %s381_s30 = smov 256   ;;  %s382_s4 = smov 16  }
 0x139   :  { %224 = dma.vmem_to_hbm [thread:$0]  %s219_s21, 512, %s461_s3, [#allocation4], %s381_s30, %s381_s30, %s382_s4  }
 0x13a   :  { %372 = dma.done.wait [#allocation4], 512  }
 0x13b   :  { %373 = vsyncadd [#allocation4], 4294966784 }
 0x13c   :  { %228 = vsyncpa [#allocation3], 1 }
 0x13d   :  { %229 = vsyncpa [#allocation6], 1 }
 0x13e   :  { %230 = vsyncpa [#allocation4], 1 }

// kernel: rel2layout_forward.27
= control target key start
LH: loop header
LB: loop body
LE: loop exit
PB: predicated region body
PF: predicated region fallthrough
CT: control target
= control target key end

     0   :  { %s2828_s0 = inlined_call_operand.hbm [shape: f32[2,8,384], index: 0, kind: input, shape index: {}, may-alias: {0,1,2}]   ;;  %s2829_s1 = inlined_call_operand.hbm [shape: f32[2,8,384], index: 1, kind: input, shape index: {}, may-alias: {0,1,2}]   ;;  %s2830_s2 = inlined_call_operand.hbm [shape: f32[2,8,384], index: 2, kind: input, shape index: {}, may-alias: {0,1,2}]   ;;  %s2831_s3 = inlined_call_operand.hbm [shape: f32[2,1,8], index: 3, kind: input, shape index: {}]   ;;  %s2832_s4 = inlined_call_operand.hbm [shape: bf16[128,128], index: 4, kind: input, shape index: {}]   ;;  %s2833_s5 = inlined_call_operand.hbm [shape: f32[1,128], index: 5, kind: input, shape index: {}]   ;;  %s2834_s6 = inlined_call_operand.hbm [shape: f32[2,8,128], index: 6, kind: input, shape index: {}]   ;;  %s2835_s7 = inlined_call_operand.hbm [shape: f32[1,128], index: 7, kind: input, shape index: {}]   ;;  %s2836_s8 = inlined_call_operand.hbm [shape: f32[1,128], index: 8, kind: input, shape index: {}]   ;;  %s2837_s9 = inlined_call_operand.hbm [shape: f32[2,8,128], index: 9, kind: output, shape index: {}]  }
   0x1   :  { %2856 = sst [smem:[#allocation33_spill]] %s2828_s0 }
   0x2   :  { %2857 = sst [smem:[#allocation34_spill]] %s2829_s1 }
   0x3   :  { %2858 = sst [smem:[#allocation35_spill]] %s2832_s4 }
   0x4   :  { %2859 = sst [smem:[#allocation36_spill]] %s2835_s7 }
   0x5   :  { %2860 = sst [smem:[#allocation37_spill]] %s2836_s8 }
   0x6   :  { %2861 = sst [smem:[#allocation38_spill]] %s2837_s9 }
   0x7   :  { %14 = vsyncpa [#allocation3], 0 }
   0x8   :  { %16 = vsyncpa [#allocation3 + $0x1], 0 }
   0x9   :  { %17 = vsyncpa [#allocation6], 0 }
   0xa   :  { %19 = vsyncpa [#allocation6 + $0x1], 0 }
   0xb   :  { %20 = vsyncpa [#allocation9], 0 }
   0xc   :  { %22 = vsyncpa [#allocation9 + $0x1], 0 }
   0xd   :  { %23 = vsyncpa [#allocation12], 0 }
   0xe   :  { %24 = vsyncpa [#allocation4], 0 }
   0xf   :  { %26 = vsyncpa [#allocation4 + $0x1], 0  ;;  %s2285_s30 = smov 0   ;;  %s2287_s10 = smov 0  }
  0x10   :  { %s2289_s11 = smov 0   ;;  %s2291_s12 = smov 0  }
  0x11   :  { %s2293_s13 = smov 0   ;;  %s2295_s14 = smov 0  }
  0x12 LB: > { %2862 = sst [smem:[#allocation26_spill]] %s2196_s30  ;;  %s2316_s15 = sadd.s32 4294967295, %s2216_s14   ;;  %s2216_s14 = sphi %s2295_s14, %s32_s14   ;;  %s2212_s13 = sphi %s2293_s13, %s2917_s13   ;;  %s2208_s12 = sphi %s2291_s12, %s2916_s12   ;;  %s2204_s11 = sphi %s2289_s11, %s2915_s11   ;;  %s2200_s10 = sphi %s2287_s10, %s2914_s10   ;;  %s2196_s30 = sphi %s2285_s30, %s2913_s30  }
  0x13   : > { %2863 = sst [smem:[#allocation27_spill]] %s2208_s12  ;;  %s1523_s16 = sadd.s32 4294967294, %s2216_s14  }
  0x14   : > { %2864 = sst [smem:[#allocation28_spill]] %s2216_s14  ;;  %p66_p0 = scmp.ne.s32.totalorder %s2200_s10, %s2196_s30 }
  0x15   : > { %p2839_p1 = scmp.eq.s32.totalorder %s2316_s15, 0  ;;  %p288_p3 = scmp.eq.s32.totalorder %s1523_s16, 1 }
  0x16   : > { %p1524_p5 = scmp.ge.s32.totalorder %s2216_s14, 1  ;;  %p295_p7 = scmp.lt.s32.totalorder %s2216_s14, 3 }
  0x17   : > { %p2325_p4 = por %p2839_p1, %p66_p0  ;;  %p2330_p6 = por %p288_p3, %p66_p0 }
  0x18   : > { %p2335_p8 = pnand %p1524_p5, %p295_p7  ;;  %s2218_s20 = smov [#allocation10]  }
  0x19   : > { %s2865_s17 = scalar_select %p2325_p4, 1, 0 }
  0x1a   : > { %s2867_s18 = scalar_select %p2330_p6, 1, 0 }
  0x1b   : > { %2866 = sst [smem:[#allocation29_spill]] %s2865_s17  ;;  %s307_s21 = sshll.u32 %s2218_s20, 4  ;;  %s2339_s21 = int_to_ptr.vmem [resolvable:$true] %s307_s21 }
  0x1c   : > { %2868 = sst [smem:[#allocation30_spill]] %s2867_s18  ;;  %p1714_p9 = pneg %p2335_p8 }
  0x1d   : > { %s2869_s19 = scalar_select %p2335_p8, 1, 0 }
  0x1e   : > { %p2346_p11 = pnand %p1714_p9, %p2839_p1  ;;  %s2219_s23 = smov [#allocation14]  }
  0x1f   : > { %s332_s24 = sshll.u32 %s2219_s23, 4  ;;  %s2220_s25 = smov [#allocation15]   ;;  %s2350_s24 = int_to_ptr.vmem [resolvable:$true] %s332_s24 }
  0x20   : > { %s2870_s22 = scalar_select %p2346_p11, 1, 0 }
  0x21   : > { %s2352_s26 = sshll.u32 %s2220_s25, 4  ;;  %s2871_s4 = sld [smem:[#allocation35_spill]]  ;;  %s344_s26 = int_to_ptr.vmem [resolvable:$true] %s2352_s26 }
  0x22   : > { %p2362_p13 = pneg %p2346_p11 }
  0x24   : > { %s2872_s18 = scalar_select %p2362_p13, 1, 0 }
  0x27   : > { %s1842_s29 = scalar_lea.hbm %s2871_s4, 1024 }
  0x28   : > { %p1843_p12 = scmp.ne.s32.totalorder %s2871_s4, %s1842_s29  ;;  %p1849_p5 = scmp.lt.u32.totalorder %s1842_s29, %s2871_s4 }
  0x2a   : > { %p1845_p0 = pnand %p2362_p13, %p1843_p12 }
  0x2c   : > { %p1846_p3 = pneg %p1845_p0 }
  0x2e   : > { %p1851_p7 = pnand %p1849_p5, %p1846_p3 }
  0x30   : > { %1854 = shalt.err (!%p1851_p7)
}
  0x31   : > { %s1855_s27 = scalar_lea.vmem %s2339_s21, 1024  ;;  %p1863_p2 = scmp.lt.s32.totalorder %s2339_s21, %s2339_s21 }
  0x32   : > { %p1856_p9 = scmp.ne.s32.totalorder %s2339_s21, %s1855_s27  ;;  %p1864_p6 = scmp.lt.s32.totalorder %s1855_s27, %s1855_s27 }
  0x34   : > { %p1858_p10 = pnand %p1856_p9, %p2362_p13  ;;  %p1865_p12 = por %p1864_p6, %p1863_p2 }
  0x36   : > { %p1859_p1 = pneg %p1858_p10 }
  0x38   : > { %p1866_p0 = pnand %p1865_p12, %p1859_p1 }
  0x3a   : > { %1869 = shalt.err (!%p1866_p0)
}
  0x3b   : > { %s2221_s28 = smov 64   ;;  %s2222_s29 = smov 4  }
  0x3c   : > { %1717 = dma.hbm_to_vmem [thread:$0]  (!%p2346_p11), %s2871_s4, 1024, %s2339_s21, [#allocation9], %s2221_s28, %s2221_s28, %s2222_s29  }
  0x3d   : > { %s2873_s7 = sld [smem:[#allocation36_spill]] }
  0x43   : > { %s1870_s30 = scalar_lea.hbm %s2873_s7, 16 }
  0x44   : > { %p1871_p2 = scmp.ne.s32.totalorder %s2873_s7, %s1870_s30  ;;  %p1877_p10 = scmp.lt.u32.totalorder %s1870_s30, %s2873_s7 }
  0x46   : > { %p1873_p1 = pnand %p1871_p2, %p2362_p13 }
  0x48   : > { %p1874_p6 = pneg %p1873_p1 }
  0x4a   : > { %p1879_p3 = pnand %p1877_p10, %p1874_p6 }
  0x4c   : > { %1882 = shalt.err (!%p1879_p3)
}
  0x4d   : > { %s1883_s21 = scalar_lea.vmem %s2350_s24, 16  ;;  %s1890_s9 = scalar_lea.vmem %s2350_s24, 32 }
  0x4e   : > { %p1884_p5 = scmp.ne.s32.totalorder %s2350_s24, %s1883_s21  ;;  %p1891_p12 = scmp.lt.s32.totalorder %s2350_s24, %s2350_s24 }
  0x4f   : > { %p1892_p0 = scmp.lt.s32.totalorder %s1890_s9, %s1883_s21 }
  0x50   : > { %p1886_p7 = pnand %p1884_p5, %p2362_p13 }
  0x51   : > { %p1893_p2 = por %p1892_p0, %p1891_p12 }
  0x52   : > { %p1887_p9 = pneg %p1886_p7 }
  0x54   : > { %p1894_p1 = pnand %p1893_p2, %p1887_p9 }
  0x56   : > { %1897 = shalt.err (!%p1894_p1)
}
  0x57   : > { %1723 = dma.hbm_to_vmem [thread:$0]  (!%p2346_p11), %s2873_s7, 16, %s2350_s24, [#allocation6]  }
  0x58   : > { %s2874_s8 = sld [smem:[#allocation37_spill]] }
  0x5e   : > { %s1898_s29 = scalar_lea.hbm %s2874_s8, 16 }
  0x5f   : > { %p1899_p6 = scmp.ne.s32.totalorder %s2874_s8, %s1898_s29  ;;  %p1905_p5 = scmp.lt.u32.totalorder %s1898_s29, %s2874_s8 }
  0x61   : > { %p1901_p10 = pnand %p1899_p6, %p2362_p13 }
  0x63   : > { %p1902_p3 = pneg %p1901_p10 }
  0x65   : > { %p1907_p7 = pnand %p1905_p5, %p1902_p3 }
  0x67   : > { %1910 = shalt.err (!%p1907_p7)
}
  0x68   : > { %s1911_s27 = scalar_lea.vmem %s344_s26, 16  ;;  %s1918_s24 = scalar_lea.vmem %s344_s26, 32 }
  0x69   : > { %p1912_p9 = scmp.ne.s32.totalorder %s344_s26, %s1911_s27  ;;  %p1919_p2 = scmp.lt.s32.totalorder %s344_s26, %s344_s26 }
  0x6a   : > { %p1920_p1 = scmp.lt.s32.totalorder %s1918_s24, %s1911_s27 }
  0x6b   : > { %p1914_p12 = pnand %p1912_p9, %p2362_p13 }
  0x6c   : > { %p1921_p4 = por %p1920_p1, %p1919_p2 }
  0x6d   : > { %p1915_p0 = pneg %p1914_p12 }
  0x6f   : > { %p1922_p8 = pnand %p1921_p4, %p1915_p0 }
  0x71   : > { %1925 = shalt.err (!%p1922_p8)
}
  0x72   : > { %1726 = dma.hbm_to_vmem [thread:$0]  (!%p2346_p11), %s2874_s8, 16, %s344_s26, [#allocation9]  }
  0x73   : > { %s53_s30 = sadd.s32 1, %s2204_s11  ;;  %s44_s12 = sadd.s32 1, %s2212_s13 }
  0x74   : > { %p60_p4 = scmp.ne.s32.totalorder %s2204_s11, %s2200_s10  ;;  %p46_p8 = scmp.ge.s32.totalorder %s44_s12, 2 }
  0x75   : > { %p61_p6 = scmp.eq.s32.totalorder %s2216_s14, 0  ;;  %p2875_p10 = scmp.eq.s32.totalorder %s2316_s15, 1 }
  0x76   : > { %p1751_p5 = scmp.lt.s32.totalorder %s2216_s14, 2  ;;  %s2919_s12 = smov (%p46_p8, %s44_s12), 0 }
  0x77   : > { %p2433_p3 = por %p2875_p10, %p60_p4  ;;  %2877 = sst [smem:[#allocation31_spill]] %s2919_s12 }
  0x78   : > { %p62_p7 = por %p61_p6, %p60_p4  ;;  %s2441_s28 = sand.u32 1, %s2216_s14  }
  0x79   : > { %s2876_s17 = scalar_select %p2433_p3, 1, 0 }
  0x7a   : > { %s48_s26 = ssub.s32 %s2212_s13, %s2919_s12  ;;  %s2846_s29 = sand.u32 1, %s2204_s11  }
  0x7b   : > { %p51_p9 = scmp.eq.s32.totalorder %s48_s26, 0  ;;  %s2448_s16 = sshll.u32 %s2846_s29, 3 }
  0x7c   : > { %s2451_s20 = smul.u32 384, %s2212_s13  ;;  %s2879_s0 = sld [smem:[#allocation33_spill]] }
  0x7d   : > { %s2454_s23 = scalar_select %p51_p9, %s2204_s11, %s53_s30  }
  0x7e   : > { %s358_s21 = scalar_lea.vmem [#allocation2], %s2448_s16  ;;  %p2465_p12 = pnand %p1751_p5, %p62_p7 }
  0x7f   : > { %2878 = sst [smem:[#allocation32_spill]] %s2454_s23  ;;  %s368_s9 = sshll.u32 %s358_s21, 4  ;;  %s2469_s9 = int_to_ptr.vmem [resolvable:$true] %s368_s9 }
  0x80   : > { %s2880_s26 = scalar_select %p2465_p12, 1, 0 }
  0x81   : > { %p2476_p2 = pneg %p2465_p12 }
  0x82   : > { %s2460_s24 = scalar_lea.hbm %s2879_s0, %s2451_s20  ;;  %s1931_s4 = scalar_lea.hbm %s2879_s0, 768 }
  0x83   : > { %s1926_s29 = scalar_lea.hbm %s2460_s24, 128  ;;  %p1932_p8 = scmp.lt.u32.totalorder %s2460_s24, %s2879_s0 }
  0x84   : > { %p1927_p0 = scmp.ne.s32.totalorder %s2460_s24, %s1926_s29  ;;  %p1933_p6 = scmp.lt.u32.totalorder %s1931_s4, %s1926_s29 }
  0x85   : > { %p1935_p5 = scmp.lt.u32.totalorder %s1926_s29, %s2460_s24 }
  0x86   : > { %p1929_p1 = pnand %p2476_p2, %p1927_p0  ;;  %p1934_p10 = por %p1933_p6, %p1932_p8 }
  0x88   : > { %p1930_p4 = pneg %p1929_p1  ;;  %p1936_p7 = por %p1935_p5, %p1934_p10 }
  0x8a   : > { %p1937_p9 = pnand %p1936_p7, %p1930_p4 }
  0x8c   : > { %1940 = shalt.err (!%p1937_p9)
}
  0x8d   : > { %s1941_s30 = scalar_lea.vmem %s2469_s9, 128  ;;  %s2223_s27 = smov [#allocation2]  }
  0x8e   : > { %p1942_p0 = scmp.ne.s32.totalorder %s2469_s9, %s1941_s30  ;;  %s1946_s21 = sshll.u32 %s2223_s27, 4  ;;  %s1947_s21 = int_to_ptr.vmem [resolvable:$false] %s1946_s21 }
  0x8f   : > { %s1948_s7 = scalar_lea.vmem %s1947_s21, 256  ;;  %p1949_p11 = scmp.lt.s32.totalorder %s2469_s9, %s1947_s21 }
  0x90   : > { %p1944_p1 = pnand %p1942_p0, %p2476_p2  ;;  %p1950_p13 = scmp.lt.s32.totalorder %s1948_s7, %s1941_s30 }
  0x92   : > { %p1945_p3 = pneg %p1944_p1  ;;  %p1951_p8 = por %p1950_p13, %p1949_p11 }
  0x94   : > { %p1952_p6 = pnand %p1951_p8, %p1945_p3 }
  0x96   : > { %1955 = shalt.err (!%p1952_p6)
}
  0x97   : > { %s2882_s4 = scalar_lea.sflag [#allocation3], %s2441_s28  ;;  %s2883_s1 = sld [smem:[#allocation34_spill]] }
  0x98   : > { %1730 = dma.hbm_to_vmem [thread:$0]  (!%p2465_p12), %s2460_s24, 128, %s2469_s9, %s2882_s4  }
  0x99   : > { %s379_s21 = scalar_lea.vmem [#allocation5], %s2448_s16  ;;  %s376_s0 = scalar_lea.sflag [#allocation6], %s2441_s28 }
  0x9a   : > { %s388_s30 = sshll.u32 %s379_s21, 4  ;;  %s389_s30 = int_to_ptr.vmem [resolvable:$true] %s388_s30 }
  0x9d   : > { %s1359_s27 = scalar_lea.hbm %s2883_s1, %s2451_s20  ;;  %s1961_s9 = scalar_lea.hbm %s2883_s1, 768 }
  0x9e   : > { %s2506_s7 = scalar_lea.hbm %s1359_s27, 128  ;;  %s1986_s12 = scalar_lea.hbm %s1359_s27, 256 }
  0x9f   : > { %p1957_p11 = scmp.ne.s32.totalorder %s2506_s7, %s1986_s12  ;;  %p1962_p4 = scmp.lt.u32.totalorder %s2506_s7, %s2883_s1 }
  0xa0   : > { %p1963_p10 = scmp.lt.u32.totalorder %s1961_s9, %s1986_s12  ;;  %p1965_p7 = scmp.lt.u32.totalorder %s1986_s12, %s2506_s7 }
  0xa1   : > { %p1959_p13 = pnand %p1957_p11, %p2476_p2 }
  0xa2   : > { %p1964_p5 = por %p1963_p10, %p1962_p4 }
  0xa3   : > { %p1960_p3 = pneg %p1959_p13 }
  0xa4   : > { %p1966_p9 = por %p1965_p7, %p1964_p5 }
  0xa6   : > { %p1967_p0 = pnand %p1966_p9, %p1960_p3 }
  0xa8   : > { %1970 = shalt.err (!%p1967_p0)
}
  0xa9   : > { %s1971_s29 = scalar_lea.vmem %s389_s30, 128  ;;  %s2224_s27 = smov [#allocation5]  }
  0xaa   : > { %p1972_p1 = scmp.ne.s32.totalorder %s389_s30, %s1971_s29  ;;  %s1976_s21 = sshll.u32 %s2224_s27, 4  ;;  %s1977_s21 = int_to_ptr.vmem [resolvable:$false] %s1976_s21 }
  0xab   : > { %s1978_s23 = scalar_lea.vmem %s1977_s21, 256  ;;  %p1979_p11 = scmp.lt.s32.totalorder %s389_s30, %s1977_s21 }
  0xac   : > { %p1974_p8 = pnand %p1972_p1, %p2476_p2  ;;  %p1980_p13 = scmp.lt.s32.totalorder %s1978_s23, %s1971_s29 }
  0xae   : > { %p1975_p6 = pneg %p1974_p8  ;;  %p1981_p12 = por %p1980_p13, %p1979_p11 }
  0xb0   : > { %p1982_p4 = pnand %p1981_p12, %p1975_p6 }
  0xb2   : > { %1985 = shalt.err (!%p1982_p4)
}
  0xb3   : > { %p2884_p10 = scmp.ne.s32.totalorder %s2880_s26, 0  ;;  %s2225_s12 = smov [#allocation11]  }
  0xb4   : > { %s321_s24 = sshll.u32 %s2225_s12, 4  ;;  %s1366_s8 = scalar_lea.hbm %s2830_s2, %s2451_s20  ;;  %s322_s24 = int_to_ptr.vmem [resolvable:$true] %s321_s24 }
  0xb5   : > { %1733 = dma.hbm_to_vmem [thread:$0]  (!%p2884_p10), %s2506_s7, 128, %s389_s30, %s376_s0  }
  0xb6   : > { %s2531_s27 = scalar_lea.hbm %s1366_s8, 256  ;;  %s1987_s23 = scalar_lea.hbm %s2833_s5, 16 }
  0xb7   : > { %p1988_p12 = scmp.ne.s32.totalorder %s2833_s5, %s1987_s23  ;;  %p2885_p3 = scmp.ne.s32.totalorder %s2872_s18, 0 }
  0xb8   : > { %p1994_p9 = scmp.lt.u32.totalorder %s1987_s23, %s2833_s5 }
  0xb9   : > { %p1990_p5 = pnand %p1988_p12, %p2885_p3 }
  0xbb   : > { %p1991_p7 = pneg %p1990_p5 }
  0xbd   : > { %p1996_p0 = pnand %p1994_p9, %p1991_p7 }
  0xbf   : > { %1999 = shalt.err (!%p1996_p0)
}
  0xc0   : > { %s2000_s20 = scalar_lea.vmem %s322_s24, 16  ;;  %s2007_s12 = scalar_lea.vmem %s322_s24, 32 }
  0xc1   : > { %p2001_p1 = scmp.ne.s32.totalorder %s322_s24, %s2000_s20  ;;  %p2008_p11 = scmp.lt.s32.totalorder %s322_s24, %s322_s24 }
  0xc2   : > { %p2009_p13 = scmp.lt.s32.totalorder %s2007_s12, %s2000_s20 }
  0xc3   : > { %p2003_p8 = pnand %p2001_p1, %p2885_p3 }
  0xc4   : > { %p2010_p4 = por %p2009_p13, %p2008_p11 }
  0xc5   : > { %p2004_p6 = pneg %p2003_p8 }
  0xc7   : > { %p2011_p10 = pnand %p2010_p4, %p2004_p6 }
  0xc9   : > { %2014 = shalt.err (!%p2011_p10)
}
  0xca   : > { %p2886_p12 = scmp.ne.s32.totalorder %s2870_s22, 0  ;;  %s399_s18 = scalar_lea.vmem [#allocation7], %s2448_s16 }
  0xcb   : > { %s408_s9 = sshll.u32 %s399_s18, 4  ;;  %s2045_s4 = scalar_lea.hbm %s1366_s8, 384  ;;  %s409_s9 = int_to_ptr.vmem [resolvable:$true] %s408_s9 }
  0xcc   : > { %1720 = dma.hbm_to_vmem [thread:$0]  (!%p2886_p12), %s2833_s5, 16, %s322_s24, [#allocation12]  }
  0xcd   : > { %p2016_p3 = scmp.ne.s32.totalorder %s2531_s27, %s2045_s4  ;;  %s2020_s22 = scalar_lea.hbm %s2830_s2, 768 }
  0xce   : > { %p2021_p10 = scmp.lt.u32.totalorder %s2531_s27, %s2830_s2  ;;  %p2022_p9 = scmp.lt.u32.totalorder %s2020_s22, %s2045_s4 }
  0xcf   : > { %p2018_p5 = pnand %p2016_p3, %p2476_p2  ;;  %p2024_p1 = scmp.lt.u32.totalorder %s2045_s4, %s2531_s27 }
  0xd0   : > { %p2023_p0 = por %p2022_p9, %p2021_p10 }
  0xd1   : > { %p2019_p7 = pneg %p2018_p5 }
  0xd2   : > { %p2025_p8 = por %p2024_p1, %p2023_p0 }
  0xd4   : > { %p2026_p6 = pnand %p2025_p8, %p2019_p7 }
  0xd6   : > { %2029 = shalt.err (!%p2026_p6)
}
  0xd7   : > { %s2030_s24 = scalar_lea.vmem %s409_s9, 128  ;;  %s2226_s8 = smov [#allocation7]  }
  0xd8   : > { %p2031_p11 = scmp.ne.s32.totalorder %s409_s9, %s2030_s24  ;;  %s2035_s7 = sshll.u32 %s2226_s8, 4  ;;  %s2036_s7 = int_to_ptr.vmem [resolvable:$false] %s2035_s7 }
  0xd9   : > { %s2037_s20 = scalar_lea.vmem %s2036_s7, 256  ;;  %p2038_p12 = scmp.lt.s32.totalorder %s409_s9, %s2036_s7 }
  0xda   : > { %p2033_p13 = pnand %p2031_p11, %p2476_p2  ;;  %p2039_p3 = scmp.lt.s32.totalorder %s2037_s20, %s2030_s24 }
  0xdc   : > { %p2034_p4 = pneg %p2033_p13  ;;  %p2040_p5 = por %p2039_p3, %p2038_p12 }
  0xde   : > { %p2041_p9 = pnand %p2040_p5, %p2034_p4 }
  0xe0   : > { %2044 = shalt.err (!%p2041_p9)
}
  0xe1   : > { %p2887_p10 = scmp.ne.s32.totalorder %s2880_s26, 0  ;;  %s1536_s12 = sshll.u32 %s2212_s13, 4 }
  0xe2   : > { %s2888_s1 = sand.u32 1, %s2204_s11   ;;  %s2576_s21 = scalar_lea.hbm %s2831_s3, %s1536_s12 }
  0xe3   : > { %1736 = dma.hbm_to_vmem [thread:$0]  (!%p2887_p10), %s2531_s27, 128, %s409_s9, %s376_s0  }
  0xe4   : > { %s418_s14 = scalar_lea.vmem [#allocation8], %s2888_s1  ;;  %s416_s22 = scalar_lea.sflag [#allocation9], %s2441_s28 }
  0xe5   : > { %s425_s18 = sshll.u32 %s418_s14, 4  ;;  %s2046_s23 = scalar_lea.hbm %s2576_s21, 16  ;;  %s426_s18 = int_to_ptr.vmem [resolvable:$true] %s425_s18 }
  0xe6   : > { %p2047_p7 = scmp.ne.s32.totalorder %s2576_s21, %s2046_s23  ;;  %s2051_s9 = scalar_lea.hbm %s2831_s3, 32 }
  0xe7   : > { %p2052_p8 = scmp.lt.u32.totalorder %s2576_s21, %s2831_s3  ;;  %p2053_p6 = scmp.lt.u32.totalorder %s2051_s9, %s2046_s23 }
  0xe8   : > { %p2049_p0 = pnand %p2047_p7, %p2476_p2  ;;  %p2055_p13 = scmp.lt.u32.totalorder %s2046_s23, %s2576_s21 }
  0xe9   : > { %p2054_p11 = por %p2053_p6, %p2052_p8 }
  0xea   : > { %p2050_p1 = pneg %p2049_p0 }
  0xeb   : > { %p2056_p4 = por %p2055_p13, %p2054_p11 }
  0xed   : > { %p2057_p12 = pnand %p2056_p4, %p2050_p1 }
  0xef   : > { %2060 = shalt.err (!%p2057_p12)
}
  0xf0   : > { %s2061_s8 = scalar_lea.vmem %s426_s18, 16  ;;  %s2227_s7 = smov [#allocation8]  }
  0xf1   : > { %p2062_p3 = scmp.ne.s32.totalorder %s426_s18, %s2061_s8  ;;  %s2066_s20 = sshll.u32 %s2227_s7, 4  ;;  %s2067_s20 = int_to_ptr.vmem [resolvable:$false] %s2066_s20 }
  0xf2   : > { %s2068_s12 = scalar_lea.vmem %s2067_s20, 32  ;;  %p2069_p7 = scmp.lt.s32.totalorder %s426_s18, %s2067_s20 }
  0xf3   : > { %p2064_p5 = pnand %p2062_p3, %p2476_p2  ;;  %p2070_p0 = scmp.lt.s32.totalorder %s2068_s12, %s2061_s8 }
  0xf5   : > { %p2065_p9 = pneg %p2064_p5  ;;  %p2071_p10 = por %p2070_p0, %p2069_p7 }
  0xf7   : > { %p2072_p6 = pnand %p2071_p10, %p2065_p9 }
  0xf9   : > { %2075 = shalt.err (!%p2072_p6)
}
  0xfa   : > { %p2889_p8 = scmp.ne.s32.totalorder %s2880_s26, 0  ;;  %s1538_s1 = sshll.u32 %s2212_s13, 7 }
  0xfb   : > { %s2600_s29 = scalar_lea.hbm %s2834_s6, %s1538_s1  ;;  %s436_s23 = scalar_lea.vmem [#allocation13], %s2448_s16 }
  0xfc   : > { %1739 = dma.hbm_to_vmem [thread:$0]  (!%p2889_p8), %s2576_s21, 16, %s426_s18, %s416_s22  }
  0xfd   : > { %s444_s0 = sshll.u32 %s436_s23, 4  ;;  %s2076_s27 = scalar_lea.hbm %s2600_s29, 128  ;;  %s445_s0 = int_to_ptr.vmem [resolvable:$true] %s444_s0 }
  0xfe   : > { %p2077_p10 = scmp.ne.s32.totalorder %s2600_s29, %s2076_s27  ;;  %s2081_s21 = scalar_lea.hbm %s2834_s6, 256 }
  0xff   : > { %p2082_p13 = scmp.lt.u32.totalorder %s2600_s29, %s2834_s6  ;;  %p2083_p4 = scmp.lt.u32.totalorder %s2081_s21, %s2076_s27 }
 0x100   : > { %p2079_p1 = pnand %p2077_p10, %p2476_p2  ;;  %p2085_p3 = scmp.lt.u32.totalorder %s2076_s27, %s2600_s29 }
 0x101   : > { %p2084_p12 = por %p2083_p4, %p2082_p13 }
 0x102   : > { %p2080_p11 = pneg %p2079_p1 }
 0x103   : > { %p2086_p5 = por %p2085_p3, %p2084_p12 }
 0x105   : > { %p2087_p9 = pnand %p2086_p5, %p2080_p11 }
 0x107   : > { %2090 = shalt.err (!%p2087_p9)
}
 0x108   : > { %s2091_s16 = scalar_lea.vmem %s445_s0, 128  ;;  %s2228_s24 = smov [#allocation13]  }
 0x109   : > { %p2092_p7 = scmp.ne.s32.totalorder %s445_s0, %s2091_s16  ;;  %s2096_s8 = sshll.u32 %s2228_s24, 4  ;;  %s2097_s8 = int_to_ptr.vmem [resolvable:$false] %s2096_s8 }
 0x10a   : > { %s2098_s7 = scalar_lea.vmem %s2097_s8, 256  ;;  %p2099_p10 = scmp.lt.s32.totalorder %s445_s0, %s2097_s8 }
 0x10b   : > { %p2094_p0 = pnand %p2092_p7, %p2476_p2  ;;  %p2100_p1 = scmp.lt.s32.totalorder %s2098_s7, %s2091_s16 }
 0x10d   : > { %p2095_p6 = pneg %p2094_p0  ;;  %p2101_p8 = por %p2100_p1, %p2099_p10 }
 0x10f   : > { %p2102_p4 = pnand %p2101_p8, %p2095_p6 }
 0x111   : > { %2105 = shalt.err (!%p2102_p4)
}
 0x112   : > { %p2890_p13 = scmp.ne.s32.totalorder %s2880_s26, 0  ;;  %s2891_s20 = scalar_lea.sflag [#allocation3], %s2441_s28 }
 0x113   : > { %p2892_p11 = scmp.ne.s32.totalorder %s2869_s19, 0 }
 0x114   : > { %1742 = dma.hbm_to_vmem [thread:$0]  (!%p2890_p13), %s2600_s29, 128, %s445_s0, %s2891_s20  }
 0x115   : > { %453 = sbr.rel (%p2892_p11) target bundleno = 2812 (0xafc), region = 56  ;;  %s2893_s25 = sld [smem:[#allocation29_spill]] (!%p2892_p11) }
 0x116   : > { %s455_s12 = sand.u32 (!%p2892_p11), 1, %s2316_s15   ;;  %s2626_s1 = sand.u32 (!%p2892_p11), 1, %s2200_s10  }
 0x117   : > { %s2629_s14 = sshll.u32 (!%p2892_p11), %s2626_s1, 3  ;;  %s456_s4 = scalar_lea.sflag (!%p2892_p11), [#allocation3], %s455_s12 }
 0x118   : > { %s459_s23 = scalar_lea.vmem (!%p2892_p11), [#allocation2], %s2629_s14 }
 0x11b   : > { %p2894_p2 = scmp.ne.s32.totalorder (!%p2892_p11), %s2893_s25, 0 }
 0x11d   : > { %2159 = dma.done.wait (%p2894_p2), %s456_s4, 128  }
 0x11e   : > { %2161 = vsyncadd (%p2894_p2), %s456_s4, 4294967168  ;;  %s465_s19 = scalar_lea.sflag [#allocation6], %s455_s12  ;;  %s468_s28 = scalar_lea.vmem [#allocation5], %s2629_s14 }
 0x11f   : > { %2163 = dma.done.wait (%p2894_p2), %s465_s19, 256  }
 0x120   : > { %2165 = vsyncadd (%p2894_p2), %s465_s19, 4294967040  ;;  %s477_s26 = scalar_lea.vmem [#allocation7], %s2629_s14  ;;  %s483_s29 = scalar_lea.sflag [#allocation9], %s455_s12 }
 0x121   : > { %s485_s0 = scalar_lea.vmem [#allocation8], %s2626_s1 }
 0x122   : > { %2167 = dma.done.wait (%p2894_p2), %s483_s29, 16  }
 0x123   : > { %2169 = vsyncadd (%p2894_p2), %s483_s29, 4294967280  ;;  %p2895_p8 = scmp.eq.s32.totalorder %s2316_s15, 0 }
 0x125   : > { %2171 = dma.done.wait (%p2895_p8), [#allocation9], 1024   ;;  %p2896_p12 = pmov %p2895_p8 }
 0x126   : > { %p2897_p3 = pmov %p2895_p8 }
 0x127   : > { %2173 = vsyncadd (%p2896_p12), [#allocation9], 4294966272 }
 0x128   : > { %2175 = dma.done.wait (%p2897_p3), [#allocation12], 16   ;;  %p2898_p5 = pmov %p2897_p3 }
 0x129   : > { %s502_s27 = scalar_lea.vmem [#allocation13], %s2629_s14 }
 0x12a   : > { %2177 = vsyncadd (%p2898_p5), [#allocation12], 4294967280 }
 0x12b   : > { %2179 = dma.done.wait (%p2894_p2), %s456_s4, 128  }
 0x12c   : > { %2181 = vsyncadd (%p2894_p2), %s456_s4, 4294967168  ;;  %p2899_p9 = pmov %p2897_p3 }
 0x12d   : > { %p2900_p7 = pmov %p2897_p3 }
 0x12e   : > { %2183 = dma.done.wait (%p2899_p9), [#allocation6], 16  }
 0x12f   : > { %2185 = vsyncadd (%p2900_p7), [#allocation6], 4294967280  ;;  %p2901_p0 = pmov %p2897_p3 }
 0x131   : > { %2187 = dma.done.wait (%p2901_p0), [#allocation9], 16   ;;  %p2902_p6 = pmov %p2901_p0 }
 0x132   : > { %v2229_v0 = vmov 0.0   ;;  %vm2230_vm0 = vmmov 0   ;;  %v568_v1 = vld [vmem:[%s468_s28] sm:$0xff]  ;;  %vm595_vm1 = vcmask 261120   ;;  %v565_v2 = vld [vmem:[%s459_s23] sm:$0xff]  ;;  %s2231_s15 = smov 96  }
 0x133   : > { %2189 = vsyncadd (%p2902_p6), [#allocation9], 4294967280  ;;  %1605 = vmatprep.subr.bf16.mxu0 %v2229_v0  ;;  %1607 = vmatprep.mubr.msk.bf16.mxu0 %vm2230_vm0, %v2229_v0  ;;  %v2676_v3 = vpack.c.bf16 %v568_v1, %v568_v1  ;;  %v566_v4 = vmul.f32 0.17677669, %v565_v2  ;;  %v2690_v7 = vld [vmem:[%s485_s0] ss:$0 sm:$0xff] }
 0x134   : > { %1611 = vmatprep.subr.bf16.mxu1 %v2229_v0  ;;  %1613 = vmatprep.mubr.msk.bf16.mxu1 %vm2230_vm0, %v2229_v0  ;;  %vm642_vm2 = vcmask 64512   ;;  %v570_v14 = vld [vmem:[%s477_s26] sm:$0xff]  ;;  %vm656_vm3 = vcmask 1043456   ;;  %s2232_s9 = smov 64   ;;  %v1816_v44 = vld [vmem:[#allocation10] sm:$0xff]   ;;  %s2233_s18 = smov 32  }
 0x135   : > { %v600_v5 = vsel %vm595_vm1, %v2676_v3, 0  ;;  %v2681_v6 = vpack.c.bf16 %v566_v4, %v566_v4  ;;  %v2696_v15 = vpack.c.bf16 %v570_v14, %v570_v14  ;;  %v1817_v45 = vld [vmem:[#allocation10 + $0x8] sm:$0xff]   ;;  %v1818_v46 = vld [vmem:[#allocation10 + $0x10] sm:$0xff]   ;;  %v1819_v47 = vld [vmem:[#allocation10 + $0x18] sm:$0xff]   ;;  %s2903_s21 = sld [smem:[#allocation27_spill]]  ;;  %s563_s30 = scalar_lea.vmem [#allocation16], %s2629_s14 }
 0x136   : > { %1606 = vmatpush3.bf16.xpose.msra.mxu0 %v600_v5  ;;  %s1315_s16 = sshll.u32 %s563_s30, 4  ;;  %s2904_s7 = sld [smem:[#allocation38_spill]]  ;;  %s2781_s16 = int_to_ptr.vmem [resolvable:$true] %s1315_s16 }
 0x137   : > { %1623 = vmatprep.subr.bf16.mxu0 %v2229_v0  ;;  %704 = vrot.lane.b32.xlu1 %v2681_v6, %s2231_s15  ;;  %v658_v16 = vsel %vm656_vm3, %v2696_v15, 0  ;;  %s1301_s25 = scalar_lea.sflag [#allocation4], %s2626_s1  ;;  %s2106_s12 = scalar_lea.vmem %s2781_s16, 128 }
 0x138   : > { %1612 = vmatpush3.bf16.msra.mxu1 %v658_v16  ;;  %p2107_p10 = scmp.ne.s32.totalorder %s2781_s16, %s2106_s12  ;;  %p2905_p1 = scmp.ne.s32.totalorder %s2876_s17, 0 }
 0x139   : > { %1617 = vmatprep.subr.bf16.mxu1 %v2229_v0  ;;  %s2234_s14 = smov [#allocation16]  }
 0x13a   : > { %p2108_p4 = pnand %p2107_p10, %p2905_p1  ;;  %s2110_s4 = sshll.u32 %s2234_s14, 4  ;;  %s2111_s4 = int_to_ptr.vmem [resolvable:$false] %s2110_s4 }
 0x13b   : > { %s1574_s22 = sshll.u32 %s2903_s21, 7  ;;  %s2112_s23 = scalar_lea.vmem %s2111_s4, 256 }
 0x13c   : > { %s2779_s20 = scalar_lea.hbm %s2904_s7, %s1574_s22  ;;  %p2109_p13 = pneg %p2108_p4 }
 0x13d   : > { %1608 = vmatmul.mubr.msk.bf16.vlgmr.msra.gmra.mrb[0].mxu0 %vm595_vm1, %v2681_v6  ;;  %p2113_p11 = scmp.lt.s32.totalorder %s2781_s16, %s2111_s4  ;;  %p2114_p2 = scmp.lt.s32.totalorder %s2112_s23, %s2106_s12 }
 0x13e   : > { %1625 = vmatprep.mubr.msk.bf16.mxu0 %vm2230_vm0, %v2229_v0 }
 0x13f   : > { %p2115_p8 = por %p2114_p2, %p2113_p11 }
 0x141   : > { %p2116_p12 = pnand %p2115_p8, %p2109_p13 }
 0x1a9   : > { %v705_v24 = vpop.permute.xlu1 %704 }
 0x210   : > { %v636_v8 = vpop.f32.mrb[0].mxu0 }
 0x211   : > { %v637_v9 = vadd.f32 %v2690_v7, %v636_v8  ;;  %v1609_v10 = vpop.f32.mrb[1].mxu0 }
 0x212   : > { %v639_v11 = vpop.f32.mrb[2].mxu0 }
 0x213   : > { %v1610_v12 = vpop.f32.mrb[3].mxu0  ;;  %v643_v13 = vsel %vm642_vm2, %v637_v9, -inf }
 0x214   : > { %644 = vmax.xlane.f32.xlu0 %v643_v13 }
 0x22a   : > { %707 = vrot.lane.b32.xlu0 %v2676_v3, %s2231_s15 }
 0x22e   : > { %766 = vrot.lane.b32.xlu0 %v2696_v15, %s2231_s15 }
 0x2a1   : > { %v645_v17 = vpop.xlane.xlu0 %644 }
 0x2a2   : > { %v646_v18 = vsub.f32 %v637_v9, %v645_v17 }
 0x2a4   : > { %v647_v19 = vmul.f32 1.442695, %v646_v18 }
 0x2a5   : > { %v708_v20 = vpop.permute.xlu0 %707 }
 0x2a6   : > { %1824 = vpow2.f32 %v647_v19  ;;  %v713_v22 = vsel %vm595_vm1, %v708_v20, 0 }
 0x2a9   : > { %v767_v35 = vpop.permute.xlu0 %766 }
 0x2aa   : > { %v772_v36 = vsel %vm656_vm3, %v767_v35, 0 }
 0x2ab   : > { %1624 = vmatpush3.bf16.msra.mxu0 %v772_v36 }
 0x2ac   : > { %1637 = vmatprep.subr.bf16.mxu0 %v2229_v0 }
 0x2b0   : > { %v1825_v21 = vpop.eup %1824 }
 0x2b1   : > { %v652_v23 = vpack.c.bf16 %v1825_v21, %v1825_v21  ;;  %v649_v43 = vsel %vm642_vm2, %v1825_v21, 0.0 }
 0x2b3   : > { %1614 = vmatmul.mubr.msk.bf16.vlgmr.msra.gmra.mrb[0].mxu1 %vm642_vm2, %v652_v23 }
 0x2b4   : > { %1618 = vmatpush3.bf16.xpose.msra.mxu1 %v713_v22  ;;  %1619 = vmatprep.mubr.msk.bf16.mxu1 %vm2230_vm0, %v2229_v0 }
 0x2b5   : > { %1629 = vmatprep.subr.bf16.mxu1 %v2229_v0 }
 0x2bb   : > { %1620 = vmatmul.mubr.msk.bf16.vlgmr.msra.gmra.mrb[4].mxu1 %vm595_vm1, %v705_v24 }
 0x2bc   : > { %1633 = vmatprep.mubr.msk.bf16.mxu1 %vm2230_vm0, %v2229_v0  ;;  %1630 = vmatpush3.bf16.msra.mxu1 %v1818_v46 }
 0x2bd   : > { %1631 = vmatprep.subr.bf16.mxu1 %v2229_v0 }
 0x2c0   : > { %1632 = vmatpush3.bf16.msra.mxu1 %v1819_v47 }
 0x2c1   : > { %1645 = vmatprep.subr.bf16.mxu1 %v2229_v0 }
 0x386   : > { %v694_v25 = vpop.f32.mrb[0].mxu1 }
 0x387   : > { %v1615_v26 = vpop.f32.mrb[1].mxu1 }
 0x388   : > { %v697_v27 = vpop.f32.mrb[2].mxu1 }
 0x389   : > { %v1616_v28 = vpop.f32.mrb[3].mxu1 }
 0x38a   : > { %v1820_v28 = vld [vmem:[#allocation10 + $0x20] sm:$0xff]  }
 0x38e   : > { %v749_v29 = vpop.f32.mrb[4].mxu1 }
 0x38f   : > { %v750_v30 = vadd.f32 %v2690_v7, %v749_v29  ;;  %v1621_v31 = vpop.f32.mrb[5].mxu1  ;;  %v1821_v29 = vld [vmem:[#allocation10 + $0x28] sm:$0xff]  }
 0x390   : > { %v752_v32 = vpop.f32.mrb[6].mxu1 }
 0x391   : > { %v1622_v33 = vpop.f32.mrb[7].mxu1  ;;  %v755_v34 = vsel %vm642_vm2, %v750_v30, -inf }
 0x392   : > { %756 = vmax.xlane.f32.xlu1 %v755_v34 }
 0x3a3   : > { %929 = vrot.lane.b32.xlu1 %v2676_v3, %s2232_s9 }
 0x3a7   : > { %927 = vrot.lane.b32.xlu1 %v2681_v6, %s2232_s9 }
 0x41f   : > { %v757_v37 = vpop.xlane.xlu1 %756 }
 0x420   : > { %v758_v38 = vsub.f32 %v750_v30, %v757_v37 }
 0x422   : > { %v759_v39 = vmul.f32 1.442695, %v758_v38 }
 0x423   : > { %v930_v55 = vpop.permute.xlu1 %929 }
 0x424   : > { %1826 = vpow2.f32 %v759_v39  ;;  %v935_v60 = vsel %vm595_vm1, %v930_v55, 0 }
 0x427   : > { %v928_v62 = vpop.permute.xlu1 %927 }
 0x42e   : > { %v1827_v40 = vpop.eup %1826 }
 0x42f   : > { %v761_v41 = vsel %vm642_vm2, %v1827_v40, 0.0  ;;  %v764_v42 = vpack.c.bf16 %v1827_v40, %v1827_v40 }
 0x430   : > { %762 = vadd.xlane.f32.xlu0 %v761_v41 }
 0x431   : > { %1626 = vmatmul.mubr.msk.bf16.vlgmr.msra.gmra.mrb[4].mxu0 %vm642_vm2, %v764_v42 }
 0x432   : > { %1641 = vmatprep.mubr.msk.bf16.mxu0 %vm2230_vm0, %v2229_v0  ;;  %1638 = vmatpush3.bf16.msra.mxu0 %v1816_v44 }
 0x433   : > { %1639 = vmatprep.subr.bf16.mxu0 %v2229_v0 }
 0x434   : > { %650 = vadd.xlane.f32.xlu0 %v649_v43 }
 0x436   : > { %1640 = vmatpush3.bf16.msra.mxu0 %v1817_v45 }
 0x437   : > { %1651 = vmatprep.subr.bf16.mxu0 %v2229_v0 }
 0x44a   : > { %987 = vrot.lane.b32.xlu0 %v2696_v15, %s2232_s9 }
 0x44e   : > { %1096 = vrot.lane.b32.xlu0 %v2676_v3, %s2233_s18 }
 0x452   : > { %1094 = vrot.lane.b32.xlu0 %v2681_v6, %s2233_s18 }
 0x4bd   : > { %v763_v48 = vpop.xlane.xlu0 %762 }
 0x4c1   : > { %v651_v49 = vpop.xlane.xlu0 %650 }
 0x4c2   : > { %1828 = vrcp.f32 %v651_v49 }
 0x4c3   : > { %1830 = vrcp.f32 %v763_v48 }
 0x4c5   : > { %v988_v6 = vpop.permute.xlu0 %987 }
 0x4c6   : > { %v993_v18 = vsel %vm656_vm3, %v988_v6, 0 }
 0x4c9   : > { %v1097_v22 = vpop.permute.xlu0 %1096 }
 0x4ca   : > { %v1102_v24 = vsel %vm595_vm1, %v1097_v22, 0  ;;  %v1572_v22 = vld [vmem:[#allocation15] ss:$0 sm:$0xff] }
 0x4cc   : > { %v1829_v50 = vpop.eup %1828 }
 0x4cd   : > { %v701_v51 = vmul.f32 %v1829_v50, %v694_v25  ;;  %v1831_v53 = vpop.eup %1830  ;;  %v1095_v27 = vpop.permute.xlu0 %1094 }
 0x4cf   : > { %v702_v52 = vpack.c.bf16 %v701_v51, %v701_v51  ;;  %v1822_v51 = vld [vmem:[#allocation10 + $0x30] sm:$0xff]  }
 0x4d1   : > { %1642 = vmatmul.mubr.msk.bf16.vlgmr.msra.gmra.mrb[8].mxu0 %vm595_vm1, %v702_v52 }
 0x4d2   : > { %1653 = vmatprep.mubr.msk.bf16.mxu0 %vm2230_vm0, %v2229_v0  ;;  %1652 = vmatpush3.bf16.msra.mxu0 %v993_v18 }
 0x4d3   : > { %1665 = vmatprep.subr.bf16.mxu0 %v2229_v0 }
 0x504   : > { %v808_v54 = vpop.f32.mrb[4].mxu0 }
 0x505   : > { %v815_v56 = vmul.f32 %v1831_v53, %v808_v54  ;;  %v1627_v57 = vpop.f32.mrb[5].mxu0 }
 0x506   : > { %v811_v58 = vpop.f32.mrb[6].mxu0 }
 0x507   : > { %v816_v59 = vpack.c.bf16 %v815_v56, %v815_v56  ;;  %v1628_v61 = vpop.f32.mrb[7].mxu0  ;;  %v1823_v56 = vld [vmem:[#allocation10 + $0x38] sm:$0xff]  }
 0x509   : > { %1634 = vmatmul.mubr.msk.bf16.vlgmr.msra.gmra.mrb[8].mxu1 %vm595_vm1, %v816_v59 }
 0x50a   : > { %1646 = vmatpush3.bf16.xpose.msra.mxu1 %v935_v60  ;;  %1647 = vmatprep.mubr.msk.bf16.mxu1 %vm2230_vm0, %v2229_v0 }
 0x50b   : > { %1657 = vmatprep.subr.bf16.mxu1 %v2229_v0 }
 0x511   : > { %1648 = vmatmul.mubr.msk.bf16.vlgmr.msra.gmra.mrb[12].mxu1 %vm595_vm1, %v928_v62 }
 0x512   : > { %1661 = vmatprep.mubr.msk.bf16.mxu1 %vm2230_vm0, %v2229_v0  ;;  %1658 = vmatpush3.bf16.msra.mxu1 %v1820_v28 }
 0x513   : > { %1659 = vmatprep.subr.bf16.mxu1 %v2229_v0 }
 0x516   : > { %1660 = vmatpush3.bf16.msra.mxu1 %v1821_v29 }
 0x517   : > { %1671 = vmatprep.subr.bf16.mxu1 %v2229_v0 }
 0x5a4   : > { %v921_v63 = vpop.f32.mrb[8].mxu0 }
 0x5a5   : > { %v1643_v1 = vpop.f32.mrb[9].mxu0 }
 0x5a6   : > { %v924_v2 = vpop.f32.mrb[10].mxu0 }
 0x5a7   : > { %v1644_v4 = vpop.f32.mrb[11].mxu0  ;;  %v1570_v2 = vld [vmem:[#allocation11] ss:$0 sm:$0xff] }
 0x5dc   : > { %v866_v5 = vpop.f32.mrb[8].mxu1 }
 0x5dd   : > { %v2742_v8 = vadd.f32 %v921_v63, %v866_v5  ;;  %v1635_v9 = vpop.f32.mrb[9].mxu1 }
 0x5de   : > { %v869_v10 = vpop.f32.mrb[10].mxu1  ;;  %v1269_v9 = vld [vmem:[%s502_s27] sm:$0xff] }
 0x5df   : > { %v1636_v11 = vpop.f32.mrb[11].mxu1 }
 0x5e4   : > { %v971_v12 = vpop.f32.mrb[12].mxu1 }
 0x5e5   : > { %v972_v13 = vadd.f32 %v2690_v7, %v971_v12  ;;  %v1649_v14 = vpop.f32.mrb[13].mxu1 }
 0x5e6   : > { %v974_v16 = vpop.f32.mrb[14].mxu1 }
 0x5e7   : > { %v1650_v17 = vpop.f32.mrb[15].mxu1  ;;  %v977_v3 = vsel %vm642_vm2, %v972_v13, -inf }
 0x5e8   : > { %978 = vmax.xlane.f32.xlu1 %v977_v3 }
 0x675   : > { %v979_v19 = vpop.xlane.xlu1 %978 }
 0x676   : > { %v980_v20 = vsub.f32 %v972_v13, %v979_v19 }
 0x678   : > { %v981_v21 = vmul.f32 1.442695, %v980_v20  ;;  %v1571_v20 = vld [vmem:[#allocation14] ss:$0 sm:$0xff] }
 0x67a   : > { %1832 = vpow2.f32 %v981_v21 }
 0x684   : > { %v1833_v23 = vpop.eup %1832 }
 0x685   : > { %v983_v25 = vsel %vm642_vm2, %v1833_v23, 0.0  ;;  %v986_v26 = vpack.c.bf16 %v1833_v23, %v1833_v23 }
 0x686   : > { %984 = vadd.xlane.f32.xlu0 %v983_v25 }
 0x687   : > { %1654 = vmatmul.mubr.msk.bf16.vlgmr.msra.gmra.mrb[12].mxu0 %vm642_vm2, %v986_v26 }
 0x688   : > { %1666 = vmatpush3.bf16.xpose.msra.mxu0 %v1102_v24  ;;  %1667 = vmatprep.mubr.msk.bf16.mxu0 %vm2230_vm0, %v2229_v0 }
 0x689   : > { %1677 = vmatprep.subr.bf16.mxu0 %v2229_v0 }
 0x68f   : > { %1668 = vmatmul.mubr.msk.bf16.vlgmr.msra.gmra.mrb[16].mxu0 %vm595_vm1, %v1095_v27 }
 0x690   : > { %1681 = vmatprep.mubr.msk.bf16.mxu0 %vm2230_vm0, %v2229_v0  ;;  %1678 = vmatpush3.bf16.msra.mxu0 %v1822_v51 }
 0x691   : > { %1679 = vmatprep.subr.bf16.mxu0 %v2229_v0 }
 0x694   : > { %1680 = vmatpush3.bf16.msra.mxu0 %v1823_v56 }
 0x713   : > { %v985_v30 = vpop.xlane.xlu0 %984 }
 0x714   : > { %1834 = vrcp.f32 %v985_v30 }
 0x71e   : > { %v1835_v31 = vpop.eup %1834 }
 0x75a   : > { %v1029_v32 = vpop.f32.mrb[12].mxu0 }
 0x75b   : > { %v1036_v33 = vmul.f32 %v1835_v31, %v1029_v32  ;;  %v1655_v34 = vpop.f32.mrb[13].mxu0 }
 0x75c   : > { %v1032_v35 = vpop.f32.mrb[14].mxu0 }
 0x75d   : > { %v1037_v36 = vpack.c.bf16 %v1036_v33, %v1036_v33  ;;  %v1656_v37 = vpop.f32.mrb[15].mxu0 }
 0x75f   : > { %1662 = vmatmul.mubr.msk.bf16.vlgmr.msra.gmra.mrb[16].mxu1 %vm595_vm1, %v1037_v36 }
 0x760   : > { %1673 = vmatprep.mubr.msk.bf16.mxu1 %vm2230_vm0, %v2229_v0 }
 0x762   : > { %v1138_v38 = vpop.f32.mrb[16].mxu0 }
 0x763   : > { %v1139_v39 = vadd.f32 %v2690_v7, %v1138_v38  ;;  %v1669_v40 = vpop.f32.mrb[17].mxu0 }
 0x764   : > { %v1141_v41 = vpop.f32.mrb[18].mxu0 }
 0x765   : > { %v1670_v42 = vpop.f32.mrb[19].mxu0  ;;  %v1144_v43 = vsel %vm642_vm2, %v1139_v39, -inf }
 0x766   : > { %1145 = vmax.xlane.f32.xlu1 %v1144_v43 }
 0x777   : > { %1154 = vrot.lane.b32.xlu1 %v2696_v15, %s2233_s18 }
 0x7f3   : > { %v1146_v44 = vpop.xlane.xlu1 %1145 }
 0x7f4   : > { %v1147_v45 = vsub.f32 %v1139_v39, %v1146_v44 }
 0x7f6   : > { %v1148_v46 = vmul.f32 1.442695, %v1147_v45 }
 0x7f7   : > { %v1155_v47 = vpop.permute.xlu1 %1154 }
 0x7f8   : > { %1836 = vpow2.f32 %v1148_v46  ;;  %v1160_v48 = vsel %vm656_vm3, %v1155_v47, 0 }
 0x7f9   : > { %1672 = vmatpush3.bf16.msra.mxu1 %v1160_v48 }
 0x802   : > { %v1837_v49 = vpop.eup %1836 }
 0x803   : > { %v1150_v7 = vsel %vm642_vm2, %v1837_v49, 0.0  ;;  %v1153_v50 = vpack.c.bf16 %v1837_v49, %v1837_v49 }
 0x804   : > { %1151 = vadd.xlane.f32.xlu1 %v1150_v7 }
 0x805   : > { %1674 = vmatmul.mubr.msk.bf16.vlgmr.msra.gmra.mrb[20].mxu1 %vm642_vm2, %v1153_v50 }
 0x832   : > { %v1087_v15 = vpop.f32.mrb[16].mxu1 }
 0x833   : > { %v1093_v52 = vadd.f32 %v1087_v15, %v2742_v8  ;;  %v1663_v53 = vpop.f32.mrb[17].mxu1 }
 0x834   : > { %v1090_v54 = vpop.f32.mrb[18].mxu1 }
 0x835   : > { %v1664_v55 = vpop.f32.mrb[19].mxu1 }
 0x891   : > { %v1152_v57 = vpop.xlane.xlu1 %1151 }
 0x892   : > { %1838 = vrcp.f32 %v1152_v57 }
 0x89c   : > { %v1839_v58 = vpop.eup %1838 }
 0x8d8   : > { %v1196_v59 = vpop.f32.mrb[20].mxu1 }
 0x8d9   : > { %v1203_v60 = vmul.f32 %v1839_v58, %v1196_v59  ;;  %v1675_v61 = vpop.f32.mrb[21].mxu1 }
 0x8da   : > { %v1199_v62 = vpop.f32.mrb[22].mxu1 }
 0x8db   : > { %v1204_v63 = vpack.c.bf16 %v1203_v60, %v1203_v60  ;;  %v1676_v1 = vpop.f32.mrb[23].mxu1 }
 0x8dd   : > { %1682 = vmatmul.mubr.msk.bf16.vlgmr.msra.gmra.mrb[20].mxu0 %vm595_vm1, %v1204_v63 }
 0x9b0   : > { %v1254_v0 = vpop.f32.mrb[20].mxu0 }
 0x9b1   : > { %v1260_v4 = vadd.f32 %v1254_v0, %v1093_v52  ;;  %v1683_v5 = vpop.f32.mrb[21].mxu0 }
 0x9b2   : > { %v1257_v8 = vpop.f32.mrb[22].mxu0 }
 0x9b3   : > { %v1268_v10 = vadd.f32 %v1570_v2, %v1260_v4  ;;  %v1684_v11 = vpop.f32.mrb[23].mxu0 }
 0x9b5   : > { %v1270_v12 = vadd.f32 %v1269_v9, %v1268_v10 }
 0x9b7   : > { %1271 = vadd.xlane.f32.xlu0 %v1270_v12 }
 0xa44   : > { %v1272_v13 = vpop.xlane.xlu0 %1271 }
 0xa45   : > { %v1274_v14 = vmul.f32 0.0078125, %v1272_v13 }
 0xa47   : > { %v1275_v16 = vsub.f32 %v1270_v12, %v1274_v14 }
 0xa49   : > { %v1276_v17 = vmul.f32 %v1275_v16, %v1275_v16 }
 0xa4b   : > { %1277 = vadd.xlane.f32.xlu0 %v1276_v17 }
 0xad8   : > { %v1278_v3 = vpop.xlane.xlu0 %1277 }
 0xad9   : > { %v1279_v6 = vmul.f32 0.0078125, %v1278_v3 }
 0xadb   : > { %v1280_v18 = vadd.f32 1e-05, %v1279_v6 }
 0xadd   : > { %1840 = vrsqrt.f32 %v1280_v18 }
 0xae7   : > { %v1841_v19 = vpop.eup %1840 }
 0xae8   : > { %v1282_v21 = vmul.f32 %v1841_v19, %v1275_v16 }
 0xaea   : > { %v1290_v23 = vmul.f32 %v1571_v20, %v1282_v21 }
 0xaec   : > { %v1298_v24 = vadd.f32 %v1572_v22, %v1290_v23 }
 0xaee   : > { %1299 = vst [vmem:[%s563_s30] sm:$0xff] %v1298_v24 }
 0xaef   : > { %2119 = shalt.err (!%p2116_p12)
}
 0xaf0   : > { %s2120_s1 = scalar_lea.hbm %s2779_s20, 128  ;;  %s2124_s26 = scalar_lea.hbm %s2904_s7, 256 }
 0xaf1   : > { %p2121_p3 = scmp.ne.s32.totalorder %s2779_s20, %s2120_s1  ;;  %p2125_p7 = scmp.lt.u32.totalorder %s2779_s20, %s2904_s7 }
 0xaf2   : > { %p2126_p0 = scmp.lt.u32.totalorder %s2124_s26, %s2120_s1  ;;  %p2128_p10 = scmp.lt.u32.totalorder %s2120_s1, %s2779_s20 }
 0xaf3   : > { %p2122_p5 = pnand %p2121_p3, %p2905_p1 }
 0xaf4   : > { %p2127_p6 = por %p2126_p0, %p2125_p7 }
 0xaf5   : > { %p2123_p9 = pneg %p2122_p5 }
 0xaf6   : > { %p2129_p4 = por %p2128_p10, %p2127_p6 }
 0xaf8   : > { %p2130_p13 = pnand %p2129_p4, %p2123_p9 }
 0xafa   : > { %2133 = shalt.err (!%p2130_p13)
}
 0xafb   : > { %1712 = dma.vmem_to_hbm [thread:$0]  (%p2905_p1), %s2781_s16, 128, %s2779_s20, %s1301_s25  }
 0xafc PF: > { %s2906_s27 = sld [smem:[#allocation26_spill]]  ;;  %s2907_s15 = sld [smem:[#allocation30_spill]] }
 0xafd   : > { %s2908_s9 = sld [smem:[#allocation28_spill]] }
 0xb02   : > { %s1327_s18 = sand.u32 1, %s2906_s27   ;;  %p2909_p11 = scmp.ne.s32.totalorder %s2907_s15, 0 }
 0xb03   : > { %p2910_p2 = scmp.ge.s32.totalorder %s2908_s9, 2  ;;  %s1328_s21 = scalar_lea.sflag [#allocation4], %s1327_s18 }
 0xb05   : > { %p1744_p8 = pnand %p2910_p2, %p2909_p11 }
 0xb07   : > { %2191 = dma.done.wait (!%p1744_p8), %s1328_s21, 128  }
 0xb08   : > { %2193 = vsyncadd (!%p1744_p8), %s1328_s21, 4294967168  ;;  %s32_s14 = sadd.s32 1, %s2908_s9   ;;  %s2911_s17 = sld [smem:[#allocation32_spill]] }
 0xb09   : > { %p29_p12 = scmp.ge.s32.totalorder %s32_s14, 4   ;;  %s2912_s22 = sld [smem:[#allocation31_spill]] }
 0xb0a   : > { %s2913_s30 = smov %s2200_s10  ;;  %s2914_s10 = smov %s2204_s11 }
 0xb0b   : > { %s2916_s12 = smov %s2212_s13  ;;  %31 = sbr.rel (!%p29_p12) target bundleno = 18 (0x12), region = 165 }
 0xb0e   : > { %s2915_s11 = smov %s2911_s17 }
 0xb0f   : > { %s2917_s13 = smov %s2912_s22 }
 0xb12   :  { %1333 = vsyncpa [#allocation3], 1 }
 0xb13   :  { %1335 = vsyncpa [#allocation3 + $0x1], 1 }
 0xb14   :  { %1336 = vsyncpa [#allocation6], 1 }
 0xb15   :  { %1338 = vsyncpa [#allocation6 + $0x1], 1 }
 0xb16   :  { %1339 = vsyncpa [#allocation9], 1 }
 0xb17   :  { %1341 = vsyncpa [#allocation9 + $0x1], 1 }
 0xb18   :  { %1342 = vsyncpa [#allocation12], 1 }
 0xb19   :  { %1343 = vsyncpa [#allocation4], 1 }
 0xb1a   :  { %1345 = vsyncpa [#allocation4 + $0x1], 1 }

// kernel: rel2layout_forward.39
= control target key start
LH: loop header
LB: loop body
LE: loop exit
PB: predicated region body
PF: predicated region fallthrough
CT: control target
= control target key end

     0   :  { %s2823_s0 = inlined_call_operand.hbm [shape: f32[2,8,128], index: 0, kind: input, shape index: {}]   ;;  %s2824_s1 = inlined_call_operand.hbm [shape: f32[2,8,256], index: 1, kind: input, shape index: {}, may-alias: {1,2}]   ;;  %s2825_s2 = inlined_call_operand.hbm [shape: f32[2,8,256], index: 2, kind: input, shape index: {}, may-alias: {1,2}]   ;;  %s2826_s3 = inlined_call_operand.hbm [shape: f32[2,1,8], index: 3, kind: input, shape index: {}]   ;;  %s2827_s4 = inlined_call_operand.hbm [shape: bf16[128,128], index: 4, kind: input, shape index: {}]   ;;  %s2828_s5 = inlined_call_operand.hbm [shape: f32[1,128], index: 5, kind: input, shape index: {}]   ;;  %s2829_s6 = inlined_call_operand.hbm [shape: f32[2,8,128], index: 6, kind: input, shape index: {}]   ;;  %s2830_s7 = inlined_call_operand.hbm [shape: f32[1,128], index: 7, kind: input, shape index: {}]   ;;  %s2831_s8 = inlined_call_operand.hbm [shape: f32[1,128], index: 8, kind: input, shape index: {}]   ;;  %s2832_s9 = inlined_call_operand.hbm [shape: f32[2,8,128], index: 9, kind: output, shape index: {}]  }
   0x1   :  { %2853 = sst [smem:[#allocation33_spill]] %s2823_s0 }
   0x2   :  { %2854 = sst [smem:[#allocation34_spill]] %s2824_s1 }
   0x3   :  { %2855 = sst [smem:[#allocation35_spill]] %s2827_s4 }
   0x4   :  { %2856 = sst [smem:[#allocation36_spill]] %s2830_s7 }
   0x5   :  { %2857 = sst [smem:[#allocation37_spill]] %s2831_s8 }
   0x6   :  { %2858 = sst [smem:[#allocation38_spill]] %s2832_s9 }
   0x7   :  { %14 = vsyncpa [#allocation3], 0 }
   0x8   :  { %16 = vsyncpa [#allocation3 + $0x1], 0 }
   0x9   :  { %17 = vsyncpa [#allocation6], 0 }
   0xa   :  { %19 = vsyncpa [#allocation6 + $0x1], 0 }
   0xb   :  { %20 = vsyncpa [#allocation9], 0 }
   0xc   :  { %22 = vsyncpa [#allocation9 + $0x1], 0 }
   0xd   :  { %23 = vsyncpa [#allocation12], 0 }
   0xe   :  { %24 = vsyncpa [#allocation4], 0 }
   0xf   :  { %26 = vsyncpa [#allocation4 + $0x1], 0  ;;  %s2280_s30 = smov 0   ;;  %s2282_s10 = smov 0  }
  0x10   :  { %s2284_s11 = smov 0   ;;  %s2286_s12 = smov 0  }
  0x11   :  { %s2288_s13 = smov 0   ;;  %s2290_s14 = smov 0  }
  0x12 LB: > { %2859 = sst [smem:[#allocation26_spill]] %s2191_s30  ;;  %s2311_s15 = sadd.s32 4294967295, %s2211_s14   ;;  %s2211_s14 = sphi %s2290_s14, %s32_s14   ;;  %s2207_s13 = sphi %s2288_s13, %s2916_s13   ;;  %s2203_s12 = sphi %s2286_s12, %s2915_s12   ;;  %s2199_s11 = sphi %s2284_s11, %s2914_s11   ;;  %s2195_s10 = sphi %s2282_s10, %s2913_s10   ;;  %s2191_s30 = sphi %s2280_s30, %s2912_s30  }
  0x13   : > { %2860 = sst [smem:[#allocation27_spill]] %s2203_s12  ;;  %s1516_s16 = sadd.s32 4294967294, %s2211_s14  }
  0x14   : > { %2861 = sst [smem:[#allocation28_spill]] %s2211_s14  ;;  %p66_p0 = scmp.ne.s32.totalorder %s2195_s10, %s2191_s30 }
  0x15   : > { %p2834_p1 = scmp.eq.s32.totalorder %s2311_s15, 0  ;;  %p288_p3 = scmp.eq.s32.totalorder %s1516_s16, 1 }
  0x16   : > { %p1517_p5 = scmp.ge.s32.totalorder %s2211_s14, 1  ;;  %p295_p7 = scmp.lt.s32.totalorder %s2211_s14, 3 }
  0x17   : > { %p2320_p4 = por %p2834_p1, %p66_p0  ;;  %p2325_p6 = por %p288_p3, %p66_p0 }
  0x18   : > { %p2330_p8 = pnand %p1517_p5, %p295_p7  ;;  %s2213_s20 = smov [#allocation10]  }
  0x19   : > { %s2862_s17 = scalar_select %p2320_p4, 1, 0 }
  0x1a   : > { %s2864_s18 = scalar_select %p2325_p6, 1, 0 }
  0x1b   : > { %2863 = sst [smem:[#allocation29_spill]] %s2862_s17  ;;  %s307_s21 = sshll.u32 %s2213_s20, 4  ;;  %s2334_s21 = int_to_ptr.vmem [resolvable:$true] %s307_s21 }
  0x1c   : > { %2865 = sst [smem:[#allocation30_spill]] %s2864_s18  ;;  %p1710_p9 = pneg %p2330_p8 }
  0x1d   : > { %s2866_s19 = scalar_select %p2330_p8, 1, 0 }
  0x1e   : > { %p2341_p11 = pnand %p1710_p9, %p2834_p1  ;;  %s2214_s23 = smov [#allocation14]  }
  0x1f   : > { %s332_s24 = sshll.u32 %s2214_s23, 4  ;;  %s2215_s25 = smov [#allocation15]   ;;  %s2345_s24 = int_to_ptr.vmem [resolvable:$true] %s332_s24 }
  0x20   : > { %s2867_s22 = scalar_select %p2341_p11, 1, 0 }
  0x21   : > { %s2347_s26 = sshll.u32 %s2215_s25, 4  ;;  %s2868_s4 = sld [smem:[#allocation35_spill]]  ;;  %s344_s26 = int_to_ptr.vmem [resolvable:$true] %s2347_s26 }
  0x22   : > { %p2357_p13 = pneg %p2341_p11 }
  0x24   : > { %s2869_s18 = scalar_select %p2357_p13, 1, 0 }
  0x27   : > { %s1838_s29 = scalar_lea.hbm %s2868_s4, 1024 }
  0x28   : > { %p1839_p12 = scmp.ne.s32.totalorder %s2868_s4, %s1838_s29  ;;  %p1845_p5 = scmp.lt.u32.totalorder %s1838_s29, %s2868_s4 }
  0x2a   : > { %p1841_p0 = pnand %p2357_p13, %p1839_p12 }
  0x2c   : > { %p1842_p3 = pneg %p1841_p0 }
  0x2e   : > { %p1847_p7 = pnand %p1845_p5, %p1842_p3 }
  0x30   : > { %1850 = shalt.err (!%p1847_p7)
}
  0x31   : > { %s1851_s27 = scalar_lea.vmem %s2334_s21, 1024  ;;  %p1859_p2 = scmp.lt.s32.totalorder %s2334_s21, %s2334_s21 }
  0x32   : > { %p1852_p9 = scmp.ne.s32.totalorder %s2334_s21, %s1851_s27  ;;  %p1860_p6 = scmp.lt.s32.totalorder %s1851_s27, %s1851_s27 }
  0x34   : > { %p1854_p10 = pnand %p1852_p9, %p2357_p13  ;;  %p1861_p12 = por %p1860_p6, %p1859_p2 }
  0x36   : > { %p1855_p1 = pneg %p1854_p10 }
  0x38   : > { %p1862_p0 = pnand %p1861_p12, %p1855_p1 }
  0x3a   : > { %1865 = shalt.err (!%p1862_p0)
}
  0x3b   : > { %s2216_s28 = smov 64   ;;  %s2217_s29 = smov 4  }
  0x3c   : > { %1713 = dma.hbm_to_vmem [thread:$0]  (!%p2341_p11), %s2868_s4, 1024, %s2334_s21, [#allocation9], %s2216_s28, %s2216_s28, %s2217_s29  }
  0x3d   : > { %s2870_s7 = sld [smem:[#allocation36_spill]] }
  0x43   : > { %s1866_s30 = scalar_lea.hbm %s2870_s7, 16 }
  0x44   : > { %p1867_p2 = scmp.ne.s32.totalorder %s2870_s7, %s1866_s30  ;;  %p1873_p10 = scmp.lt.u32.totalorder %s1866_s30, %s2870_s7 }
  0x46   : > { %p1869_p1 = pnand %p1867_p2, %p2357_p13 }
  0x48   : > { %p1870_p6 = pneg %p1869_p1 }
  0x4a   : > { %p1875_p3 = pnand %p1873_p10, %p1870_p6 }
  0x4c   : > { %1878 = shalt.err (!%p1875_p3)
}
  0x4d   : > { %s1879_s21 = scalar_lea.vmem %s2345_s24, 16  ;;  %s1886_s9 = scalar_lea.vmem %s2345_s24, 32 }
  0x4e   : > { %p1880_p5 = scmp.ne.s32.totalorder %s2345_s24, %s1879_s21  ;;  %p1887_p12 = scmp.lt.s32.totalorder %s2345_s24, %s2345_s24 }
  0x4f   : > { %p1888_p0 = scmp.lt.s32.totalorder %s1886_s9, %s1879_s21 }
  0x50   : > { %p1882_p7 = pnand %p1880_p5, %p2357_p13 }
  0x51   : > { %p1889_p2 = por %p1888_p0, %p1887_p12 }
  0x52   : > { %p1883_p9 = pneg %p1882_p7 }
  0x54   : > { %p1890_p1 = pnand %p1889_p2, %p1883_p9 }
  0x56   : > { %1893 = shalt.err (!%p1890_p1)
}
  0x57   : > { %1719 = dma.hbm_to_vmem [thread:$0]  (!%p2341_p11), %s2870_s7, 16, %s2345_s24, [#allocation6]  }
  0x58   : > { %s2871_s8 = sld [smem:[#allocation37_spill]] }
  0x5e   : > { %s1894_s29 = scalar_lea.hbm %s2871_s8, 16 }
  0x5f   : > { %p1895_p6 = scmp.ne.s32.totalorder %s2871_s8, %s1894_s29  ;;  %p1901_p5 = scmp.lt.u32.totalorder %s1894_s29, %s2871_s8 }
  0x61   : > { %p1897_p10 = pnand %p1895_p6, %p2357_p13 }
  0x63   : > { %p1898_p3 = pneg %p1897_p10 }
  0x65   : > { %p1903_p7 = pnand %p1901_p5, %p1898_p3 }
  0x67   : > { %1906 = shalt.err (!%p1903_p7)
}
  0x68   : > { %s1907_s27 = scalar_lea.vmem %s344_s26, 16  ;;  %s1914_s24 = scalar_lea.vmem %s344_s26, 32 }
  0x69   : > { %p1908_p9 = scmp.ne.s32.totalorder %s344_s26, %s1907_s27  ;;  %p1915_p2 = scmp.lt.s32.totalorder %s344_s26, %s344_s26 }
  0x6a   : > { %p1916_p1 = scmp.lt.s32.totalorder %s1914_s24, %s1907_s27 }
  0x6b   : > { %p1910_p12 = pnand %p1908_p9, %p2357_p13 }
  0x6c   : > { %p1917_p4 = por %p1916_p1, %p1915_p2 }
  0x6d   : > { %p1911_p0 = pneg %p1910_p12 }
  0x6f   : > { %p1918_p8 = pnand %p1917_p4, %p1911_p0 }
  0x71   : > { %1921 = shalt.err (!%p1918_p8)
}
  0x72   : > { %1722 = dma.hbm_to_vmem [thread:$0]  (!%p2341_p11), %s2871_s8, 16, %s344_s26, [#allocation9]  }
  0x73   : > { %s53_s30 = sadd.s32 1, %s2199_s11  ;;  %s44_s12 = sadd.s32 1, %s2207_s13 }
  0x74   : > { %p60_p4 = scmp.ne.s32.totalorder %s2199_s11, %s2195_s10  ;;  %p46_p8 = scmp.ge.s32.totalorder %s44_s12, 2 }
  0x75   : > { %p61_p6 = scmp.eq.s32.totalorder %s2211_s14, 0  ;;  %p2872_p10 = scmp.eq.s32.totalorder %s2311_s15, 1 }
  0x76   : > { %p1747_p5 = scmp.lt.s32.totalorder %s2211_s14, 2  ;;  %s2918_s12 = smov (%p46_p8, %s44_s12), 0 }
  0x77   : > { %p2428_p3 = por %p2872_p10, %p60_p4  ;;  %2874 = sst [smem:[#allocation31_spill]] %s2918_s12 }
  0x78   : > { %p62_p7 = por %p61_p6, %p60_p4  ;;  %s2436_s28 = sand.u32 1, %s2211_s14  }
  0x79   : > { %s2873_s17 = scalar_select %p2428_p3, 1, 0 }
  0x7a   : > { %s48_s26 = ssub.s32 %s2207_s13, %s2918_s12  ;;  %s2841_s29 = sand.u32 1, %s2199_s11  }
  0x7b   : > { %p51_p9 = scmp.eq.s32.totalorder %s48_s26, 0  ;;  %s2443_s16 = sshll.u32 %s2841_s29, 3 }
  0x7c   : > { %s1524_s20 = sshll.u32 %s2207_s13, 7  ;;  %s2876_s0 = sld [smem:[#allocation33_spill]] }
  0x7d   : > { %s2447_s23 = scalar_select %p51_p9, %s2199_s11, %s53_s30  }
  0x7e   : > { %s358_s21 = scalar_lea.vmem [#allocation2], %s2443_s16  ;;  %p2457_p12 = pnand %p1747_p5, %p62_p7 }
  0x7f   : > { %2875 = sst [smem:[#allocation32_spill]] %s2447_s23  ;;  %s366_s9 = sshll.u32 %s358_s21, 4  ;;  %s2461_s9 = int_to_ptr.vmem [resolvable:$true] %s366_s9 }
  0x80   : > { %s2877_s26 = scalar_select %p2457_p12, 1, 0 }
  0x81   : > { %s2466_s25 = scalar_lea.hbm %s2829_s6, %s1524_s20  ;;  %s2847_s27 = scalar_lea.sflag [#allocation3], %s2436_s28 }
  0x82   : > { %s2452_s24 = scalar_lea.hbm %s2876_s0, %s1524_s20  ;;  %p2473_p2 = pneg %p2457_p12 }
  0x83   : > { %s1922_s4 = scalar_lea.hbm %s2452_s24, 128  ;;  %s1927_s12 = scalar_lea.hbm %s2876_s0, 256 }
  0x84   : > { %p1923_p0 = scmp.ne.s32.totalorder %s2452_s24, %s1922_s4  ;;  %p1928_p8 = scmp.lt.u32.totalorder %s2452_s24, %s2876_s0 }
  0x85   : > { %p1929_p6 = scmp.lt.u32.totalorder %s1927_s12, %s1922_s4  ;;  %p1931_p5 = scmp.lt.u32.totalorder %s1922_s4, %s2452_s24 }
  0x86   : > { %p1925_p1 = pnand %p2473_p2, %p1923_p0 }
  0x87   : > { %p1930_p10 = por %p1929_p6, %p1928_p8 }
  0x88   : > { %p1926_p4 = pneg %p1925_p1 }
  0x89   : > { %p1932_p7 = por %p1931_p5, %p1930_p10 }
  0x8b   : > { %p1933_p9 = pnand %p1932_p7, %p1926_p4 }
  0x8d   : > { %1936 = shalt.err (!%p1933_p9)
}
  0x8e   : > { %s1937_s20 = scalar_lea.vmem %s2461_s9, 128  ;;  %s2218_s8 = smov [#allocation2]  }
  0x8f   : > { %p1938_p0 = scmp.ne.s32.totalorder %s2461_s9, %s1937_s20  ;;  %s1942_s30 = sshll.u32 %s2218_s8, 4  ;;  %s1943_s30 = int_to_ptr.vmem [resolvable:$false] %s1942_s30 }
  0x90   : > { %s1944_s23 = scalar_lea.vmem %s1943_s30, 256  ;;  %p1945_p11 = scmp.lt.s32.totalorder %s2461_s9, %s1943_s30 }
  0x91   : > { %p1940_p1 = pnand %p1938_p0, %p2473_p2  ;;  %p1946_p13 = scmp.lt.s32.totalorder %s1944_s23, %s1937_s20 }
  0x93   : > { %p1941_p3 = pneg %p1940_p1  ;;  %p1947_p8 = por %p1946_p13, %p1945_p11 }
  0x95   : > { %p1948_p6 = pnand %p1947_p8, %p1941_p3 }
  0x97   : > { %1951 = shalt.err (!%p1948_p6)
}
  0x98   : > { %1726 = dma.hbm_to_vmem [thread:$0]  (!%p2457_p12), %s2452_s24, 128, %s2461_s9, %s2847_s27  }
  0x99   : > { %s2848_s4 = sshll.u32 %s2207_s13, 8  ;;  %s2879_s1 = sld [smem:[#allocation34_spill]] }
  0x9a   : > { %s377_s20 = scalar_lea.vmem [#allocation5], %s2443_s16 }
  0x9b   : > { %s385_s8 = sshll.u32 %s377_s20, 4  ;;  %s386_s8 = int_to_ptr.vmem [resolvable:$true] %s385_s8 }
  0x9f   : > { %s2504_s29 = scalar_lea.hbm %s2879_s1, %s2848_s4  ;;  %s1957_s27 = scalar_lea.hbm %s2879_s1, 512 }
  0xa0   : > { %s1952_s23 = scalar_lea.hbm %s2504_s29, 128  ;;  %p1958_p4 = scmp.lt.u32.totalorder %s2504_s29, %s2879_s1 }
  0xa1   : > { %p1953_p11 = scmp.ne.s32.totalorder %s2504_s29, %s1952_s23  ;;  %p1959_p10 = scmp.lt.u32.totalorder %s1957_s27, %s1952_s23 }
  0xa2   : > { %p1961_p7 = scmp.lt.u32.totalorder %s1952_s23, %s2504_s29 }
  0xa3   : > { %p1955_p13 = pnand %p1953_p11, %p2473_p2  ;;  %p1960_p5 = por %p1959_p10, %p1958_p4 }
  0xa5   : > { %p1956_p3 = pneg %p1955_p13  ;;  %p1962_p9 = por %p1961_p7, %p1960_p5 }
  0xa7   : > { %p1963_p0 = pnand %p1962_p9, %p1956_p3 }
  0xa9   : > { %1966 = shalt.err (!%p1963_p0)
}
  0xaa   : > { %s1967_s20 = scalar_lea.vmem %s386_s8, 128  ;;  %s2219_s4 = smov [#allocation5]  }
  0xab   : > { %p1968_p1 = scmp.ne.s32.totalorder %s386_s8, %s1967_s20  ;;  %s1972_s30 = sshll.u32 %s2219_s4, 4  ;;  %s1973_s30 = int_to_ptr.vmem [resolvable:$false] %s1972_s30 }
  0xac   : > { %s1974_s24 = scalar_lea.vmem %s1973_s30, 256  ;;  %p1975_p11 = scmp.lt.s32.totalorder %s386_s8, %s1973_s30 }
  0xad   : > { %p1970_p8 = pnand %p1968_p1, %p2473_p2  ;;  %p1976_p13 = scmp.lt.s32.totalorder %s1974_s24, %s1967_s20 }
  0xaf   : > { %p1971_p6 = pneg %p1970_p8  ;;  %p1977_p12 = por %p1976_p13, %p1975_p11 }
  0xb1   : > { %p1978_p4 = pnand %p1977_p12, %p1971_p6 }
  0xb3   : > { %1981 = shalt.err (!%p1978_p4)
}
  0xb4   : > { %p2880_p10 = scmp.ne.s32.totalorder %s2877_s26, 0  ;;  %s2881_s27 = scalar_lea.sflag [#allocation6], %s2436_s28 }
  0xb5   : > { %s2220_s23 = smov [#allocation11]   ;;  %s2882_s12 = sshll.u32 %s2207_s13, 8 }
  0xb6   : > { %1729 = dma.hbm_to_vmem [thread:$0]  (!%p2880_p10), %s2504_s29, 128, %s386_s8, %s2881_s27  }
  0xb7   : > { %s321_s9 = sshll.u32 %s2220_s23, 4  ;;  %s1359_s30 = scalar_lea.hbm %s2825_s2, %s2882_s12  ;;  %s322_s9 = int_to_ptr.vmem [resolvable:$true] %s321_s9 }
  0xb8   : > { %s1982_s0 = scalar_lea.hbm %s2828_s5, 16  ;;  %p2883_p3 = scmp.ne.s32.totalorder %s2869_s18, 0 }
  0xb9   : > { %p1983_p12 = scmp.ne.s32.totalorder %s2828_s5, %s1982_s0  ;;  %p1989_p9 = scmp.lt.u32.totalorder %s1982_s0, %s2828_s5 }
  0xbb   : > { %p1985_p5 = pnand %p1983_p12, %p2883_p3 }
  0xbd   : > { %p1986_p7 = pneg %p1985_p5 }
  0xbf   : > { %p1991_p0 = pnand %p1989_p9, %p1986_p7 }
  0xc1   : > { %1994 = shalt.err (!%p1991_p0)
}
  0xc2   : > { %s1995_s27 = scalar_lea.vmem %s322_s9, 16  ;;  %s2002_s23 = scalar_lea.vmem %s322_s9, 32 }
  0xc3   : > { %p1996_p1 = scmp.ne.s32.totalorder %s322_s9, %s1995_s27  ;;  %p2003_p11 = scmp.lt.s32.totalorder %s322_s9, %s322_s9 }
  0xc4   : > { %p2004_p13 = scmp.lt.s32.totalorder %s2002_s23, %s1995_s27 }
  0xc5   : > { %p1998_p8 = pnand %p1996_p1, %p2883_p3 }
  0xc6   : > { %p2005_p4 = por %p2004_p13, %p2003_p11 }
  0xc7   : > { %p1999_p6 = pneg %p1998_p8 }
  0xc9   : > { %p2006_p10 = pnand %p2005_p4, %p1999_p6 }
  0xcb   : > { %2009 = shalt.err (!%p2006_p10)
}
  0xcc   : > { %p2884_p12 = scmp.ne.s32.totalorder %s2867_s22, 0  ;;  %s2550_s0 = scalar_lea.hbm %s1359_s30, 128 }
  0xcd   : > { %s396_s18 = scalar_lea.vmem [#allocation7], %s2443_s16  ;;  %s2040_s4 = scalar_lea.hbm %s1359_s30, 256 }
  0xce   : > { %1716 = dma.hbm_to_vmem [thread:$0]  (!%p2884_p12), %s2828_s5, 16, %s322_s9, [#allocation12]  }
  0xcf   : > { %s405_s12 = sshll.u32 %s396_s18, 4  ;;  %p2011_p3 = scmp.ne.s32.totalorder %s2550_s0, %s2040_s4  ;;  %s406_s12 = int_to_ptr.vmem [resolvable:$true] %s405_s12 }
  0xd0   : > { %s2015_s20 = scalar_lea.hbm %s2825_s2, 512  ;;  %p2016_p7 = scmp.lt.u32.totalorder %s2550_s0, %s2825_s2 }
  0xd1   : > { %p2013_p10 = pnand %p2011_p3, %p2473_p2  ;;  %p2017_p9 = scmp.lt.u32.totalorder %s2015_s20, %s2040_s4 }
  0xd2   : > { %p2019_p1 = scmp.lt.u32.totalorder %s2040_s4, %s2550_s0 }
  0xd3   : > { %p2014_p5 = pneg %p2013_p10  ;;  %p2018_p0 = por %p2017_p9, %p2016_p7 }
  0xd5   : > { %p2020_p8 = por %p2019_p1, %p2018_p0 }
  0xd7   : > { %p2021_p6 = pnand %p2020_p8, %p2014_p5 }
  0xd9   : > { %2024 = shalt.err (!%p2021_p6)
}
  0xda   : > { %s2025_s9 = scalar_lea.vmem %s406_s12, 128  ;;  %s2221_s30 = smov [#allocation7]  }
  0xdb   : > { %p2026_p11 = scmp.ne.s32.totalorder %s406_s12, %s2025_s9  ;;  %s2030_s8 = sshll.u32 %s2221_s30, 4  ;;  %s2031_s8 = int_to_ptr.vmem [resolvable:$false] %s2030_s8 }
  0xdc   : > { %s2032_s27 = scalar_lea.vmem %s2031_s8, 256  ;;  %p2033_p12 = scmp.lt.s32.totalorder %s406_s12, %s2031_s8 }
  0xdd   : > { %p2028_p13 = pnand %p2026_p11, %p2473_p2  ;;  %p2034_p3 = scmp.lt.s32.totalorder %s2032_s27, %s2025_s9 }
  0xdf   : > { %p2029_p4 = pneg %p2028_p13  ;;  %p2035_p10 = por %p2034_p3, %p2033_p12 }
  0xe1   : > { %p2036_p7 = pnand %p2035_p10, %p2029_p4 }
  0xe3   : > { %2039 = shalt.err (!%p2036_p7)
}
  0xe4   : > { %p2885_p9 = scmp.ne.s32.totalorder %s2877_s26, 0  ;;  %s2886_s23 = scalar_lea.sflag [#allocation6], %s2436_s28 }
  0xe5   : > { %s1531_s1 = sshll.u32 %s2207_s13, 4  ;;  %s2887_s22 = sand.u32 1, %s2199_s11  }
  0xe6   : > { %1732 = dma.hbm_to_vmem [thread:$0]  (!%p2885_p9), %s2550_s0, 128, %s406_s12, %s2886_s23  }
  0xe7   : > { %s2575_s4 = scalar_lea.hbm %s2826_s3, %s1531_s1  ;;  %s415_s21 = scalar_lea.vmem [#allocation8], %s2887_s22 }
  0xe8   : > { %s422_s20 = sshll.u32 %s415_s21, 4  ;;  %s413_s24 = scalar_lea.sflag [#allocation9], %s2436_s28  ;;  %s423_s20 = int_to_ptr.vmem [resolvable:$true] %s422_s20 }
  0xe9   : > { %s2041_s29 = scalar_lea.hbm %s2575_s4, 16  ;;  %s2046_s9 = scalar_lea.hbm %s2826_s3, 32 }
  0xea   : > { %p2042_p5 = scmp.ne.s32.totalorder %s2575_s4, %s2041_s29  ;;  %p2047_p8 = scmp.lt.u32.totalorder %s2575_s4, %s2826_s3 }
  0xeb   : > { %p2048_p6 = scmp.lt.u32.totalorder %s2046_s9, %s2041_s29  ;;  %p2050_p13 = scmp.lt.u32.totalorder %s2041_s29, %s2575_s4 }
  0xec   : > { %p2044_p0 = pnand %p2042_p5, %p2473_p2 }
  0xed   : > { %p2049_p11 = por %p2048_p6, %p2047_p8 }
  0xee   : > { %p2045_p1 = pneg %p2044_p0 }
  0xef   : > { %p2051_p4 = por %p2050_p13, %p2049_p11 }
  0xf1   : > { %p2052_p12 = pnand %p2051_p4, %p2045_p1 }
  0xf3   : > { %2055 = shalt.err (!%p2052_p12)
}
  0xf4   : > { %s2056_s27 = scalar_lea.vmem %s423_s20, 16  ;;  %s2222_s23 = smov [#allocation8]  }
  0xf5   : > { %p2057_p3 = scmp.ne.s32.totalorder %s423_s20, %s2056_s27  ;;  %s2061_s1 = sshll.u32 %s2222_s23, 4  ;;  %s2062_s1 = int_to_ptr.vmem [resolvable:$false] %s2061_s1 }
  0xf6   : > { %s2063_s14 = scalar_lea.vmem %s2062_s1, 32  ;;  %p2064_p5 = scmp.lt.s32.totalorder %s423_s20, %s2062_s1 }
  0xf7   : > { %p2059_p10 = pnand %p2057_p3, %p2473_p2  ;;  %p2065_p0 = scmp.lt.s32.totalorder %s2063_s14, %s2056_s27 }
  0xf9   : > { %p2060_p7 = pneg %p2059_p10  ;;  %p2066_p9 = por %p2065_p0, %p2064_p5 }
  0xfb   : > { %p2067_p6 = pnand %p2066_p9, %p2060_p7 }
  0xfd   : > { %2070 = shalt.err (!%p2067_p6)
}
  0xfe   : > { %p2888_p8 = scmp.ne.s32.totalorder %s2877_s26, 0  ;;  %s433_s18 = scalar_lea.vmem [#allocation13], %s2443_s16 }
  0xff   : > { %s441_s22 = sshll.u32 %s433_s18, 4  ;;  %s2071_s21 = scalar_lea.hbm %s2466_s25, 128  ;;  %s442_s22 = int_to_ptr.vmem [resolvable:$true] %s441_s22 }
 0x100   : > { %1735 = dma.hbm_to_vmem [thread:$0]  (!%p2888_p8), %s2575_s4, 16, %s423_s20, %s413_s24  }
 0x101   : > { %p2072_p1 = scmp.ne.s32.totalorder %s2466_s25, %s2071_s21  ;;  %s2076_s12 = scalar_lea.hbm %s2829_s6, 256 }
 0x102   : > { %p2077_p9 = scmp.lt.u32.totalorder %s2466_s25, %s2829_s6  ;;  %p2078_p4 = scmp.lt.u32.totalorder %s2076_s12, %s2071_s21 }
 0x103   : > { %p2074_p11 = pnand %p2072_p1, %p2473_p2  ;;  %p2080_p3 = scmp.lt.u32.totalorder %s2071_s21, %s2466_s25 }
 0x104   : > { %p2079_p12 = por %p2078_p4, %p2077_p9 }
 0x105   : > { %p2075_p13 = pneg %p2074_p11 }
 0x106   : > { %p2081_p10 = por %p2080_p3, %p2079_p12 }
 0x108   : > { %p2082_p7 = pnand %p2081_p10, %p2075_p13 }
 0x10a   : > { %2085 = shalt.err (!%p2082_p7)
}
 0x10b   : > { %s2086_s16 = scalar_lea.vmem %s442_s22, 128  ;;  %s2223_s4 = smov [#allocation13]  }
 0x10c   : > { %p2087_p5 = scmp.ne.s32.totalorder %s442_s22, %s2086_s16  ;;  %s2091_s20 = sshll.u32 %s2223_s4, 4  ;;  %s2092_s20 = int_to_ptr.vmem [resolvable:$false] %s2091_s20 }
 0x10d   : > { %s2093_s24 = scalar_lea.vmem %s2092_s20, 256  ;;  %p2094_p1 = scmp.lt.s32.totalorder %s442_s22, %s2092_s20 }
 0x10e   : > { %p2089_p0 = pnand %p2087_p5, %p2473_p2  ;;  %p2095_p11 = scmp.lt.s32.totalorder %s2093_s24, %s2086_s16 }
 0x110   : > { %p2090_p6 = pneg %p2089_p0  ;;  %p2096_p8 = por %p2095_p11, %p2094_p1 }
 0x112   : > { %p2097_p4 = pnand %p2096_p8, %p2090_p6 }
 0x114   : > { %2100 = shalt.err (!%p2097_p4)
}
 0x115   : > { %p2889_p9 = scmp.ne.s32.totalorder %s2877_s26, 0  ;;  %s2890_s8 = scalar_lea.sflag [#allocation3], %s2436_s28 }
 0x116   : > { %p2891_p13 = scmp.ne.s32.totalorder %s2866_s19, 0 }
 0x117   : > { %1738 = dma.hbm_to_vmem [thread:$0]  (!%p2889_p9), %s2466_s25, 128, %s442_s22, %s2890_s8  }
 0x118   : > { %450 = sbr.rel (%p2891_p13) target bundleno = 2815 (0xaff), region = 56  ;;  %s2892_s7 = sld [smem:[#allocation29_spill]] (!%p2891_p13) }
 0x119   : > { %s452_s27 = sand.u32 (!%p2891_p13), 1, %s2311_s15   ;;  %s2621_s23 = sand.u32 (!%p2891_p13), 1, %s2195_s10  }
 0x11a   : > { %s2624_s1 = sshll.u32 (!%p2891_p13), %s2621_s23, 3  ;;  %s453_s14 = scalar_lea.sflag (!%p2891_p13), [#allocation3], %s452_s27 }
 0x11b   : > { %s456_s18 = scalar_lea.vmem (!%p2891_p13), [#allocation2], %s2624_s1 }
 0x11e   : > { %p2893_p2 = scmp.ne.s32.totalorder (!%p2891_p13), %s2892_s7, 0 }
 0x120   : > { %2154 = dma.done.wait (%p2893_p2), %s453_s14, 128  }
 0x121   : > { %2156 = vsyncadd (%p2893_p2), %s453_s14, 4294967168  ;;  %s462_s19 = scalar_lea.sflag [#allocation6], %s452_s27  ;;  %s465_s28 = scalar_lea.vmem [#allocation5], %s2624_s1 }
 0x122   : > { %2158 = dma.done.wait (%p2893_p2), %s462_s19, 256  }
 0x123   : > { %2160 = vsyncadd (%p2893_p2), %s462_s19, 4294967040  ;;  %s474_s26 = scalar_lea.vmem [#allocation7], %s2624_s1  ;;  %s480_s25 = scalar_lea.sflag [#allocation9], %s452_s27 }
 0x124   : > { %s482_s22 = scalar_lea.vmem [#allocation8], %s2621_s23 }
 0x125   : > { %2162 = dma.done.wait (%p2893_p2), %s480_s25, 16  }
 0x126   : > { %2164 = vsyncadd (%p2893_p2), %s480_s25, 4294967280  ;;  %p2894_p8 = scmp.eq.s32.totalorder %s2311_s15, 0 }
 0x128   : > { %2166 = dma.done.wait (%p2894_p8), [#allocation9], 1024   ;;  %p2895_p12 = pmov %p2894_p8 }
 0x129   : > { %p2896_p3 = pmov %p2894_p8 }
 0x12a   : > { %2168 = vsyncadd (%p2895_p12), [#allocation9], 4294966272 }
 0x12b   : > { %2170 = dma.done.wait (%p2896_p3), [#allocation12], 16   ;;  %p2897_p10 = pmov %p2896_p3 }
 0x12c   : > { %s499_s21 = scalar_lea.vmem [#allocation13], %s2624_s1 }
 0x12d   : > { %2172 = vsyncadd (%p2897_p10), [#allocation12], 4294967280 }
 0x12e   : > { %2174 = dma.done.wait (%p2893_p2), %s453_s14, 128  }
 0x12f   : > { %2176 = vsyncadd (%p2893_p2), %s453_s14, 4294967168  ;;  %p2898_p7 = pmov %p2896_p3 }
 0x130   : > { %p2899_p5 = pmov %p2896_p3 }
 0x131   : > { %2178 = dma.done.wait (%p2898_p7), [#allocation6], 16  }
 0x132   : > { %2180 = vsyncadd (%p2899_p5), [#allocation6], 4294967280  ;;  %p2900_p0 = pmov %p2896_p3 }
 0x134   : > { %2182 = dma.done.wait (%p2900_p0), [#allocation9], 16   ;;  %p2901_p6 = pmov %p2900_p0 }
 0x135   : > { %v2224_v0 = vmov 0.0   ;;  %vm2225_vm0 = vmmov 0   ;;  %v565_v1 = vld [vmem:[%s465_s28] sm:$0xff]  ;;  %vm592_vm1 = vcmask 261120   ;;  %v562_v2 = vld [vmem:[%s456_s18] sm:$0xff]  ;;  %s2226_s15 = smov 96  }
 0x136   : > { %2184 = vsyncadd (%p2901_p6), [#allocation9], 4294967280  ;;  %1602 = vmatprep.subr.bf16.mxu0 %v2224_v0  ;;  %1604 = vmatprep.mubr.msk.bf16.mxu0 %vm2225_vm0, %v2224_v0  ;;  %v2671_v3 = vpack.c.bf16 %v565_v1, %v565_v1  ;;  %v563_v4 = vmul.f32 0.17677669, %v562_v2  ;;  %v2685_v7 = vld [vmem:[%s482_s22] ss:$0 sm:$0xff] }
 0x137   : > { %1608 = vmatprep.subr.bf16.mxu1 %v2224_v0  ;;  %1610 = vmatprep.mubr.msk.bf16.mxu1 %vm2225_vm0, %v2224_v0  ;;  %vm639_vm2 = vcmask 64512   ;;  %v567_v14 = vld [vmem:[%s474_s26] sm:$0xff]  ;;  %vm653_vm3 = vcmask 1043456   ;;  %s2227_s29 = smov 64   ;;  %v1812_v44 = vld [vmem:[#allocation10] sm:$0xff]   ;;  %s2228_s0 = smov 32  }
 0x138   : > { %v597_v5 = vsel %vm592_vm1, %v2671_v3, 0  ;;  %v2676_v6 = vpack.c.bf16 %v563_v4, %v563_v4  ;;  %v2691_v15 = vpack.c.bf16 %v567_v14, %v567_v14  ;;  %v1813_v45 = vld [vmem:[#allocation10 + $0x8] sm:$0xff]   ;;  %v1814_v46 = vld [vmem:[#allocation10 + $0x10] sm:$0xff]   ;;  %v1815_v47 = vld [vmem:[#allocation10 + $0x18] sm:$0xff]   ;;  %s2902_s12 = sld [smem:[#allocation27_spill]]  ;;  %s560_s30 = scalar_lea.vmem [#allocation16], %s2624_s1 }
 0x139   : > { %1603 = vmatpush3.bf16.xpose.msra.mxu0 %v597_v5  ;;  %s1312_s16 = sshll.u32 %s560_s30, 4  ;;  %s2903_s24 = sld [smem:[#allocation38_spill]]  ;;  %s2776_s16 = int_to_ptr.vmem [resolvable:$true] %s1312_s16 }
 0x13a   : > { %1620 = vmatprep.subr.bf16.mxu0 %v2224_v0  ;;  %701 = vrot.lane.b32.xlu1 %v2676_v6, %s2226_s15  ;;  %v655_v16 = vsel %vm653_vm3, %v2691_v15, 0  ;;  %s1298_s7 = scalar_lea.sflag [#allocation4], %s2621_s23  ;;  %s2101_s27 = scalar_lea.vmem %s2776_s16, 128 }
 0x13b   : > { %1609 = vmatpush3.bf16.msra.mxu1 %v655_v16  ;;  %p2102_p1 = scmp.ne.s32.totalorder %s2776_s16, %s2101_s27  ;;  %p2904_p11 = scmp.ne.s32.totalorder %s2873_s17, 0 }
 0x13c   : > { %1614 = vmatprep.subr.bf16.mxu1 %v2224_v0  ;;  %s2229_s1 = smov [#allocation16]  }
 0x13d   : > { %p2103_p4 = pnand %p2102_p1, %p2904_p11  ;;  %s2105_s14 = sshll.u32 %s2229_s1, 4  ;;  %s2106_s14 = int_to_ptr.vmem [resolvable:$false] %s2105_s14 }
 0x13e   : > { %s1569_s9 = sshll.u32 %s2902_s12, 7  ;;  %s2107_s18 = scalar_lea.vmem %s2106_s14, 256 }
 0x13f   : > { %s2774_s8 = scalar_lea.hbm %s2903_s24, %s1569_s9  ;;  %p2104_p9 = pneg %p2103_p4 }
 0x140   : > { %1605 = vmatmul.mubr.msk.bf16.vlgmr.msra.gmra.mrb[0].mxu0 %vm592_vm1, %v2676_v6  ;;  %p2108_p13 = scmp.lt.s32.totalorder %s2776_s16, %s2106_s14  ;;  %p2109_p2 = scmp.lt.s32.totalorder %s2107_s18, %s2101_s27 }
 0x141   : > { %1622 = vmatprep.mubr.msk.bf16.mxu0 %vm2225_vm0, %v2224_v0 }
 0x142   : > { %p2110_p8 = por %p2109_p2, %p2108_p13 }
 0x144   : > { %p2111_p12 = pnand %p2110_p8, %p2104_p9 }
 0x1ac   : > { %v702_v24 = vpop.permute.xlu1 %701 }
 0x213   : > { %v633_v8 = vpop.f32.mrb[0].mxu0 }
 0x214   : > { %v634_v9 = vadd.f32 %v2685_v7, %v633_v8  ;;  %v1606_v10 = vpop.f32.mrb[1].mxu0 }
 0x215   : > { %v636_v11 = vpop.f32.mrb[2].mxu0 }
 0x216   : > { %v1607_v12 = vpop.f32.mrb[3].mxu0  ;;  %v640_v13 = vsel %vm639_vm2, %v634_v9, -inf }
 0x217   : > { %641 = vmax.xlane.f32.xlu0 %v640_v13 }
 0x22d   : > { %704 = vrot.lane.b32.xlu0 %v2671_v3, %s2226_s15 }
 0x231   : > { %763 = vrot.lane.b32.xlu0 %v2691_v15, %s2226_s15 }
 0x2a4   : > { %v642_v17 = vpop.xlane.xlu0 %641 }
 0x2a5   : > { %v643_v18 = vsub.f32 %v634_v9, %v642_v17 }
 0x2a7   : > { %v644_v19 = vmul.f32 1.442695, %v643_v18 }
 0x2a8   : > { %v705_v20 = vpop.permute.xlu0 %704 }
 0x2a9   : > { %1820 = vpow2.f32 %v644_v19  ;;  %v710_v22 = vsel %vm592_vm1, %v705_v20, 0 }
 0x2ac   : > { %v764_v35 = vpop.permute.xlu0 %763 }
 0x2ad   : > { %v769_v36 = vsel %vm653_vm3, %v764_v35, 0 }
 0x2ae   : > { %1621 = vmatpush3.bf16.msra.mxu0 %v769_v36 }
 0x2af   : > { %1634 = vmatprep.subr.bf16.mxu0 %v2224_v0 }
 0x2b3   : > { %v1821_v21 = vpop.eup %1820 }
 0x2b4   : > { %v649_v23 = vpack.c.bf16 %v1821_v21, %v1821_v21  ;;  %v646_v43 = vsel %vm639_vm2, %v1821_v21, 0.0 }
 0x2b6   : > { %1611 = vmatmul.mubr.msk.bf16.vlgmr.msra.gmra.mrb[0].mxu1 %vm639_vm2, %v649_v23 }
 0x2b7   : > { %1615 = vmatpush3.bf16.xpose.msra.mxu1 %v710_v22  ;;  %1616 = vmatprep.mubr.msk.bf16.mxu1 %vm2225_vm0, %v2224_v0 }
 0x2b8   : > { %1626 = vmatprep.subr.bf16.mxu1 %v2224_v0 }
 0x2be   : > { %1617 = vmatmul.mubr.msk.bf16.vlgmr.msra.gmra.mrb[4].mxu1 %vm592_vm1, %v702_v24 }
 0x2bf   : > { %1630 = vmatprep.mubr.msk.bf16.mxu1 %vm2225_vm0, %v2224_v0  ;;  %1627 = vmatpush3.bf16.msra.mxu1 %v1814_v46 }
 0x2c0   : > { %1628 = vmatprep.subr.bf16.mxu1 %v2224_v0 }
 0x2c3   : > { %1629 = vmatpush3.bf16.msra.mxu1 %v1815_v47 }
 0x2c4   : > { %1642 = vmatprep.subr.bf16.mxu1 %v2224_v0 }
 0x389   : > { %v691_v25 = vpop.f32.mrb[0].mxu1 }
 0x38a   : > { %v1612_v26 = vpop.f32.mrb[1].mxu1 }
 0x38b   : > { %v694_v27 = vpop.f32.mrb[2].mxu1 }
 0x38c   : > { %v1613_v28 = vpop.f32.mrb[3].mxu1 }
 0x38d   : > { %v1816_v28 = vld [vmem:[#allocation10 + $0x20] sm:$0xff]  }
 0x391   : > { %v746_v29 = vpop.f32.mrb[4].mxu1 }
 0x392   : > { %v747_v30 = vadd.f32 %v2685_v7, %v746_v29  ;;  %v1618_v31 = vpop.f32.mrb[5].mxu1  ;;  %v1817_v29 = vld [vmem:[#allocation10 + $0x28] sm:$0xff]  }
 0x393   : > { %v749_v32 = vpop.f32.mrb[6].mxu1 }
 0x394   : > { %v1619_v33 = vpop.f32.mrb[7].mxu1  ;;  %v752_v34 = vsel %vm639_vm2, %v747_v30, -inf }
 0x395   : > { %753 = vmax.xlane.f32.xlu1 %v752_v34 }
 0x3a6   : > { %926 = vrot.lane.b32.xlu1 %v2671_v3, %s2227_s29 }
 0x3aa   : > { %924 = vrot.lane.b32.xlu1 %v2676_v6, %s2227_s29 }
 0x422   : > { %v754_v37 = vpop.xlane.xlu1 %753 }
 0x423   : > { %v755_v38 = vsub.f32 %v747_v30, %v754_v37 }
 0x425   : > { %v756_v39 = vmul.f32 1.442695, %v755_v38 }
 0x426   : > { %v927_v55 = vpop.permute.xlu1 %926 }
 0x427   : > { %1822 = vpow2.f32 %v756_v39  ;;  %v932_v60 = vsel %vm592_vm1, %v927_v55, 0 }
 0x42a   : > { %v925_v62 = vpop.permute.xlu1 %924 }
 0x431   : > { %v1823_v40 = vpop.eup %1822 }
 0x432   : > { %v758_v41 = vsel %vm639_vm2, %v1823_v40, 0.0  ;;  %v761_v42 = vpack.c.bf16 %v1823_v40, %v1823_v40 }
 0x433   : > { %759 = vadd.xlane.f32.xlu0 %v758_v41 }
 0x434   : > { %1623 = vmatmul.mubr.msk.bf16.vlgmr.msra.gmra.mrb[4].mxu0 %vm639_vm2, %v761_v42 }
 0x435   : > { %1638 = vmatprep.mubr.msk.bf16.mxu0 %vm2225_vm0, %v2224_v0  ;;  %1635 = vmatpush3.bf16.msra.mxu0 %v1812_v44 }
 0x436   : > { %1636 = vmatprep.subr.bf16.mxu0 %v2224_v0 }
 0x437   : > { %647 = vadd.xlane.f32.xlu0 %v646_v43 }
 0x439   : > { %1637 = vmatpush3.bf16.msra.mxu0 %v1813_v45 }
 0x43a   : > { %1648 = vmatprep.subr.bf16.mxu0 %v2224_v0 }
 0x44d   : > { %984 = vrot.lane.b32.xlu0 %v2691_v15, %s2227_s29 }
 0x451   : > { %1093 = vrot.lane.b32.xlu0 %v2671_v3, %s2228_s0 }
 0x455   : > { %1091 = vrot.lane.b32.xlu0 %v2676_v6, %s2228_s0 }
 0x4c0   : > { %v760_v48 = vpop.xlane.xlu0 %759 }
 0x4c4   : > { %v648_v49 = vpop.xlane.xlu0 %647 }
 0x4c5   : > { %1824 = vrcp.f32 %v648_v49 }
 0x4c6   : > { %1826 = vrcp.f32 %v760_v48 }
 0x4c8   : > { %v985_v6 = vpop.permute.xlu0 %984 }
 0x4c9   : > { %v990_v18 = vsel %vm653_vm3, %v985_v6, 0 }
 0x4cc   : > { %v1094_v22 = vpop.permute.xlu0 %1093 }
 0x4cd   : > { %v1099_v24 = vsel %vm592_vm1, %v1094_v22, 0  ;;  %v1567_v22 = vld [vmem:[#allocation15] ss:$0 sm:$0xff] }
 0x4cf   : > { %v1825_v50 = vpop.eup %1824 }
 0x4d0   : > { %v698_v51 = vmul.f32 %v1825_v50, %v691_v25  ;;  %v1827_v53 = vpop.eup %1826  ;;  %v1092_v27 = vpop.permute.xlu0 %1091 }
 0x4d2   : > { %v699_v52 = vpack.c.bf16 %v698_v51, %v698_v51  ;;  %v1818_v51 = vld [vmem:[#allocation10 + $0x30] sm:$0xff]  }
 0x4d4   : > { %1639 = vmatmul.mubr.msk.bf16.vlgmr.msra.gmra.mrb[8].mxu0 %vm592_vm1, %v699_v52 }
 0x4d5   : > { %1650 = vmatprep.mubr.msk.bf16.mxu0 %vm2225_vm0, %v2224_v0  ;;  %1649 = vmatpush3.bf16.msra.mxu0 %v990_v18 }
 0x4d6   : > { %1662 = vmatprep.subr.bf16.mxu0 %v2224_v0 }
 0x507   : > { %v805_v54 = vpop.f32.mrb[4].mxu0 }
 0x508   : > { %v812_v56 = vmul.f32 %v1827_v53, %v805_v54  ;;  %v1624_v57 = vpop.f32.mrb[5].mxu0 }
 0x509   : > { %v808_v58 = vpop.f32.mrb[6].mxu0 }
 0x50a   : > { %v813_v59 = vpack.c.bf16 %v812_v56, %v812_v56  ;;  %v1625_v61 = vpop.f32.mrb[7].mxu0  ;;  %v1819_v56 = vld [vmem:[#allocation10 + $0x38] sm:$0xff]  }
 0x50c   : > { %1631 = vmatmul.mubr.msk.bf16.vlgmr.msra.gmra.mrb[8].mxu1 %vm592_vm1, %v813_v59 }
 0x50d   : > { %1643 = vmatpush3.bf16.xpose.msra.mxu1 %v932_v60  ;;  %1644 = vmatprep.mubr.msk.bf16.mxu1 %vm2225_vm0, %v2224_v0 }
 0x50e   : > { %1654 = vmatprep.subr.bf16.mxu1 %v2224_v0 }
 0x514   : > { %1645 = vmatmul.mubr.msk.bf16.vlgmr.msra.gmra.mrb[12].mxu1 %vm592_vm1, %v925_v62 }
 0x515   : > { %1658 = vmatprep.mubr.msk.bf16.mxu1 %vm2225_vm0, %v2224_v0  ;;  %1655 = vmatpush3.bf16.msra.mxu1 %v1816_v28 }
 0x516   : > { %1656 = vmatprep.subr.bf16.mxu1 %v2224_v0 }
 0x519   : > { %1657 = vmatpush3.bf16.msra.mxu1 %v1817_v29 }
 0x51a   : > { %1668 = vmatprep.subr.bf16.mxu1 %v2224_v0 }
 0x5a7   : > { %v918_v63 = vpop.f32.mrb[8].mxu0 }
 0x5a8   : > { %v1640_v1 = vpop.f32.mrb[9].mxu0 }
 0x5a9   : > { %v921_v2 = vpop.f32.mrb[10].mxu0 }
 0x5aa   : > { %v1641_v4 = vpop.f32.mrb[11].mxu0  ;;  %v1565_v2 = vld [vmem:[#allocation11] ss:$0 sm:$0xff] }
 0x5df   : > { %v863_v5 = vpop.f32.mrb[8].mxu1 }
 0x5e0   : > { %v2737_v8 = vadd.f32 %v918_v63, %v863_v5  ;;  %v1632_v9 = vpop.f32.mrb[9].mxu1 }
 0x5e1   : > { %v866_v10 = vpop.f32.mrb[10].mxu1  ;;  %v1266_v9 = vld [vmem:[%s499_s21] sm:$0xff] }
 0x5e2   : > { %v1633_v11 = vpop.f32.mrb[11].mxu1 }
 0x5e7   : > { %v968_v12 = vpop.f32.mrb[12].mxu1 }
 0x5e8   : > { %v969_v13 = vadd.f32 %v2685_v7, %v968_v12  ;;  %v1646_v14 = vpop.f32.mrb[13].mxu1 }
 0x5e9   : > { %v971_v16 = vpop.f32.mrb[14].mxu1 }
 0x5ea   : > { %v1647_v17 = vpop.f32.mrb[15].mxu1  ;;  %v974_v3 = vsel %vm639_vm2, %v969_v13, -inf }
 0x5eb   : > { %975 = vmax.xlane.f32.xlu1 %v974_v3 }
 0x678   : > { %v976_v19 = vpop.xlane.xlu1 %975 }
 0x679   : > { %v977_v20 = vsub.f32 %v969_v13, %v976_v19 }
 0x67b   : > { %v978_v21 = vmul.f32 1.442695, %v977_v20  ;;  %v1566_v20 = vld [vmem:[#allocation14] ss:$0 sm:$0xff] }
 0x67d   : > { %1828 = vpow2.f32 %v978_v21 }
 0x687   : > { %v1829_v23 = vpop.eup %1828 }
 0x688   : > { %v980_v25 = vsel %vm639_vm2, %v1829_v23, 0.0  ;;  %v983_v26 = vpack.c.bf16 %v1829_v23, %v1829_v23 }
 0x689   : > { %981 = vadd.xlane.f32.xlu0 %v980_v25 }
 0x68a   : > { %1651 = vmatmul.mubr.msk.bf16.vlgmr.msra.gmra.mrb[12].mxu0 %vm639_vm2, %v983_v26 }
 0x68b   : > { %1663 = vmatpush3.bf16.xpose.msra.mxu0 %v1099_v24  ;;  %1664 = vmatprep.mubr.msk.bf16.mxu0 %vm2225_vm0, %v2224_v0 }
 0x68c   : > { %1674 = vmatprep.subr.bf16.mxu0 %v2224_v0 }
 0x692   : > { %1665 = vmatmul.mubr.msk.bf16.vlgmr.msra.gmra.mrb[16].mxu0 %vm592_vm1, %v1092_v27 }
 0x693   : > { %1678 = vmatprep.mubr.msk.bf16.mxu0 %vm2225_vm0, %v2224_v0  ;;  %1675 = vmatpush3.bf16.msra.mxu0 %v1818_v51 }
 0x694   : > { %1676 = vmatprep.subr.bf16.mxu0 %v2224_v0 }
 0x697   : > { %1677 = vmatpush3.bf16.msra.mxu0 %v1819_v56 }
 0x716   : > { %v982_v30 = vpop.xlane.xlu0 %981 }
 0x717   : > { %1830 = vrcp.f32 %v982_v30 }
 0x721   : > { %v1831_v31 = vpop.eup %1830 }
 0x75d   : > { %v1026_v32 = vpop.f32.mrb[12].mxu0 }
 0x75e   : > { %v1033_v33 = vmul.f32 %v1831_v31, %v1026_v32  ;;  %v1652_v34 = vpop.f32.mrb[13].mxu0 }
 0x75f   : > { %v1029_v35 = vpop.f32.mrb[14].mxu0 }
 0x760   : > { %v1034_v36 = vpack.c.bf16 %v1033_v33, %v1033_v33  ;;  %v1653_v37 = vpop.f32.mrb[15].mxu0 }
 0x762   : > { %1659 = vmatmul.mubr.msk.bf16.vlgmr.msra.gmra.mrb[16].mxu1 %vm592_vm1, %v1034_v36 }
 0x763   : > { %1670 = vmatprep.mubr.msk.bf16.mxu1 %vm2225_vm0, %v2224_v0 }
 0x765   : > { %v1135_v38 = vpop.f32.mrb[16].mxu0 }
 0x766   : > { %v1136_v39 = vadd.f32 %v2685_v7, %v1135_v38  ;;  %v1666_v40 = vpop.f32.mrb[17].mxu0 }
 0x767   : > { %v1138_v41 = vpop.f32.mrb[18].mxu0 }
 0x768   : > { %v1667_v42 = vpop.f32.mrb[19].mxu0  ;;  %v1141_v43 = vsel %vm639_vm2, %v1136_v39, -inf }
 0x769   : > { %1142 = vmax.xlane.f32.xlu1 %v1141_v43 }
 0x77a   : > { %1151 = vrot.lane.b32.xlu1 %v2691_v15, %s2228_s0 }
 0x7f6   : > { %v1143_v44 = vpop.xlane.xlu1 %1142 }
 0x7f7   : > { %v1144_v45 = vsub.f32 %v1136_v39, %v1143_v44 }
 0x7f9   : > { %v1145_v46 = vmul.f32 1.442695, %v1144_v45 }
 0x7fa   : > { %v1152_v47 = vpop.permute.xlu1 %1151 }
 0x7fb   : > { %1832 = vpow2.f32 %v1145_v46  ;;  %v1157_v48 = vsel %vm653_vm3, %v1152_v47, 0 }
 0x7fc   : > { %1669 = vmatpush3.bf16.msra.mxu1 %v1157_v48 }
 0x805   : > { %v1833_v49 = vpop.eup %1832 }
 0x806   : > { %v1147_v7 = vsel %vm639_vm2, %v1833_v49, 0.0  ;;  %v1150_v50 = vpack.c.bf16 %v1833_v49, %v1833_v49 }
 0x807   : > { %1148 = vadd.xlane.f32.xlu1 %v1147_v7 }
 0x808   : > { %1671 = vmatmul.mubr.msk.bf16.vlgmr.msra.gmra.mrb[20].mxu1 %vm639_vm2, %v1150_v50 }
 0x835   : > { %v1084_v15 = vpop.f32.mrb[16].mxu1 }
 0x836   : > { %v1090_v52 = vadd.f32 %v1084_v15, %v2737_v8  ;;  %v1660_v53 = vpop.f32.mrb[17].mxu1 }
 0x837   : > { %v1087_v54 = vpop.f32.mrb[18].mxu1 }
 0x838   : > { %v1661_v55 = vpop.f32.mrb[19].mxu1 }
 0x894   : > { %v1149_v57 = vpop.xlane.xlu1 %1148 }
 0x895   : > { %1834 = vrcp.f32 %v1149_v57 }
 0x89f   : > { %v1835_v58 = vpop.eup %1834 }
 0x8db   : > { %v1193_v59 = vpop.f32.mrb[20].mxu1 }
 0x8dc   : > { %v1200_v60 = vmul.f32 %v1835_v58, %v1193_v59  ;;  %v1672_v61 = vpop.f32.mrb[21].mxu1 }
 0x8dd   : > { %v1196_v62 = vpop.f32.mrb[22].mxu1 }
 0x8de   : > { %v1201_v63 = vpack.c.bf16 %v1200_v60, %v1200_v60  ;;  %v1673_v1 = vpop.f32.mrb[23].mxu1 }
 0x8e0   : > { %1679 = vmatmul.mubr.msk.bf16.vlgmr.msra.gmra.mrb[20].mxu0 %vm592_vm1, %v1201_v63 }
 0x9b3   : > { %v1251_v0 = vpop.f32.mrb[20].mxu0 }
 0x9b4   : > { %v1257_v4 = vadd.f32 %v1251_v0, %v1090_v52  ;;  %v1680_v5 = vpop.f32.mrb[21].mxu0 }
 0x9b5   : > { %v1254_v8 = vpop.f32.mrb[22].mxu0 }
 0x9b6   : > { %v1265_v10 = vadd.f32 %v1565_v2, %v1257_v4  ;;  %v1681_v11 = vpop.f32.mrb[23].mxu0 }
 0x9b8   : > { %v1267_v12 = vadd.f32 %v1266_v9, %v1265_v10 }
 0x9ba   : > { %1268 = vadd.xlane.f32.xlu0 %v1267_v12 }
 0xa47   : > { %v1269_v13 = vpop.xlane.xlu0 %1268 }
 0xa48   : > { %v1271_v14 = vmul.f32 0.0078125, %v1269_v13 }
 0xa4a   : > { %v1272_v16 = vsub.f32 %v1267_v12, %v1271_v14 }
 0xa4c   : > { %v1273_v17 = vmul.f32 %v1272_v16, %v1272_v16 }
 0xa4e   : > { %1274 = vadd.xlane.f32.xlu0 %v1273_v17 }
 0xadb   : > { %v1275_v3 = vpop.xlane.xlu0 %1274 }
 0xadc   : > { %v1276_v6 = vmul.f32 0.0078125, %v1275_v3 }
 0xade   : > { %v1277_v18 = vadd.f32 1e-05, %v1276_v6 }
 0xae0   : > { %1836 = vrsqrt.f32 %v1277_v18 }
 0xaea   : > { %v1837_v19 = vpop.eup %1836 }
 0xaeb   : > { %v1279_v21 = vmul.f32 %v1837_v19, %v1272_v16 }
 0xaed   : > { %v1287_v23 = vmul.f32 %v1566_v20, %v1279_v21 }
 0xaef   : > { %v1295_v24 = vadd.f32 %v1567_v22, %v1287_v23 }
 0xaf1   : > { %1296 = vst [vmem:[%s560_s30] sm:$0xff] %v1295_v24 }
 0xaf2   : > { %2114 = shalt.err (!%p2111_p12)
}
 0xaf3   : > { %s2115_s23 = scalar_lea.hbm %s2774_s8, 128  ;;  %s2119_s26 = scalar_lea.hbm %s2903_s24, 256 }
 0xaf4   : > { %p2116_p3 = scmp.ne.s32.totalorder %s2774_s8, %s2115_s23  ;;  %p2120_p5 = scmp.lt.u32.totalorder %s2774_s8, %s2903_s24 }
 0xaf5   : > { %p2121_p0 = scmp.lt.u32.totalorder %s2119_s26, %s2115_s23  ;;  %p2123_p1 = scmp.lt.u32.totalorder %s2115_s23, %s2774_s8 }
 0xaf6   : > { %p2117_p10 = pnand %p2116_p3, %p2904_p11 }
 0xaf7   : > { %p2122_p6 = por %p2121_p0, %p2120_p5 }
 0xaf8   : > { %p2118_p7 = pneg %p2117_p10 }
 0xaf9   : > { %p2124_p4 = por %p2123_p1, %p2122_p6 }
 0xafb   : > { %p2125_p9 = pnand %p2124_p4, %p2118_p7 }
 0xafd   : > { %2128 = shalt.err (!%p2125_p9)
}
 0xafe   : > { %1708 = dma.vmem_to_hbm [thread:$0]  (%p2904_p11), %s2776_s16, 128, %s2774_s8, %s1298_s7  }
 0xaff PF: > { %s2905_s21 = sld [smem:[#allocation26_spill]]  ;;  %s2906_s15 = sld [smem:[#allocation30_spill]] }
 0xb00   : > { %s2907_s29 = sld [smem:[#allocation28_spill]] }
 0xb05   : > { %s1324_s0 = sand.u32 1, %s2905_s21   ;;  %p2908_p13 = scmp.ne.s32.totalorder %s2906_s15, 0 }
 0xb06   : > { %p2909_p2 = scmp.ge.s32.totalorder %s2907_s29, 2  ;;  %s1325_s12 = scalar_lea.sflag [#allocation4], %s1324_s0 }
 0xb08   : > { %p1740_p8 = pnand %p2909_p2, %p2908_p13 }
 0xb0a   : > { %2186 = dma.done.wait (!%p1740_p8), %s1325_s12, 128  }
 0xb0b   : > { %2188 = vsyncadd (!%p1740_p8), %s1325_s12, 4294967168  ;;  %s32_s14 = sadd.s32 1, %s2907_s29   ;;  %s2910_s17 = sld [smem:[#allocation32_spill]] }
 0xb0c   : > { %p29_p12 = scmp.ge.s32.totalorder %s32_s14, 4   ;;  %s2911_s9 = sld [smem:[#allocation31_spill]] }
 0xb0d   : > { %s2912_s30 = smov %s2195_s10  ;;  %s2913_s10 = smov %s2199_s11 }
 0xb0e   : > { %s2915_s12 = smov %s2207_s13  ;;  %31 = sbr.rel (!%p29_p12) target bundleno = 18 (0x12), region = 165 }
 0xb11   : > { %s2914_s11 = smov %s2910_s17 }
 0xb12   : > { %s2916_s13 = smov %s2911_s9 }
 0xb15   :  { %1330 = vsyncpa [#allocation3], 1 }
 0xb16   :  { %1332 = vsyncpa [#allocation3 + $0x1], 1 }
 0xb17   :  { %1333 = vsyncpa [#allocation6], 1 }
 0xb18   :  { %1335 = vsyncpa [#allocation6 + $0x1], 1 }
 0xb19   :  { %1336 = vsyncpa [#allocation9], 1 }
 0xb1a   :  { %1338 = vsyncpa [#allocation9 + $0x1], 1 }
 0xb1b   :  { %1339 = vsyncpa [#allocation12], 1 }
 0xb1c   :  { %1340 = vsyncpa [#allocation4], 1 }
 0xb1d   :  { %1342 = vsyncpa [#allocation4 + $0x1], 1 }

</bundles_post_ra>
